<compile_context>
chip_gen: v7x
topology: tpu7x:2x2x1
jax: 0.10.0
libtpu: 0.0.40
codegen_flags: <defaults>
</compile_context>

<pallas_src>
import jax
import jax.numpy as jnp
from jax.experimental import pallas as pl
from jax.experimental.pallas import tpu as pltpu

PYRAMIDS = (6, 12, 18, 24)   # dilations of the 4 ASPP stages (applied on D and H)
KSIZE = 3


def _valid_taps(D, H):
    """Static list of conv taps that can touch the output for this volume size."""
    taps = []
    for s, dil in enumerate(PYRAMIDS):
        for kd in range(KSIZE):
            dz = (kd - 1) * dil
            if abs(dz) >= D:        # depth shift larger than the volume: all-zero tap
                continue
            for kh in range(KSIZE):
                dy = (kh - 1) * dil
                if abs(dy) >= H:    # height shift larger than the volume: all-zero tap
                    continue
                for kw in range(KSIZE):
                    dx = kw - 1
                    taps.append((s, kd, kh, kw, dz, dy, dx))
    return taps


def _pack_weights(weights, D, taps, dtype):
    """Per tap: shifted block-diagonal (Cout*D, Cin*D) = kron(w_tap, depth_shift).

    Folding the depth shift into the weight matrix handles the D-axis halo exactly
    (source depths outside [0, D) get zero blocks) without padding the activations.
    Row index = o*D + z, column index = ci*D + z'.
    """
    z = jnp.arange(D)
    mats = []
    for (s, kd, kh, kw, dz, dy, dx) in taps:
        w_tap = weights[s][:, :, kd, kh, kw].astype(jnp.float32)        # (Cout, Cin)
        shift = ((z[:, None] + dz) == z[None, :]).astype(jnp.float32)   # (D, D)
        mats.append(jnp.kron(w_tap, shift))                             # (Cout*D, Cin*D)
    return jnp.stack(mats, axis=0).astype(dtype)


def _make_kernel(D, H, W, Cin, Cout, taps):
    Wp = W + 2
    HWp = H * Wp
    CoutD = Cout * D

    def kernel(x_ref, sbd_ref, b_ref, o_ref):
        # x_ref  : (1, Cin*D, H*Wp + 2)  flattened (H, W+2) lanes + 1 guard lane per end
        # sbd_ref: (T, Cout*D, Cin*D)    shifted block-diagonal tap weights (resident)
        # b_ref  : (Cout*D, 1)           summed stage biases, repeated over depth
        # o_ref  : (1, Cout*D, H*Wp)     accumulated in place (f32)
        o_ref[0] = jnp.broadcast_to(b_ref[...], (CoutD, HWp))
        for t, (s, kd, kh, kw, dz, dy, dx) in enumerate(taps):
            # Valid output rows along H for this tap (static Python ints).
            y0 = max(0, -dy)
            y1 = H - max(0, dy)
            L = (y1 - y0) * Wp
            dst_lo = y0 * Wp
            src_lo = (y0 + dy) * Wp + dx + 1     # +1 accounts for the guard lane
            src = x_ref[0, :, src_lo:src_lo + L]                       # (Cin*D, L)
            o_ref[0, :, dst_lo:dst_lo + L] += jnp.dot(
                sbd_ref[t], src, preferred_element_type=jnp.float32)   # MXU
    return kernel


def aspp_forward(x_ncdhw, weights, biases, *, compute_dtype=jnp.float32):
    """weights: list of 4 arrays (Cout, Cin, 3, 3, 3) [PyTorch Conv3d layout];
       biases : list of 4 arrays (Cout,).  Returns float32 NCDHW output.

       compute_dtype=jnp.bfloat16 halves HBM/VMEM traffic and doubles MXU rate on
       v6e/v7x (accumulation stays float32)."""
    N, Cin, D, H, W = x_ncdhw.shape
    Cout = weights[0].shape[0]
    Wp = W + 2
    HWp = H * Wp
    CinD, CoutD = Cin * D, Cout * D
    taps = _valid_taps(D, H)

    # ---- glue (layout + parameter packing) in plain JAX ---------------------
    x = x_ncdhw.astype(compute_dtype)
    x = jnp.pad(x, ((0, 0), (0, 0), (0, 0), (0, 0), (1, 1)))  # W pad 1 (dilation-1 axis)
    x = x.reshape(N, CinD, HWp)                               # rows = ci*D + z
    x = jnp.pad(x, ((0, 0), (0, 0), (1, 1)))                  # 1 guard lane each end

    sbd = _pack_weights(weights, D, taps, compute_dtype)      # (T, Cout*D, Cin*D)
    b_total = jnp.sum(jnp.stack(biases, axis=0).astype(jnp.float32), axis=0)  # (Cout,)
    b_rows = jnp.repeat(b_total, D).reshape(CoutD, 1)         # row o*D + z -> b[o]

    kernel = _make_kernel(D, H, W, Cin, Cout, taps)
    out2d = pl.pallas_call(
        kernel,
        out_shape=jax.ShapeDtypeStruct((N, CoutD, HWp), jnp.float32),
        grid_spec=pltpu.PrefetchScalarGridSpec(
            num_scalar_prefetch=0,
            grid=(N,),
            in_specs=[
                pl.BlockSpec((1, CinD, HWp + 2), lambda n: (n, 0, 0)),
                pl.BlockSpec(sbd.shape, lambda n: (0, 0, 0)),   # weights stay resident
                pl.BlockSpec((CoutD, 1), lambda n: (0, 0)),
            ],
            out_specs=pl.BlockSpec((1, CoutD, HWp), lambda n: (n, 0, 0)),
        ),
        compiler_params=pltpu.CompilerParams(
            dimension_semantics=("parallel",)),                 # v7x: batch over 2 TCs
    )(x, sbd, b_rows)

    # rows = (cout, d); lanes = (h, w+2)  ->  NCDHW, dropping the W pad columns.
    return out2d.reshape(N, Cout, D, H, Wp)[..., 1:W + 1]


def aspp_reference(x_ncdhw, weights, biases):
    """Pure-JAX reference matching PyTorch Conv3d semantics (cross-correlation)."""
    out = jnp.zeros(
        (x_ncdhw.shape[0], weights[0].shape[0]) + x_ncdhw.shape[2:], jnp.float32)
    for (w, b), d in zip(zip(weights, biases), PYRAMIDS):
        y = jax.lax.conv_general_dilated(
            x_ncdhw.astype(jnp.float32), w.astype(jnp.float32),
            window_strides=(1, 1, 1),
            padding=((d, d), (d, d), (1, 1)),
            rhs_dilation=(d, d, 1),
            dimension_numbers=("NCDHW", "OIDHW", "NCDHW"))
        out = out + y + b.reshape(1, -1, 1, 1, 1)
    return out


if __name__ == "__main__":
    N, Cin, Cout, D, H, W = 2, 4, 4, 8, 16, 16

    key = jax.random.PRNGKey(0)
    kx, k0, k1, k2, k3 = jax.random.split(key, 5)
    x = jax.random.normal(kx, (N, Cin, D, H, W), jnp.float32)
    # nn.init.normal_(weight, mean=0, std=0.01); nn.init.constant_(bias, 0)
    weights = [jax.random.normal(k, (Cout, Cin, KSIZE, KSIZE, KSIZE), jnp.float32) * 0.01
               for k in (k0, k1, k2, k3)]
    biases = [jnp.zeros((Cout,), jnp.float32) for _ in range(len(PYRAMIDS))]

    out = jax.block_until_ready(aspp_forward(x, weights, biases))

    ref = aspp_reference(x, weights, biases)
    assert out.shape == ref.shape == (N, Cout, D, H, W)
    if not jnp.allclose(out, ref, atol=5e-4, rtol=5e-3):
        raise SystemExit(
            "mismatch: max abs diff = %e" % float(jnp.max(jnp.abs(out - ref))))

    print("KERNEL_OK")
</pallas_src>

<mosaic_0001>
module attributes {stable_mosaic.version = 11 : i64} {
  func.func @kernel(%arg0: i32, %arg1: memref<1x32x290xf32, #tpu.memory_space<vmem>>, %arg2: memref<42x32x32xf32, #tpu.memory_space<vmem>>, %arg3: memref<32x1xf32, #tpu.memory_space<vmem>>, %arg4: memref<1x32x288xf32, #tpu.memory_space<vmem>>) attributes {dimension_semantics = [#tpu.dimension_semantics<parallel>], iteration_bounds = array<i64: 2>, scalar_prefetch = 0 : i64, scratch_operands = 0 : i64, tpu.core_type = #tpu.core_type<tc>, window_params = [{transform_indices = @transform_0, window_bounds = array<i64: 1, 32, 290>}, {pipeline_mode = #tpu.pipeline_mode<synchronous>, transform_indices = @transform_1, window_bounds = array<i64: 42, 32, 32>}, {pipeline_mode = #tpu.pipeline_mode<synchronous>, transform_indices = @transform_2, window_bounds = array<i64: 32, 1>}, {transform_indices = @transform_3, window_bounds = array<i64: 1, 32, 288>}]} {
    %c0 = arith.constant 0 : index
    %c0_0 = arith.constant 0 : index
    %0 = vector.load %arg3[%c0, %c0_0] : memref<32x1xf32, #tpu.memory_space<vmem>>, vector<32x1xf32>
    %1 = vector.shape_cast %0 : vector<32x1xf32> to vector<32x1xf32>
    %2 = vector.broadcast %1 : vector<32x1xf32> to vector<32x288xf32>
    %c0_1 = arith.constant 0 : index
    %c0_2 = arith.constant 0 : index
    %c0_3 = arith.constant 0 : index
    %3 = vector.load %arg4[%c0_1, %c0_2, %c0_3] : memref<1x32x288xf32, #tpu.memory_space<vmem>>, vector<1x32x288xf32>
    %4 = vector.shape_cast %3 : vector<1x32x288xf32> to vector<32x288xf32>
    %5 = vector.shape_cast %2 : vector<32x288xf32> to vector<1x32x288xf32>
    tpu.vector_store %arg4[%c0_1, %c0_2, %c0_3], %5 {strides = array<i32>} : memref<1x32x288xf32, #tpu.memory_space<vmem>>, vector<1x32x288xf32>,
    %c0_4 = arith.constant 0 : index
    %c0_5 = arith.constant 0 : index
    %c0_6 = arith.constant 0 : index
    %6 = vector.load %arg1[%c0_4, %c0_5, %c0_6] : memref<1x32x290xf32, #tpu.memory_space<vmem>>, vector<1x32x180xf32>
    %7 = vector.shape_cast %6 : vector<1x32x180xf32> to vector<32x180xf32>
    %c0_7 = arith.constant 0 : index
    %c0_8 = arith.constant 0 : index
    %c108 = arith.constant 108 : index
    %8 = vector.load %arg4[%c0_7, %c0_8, %c108] : memref<1x32x288xf32, #tpu.memory_space<vmem>>, vector<1x32x180xf32>
    %9 = vector.shape_cast %8 : vector<1x32x180xf32> to vector<32x180xf32>
    %c0_9 = arith.constant 0 : index
    %c0_10 = arith.constant 0 : index
    %c0_11 = arith.constant 0 : index
    %10 = vector.load %arg2[%c0_9, %c0_10, %c0_11] : memref<42x32x32xf32, #tpu.memory_space<vmem>>, vector<1x32x32xf32>
    %11 = vector.shape_cast %10 : vector<1x32x32xf32> to vector<32x32xf32>
    %cst = arith.constant dense<0.000000e+00> : vector<32x180xf32>
    %12 = tpu.matmul %11, %7, %cst {dimension_numbers = #tpu.dot_dimension_numbers<[1], [0], [0], [1], [0, 0, 1, 1], [], []>} : vector<32x32xf32>, vector<32x180xf32>, vector<32x180xf32> -> vector<32x180xf32>
    %13 = arith.addf %9, %12 : vector<32x180xf32>
    %c0_12 = arith.constant 0 : index
    %c0_13 = arith.constant 0 : index
    %c108_14 = arith.constant 108 : index
    %14 = vector.load %arg4[%c0_12, %c0_13, %c108_14] : memref<1x32x288xf32, #tpu.memory_space<vmem>>, vector<1x32x180xf32>
    %15 = vector.shape_cast %14 : vector<1x32x180xf32> to vector<32x180xf32>
    %16 = vector.shape_cast %13 : vector<32x180xf32> to vector<1x32x180xf32>
    tpu.vector_store %arg4[%c0_12, %c0_13, %c108_14], %16 {strides = array<i32>} : memref<1x32x288xf32, #tpu.memory_space<vmem>>, vector<1x32x180xf32>,
    %c0_15 = arith.constant 0 : index
    %c0_16 = arith.constant 0 : index
    %c1 = arith.constant 1 : index
    %17 = vector.load %arg1[%c0_15, %c0_16, %c1] : memref<1x32x290xf32, #tpu.memory_space<vmem>>, vector<1x32x180xf32>
    %18 = vector.shape_cast %17 : vector<1x32x180xf32> to vector<32x180xf32>
    %c0_17 = arith.constant 0 : index
    %c0_18 = arith.constant 0 : index
    %c108_19 = arith.constant 108 : index
    %19 = vector.load %arg4[%c0_17, %c0_18, %c108_19] : memref<1x32x288xf32, #tpu.memory_space<vmem>>, vector<1x32x180xf32>
    %20 = vector.shape_cast %19 : vector<1x32x180xf32> to vector<32x180xf32>
    %c1_20 = arith.constant 1 : index
    %c0_21 = arith.constant 0 : index
    %c0_22 = arith.constant 0 : index
    %21 = vector.load %arg2[%c1_20, %c0_21, %c0_22] : memref<42x32x32xf32, #tpu.memory_space<vmem>>, vector<1x32x32xf32>
    %22 = vector.shape_cast %21 : vector<1x32x32xf32> to vector<32x32xf32>
    %cst_23 = arith.constant dense<0.000000e+00> : vector<32x180xf32>
    %23 = tpu.matmul %22, %18, %cst_23 {dimension_numbers = #tpu.dot_dimension_numbers<[1], [0], [0], [1], [0, 0, 1, 1], [], []>} : vector<32x32xf32>, vector<32x180xf32>, vector<32x180xf32> -> vector<32x180xf32>
    %24 = arith.addf %20, %23 : vector<32x180xf32>
    %c0_24 = arith.constant 0 : index
    %c0_25 = arith.constant 0 : index
    %c108_26 = arith.constant 108 : index
    %25 = vector.load %arg4[%c0_24, %c0_25, %c108_26] : memref<1x32x288xf32, #tpu.memory_space<vmem>>, vector<1x32x180xf32>
    %26 = vector.shape_cast %25 : vector<1x32x180xf32> to vector<32x180xf32>
    %27 = vector.shape_cast %24 : vector<32x180xf32> to vector<1x32x180xf32>
    tpu.vector_store %arg4[%c0_24, %c0_25, %c108_26], %27 {strides = array<i32>} : memref<1x32x288xf32, #tpu.memory_space<vmem>>, vector<1x32x180xf32>,
    %c0_27 = arith.constant 0 : index
    %c0_28 = arith.constant 0 : index
    %c2 = arith.constant 2 : index
    %28 = vector.load %arg1[%c0_27, %c0_28, %c2] : memref<1x32x290xf32, #tpu.memory_space<vmem>>, vector<1x32x180xf32>
    %29 = vector.shape_cast %28 : vector<1x32x180xf32> to vector<32x180xf32>
    %c0_29 = arith.constant 0 : index
    %c0_30 = arith.constant 0 : index
    %c108_31 = arith.constant 108 : index
    %30 = vector.load %arg4[%c0_29, %c0_30, %c108_31] : memref<1x32x288xf32, #tpu.memory_space<vmem>>, vector<1x32x180xf32>
    %31 = vector.shape_cast %30 : vector<1x32x180xf32> to vector<32x180xf32>
    %c2_32 = arith.constant 2 : index
    %c0_33 = arith.constant 0 : index
    %c0_34 = arith.constant 0 : index
    %32 = vector.load %arg2[%c2_32, %c0_33, %c0_34] : memref<42x32x32xf32, #tpu.memory_space<vmem>>, vector<1x32x32xf32>
    %33 = vector.shape_cast %32 : vector<1x32x32xf32> to vector<32x32xf32>
    %cst_35 = arith.constant dense<0.000000e+00> : vector<32x180xf32>
    %34 = tpu.matmul %33, %29, %cst_35 {dimension_numbers = #tpu.dot_dimension_numbers<[1], [0], [0], [1], [0, 0, 1, 1], [], []>} : vector<32x32xf32>, vector<32x180xf32>, vector<32x180xf32> -> vector<32x180xf32>
    %35 = arith.addf %31, %34 : vector<32x180xf32>
    %c0_36 = arith.constant 0 : index
    %c0_37 = arith.constant 0 : index
    %c108_38 = arith.constant 108 : index
    %36 = vector.load %arg4[%c0_36, %c0_37, %c108_38] : memref<1x32x288xf32, #tpu.memory_space<vmem>>, vector<1x32x180xf32>
    %37 = vector.shape_cast %36 : vector<1x32x180xf32> to vector<32x180xf32>
    %38 = vector.shape_cast %35 : vector<32x180xf32> to vector<1x32x180xf32>
    tpu.vector_store %arg4[%c0_36, %c0_37, %c108_38], %38 {strides = array<i32>} : memref<1x32x288xf32, #tpu.memory_space<vmem>>, vector<1x32x180xf32>,
    %c0_39 = arith.constant 0 : index
    %c0_40 = arith.constant 0 : index
    %c0_41 = arith.constant 0 : index
    %39 = vector.load %arg1[%c0_39, %c0_40, %c0_41] : memref<1x32x290xf32, #tpu.memory_space<vmem>>, vector<1x32x288xf32>
    %40 = vector.shape_cast %39 : vector<1x32x288xf32> to vector<32x288xf32>
    %c0_42 = arith.constant 0 : index
    %c0_43 = arith.constant 0 : index
    %c0_44 = arith.constant 0 : index
    %41 = vector.load %arg4[%c0_42, %c0_43, %c0_44] : memref<1x32x288xf32, #tpu.memory_space<vmem>>, vector<1x32x288xf32>
    %42 = vector.shape_cast %41 : vector<1x32x288xf32> to vector<32x288xf32>
    %c3 = arith.constant 3 : index
    %c0_45 = arith.constant 0 : index
    %c0_46 = arith.constant 0 : index
    %43 = vector.load %arg2[%c3, %c0_45, %c0_46] : memref<42x32x32xf32, #tpu.memory_space<vmem>>, vector<1x32x32xf32>
    %44 = vector.shape_cast %43 : vector<1x32x32xf32> to vector<32x32xf32>
    %cst_47 = arith.constant dense<0.000000e+00> : vector<32x288xf32>
    %45 = tpu.matmul %44, %40, %cst_47 {dimension_numbers = #tpu.dot_dimension_numbers<[1], [0], [0], [1], [0, 0, 1, 1], [], []>} : vector<32x32xf32>, vector<32x288xf32>, vector<32x288xf32> -> vector<32x288xf32>
    %46 = arith.addf %42, %45 : vector<32x288xf32>
    %c0_48 = arith.constant 0 : index
    %c0_49 = arith.constant 0 : index
    %c0_50 = arith.constant 0 : index
    %47 = vector.load %arg4[%c0_48, %c0_49, %c0_50] : memref<1x32x288xf32, #tpu.memory_space<vmem>>, vector<1x32x288xf32>
    %48 = vector.shape_cast %47 : vector<1x32x288xf32> to vector<32x288xf32>
    %49 = vector.shape_cast %46 : vector<32x288xf32> to vector<1x32x288xf32>
    tpu.vector_store %arg4[%c0_48, %c0_49, %c0_50], %49 {strides = array<i32>} : memref<1x32x288xf32, #tpu.memory_space<vmem>>, vector<1x32x288xf32>,
    %c0_51 = arith.constant 0 : index
    %c0_52 = arith.constant 0 : index
    %c1_53 = arith.constant 1 : index
    %50 = vector.load %arg1[%c0_51, %c0_52, %c1_53] : memref<1x32x290xf32, #tpu.memory_space<vmem>>, vector<1x32x288xf32>
    %51 = vector.shape_cast %50 : vector<1x32x288xf32> to vector<32x288xf32>
    %c0_54 = arith.constant 0 : index
    %c0_55 = arith.constant 0 : index
    %c0_56 = arith.constant 0 : index
    %52 = vector.load %arg4[%c0_54, %c0_55, %c0_56] : memref<1x32x288xf32, #tpu.memory_space<vmem>>, vector<1x32x288xf32>
    %53 = vector.shape_cast %52 : vector<1x32x288xf32> to vector<32x288xf32>
    %c4 = arith.constant 4 : index
    %c0_57 = arith.constant 0 : index
    %c0_58 = arith.constant 0 : index
    %54 = vector.load %arg2[%c4, %c0_57, %c0_58] : memref<42x32x32xf32, #tpu.memory_space<vmem>>, vector<1x32x32xf32>
    %55 = vector.shape_cast %54 : vector<1x32x32xf32> to vector<32x32xf32>
    %cst_59 = arith.constant dense<0.000000e+00> : vector<32x288xf32>
    %56 = tpu.matmul %55, %51, %cst_59 {dimension_numbers = #tpu.dot_dimension_numbers<[1], [0], [0], [1], [0, 0, 1, 1], [], []>} : vector<32x32xf32>, vector<32x288xf32>, vector<32x288xf32> -> vector<32x288xf32>
    %57 = arith.addf %53, %56 : vector<32x288xf32>
    %c0_60 = arith.constant 0 : index
    %c0_61 = arith.constant 0 : index
    %c0_62 = arith.constant 0 : index
    %58 = vector.load %arg4[%c0_60, %c0_61, %c0_62] : memref<1x32x288xf32, #tpu.memory_space<vmem>>, vector<1x32x288xf32>
    %59 = vector.shape_cast %58 : vector<1x32x288xf32> to vector<32x288xf32>
    %60 = vector.shape_cast %57 : vector<32x288xf32> to vector<1x32x288xf32>
    tpu.vector_store %arg4[%c0_60, %c0_61, %c0_62], %60 {strides = array<i32>} : memref<1x32x288xf32, #tpu.memory_space<vmem>>, vector<1x32x288xf32>,
    %c0_63 = arith.constant 0 : index
    %c0_64 = arith.constant 0 : index
    %c2_65 = arith.constant 2 : index
    %61 = vector.load %arg1[%c0_63, %c0_64, %c2_65] : memref<1x32x290xf32, #tpu.memory_space<vmem>>, vector<1x32x288xf32>
    %62 = vector.shape_cast %61 : vector<1x32x288xf32> to vector<32x288xf32>
    %c0_66 = arith.constant 0 : index
    %c0_67 = arith.constant 0 : index
    %c0_68 = arith.constant 0 : index
    %63 = vector.load %arg4[%c0_66, %c0_67, %c0_68] : memref<1x32x288xf32, #tpu.memory_space<vmem>>, vector<1x32x288xf32>
    %64 = vector.shape_cast %63 : vector<1x32x288xf32> to vector<32x288xf32>
    %c5 = arith.constant 5 : index
    %c0_69 = arith.constant 0 : index
    %c0_70 = arith.constant 0 : index
    %65 = vector.load %arg2[%c5, %c0_69, %c0_70] : memref<42x32x32xf32, #tpu.memory_space<vmem>>, vector<1x32x32xf32>
    %66 = vector.shape_cast %65 : vector<1x32x32xf32> to vector<32x32xf32>
    %cst_71 = arith.constant dense<0.000000e+00> : vector<32x288xf32>
    %67 = tpu.matmul %66, %62, %cst_71 {dimension_numbers = #tpu.dot_dimension_numbers<[1], [0], [0], [1], [0, 0, 1, 1], [], []>} : vector<32x32xf32>, vector<32x288xf32>, vector<32x288xf32> -> vector<32x288xf32>
    %68 = arith.addf %64, %67 : vector<32x288xf32>
    %c0_72 = arith.constant 0 : index
    %c0_73 = arith.constant 0 : index
    %c0_74 = arith.constant 0 : index
    %69 = vector.load %arg4[%c0_72, %c0_73, %c0_74] : memref<1x32x288xf32, #tpu.memory_space<vmem>>, vector<1x32x288xf32>
    %70 = vector.shape_cast %69 : vector<1x32x288xf32> to vector<32x288xf32>
    %71 = vector.shape_cast %68 : vector<32x288xf32> to vector<1x32x288xf32>
    tpu.vector_store %arg4[%c0_72, %c0_73, %c0_74], %71 {strides = array<i32>} : memref<1x32x288xf32, #tpu.memory_space<vmem>>, vector<1x32x288xf32>,
    %c0_75 = arith.constant 0 : index
    %c0_76 = arith.constant 0 : index
    %c108_77 = arith.constant 108 : index
    %72 = vector.load %arg1[%c0_75, %c0_76, %c108_77] : memref<1x32x290xf32, #tpu.memory_space<vmem>>, vector<1x32x180xf32>
    %73 = vector.shape_cast %72 : vector<1x32x180xf32> to vector<32x180xf32>
    %c0_78 = arith.constant 0 : index
    %c0_79 = arith.constant 0 : index
    %c0_80 = arith.constant 0 : index
    %74 = vector.load %arg4[%c0_78, %c0_79, %c0_80] : memref<1x32x288xf32, #tpu.memory_space<vmem>>, vector<1x32x180xf32>
    %75 = vector.shape_cast %74 : vector<1x32x180xf32> to vector<32x180xf32>
    %c6 = arith.constant 6 : index
    %c0_81 = arith.constant 0 : index
    %c0_82 = arith.constant 0 : index
    %76 = vector.load %arg2[%c6, %c0_81, %c0_82] : memref<42x32x32xf32, #tpu.memory_space<vmem>>, vector<1x32x32xf32>
    %77 = vector.shape_cast %76 : vector<1x32x32xf32> to vector<32x32xf32>
    %cst_83 = arith.constant dense<0.000000e+00> : vector<32x180xf32>
    %78 = tpu.matmul %77, %73, %cst_83 {dimension_numbers = #tpu.dot_dimension_numbers<[1], [0], [0], [1], [0, 0, 1, 1], [], []>} : vector<32x32xf32>, vector<32x180xf32>, vector<32x180xf32> -> vector<32x180xf32>
    %79 = arith.addf %75, %78 : vector<32x180xf32>
    %c0_84 = arith.constant 0 : index
    %c0_85 = arith.constant 0 : index
    %c0_86 = arith.constant 0 : index
    %80 = vector.load %arg4[%c0_84, %c0_85, %c0_86] : memref<1x32x288xf32, #tpu.memory_space<vmem>>, vector<1x32x180xf32>
    %81 = vector.shape_cast %80 : vector<1x32x180xf32> to vector<32x180xf32>
    %82 = vector.shape_cast %79 : vector<32x180xf32> to vector<1x32x180xf32>
    tpu.vector_store %arg4[%c0_84, %c0_85, %c0_86], %82 {strides = array<i32>} : memref<1x32x288xf32, #tpu.memory_space<vmem>>, vector<1x32x180xf32>,
    %c0_87 = arith.constant 0 : index
    %c0_88 = arith.constant 0 : index
    %c109 = arith.constant 109 : index
    %83 = vector.load %arg1[%c0_87, %c0_88, %c109] : memref<1x32x290xf32, #tpu.memory_space<vmem>>, vector<1x32x180xf32>
    %84 = vector.shape_cast %83 : vector<1x32x180xf32> to vector<32x180xf32>
    %c0_89 = arith.constant 0 : index
    %c0_90 = arith.constant 0 : index
    %c0_91 = arith.constant 0 : index
    %85 = vector.load %arg4[%c0_89, %c0_90, %c0_91] : memref<1x32x288xf32, #tpu.memory_space<vmem>>, vector<1x32x180xf32>
    %86 = vector.shape_cast %85 : vector<1x32x180xf32> to vector<32x180xf32>
    %c7 = arith.constant 7 : index
    %c0_92 = arith.constant 0 : index
    %c0_93 = arith.constant 0 : index
    %87 = vector.load %arg2[%c7, %c0_92, %c0_93] : memref<42x32x32xf32, #tpu.memory_space<vmem>>, vector<1x32x32xf32>
    %88 = vector.shape_cast %87 : vector<1x32x32xf32> to vector<32x32xf32>
    %cst_94 = arith.constant dense<0.000000e+00> : vector<32x180xf32>
    %89 = tpu.matmul %88, %84, %cst_94 {dimension_numbers = #tpu.dot_dimension_numbers<[1], [0], [0], [1], [0, 0, 1, 1], [], []>} : vector<32x32xf32>, vector<32x180xf32>, vector<32x180xf32> -> vector<32x180xf32>
    %90 = arith.addf %86, %89 : vector<32x180xf32>
    %c0_95 = arith.constant 0 : index
    %c0_96 = arith.constant 0 : index
    %c0_97 = arith.constant 0 : index
    %91 = vector.load %arg4[%c0_95, %c0_96, %c0_97] : memref<1x32x288xf32, #tpu.memory_space<vmem>>, vector<1x32x180xf32>
    %92 = vector.shape_cast %91 : vector<1x32x180xf32> to vector<32x180xf32>
    %93 = vector.shape_cast %90 : vector<32x180xf32> to vector<1x32x180xf32>
    tpu.vector_store %arg4[%c0_95, %c0_96, %c0_97], %93 {strides = array<i32>} : memref<1x32x288xf32, #tpu.memory_space<vmem>>, vector<1x32x180xf32>,
    %c0_98 = arith.constant 0 : index
    %c0_99 = arith.constant 0 : index
    %c110 = arith.constant 110 : index
    %94 = vector.load %arg1[%c0_98, %c0_99, %c110] : memref<1x32x290xf32, #tpu.memory_space<vmem>>, vector<1x32x180xf32>
    %95 = vector.shape_cast %94 : vector<1x32x180xf32> to vector<32x180xf32>
    %c0_100 = arith.constant 0 : index
    %c0_101 = arith.constant 0 : index
    %c0_102 = arith.constant 0 : index
    %96 = vector.load %arg4[%c0_100, %c0_101, %c0_102] : memref<1x32x288xf32, #tpu.memory_space<vmem>>, vector<1x32x180xf32>
    %97 = vector.shape_cast %96 : vector<1x32x180xf32> to vector<32x180xf32>
    %c8 = arith.constant 8 : index
    %c0_103 = arith.constant 0 : index
    %c0_104 = arith.constant 0 : index
    %98 = vector.load %arg2[%c8, %c0_103, %c0_104] : memref<42x32x32xf32, #tpu.memory_space<vmem>>, vector<1x32x32xf32>
    %99 = vector.shape_cast %98 : vector<1x32x32xf32> to vector<32x32xf32>
    %cst_105 = arith.constant dense<0.000000e+00> : vector<32x180xf32>
    %100 = tpu.matmul %99, %95, %cst_105 {dimension_numbers = #tpu.dot_dimension_numbers<[1], [0], [0], [1], [0, 0, 1, 1], [], []>} : vector<32x32xf32>, vector<32x180xf32>, vector<32x180xf32> -> vector<32x180xf32>
    %101 = arith.addf %97, %100 : vector<32x180xf32>
    %c0_106 = arith.constant 0 : index
    %c0_107 = arith.constant 0 : index
    %c0_108 = arith.constant 0 : index
    %102 = vector.load %arg4[%c0_106, %c0_107, %c0_108] : memref<1x32x288xf32, #tpu.memory_space<vmem>>, vector<1x32x180xf32>
    %103 = vector.shape_cast %102 : vector<1x32x180xf32> to vector<32x180xf32>
    %104 = vector.shape_cast %101 : vector<32x180xf32> to vector<1x32x180xf32>
    tpu.vector_store %arg4[%c0_106, %c0_107, %c0_108], %104 {strides = array<i32>} : memref<1x32x288xf32, #tpu.memory_space<vmem>>, vector<1x32x180xf32>,
    %c0_109 = arith.constant 0 : index
    %c0_110 = arith.constant 0 : index
    %c0_111 = arith.constant 0 : index
    %105 = vector.load %arg1[%c0_109, %c0_110, %c0_111] : memref<1x32x290xf32, #tpu.memory_space<vmem>>, vector<1x32x180xf32>
    %106 = vector.shape_cast %105 : vector<1x32x180xf32> to vector<32x180xf32>
    %c0_112 = arith.constant 0 : index
    %c0_113 = arith.constant 0 : index
    %c108_114 = arith.constant 108 : index
    %107 = vector.load %arg4[%c0_112, %c0_113, %c108_114] : memref<1x32x288xf32, #tpu.memory_space<vmem>>, vector<1x32x180xf32>
    %108 = vector.shape_cast %107 : vector<1x32x180xf32> to vector<32x180xf32>
    %c9 = arith.constant 9 : index
    %c0_115 = arith.constant 0 : index
    %c0_116 = arith.constant 0 : index
    %109 = vector.load %arg2[%c9, %c0_115, %c0_116] : memref<42x32x32xf32, #tpu.memory_space<vmem>>, vector<1x32x32xf32>
    %110 = vector.shape_cast %109 : vector<1x32x32xf32> to vector<32x32xf32>
    %cst_117 = arith.constant dense<0.000000e+00> : vector<32x180xf32>
    %111 = tpu.matmul %110, %106, %cst_117 {dimension_numbers = #tpu.dot_dimension_numbers<[1], [0], [0], [1], [0, 0, 1, 1], [], []>} : vector<32x32xf32>, vector<32x180xf32>, vector<32x180xf32> -> vector<32x180xf32>
    %112 = arith.addf %108, %111 : vector<32x180xf32>
    %c0_118 = arith.constant 0 : index
    %c0_119 = arith.constant 0 : index
    %c108_120 = arith.constant 108 : index
    %113 = vector.load %arg4[%c0_118, %c0_119, %c108_120] : memref<1x32x288xf32, #tpu.memory_space<vmem>>, vector<1x32x180xf32>
    %114 = vector.shape_cast %113 : vector<1x32x180xf32> to vector<32x180xf32>
    %115 = vector.shape_cast %112 : vector<32x180xf32> to vector<1x32x180xf32>
    tpu.vector_store %arg4[%c0_118, %c0_119, %c108_120], %115 {strides = array<i32>} : memref<1x32x288xf32, #tpu.memory_space<vmem>>, vector<1x32x180xf32>,
    %c0_121 = arith.constant 0 : index
    %c0_122 = arith.constant 0 : index
    %c1_123 = arith.constant 1 : index
    %116 = vector.load %arg1[%c0_121, %c0_122, %c1_123] : memref<1x32x290xf32, #tpu.memory_space<vmem>>, vector<1x32x180xf32>
    %117 = vector.shape_cast %116 : vector<1x32x180xf32> to vector<32x180xf32>
    %c0_124 = arith.constant 0 : index
    %c0_125 = arith.constant 0 : index
    %c108_126 = arith.constant 108 : index
    %118 = vector.load %arg4[%c0_124, %c0_125, %c108_126] : memref<1x32x288xf32, #tpu.memory_space<vmem>>, vector<1x32x180xf32>
    %119 = vector.shape_cast %118 : vector<1x32x180xf32> to vector<32x180xf32>
    %c10 = arith.constant 10 : index
    %c0_127 = arith.constant 0 : index
    %c0_128 = arith.constant 0 : index
    %120 = vector.load %arg2[%c10, %c0_127, %c0_128] : memref<42x32x32xf32, #tpu.memory_space<vmem>>, vector<1x32x32xf32>
    %121 = vector.shape_cast %120 : vector<1x32x32xf32> to vector<32x32xf32>
    %cst_129 = arith.constant dense<0.000000e+00> : vector<32x180xf32>
    %122 = tpu.matmul %121, %117, %cst_129 {dimension_numbers = #tpu.dot_dimension_numbers<[1], [0], [0], [1], [0, 0, 1, 1], [], []>} : vector<32x32xf32>, vector<32x180xf32>, vector<32x180xf32> -> vector<32x180xf32>
    %123 = arith.addf %119, %122 : vector<32x180xf32>
    %c0_130 = arith.constant 0 : index
    %c0_131 = arith.constant 0 : index
    %c108_132 = arith.constant 108 : index
    %124 = vector.load %arg4[%c0_130, %c0_131, %c108_132] : memref<1x32x288xf32, #tpu.memory_space<vmem>>, vector<1x32x180xf32>
    %125 = vector.shape_cast %124 : vector<1x32x180xf32> to vector<32x180xf32>
    %126 = vector.shape_cast %123 : vector<32x180xf32> to vector<1x32x180xf32>
    tpu.vector_store %arg4[%c0_130, %c0_131, %c108_132], %126 {strides = array<i32>} : memref<1x32x288xf32, #tpu.memory_space<vmem>>, vector<1x32x180xf32>,
    %c0_133 = arith.constant 0 : index
    %c0_134 = arith.constant 0 : index
    %c2_135 = arith.constant 2 : index
    %127 = vector.load %arg1[%c0_133, %c0_134, %c2_135] : memref<1x32x290xf32, #tpu.memory_space<vmem>>, vector<1x32x180xf32>
    %128 = vector.shape_cast %127 : vector<1x32x180xf32> to vector<32x180xf32>
    %c0_136 = arith.constant 0 : index
    %c0_137 = arith.constant 0 : index
    %c108_138 = arith.constant 108 : index
    %129 = vector.load %arg4[%c0_136, %c0_137, %c108_138] : memref<1x32x288xf32, #tpu.memory_space<vmem>>, vector<1x32x180xf32>
    %130 = vector.shape_cast %129 : vector<1x32x180xf32> to vector<32x180xf32>
    %c11 = arith.constant 11 : index
    %c0_139 = arith.constant 0 : index
    %c0_140 = arith.constant 0 : index
    %131 = vector.load %arg2[%c11, %c0_139, %c0_140] : memref<42x32x32xf32, #tpu.memory_space<vmem>>, vector<1x32x32xf32>
    %132 = vector.shape_cast %131 : vector<1x32x32xf32> to vector<32x32xf32>
    %cst_141 = arith.constant dense<0.000000e+00> : vector<32x180xf32>
    %133 = tpu.matmul %132, %128, %cst_141 {dimension_numbers = #tpu.dot_dimension_numbers<[1], [0], [0], [1], [0, 0, 1, 1], [], []>} : vector<32x32xf32>, vector<32x180xf32>, vector<32x180xf32> -> vector<32x180xf32>
    %134 = arith.addf %130, %133 : vector<32x180xf32>
    %c0_142 = arith.constant 0 : index
    %c0_143 = arith.constant 0 : index
    %c108_144 = arith.constant 108 : index
    %135 = vector.load %arg4[%c0_142, %c0_143, %c108_144] : memref<1x32x288xf32, #tpu.memory_space<vmem>>, vector<1x32x180xf32>
    %136 = vector.shape_cast %135 : vector<1x32x180xf32> to vector<32x180xf32>
    %137 = vector.shape_cast %134 : vector<32x180xf32> to vector<1x32x180xf32>
    tpu.vector_store %arg4[%c0_142, %c0_143, %c108_144], %137 {strides = array<i32>} : memref<1x32x288xf32, #tpu.memory_space<vmem>>, vector<1x32x180xf32>,
    %c0_145 = arith.constant 0 : index
    %c0_146 = arith.constant 0 : index
    %c0_147 = arith.constant 0 : index
    %138 = vector.load %arg1[%c0_145, %c0_146, %c0_147] : memref<1x32x290xf32, #tpu.memory_space<vmem>>, vector<1x32x288xf32>
    %139 = vector.shape_cast %138 : vector<1x32x288xf32> to vector<32x288xf32>
    %c0_148 = arith.constant 0 : index
    %c0_149 = arith.constant 0 : index
    %c0_150 = arith.constant 0 : index
    %140 = vector.load %arg4[%c0_148, %c0_149, %c0_150] : memref<1x32x288xf32, #tpu.memory_space<vmem>>, vector<1x32x288xf32>
    %141 = vector.shape_cast %140 : vector<1x32x288xf32> to vector<32x288xf32>
    %c12 = arith.constant 12 : index
    %c0_151 = arith.constant 0 : index
    %c0_152 = arith.constant 0 : index
    %142 = vector.load %arg2[%c12, %c0_151, %c0_152] : memref<42x32x32xf32, #tpu.memory_space<vmem>>, vector<1x32x32xf32>
    %143 = vector.shape_cast %142 : vector<1x32x32xf32> to vector<32x32xf32>
    %cst_153 = arith.constant dense<0.000000e+00> : vector<32x288xf32>
    %144 = tpu.matmul %143, %139, %cst_153 {dimension_numbers = #tpu.dot_dimension_numbers<[1], [0], [0], [1], [0, 0, 1, 1], [], []>} : vector<32x32xf32>, vector<32x288xf32>, vector<32x288xf32> -> vector<32x288xf32>
    %145 = arith.addf %141, %144 : vector<32x288xf32>
    %c0_154 = arith.constant 0 : index
    %c0_155 = arith.constant 0 : index
    %c0_156 = arith.constant 0 : index
    %146 = vector.load %arg4[%c0_154, %c0_155, %c0_156] : memref<1x32x288xf32, #tpu.memory_space<vmem>>, vector<1x32x288xf32>
    %147 = vector.shape_cast %146 : vector<1x32x288xf32> to vector<32x288xf32>
    %148 = vector.shape_cast %145 : vector<32x288xf32> to vector<1x32x288xf32>
    tpu.vector_store %arg4[%c0_154, %c0_155, %c0_156], %148 {strides = array<i32>} : memref<1x32x288xf32, #tpu.memory_space<vmem>>, vector<1x32x288xf32>,
    %c0_157 = arith.constant 0 : index
    %c0_158 = arith.constant 0 : index
    %c1_159 = arith.constant 1 : index
    %149 = vector.load %arg1[%c0_157, %c0_158, %c1_159] : memref<1x32x290xf32, #tpu.memory_space<vmem>>, vector<1x32x288xf32>
    %150 = vector.shape_cast %149 : vector<1x32x288xf32> to vector<32x288xf32>
    %c0_160 = arith.constant 0 : index
    %c0_161 = arith.constant 0 : index
    %c0_162 = arith.constant 0 : index
    %151 = vector.load %arg4[%c0_160, %c0_161, %c0_162] : memref<1x32x288xf32, #tpu.memory_space<vmem>>, vector<1x32x288xf32>
    %152 = vector.shape_cast %151 : vector<1x32x288xf32> to vector<32x288xf32>
    %c13 = arith.constant 13 : index
    %c0_163 = arith.constant 0 : index
    %c0_164 = arith.constant 0 : index
    %153 = vector.load %arg2[%c13, %c0_163, %c0_164] : memref<42x32x32xf32, #tpu.memory_space<vmem>>, vector<1x32x32xf32>
    %154 = vector.shape_cast %153 : vector<1x32x32xf32> to vector<32x32xf32>
    %cst_165 = arith.constant dense<0.000000e+00> : vector<32x288xf32>
    %155 = tpu.matmul %154, %150, %cst_165 {dimension_numbers = #tpu.dot_dimension_numbers<[1], [0], [0], [1], [0, 0, 1, 1], [], []>} : vector<32x32xf32>, vector<32x288xf32>, vector<32x288xf32> -> vector<32x288xf32>
    %156 = arith.addf %152, %155 : vector<32x288xf32>
    %c0_166 = arith.constant 0 : index
    %c0_167 = arith.constant 0 : index
    %c0_168 = arith.constant 0 : index
    %157 = vector.load %arg4[%c0_166, %c0_167, %c0_168] : memref<1x32x288xf32, #tpu.memory_space<vmem>>, vector<1x32x288xf32>
    %158 = vector.shape_cast %157 : vector<1x32x288xf32> to vector<32x288xf32>
    %159 = vector.shape_cast %156 : vector<32x288xf32> to vector<1x32x288xf32>
    tpu.vector_store %arg4[%c0_166, %c0_167, %c0_168], %159 {strides = array<i32>} : memref<1x32x288xf32, #tpu.memory_space<vmem>>, vector<1x32x288xf32>,
    %c0_169 = arith.constant 0 : index
    %c0_170 = arith.constant 0 : index
    %c2_171 = arith.constant 2 : index
    %160 = vector.load %arg1[%c0_169, %c0_170, %c2_171] : memref<1x32x290xf32, #tpu.memory_space<vmem>>, vector<1x32x288xf32>
    %161 = vector.shape_cast %160 : vector<1x32x288xf32> to vector<32x288xf32>
    %c0_172 = arith.constant 0 : index
    %c0_173 = arith.constant 0 : index
    %c0_174 = arith.constant 0 : index
    %162 = vector.load %arg4[%c0_172, %c0_173, %c0_174] : memref<1x32x288xf32, #tpu.memory_space<vmem>>, vector<1x32x288xf32>
    %163 = vector.shape_cast %162 : vector<1x32x288xf32> to vector<32x288xf32>
    %c14 = arith.constant 14 : index
    %c0_175 = arith.constant 0 : index
    %c0_176 = arith.constant 0 : index
    %164 = vector.load %arg2[%c14, %c0_175, %c0_176] : memref<42x32x32xf32, #tpu.memory_space<vmem>>, vector<1x32x32xf32>
    %165 = vector.shape_cast %164 : vector<1x32x32xf32> to vector<32x32xf32>
    %cst_177 = arith.constant dense<0.000000e+00> : vector<32x288xf32>
    %166 = tpu.matmul %165, %161, %cst_177 {dimension_numbers = #tpu.dot_dimension_numbers<[1], [0], [0], [1], [0, 0, 1, 1], [], []>} : vector<32x32xf32>, vector<32x288xf32>, vector<32x288xf32> -> vector<32x288xf32>
    %167 = arith.addf %163, %166 : vector<32x288xf32>
    %c0_178 = arith.constant 0 : index
    %c0_179 = arith.constant 0 : index
    %c0_180 = arith.constant 0 : index
    %168 = vector.load %arg4[%c0_178, %c0_179, %c0_180] : memref<1x32x288xf32, #tpu.memory_space<vmem>>, vector<1x32x288xf32>
    %169 = vector.shape_cast %168 : vector<1x32x288xf32> to vector<32x288xf32>
    %170 = vector.shape_cast %167 : vector<32x288xf32> to vector<1x32x288xf32>
    tpu.vector_store %arg4[%c0_178, %c0_179, %c0_180], %170 {strides = array<i32>} : memref<1x32x288xf32, #tpu.memory_space<vmem>>, vector<1x32x288xf32>,
    %c0_181 = arith.constant 0 : index
    %c0_182 = arith.constant 0 : index
    %c108_183 = arith.constant 108 : index
    %171 = vector.load %arg1[%c0_181, %c0_182, %c108_183] : memref<1x32x290xf32, #tpu.memory_space<vmem>>, vector<1x32x180xf32>
    %172 = vector.shape_cast %171 : vector<1x32x180xf32> to vector<32x180xf32>
    %c0_184 = arith.constant 0 : index
    %c0_185 = arith.constant 0 : index
    %c0_186 = arith.constant 0 : index
    %173 = vector.load %arg4[%c0_184, %c0_185, %c0_186] : memref<1x32x288xf32, #tpu.memory_space<vmem>>, vector<1x32x180xf32>
    %174 = vector.shape_cast %173 : vector<1x32x180xf32> to vector<32x180xf32>
    %c15 = arith.constant 15 : index
    %c0_187 = arith.constant 0 : index
    %c0_188 = arith.constant 0 : index
    %175 = vector.load %arg2[%c15, %c0_187, %c0_188] : memref<42x32x32xf32, #tpu.memory_space<vmem>>, vector<1x32x32xf32>
    %176 = vector.shape_cast %175 : vector<1x32x32xf32> to vector<32x32xf32>
    %cst_189 = arith.constant dense<0.000000e+00> : vector<32x180xf32>
    %177 = tpu.matmul %176, %172, %cst_189 {dimension_numbers = #tpu.dot_dimension_numbers<[1], [0], [0], [1], [0, 0, 1, 1], [], []>} : vector<32x32xf32>, vector<32x180xf32>, vector<32x180xf32> -> vector<32x180xf32>
    %178 = arith.addf %174, %177 : vector<32x180xf32>
    %c0_190 = arith.constant 0 : index
    %c0_191 = arith.constant 0 : index
    %c0_192 = arith.constant 0 : index
    %179 = vector.load %arg4[%c0_190, %c0_191, %c0_192] : memref<1x32x288xf32, #tpu.memory_space<vmem>>, vector<1x32x180xf32>
    %180 = vector.shape_cast %179 : vector<1x32x180xf32> to vector<32x180xf32>
    %181 = vector.shape_cast %178 : vector<32x180xf32> to vector<1x32x180xf32>
    tpu.vector_store %arg4[%c0_190, %c0_191, %c0_192], %181 {strides = array<i32>} : memref<1x32x288xf32, #tpu.memory_space<vmem>>, vector<1x32x180xf32>,
    %c0_193 = arith.constant 0 : index
    %c0_194 = arith.constant 0 : index
    %c109_195 = arith.constant 109 : index
    %182 = vector.load %arg1[%c0_193, %c0_194, %c109_195] : memref<1x32x290xf32, #tpu.memory_space<vmem>>, vector<1x32x180xf32>
    %183 = vector.shape_cast %182 : vector<1x32x180xf32> to vector<32x180xf32>
    %c0_196 = arith.constant 0 : index
    %c0_197 = arith.constant 0 : index
    %c0_198 = arith.constant 0 : index
    %184 = vector.load %arg4[%c0_196, %c0_197, %c0_198] : memref<1x32x288xf32, #tpu.memory_space<vmem>>, vector<1x32x180xf32>
    %185 = vector.shape_cast %184 : vector<1x32x180xf32> to vector<32x180xf32>
    %c16 = arith.constant 16 : index
    %c0_199 = arith.constant 0 : index
    %c0_200 = arith.constant 0 : index
    %186 = vector.load %arg2[%c16, %c0_199, %c0_200] : memref<42x32x32xf32, #tpu.memory_space<vmem>>, vector<1x32x32xf32>
    %187 = vector.shape_cast %186 : vector<1x32x32xf32> to vector<32x32xf32>
    %cst_201 = arith.constant dense<0.000000e+00> : vector<32x180xf32>
    %188 = tpu.matmul %187, %183, %cst_201 {dimension_numbers = #tpu.dot_dimension_numbers<[1], [0], [0], [1], [0, 0, 1, 1], [], []>} : vector<32x32xf32>, vector<32x180xf32>, vector<32x180xf32> -> vector<32x180xf32>
    %189 = arith.addf %185, %188 : vector<32x180xf32>
    %c0_202 = arith.constant 0 : index
    %c0_203 = arith.constant 0 : index
    %c0_204 = arith.constant 0 : index
    %190 = vector.load %arg4[%c0_202, %c0_203, %c0_204] : memref<1x32x288xf32, #tpu.memory_space<vmem>>, vector<1x32x180xf32>
    %191 = vector.shape_cast %190 : vector<1x32x180xf32> to vector<32x180xf32>
    %192 = vector.shape_cast %189 : vector<32x180xf32> to vector<1x32x180xf32>
    tpu.vector_store %arg4[%c0_202, %c0_203, %c0_204], %192 {strides = array<i32>} : memref<1x32x288xf32, #tpu.memory_space<vmem>>, vector<1x32x180xf32>,
    %c0_205 = arith.constant 0 : index
    %c0_206 = arith.constant 0 : index
    %c110_207 = arith.constant 110 : index
    %193 = vector.load %arg1[%c0_205, %c0_206, %c110_207] : memref<1x32x290xf32, #tpu.memory_space<vmem>>, vector<1x32x180xf32>
    %194 = vector.shape_cast %193 : vector<1x32x180xf32> to vector<32x180xf32>
    %c0_208 = arith.constant 0 : index
    %c0_209 = arith.constant 0 : index
    %c0_210 = arith.constant 0 : index
    %195 = vector.load %arg4[%c0_208, %c0_209, %c0_210] : memref<1x32x288xf32, #tpu.memory_space<vmem>>, vector<1x32x180xf32>
    %196 = vector.shape_cast %195 : vector<1x32x180xf32> to vector<32x180xf32>
    %c17 = arith.constant 17 : index
    %c0_211 = arith.constant 0 : index
    %c0_212 = arith.constant 0 : index
    %197 = vector.load %arg2[%c17, %c0_211, %c0_212] : memref<42x32x32xf32, #tpu.memory_space<vmem>>, vector<1x32x32xf32>
    %198 = vector.shape_cast %197 : vector<1x32x32xf32> to vector<32x32xf32>
    %cst_213 = arith.constant dense<0.000000e+00> : vector<32x180xf32>
    %199 = tpu.matmul %198, %194, %cst_213 {dimension_numbers = #tpu.dot_dimension_numbers<[1], [0], [0], [1], [0, 0, 1, 1], [], []>} : vector<32x32xf32>, vector<32x180xf32>, vector<32x180xf32> -> vector<32x180xf32>
    %200 = arith.addf %196, %199 : vector<32x180xf32>
    %c0_214 = arith.constant 0 : index
    %c0_215 = arith.constant 0 : index
    %c0_216 = arith.constant 0 : index
    %201 = vector.load %arg4[%c0_214, %c0_215, %c0_216] : memref<1x32x288xf32, #tpu.memory_space<vmem>>, vector<1x32x180xf32>
    %202 = vector.shape_cast %201 : vector<1x32x180xf32> to vector<32x180xf32>
    %203 = vector.shape_cast %200 : vector<32x180xf32> to vector<1x32x180xf32>
    tpu.vector_store %arg4[%c0_214, %c0_215, %c0_216], %203 {strides = array<i32>} : memref<1x32x288xf32, #tpu.memory_space<vmem>>, vector<1x32x180xf32>,
    %c0_217 = arith.constant 0 : index
    %c0_218 = arith.constant 0 : index
    %c0_219 = arith.constant 0 : index
    %204 = vector.load %arg1[%c0_217, %c0_218, %c0_219] : memref<1x32x290xf32, #tpu.memory_space<vmem>>, vector<1x32x180xf32>
    %205 = vector.shape_cast %204 : vector<1x32x180xf32> to vector<32x180xf32>
    %c0_220 = arith.constant 0 : index
    %c0_221 = arith.constant 0 : index
    %c108_222 = arith.constant 108 : index
    %206 = vector.load %arg4[%c0_220, %c0_221, %c108_222] : memref<1x32x288xf32, #tpu.memory_space<vmem>>, vector<1x32x180xf32>
    %207 = vector.shape_cast %206 : vector<1x32x180xf32> to vector<32x180xf32>
    %c18 = arith.constant 18 : index
    %c0_223 = arith.constant 0 : index
    %c0_224 = arith.constant 0 : index
    %208 = vector.load %arg2[%c18, %c0_223, %c0_224] : memref<42x32x32xf32, #tpu.memory_space<vmem>>, vector<1x32x32xf32>
    %209 = vector.shape_cast %208 : vector<1x32x32xf32> to vector<32x32xf32>
    %cst_225 = arith.constant dense<0.000000e+00> : vector<32x180xf32>
    %210 = tpu.matmul %209, %205, %cst_225 {dimension_numbers = #tpu.dot_dimension_numbers<[1], [0], [0], [1], [0, 0, 1, 1], [], []>} : vector<32x32xf32>, vector<32x180xf32>, vector<32x180xf32> -> vector<32x180xf32>
    %211 = arith.addf %207, %210 : vector<32x180xf32>
    %c0_226 = arith.constant 0 : index
    %c0_227 = arith.constant 0 : index
    %c108_228 = arith.constant 108 : index
    %212 = vector.load %arg4[%c0_226, %c0_227, %c108_228] : memref<1x32x288xf32, #tpu.memory_space<vmem>>, vector<1x32x180xf32>
    %213 = vector.shape_cast %212 : vector<1x32x180xf32> to vector<32x180xf32>
    %214 = vector.shape_cast %211 : vector<32x180xf32> to vector<1x32x180xf32>
    tpu.vector_store %arg4[%c0_226, %c0_227, %c108_228], %214 {strides = array<i32>} : memref<1x32x288xf32, #tpu.memory_space<vmem>>, vector<1x32x180xf32>,
    %c0_229 = arith.constant 0 : index
    %c0_230 = arith.constant 0 : index
    %c1_231 = arith.constant 1 : index
    %215 = vector.load %arg1[%c0_229, %c0_230, %c1_231] : memref<1x32x290xf32, #tpu.memory_space<vmem>>, vector<1x32x180xf32>
    %216 = vector.shape_cast %215 : vector<1x32x180xf32> to vector<32x180xf32>
    %c0_232 = arith.constant 0 : index
    %c0_233 = arith.constant 0 : index
    %c108_234 = arith.constant 108 : index
    %217 = vector.load %arg4[%c0_232, %c0_233, %c108_234] : memref<1x32x288xf32, #tpu.memory_space<vmem>>, vector<1x32x180xf32>
    %218 = vector.shape_cast %217 : vector<1x32x180xf32> to vector<32x180xf32>
    %c19 = arith.constant 19 : index
    %c0_235 = arith.constant 0 : index
    %c0_236 = arith.constant 0 : index
    %219 = vector.load %arg2[%c19, %c0_235, %c0_236] : memref<42x32x32xf32, #tpu.memory_space<vmem>>, vector<1x32x32xf32>
    %220 = vector.shape_cast %219 : vector<1x32x32xf32> to vector<32x32xf32>
    %cst_237 = arith.constant dense<0.000000e+00> : vector<32x180xf32>
    %221 = tpu.matmul %220, %216, %cst_237 {dimension_numbers = #tpu.dot_dimension_numbers<[1], [0], [0], [1], [0, 0, 1, 1], [], []>} : vector<32x32xf32>, vector<32x180xf32>, vector<32x180xf32> -> vector<32x180xf32>
    %222 = arith.addf %218, %221 : vector<32x180xf32>
    %c0_238 = arith.constant 0 : index
    %c0_239 = arith.constant 0 : index
    %c108_240 = arith.constant 108 : index
    %223 = vector.load %arg4[%c0_238, %c0_239, %c108_240] : memref<1x32x288xf32, #tpu.memory_space<vmem>>, vector<1x32x180xf32>
    %224 = vector.shape_cast %223 : vector<1x32x180xf32> to vector<32x180xf32>
    %225 = vector.shape_cast %222 : vector<32x180xf32> to vector<1x32x180xf32>
    tpu.vector_store %arg4[%c0_238, %c0_239, %c108_240], %225 {strides = array<i32>} : memref<1x32x288xf32, #tpu.memory_space<vmem>>, vector<1x32x180xf32>,
    %c0_241 = arith.constant 0 : index
    %c0_242 = arith.constant 0 : index
    %c2_243 = arith.constant 2 : index
    %226 = vector.load %arg1[%c0_241, %c0_242, %c2_243] : memref<1x32x290xf32, #tpu.memory_space<vmem>>, vector<1x32x180xf32>
    %227 = vector.shape_cast %226 : vector<1x32x180xf32> to vector<32x180xf32>
    %c0_244 = arith.constant 0 : index
    %c0_245 = arith.constant 0 : index
    %c108_246 = arith.constant 108 : index
    %228 = vector.load %arg4[%c0_244, %c0_245, %c108_246] : memref<1x32x288xf32, #tpu.memory_space<vmem>>, vector<1x32x180xf32>
    %229 = vector.shape_cast %228 : vector<1x32x180xf32> to vector<32x180xf32>
    %c20 = arith.constant 20 : index
    %c0_247 = arith.constant 0 : index
    %c0_248 = arith.constant 0 : index
    %230 = vector.load %arg2[%c20, %c0_247, %c0_248] : memref<42x32x32xf32, #tpu.memory_space<vmem>>, vector<1x32x32xf32>
    %231 = vector.shape_cast %230 : vector<1x32x32xf32> to vector<32x32xf32>
    %cst_249 = arith.constant dense<0.000000e+00> : vector<32x180xf32>
    %232 = tpu.matmul %231, %227, %cst_249 {dimension_numbers = #tpu.dot_dimension_numbers<[1], [0], [0], [1], [0, 0, 1, 1], [], []>} : vector<32x32xf32>, vector<32x180xf32>, vector<32x180xf32> -> vector<32x180xf32>
    %233 = arith.addf %229, %232 : vector<32x180xf32>
    %c0_250 = arith.constant 0 : index
    %c0_251 = arith.constant 0 : index
    %c108_252 = arith.constant 108 : index
    %234 = vector.load %arg4[%c0_250, %c0_251, %c108_252] : memref<1x32x288xf32, #tpu.memory_space<vmem>>, vector<1x32x180xf32>
    %235 = vector.shape_cast %234 : vector<1x32x180xf32> to vector<32x180xf32>
    %236 = vector.shape_cast %233 : vector<32x180xf32> to vector<1x32x180xf32>
    tpu.vector_store %arg4[%c0_250, %c0_251, %c108_252], %236 {strides = array<i32>} : memref<1x32x288xf32, #tpu.memory_space<vmem>>, vector<1x32x180xf32>,
    %c0_253 = arith.constant 0 : index
    %c0_254 = arith.constant 0 : index
    %c0_255 = arith.constant 0 : index
    %237 = vector.load %arg1[%c0_253, %c0_254, %c0_255] : memref<1x32x290xf32, #tpu.memory_space<vmem>>, vector<1x32x288xf32>
    %238 = vector.shape_cast %237 : vector<1x32x288xf32> to vector<32x288xf32>
    %c0_256 = arith.constant 0 : index
    %c0_257 = arith.constant 0 : index
    %c0_258 = arith.constant 0 : index
    %239 = vector.load %arg4[%c0_256, %c0_257, %c0_258] : memref<1x32x288xf32, #tpu.memory_space<vmem>>, vector<1x32x288xf32>
    %240 = vector.shape_cast %239 : vector<1x32x288xf32> to vector<32x288xf32>
    %c21 = arith.constant 21 : index
    %c0_259 = arith.constant 0 : index
    %c0_260 = arith.constant 0 : index
    %241 = vector.load %arg2[%c21, %c0_259, %c0_260] : memref<42x32x32xf32, #tpu.memory_space<vmem>>, vector<1x32x32xf32>
    %242 = vector.shape_cast %241 : vector<1x32x32xf32> to vector<32x32xf32>
    %cst_261 = arith.constant dense<0.000000e+00> : vector<32x288xf32>
    %243 = tpu.matmul %242, %238, %cst_261 {dimension_numbers = #tpu.dot_dimension_numbers<[1], [0], [0], [1], [0, 0, 1, 1], [], []>} : vector<32x32xf32>, vector<32x288xf32>, vector<32x288xf32> -> vector<32x288xf32>
    %244 = arith.addf %240, %243 : vector<32x288xf32>
    %c0_262 = arith.constant 0 : index
    %c0_263 = arith.constant 0 : index
    %c0_264 = arith.constant 0 : index
    %245 = vector.load %arg4[%c0_262, %c0_263, %c0_264] : memref<1x32x288xf32, #tpu.memory_space<vmem>>, vector<1x32x288xf32>
    %246 = vector.shape_cast %245 : vector<1x32x288xf32> to vector<32x288xf32>
    %247 = vector.shape_cast %244 : vector<32x288xf32> to vector<1x32x288xf32>
    tpu.vector_store %arg4[%c0_262, %c0_263, %c0_264], %247 {strides = array<i32>} : memref<1x32x288xf32, #tpu.memory_space<vmem>>, vector<1x32x288xf32>,
    %c0_265 = arith.constant 0 : index
    %c0_266 = arith.constant 0 : index
    %c1_267 = arith.constant 1 : index
    %248 = vector.load %arg1[%c0_265, %c0_266, %c1_267] : memref<1x32x290xf32, #tpu.memory_space<vmem>>, vector<1x32x288xf32>
    %249 = vector.shape_cast %248 : vector<1x32x288xf32> to vector<32x288xf32>
    %c0_268 = arith.constant 0 : index
    %c0_269 = arith.constant 0 : index
    %c0_270 = arith.constant 0 : index
    %250 = vector.load %arg4[%c0_268, %c0_269, %c0_270] : memref<1x32x288xf32, #tpu.memory_space<vmem>>, vector<1x32x288xf32>
    %251 = vector.shape_cast %250 : vector<1x32x288xf32> to vector<32x288xf32>
    %c22 = arith.constant 22 : index
    %c0_271 = arith.constant 0 : index
    %c0_272 = arith.constant 0 : index
    %252 = vector.load %arg2[%c22, %c0_271, %c0_272] : memref<42x32x32xf32, #tpu.memory_space<vmem>>, vector<1x32x32xf32>
    %253 = vector.shape_cast %252 : vector<1x32x32xf32> to vector<32x32xf32>
    %cst_273 = arith.constant dense<0.000000e+00> : vector<32x288xf32>
    %254 = tpu.matmul %253, %249, %cst_273 {dimension_numbers = #tpu.dot_dimension_numbers<[1], [0], [0], [1], [0, 0, 1, 1], [], []>} : vector<32x32xf32>, vector<32x288xf32>, vector<32x288xf32> -> vector<32x288xf32>
    %255 = arith.addf %251, %254 : vector<32x288xf32>
    %c0_274 = arith.constant 0 : index
    %c0_275 = arith.constant 0 : index
    %c0_276 = arith.constant 0 : index
    %256 = vector.load %arg4[%c0_274, %c0_275, %c0_276] : memref<1x32x288xf32, #tpu.memory_space<vmem>>, vector<1x32x288xf32>
    %257 = vector.shape_cast %256 : vector<1x32x288xf32> to vector<32x288xf32>
    %258 = vector.shape_cast %255 : vector<32x288xf32> to vector<1x32x288xf32>
    tpu.vector_store %arg4[%c0_274, %c0_275, %c0_276], %258 {strides = array<i32>} : memref<1x32x288xf32, #tpu.memory_space<vmem>>, vector<1x32x288xf32>,
    %c0_277 = arith.constant 0 : index
    %c0_278 = arith.constant 0 : index
    %c2_279 = arith.constant 2 : index
    %259 = vector.load %arg1[%c0_277, %c0_278, %c2_279] : memref<1x32x290xf32, #tpu.memory_space<vmem>>, vector<1x32x288xf32>
    %260 = vector.shape_cast %259 : vector<1x32x288xf32> to vector<32x288xf32>
    %c0_280 = arith.constant 0 : index
    %c0_281 = arith.constant 0 : index
    %c0_282 = arith.constant 0 : index
    %261 = vector.load %arg4[%c0_280, %c0_281, %c0_282] : memref<1x32x288xf32, #tpu.memory_space<vmem>>, vector<1x32x288xf32>
    %262 = vector.shape_cast %261 : vector<1x32x288xf32> to vector<32x288xf32>
    %c23 = arith.constant 23 : index
    %c0_283 = arith.constant 0 : index
    %c0_284 = arith.constant 0 : index
    %263 = vector.load %arg2[%c23, %c0_283, %c0_284] : memref<42x32x32xf32, #tpu.memory_space<vmem>>, vector<1x32x32xf32>
    %264 = vector.shape_cast %263 : vector<1x32x32xf32> to vector<32x32xf32>
    %cst_285 = arith.constant dense<0.000000e+00> : vector<32x288xf32>
    %265 = tpu.matmul %264, %260, %cst_285 {dimension_numbers = #tpu.dot_dimension_numbers<[1], [0], [0], [1], [0, 0, 1, 1], [], []>} : vector<32x32xf32>, vector<32x288xf32>, vector<32x288xf32> -> vector<32x288xf32>
    %266 = arith.addf %262, %265 : vector<32x288xf32>
    %c0_286 = arith.constant 0 : index
    %c0_287 = arith.constant 0 : index
    %c0_288 = arith.constant 0 : index
    %267 = vector.load %arg4[%c0_286, %c0_287, %c0_288] : memref<1x32x288xf32, #tpu.memory_space<vmem>>, vector<1x32x288xf32>
    %268 = vector.shape_cast %267 : vector<1x32x288xf32> to vector<32x288xf32>
    %269 = vector.shape_cast %266 : vector<32x288xf32> to vector<1x32x288xf32>
    tpu.vector_store %arg4[%c0_286, %c0_287, %c0_288], %269 {strides = array<i32>} : memref<1x32x288xf32, #tpu.memory_space<vmem>>, vector<1x32x288xf32>,
    %c0_289 = arith.constant 0 : index
    %c0_290 = arith.constant 0 : index
    %c108_291 = arith.constant 108 : index
    %270 = vector.load %arg1[%c0_289, %c0_290, %c108_291] : memref<1x32x290xf32, #tpu.memory_space<vmem>>, vector<1x32x180xf32>
    %271 = vector.shape_cast %270 : vector<1x32x180xf32> to vector<32x180xf32>
    %c0_292 = arith.constant 0 : index
    %c0_293 = arith.constant 0 : index
    %c0_294 = arith.constant 0 : index
    %272 = vector.load %arg4[%c0_292, %c0_293, %c0_294] : memref<1x32x288xf32, #tpu.memory_space<vmem>>, vector<1x32x180xf32>
    %273 = vector.shape_cast %272 : vector<1x32x180xf32> to vector<32x180xf32>
    %c24 = arith.constant 24 : index
    %c0_295 = arith.constant 0 : index
    %c0_296 = arith.constant 0 : index
    %274 = vector.load %arg2[%c24, %c0_295, %c0_296] : memref<42x32x32xf32, #tpu.memory_space<vmem>>, vector<1x32x32xf32>
    %275 = vector.shape_cast %274 : vector<1x32x32xf32> to vector<32x32xf32>
    %cst_297 = arith.constant dense<0.000000e+00> : vector<32x180xf32>
    %276 = tpu.matmul %275, %271, %cst_297 {dimension_numbers = #tpu.dot_dimension_numbers<[1], [0], [0], [1], [0, 0, 1, 1], [], []>} : vector<32x32xf32>, vector<32x180xf32>, vector<32x180xf32> -> vector<32x180xf32>
    %277 = arith.addf %273, %276 : vector<32x180xf32>
    %c0_298 = arith.constant 0 : index
    %c0_299 = arith.constant 0 : index
    %c0_300 = arith.constant 0 : index
    %278 = vector.load %arg4[%c0_298, %c0_299, %c0_300] : memref<1x32x288xf32, #tpu.memory_space<vmem>>, vector<1x32x180xf32>
    %279 = vector.shape_cast %278 : vector<1x32x180xf32> to vector<32x180xf32>
    %280 = vector.shape_cast %277 : vector<32x180xf32> to vector<1x32x180xf32>
    tpu.vector_store %arg4[%c0_298, %c0_299, %c0_300], %280 {strides = array<i32>} : memref<1x32x288xf32, #tpu.memory_space<vmem>>, vector<1x32x180xf32>,
    %c0_301 = arith.constant 0 : index
    %c0_302 = arith.constant 0 : index
    %c109_303 = arith.constant 109 : index
    %281 = vector.load %arg1[%c0_301, %c0_302, %c109_303] : memref<1x32x290xf32, #tpu.memory_space<vmem>>, vector<1x32x180xf32>
    %282 = vector.shape_cast %281 : vector<1x32x180xf32> to vector<32x180xf32>
    %c0_304 = arith.constant 0 : index
    %c0_305 = arith.constant 0 : index
    %c0_306 = arith.constant 0 : index
    %283 = vector.load %arg4[%c0_304, %c0_305, %c0_306] : memref<1x32x288xf32, #tpu.memory_space<vmem>>, vector<1x32x180xf32>
    %284 = vector.shape_cast %283 : vector<1x32x180xf32> to vector<32x180xf32>
    %c25 = arith.constant 25 : index
    %c0_307 = arith.constant 0 : index
    %c0_308 = arith.constant 0 : index
    %285 = vector.load %arg2[%c25, %c0_307, %c0_308] : memref<42x32x32xf32, #tpu.memory_space<vmem>>, vector<1x32x32xf32>
    %286 = vector.shape_cast %285 : vector<1x32x32xf32> to vector<32x32xf32>
    %cst_309 = arith.constant dense<0.000000e+00> : vector<32x180xf32>
    %287 = tpu.matmul %286, %282, %cst_309 {dimension_numbers = #tpu.dot_dimension_numbers<[1], [0], [0], [1], [0, 0, 1, 1], [], []>} : vector<32x32xf32>, vector<32x180xf32>, vector<32x180xf32> -> vector<32x180xf32>
    %288 = arith.addf %284, %287 : vector<32x180xf32>
    %c0_310 = arith.constant 0 : index
    %c0_311 = arith.constant 0 : index
    %c0_312 = arith.constant 0 : index
    %289 = vector.load %arg4[%c0_310, %c0_311, %c0_312] : memref<1x32x288xf32, #tpu.memory_space<vmem>>, vector<1x32x180xf32>
    %290 = vector.shape_cast %289 : vector<1x32x180xf32> to vector<32x180xf32>
    %291 = vector.shape_cast %288 : vector<32x180xf32> to vector<1x32x180xf32>
    tpu.vector_store %arg4[%c0_310, %c0_311, %c0_312], %291 {strides = array<i32>} : memref<1x32x288xf32, #tpu.memory_space<vmem>>, vector<1x32x180xf32>,
    %c0_313 = arith.constant 0 : index
    %c0_314 = arith.constant 0 : index
    %c110_315 = arith.constant 110 : index
    %292 = vector.load %arg1[%c0_313, %c0_314, %c110_315] : memref<1x32x290xf32, #tpu.memory_space<vmem>>, vector<1x32x180xf32>
    %293 = vector.shape_cast %292 : vector<1x32x180xf32> to vector<32x180xf32>
    %c0_316 = arith.constant 0 : index
    %c0_317 = arith.constant 0 : index
    %c0_318 = arith.constant 0 : index
    %294 = vector.load %arg4[%c0_316, %c0_317, %c0_318] : memref<1x32x288xf32, #tpu.memory_space<vmem>>, vector<1x32x180xf32>
    %295 = vector.shape_cast %294 : vector<1x32x180xf32> to vector<32x180xf32>
    %c26 = arith.constant 26 : index
    %c0_319 = arith.constant 0 : index
    %c0_320 = arith.constant 0 : index
    %296 = vector.load %arg2[%c26, %c0_319, %c0_320] : memref<42x32x32xf32, #tpu.memory_space<vmem>>, vector<1x32x32xf32>
    %297 = vector.shape_cast %296 : vector<1x32x32xf32> to vector<32x32xf32>
    %cst_321 = arith.constant dense<0.000000e+00> : vector<32x180xf32>
    %298 = tpu.matmul %297, %293, %cst_321 {dimension_numbers = #tpu.dot_dimension_numbers<[1], [0], [0], [1], [0, 0, 1, 1], [], []>} : vector<32x32xf32>, vector<32x180xf32>, vector<32x180xf32> -> vector<32x180xf32>
    %299 = arith.addf %295, %298 : vector<32x180xf32>
    %c0_322 = arith.constant 0 : index
    %c0_323 = arith.constant 0 : index
    %c0_324 = arith.constant 0 : index
    %300 = vector.load %arg4[%c0_322, %c0_323, %c0_324] : memref<1x32x288xf32, #tpu.memory_space<vmem>>, vector<1x32x180xf32>
    %301 = vector.shape_cast %300 : vector<1x32x180xf32> to vector<32x180xf32>
    %302 = vector.shape_cast %299 : vector<32x180xf32> to vector<1x32x180xf32>
    tpu.vector_store %arg4[%c0_322, %c0_323, %c0_324], %302 {strides = array<i32>} : memref<1x32x288xf32, #tpu.memory_space<vmem>>, vector<1x32x180xf32>,
    %c0_325 = arith.constant 0 : index
    %c0_326 = arith.constant 0 : index
    %c0_327 = arith.constant 0 : index
    %303 = vector.load %arg1[%c0_325, %c0_326, %c0_327] : memref<1x32x290xf32, #tpu.memory_space<vmem>>, vector<1x32x72xf32>
    %304 = vector.shape_cast %303 : vector<1x32x72xf32> to vector<32x72xf32>
    %c0_328 = arith.constant 0 : index
    %c0_329 = arith.constant 0 : index
    %c216 = arith.constant 216 : index
    %305 = vector.load %arg4[%c0_328, %c0_329, %c216] : memref<1x32x288xf32, #tpu.memory_space<vmem>>, vector<1x32x72xf32>
    %306 = vector.shape_cast %305 : vector<1x32x72xf32> to vector<32x72xf32>
    %c27 = arith.constant 27 : index
    %c0_330 = arith.constant 0 : index
    %c0_331 = arith.constant 0 : index
    %307 = vector.load %arg2[%c27, %c0_330, %c0_331] : memref<42x32x32xf32, #tpu.memory_space<vmem>>, vector<1x32x32xf32>
    %308 = vector.shape_cast %307 : vector<1x32x32xf32> to vector<32x32xf32>
    %cst_332 = arith.constant dense<0.000000e+00> : vector<32x72xf32>
    %309 = tpu.matmul %308, %304, %cst_332 {dimension_numbers = #tpu.dot_dimension_numbers<[1], [0], [0], [1], [0, 0, 1, 1], [], []>} : vector<32x32xf32>, vector<32x72xf32>, vector<32x72xf32> -> vector<32x72xf32>
    %310 = arith.addf %306, %309 : vector<32x72xf32>
    %c0_333 = arith.constant 0 : index
    %c0_334 = arith.constant 0 : index
    %c216_335 = arith.constant 216 : index
    %311 = vector.load %arg4[%c0_333, %c0_334, %c216_335] : memref<1x32x288xf32, #tpu.memory_space<vmem>>, vector<1x32x72xf32>
    %312 = vector.shape_cast %311 : vector<1x32x72xf32> to vector<32x72xf32>
    %313 = vector.shape_cast %310 : vector<32x72xf32> to vector<1x32x72xf32>
    tpu.vector_store %arg4[%c0_333, %c0_334, %c216_335], %313 {strides = array<i32>} : memref<1x32x288xf32, #tpu.memory_space<vmem>>, vector<1x32x72xf32>,
    %c0_336 = arith.constant 0 : index
    %c0_337 = arith.constant 0 : index
    %c1_338 = arith.constant 1 : index
    %314 = vector.load %arg1[%c0_336, %c0_337, %c1_338] : memref<1x32x290xf32, #tpu.memory_space<vmem>>, vector<1x32x72xf32>
    %315 = vector.shape_cast %314 : vector<1x32x72xf32> to vector<32x72xf32>
    %c0_339 = arith.constant 0 : index
    %c0_340 = arith.constant 0 : index
    %c216_341 = arith.constant 216 : index
    %316 = vector.load %arg4[%c0_339, %c0_340, %c216_341] : memref<1x32x288xf32, #tpu.memory_space<vmem>>, vector<1x32x72xf32>
    %317 = vector.shape_cast %316 : vector<1x32x72xf32> to vector<32x72xf32>
    %c28 = arith.constant 28 : index
    %c0_342 = arith.constant 0 : index
    %c0_343 = arith.constant 0 : index
    %318 = vector.load %arg2[%c28, %c0_342, %c0_343] : memref<42x32x32xf32, #tpu.memory_space<vmem>>, vector<1x32x32xf32>
    %319 = vector.shape_cast %318 : vector<1x32x32xf32> to vector<32x32xf32>
    %cst_344 = arith.constant dense<0.000000e+00> : vector<32x72xf32>
    %320 = tpu.matmul %319, %315, %cst_344 {dimension_numbers = #tpu.dot_dimension_numbers<[1], [0], [0], [1], [0, 0, 1, 1], [], []>} : vector<32x32xf32>, vector<32x72xf32>, vector<32x72xf32> -> vector<32x72xf32>
    %321 = arith.addf %317, %320 : vector<32x72xf32>
    %c0_345 = arith.constant 0 : index
    %c0_346 = arith.constant 0 : index
    %c216_347 = arith.constant 216 : index
    %322 = vector.load %arg4[%c0_345, %c0_346, %c216_347] : memref<1x32x288xf32, #tpu.memory_space<vmem>>, vector<1x32x72xf32>
    %323 = vector.shape_cast %322 : vector<1x32x72xf32> to vector<32x72xf32>
    %324 = vector.shape_cast %321 : vector<32x72xf32> to vector<1x32x72xf32>
    tpu.vector_store %arg4[%c0_345, %c0_346, %c216_347], %324 {strides = array<i32>} : memref<1x32x288xf32, #tpu.memory_space<vmem>>, vector<1x32x72xf32>,
    %c0_348 = arith.constant 0 : index
    %c0_349 = arith.constant 0 : index
    %c2_350 = arith.constant 2 : index
    %325 = vector.load %arg1[%c0_348, %c0_349, %c2_350] : memref<1x32x290xf32, #tpu.memory_space<vmem>>, vector<1x32x72xf32>
    %326 = vector.shape_cast %325 : vector<1x32x72xf32> to vector<32x72xf32>
    %c0_351 = arith.constant 0 : index
    %c0_352 = arith.constant 0 : index
    %c216_353 = arith.constant 216 : index
    %327 = vector.load %arg4[%c0_351, %c0_352, %c216_353] : memref<1x32x288xf32, #tpu.memory_space<vmem>>, vector<1x32x72xf32>
    %328 = vector.shape_cast %327 : vector<1x32x72xf32> to vector<32x72xf32>
    %c29 = arith.constant 29 : index
    %c0_354 = arith.constant 0 : index
    %c0_355 = arith.constant 0 : index
    %329 = vector.load %arg2[%c29, %c0_354, %c0_355] : memref<42x32x32xf32, #tpu.memory_space<vmem>>, vector<1x32x32xf32>
    %330 = vector.shape_cast %329 : vector<1x32x32xf32> to vector<32x32xf32>
    %cst_356 = arith.constant dense<0.000000e+00> : vector<32x72xf32>
    %331 = tpu.matmul %330, %326, %cst_356 {dimension_numbers = #tpu.dot_dimension_numbers<[1], [0], [0], [1], [0, 0, 1, 1], [], []>} : vector<32x32xf32>, vector<32x72xf32>, vector<32x72xf32> -> vector<32x72xf32>
    %332 = arith.addf %328, %331 : vector<32x72xf32>
    %c0_357 = arith.constant 0 : index
    %c0_358 = arith.constant 0 : index
    %c216_359 = arith.constant 216 : index
    %333 = vector.load %arg4[%c0_357, %c0_358, %c216_359] : memref<1x32x288xf32, #tpu.memory_space<vmem>>, vector<1x32x72xf32>
    %334 = vector.shape_cast %333 : vector<1x32x72xf32> to vector<32x72xf32>
    %335 = vector.shape_cast %332 : vector<32x72xf32> to vector<1x32x72xf32>
    tpu.vector_store %arg4[%c0_357, %c0_358, %c216_359], %335 {strides = array<i32>} : memref<1x32x288xf32, #tpu.memory_space<vmem>>, vector<1x32x72xf32>,
    %c0_360 = arith.constant 0 : index
    %c0_361 = arith.constant 0 : index
    %c0_362 = arith.constant 0 : index
    %336 = vector.load %arg1[%c0_360, %c0_361, %c0_362] : memref<1x32x290xf32, #tpu.memory_space<vmem>>, vector<1x32x288xf32>
    %337 = vector.shape_cast %336 : vector<1x32x288xf32> to vector<32x288xf32>
    %c0_363 = arith.constant 0 : index
    %c0_364 = arith.constant 0 : index
    %c0_365 = arith.constant 0 : index
    %338 = vector.load %arg4[%c0_363, %c0_364, %c0_365] : memref<1x32x288xf32, #tpu.memory_space<vmem>>, vector<1x32x288xf32>
    %339 = vector.shape_cast %338 : vector<1x32x288xf32> to vector<32x288xf32>
    %c30 = arith.constant 30 : index
    %c0_366 = arith.constant 0 : index
    %c0_367 = arith.constant 0 : index
    %340 = vector.load %arg2[%c30, %c0_366, %c0_367] : memref<42x32x32xf32, #tpu.memory_space<vmem>>, vector<1x32x32xf32>
    %341 = vector.shape_cast %340 : vector<1x32x32xf32> to vector<32x32xf32>
    %cst_368 = arith.constant dense<0.000000e+00> : vector<32x288xf32>
    %342 = tpu.matmul %341, %337, %cst_368 {dimension_numbers = #tpu.dot_dimension_numbers<[1], [0], [0], [1], [0, 0, 1, 1], [], []>} : vector<32x32xf32>, vector<32x288xf32>, vector<32x288xf32> -> vector<32x288xf32>
    %343 = arith.addf %339, %342 : vector<32x288xf32>
    %c0_369 = arith.constant 0 : index
    %c0_370 = arith.constant 0 : index
    %c0_371 = arith.constant 0 : index
    %344 = vector.load %arg4[%c0_369, %c0_370, %c0_371] : memref<1x32x288xf32, #tpu.memory_space<vmem>>, vector<1x32x288xf32>
    %345 = vector.shape_cast %344 : vector<1x32x288xf32> to vector<32x288xf32>
    %346 = vector.shape_cast %343 : vector<32x288xf32> to vector<1x32x288xf32>
    tpu.vector_store %arg4[%c0_369, %c0_370, %c0_371], %346 {strides = array<i32>} : memref<1x32x288xf32, #tpu.memory_space<vmem>>, vector<1x32x288xf32>,
    %c0_372 = arith.constant 0 : index
    %c0_373 = arith.constant 0 : index
    %c1_374 = arith.constant 1 : index
    %347 = vector.load %arg1[%c0_372, %c0_373, %c1_374] : memref<1x32x290xf32, #tpu.memory_space<vmem>>, vector<1x32x288xf32>
    %348 = vector.shape_cast %347 : vector<1x32x288xf32> to vector<32x288xf32>
    %c0_375 = arith.constant 0 : index
    %c0_376 = arith.constant 0 : index
    %c0_377 = arith.constant 0 : index
    %349 = vector.load %arg4[%c0_375, %c0_376, %c0_377] : memref<1x32x288xf32, #tpu.memory_space<vmem>>, vector<1x32x288xf32>
    %350 = vector.shape_cast %349 : vector<1x32x288xf32> to vector<32x288xf32>
    %c31 = arith.constant 31 : index
    %c0_378 = arith.constant 0 : index
    %c0_379 = arith.constant 0 : index
    %351 = vector.load %arg2[%c31, %c0_378, %c0_379] : memref<42x32x32xf32, #tpu.memory_space<vmem>>, vector<1x32x32xf32>
    %352 = vector.shape_cast %351 : vector<1x32x32xf32> to vector<32x32xf32>
    %cst_380 = arith.constant dense<0.000000e+00> : vector<32x288xf32>
    %353 = tpu.matmul %352, %348, %cst_380 {dimension_numbers = #tpu.dot_dimension_numbers<[1], [0], [0], [1], [0, 0, 1, 1], [], []>} : vector<32x32xf32>, vector<32x288xf32>, vector<32x288xf32> -> vector<32x288xf32>
    %354 = arith.addf %350, %353 : vector<32x288xf32>
    %c0_381 = arith.constant 0 : index
    %c0_382 = arith.constant 0 : index
    %c0_383 = arith.constant 0 : index
    %355 = vector.load %arg4[%c0_381, %c0_382, %c0_383] : memref<1x32x288xf32, #tpu.memory_space<vmem>>, vector<1x32x288xf32>
    %356 = vector.shape_cast %355 : vector<1x32x288xf32> to vector<32x288xf32>
    %357 = vector.shape_cast %354 : vector<32x288xf32> to vector<1x32x288xf32>
    tpu.vector_store %arg4[%c0_381, %c0_382, %c0_383], %357 {strides = array<i32>} : memref<1x32x288xf32, #tpu.memory_space<vmem>>, vector<1x32x288xf32>,
    %c0_384 = arith.constant 0 : index
    %c0_385 = arith.constant 0 : index
    %c2_386 = arith.constant 2 : index
    %358 = vector.load %arg1[%c0_384, %c0_385, %c2_386] : memref<1x32x290xf32, #tpu.memory_space<vmem>>, vector<1x32x288xf32>
    %359 = vector.shape_cast %358 : vector<1x32x288xf32> to vector<32x288xf32>
    %c0_387 = arith.constant 0 : index
    %c0_388 = arith.constant 0 : index
    %c0_389 = arith.constant 0 : index
    %360 = vector.load %arg4[%c0_387, %c0_388, %c0_389] : memref<1x32x288xf32, #tpu.memory_space<vmem>>, vector<1x32x288xf32>
    %361 = vector.shape_cast %360 : vector<1x32x288xf32> to vector<32x288xf32>
    %c32 = arith.constant 32 : index
    %c0_390 = arith.constant 0 : index
    %c0_391 = arith.constant 0 : index
    %362 = vector.load %arg2[%c32, %c0_390, %c0_391] : memref<42x32x32xf32, #tpu.memory_space<vmem>>, vector<1x32x32xf32>
    %363 = vector.shape_cast %362 : vector<1x32x32xf32> to vector<32x32xf32>
    %cst_392 = arith.constant dense<0.000000e+00> : vector<32x288xf32>
    %364 = tpu.matmul %363, %359, %cst_392 {dimension_numbers = #tpu.dot_dimension_numbers<[1], [0], [0], [1], [0, 0, 1, 1], [], []>} : vector<32x32xf32>, vector<32x288xf32>, vector<32x288xf32> -> vector<32x288xf32>
    %365 = arith.addf %361, %364 : vector<32x288xf32>
    %c0_393 = arith.constant 0 : index
    %c0_394 = arith.constant 0 : index
    %c0_395 = arith.constant 0 : index
    %366 = vector.load %arg4[%c0_393, %c0_394, %c0_395] : memref<1x32x288xf32, #tpu.memory_space<vmem>>, vector<1x32x288xf32>
    %367 = vector.shape_cast %366 : vector<1x32x288xf32> to vector<32x288xf32>
    %368 = vector.shape_cast %365 : vector<32x288xf32> to vector<1x32x288xf32>
    tpu.vector_store %arg4[%c0_393, %c0_394, %c0_395], %368 {strides = array<i32>} : memref<1x32x288xf32, #tpu.memory_space<vmem>>, vector<1x32x288xf32>,
    %c0_396 = arith.constant 0 : index
    %c0_397 = arith.constant 0 : index
    %c216_398 = arith.constant 216 : index
    %369 = vector.load %arg1[%c0_396, %c0_397, %c216_398] : memref<1x32x290xf32, #tpu.memory_space<vmem>>, vector<1x32x72xf32>
    %370 = vector.shape_cast %369 : vector<1x32x72xf32> to vector<32x72xf32>
    %c0_399 = arith.constant 0 : index
    %c0_400 = arith.constant 0 : index
    %c0_401 = arith.constant 0 : index
    %371 = vector.load %arg4[%c0_399, %c0_400, %c0_401] : memref<1x32x288xf32, #tpu.memory_space<vmem>>, vector<1x32x72xf32>
    %372 = vector.shape_cast %371 : vector<1x32x72xf32> to vector<32x72xf32>
    %c33 = arith.constant 33 : index
    %c0_402 = arith.constant 0 : index
    %c0_403 = arith.constant 0 : index
    %373 = vector.load %arg2[%c33, %c0_402, %c0_403] : memref<42x32x32xf32, #tpu.memory_space<vmem>>, vector<1x32x32xf32>
    %374 = vector.shape_cast %373 : vector<1x32x32xf32> to vector<32x32xf32>
    %cst_404 = arith.constant dense<0.000000e+00> : vector<32x72xf32>
    %375 = tpu.matmul %374, %370, %cst_404 {dimension_numbers = #tpu.dot_dimension_numbers<[1], [0], [0], [1], [0, 0, 1, 1], [], []>} : vector<32x32xf32>, vector<32x72xf32>, vector<32x72xf32> -> vector<32x72xf32>
    %376 = arith.addf %372, %375 : vector<32x72xf32>
    %c0_405 = arith.constant 0 : index
    %c0_406 = arith.constant 0 : index
    %c0_407 = arith.constant 0 : index
    %377 = vector.load %arg4[%c0_405, %c0_406, %c0_407] : memref<1x32x288xf32, #tpu.memory_space<vmem>>, vector<1x32x72xf32>
    %378 = vector.shape_cast %377 : vector<1x32x72xf32> to vector<32x72xf32>
    %379 = vector.shape_cast %376 : vector<32x72xf32> to vector<1x32x72xf32>
    tpu.vector_store %arg4[%c0_405, %c0_406, %c0_407], %379 {strides = array<i32>} : memref<1x32x288xf32, #tpu.memory_space<vmem>>, vector<1x32x72xf32>,
    %c0_408 = arith.constant 0 : index
    %c0_409 = arith.constant 0 : index
    %c217 = arith.constant 217 : index
    %380 = vector.load %arg1[%c0_408, %c0_409, %c217] : memref<1x32x290xf32, #tpu.memory_space<vmem>>, vector<1x32x72xf32>
    %381 = vector.shape_cast %380 : vector<1x32x72xf32> to vector<32x72xf32>
    %c0_410 = arith.constant 0 : index
    %c0_411 = arith.constant 0 : index
    %c0_412 = arith.constant 0 : index
    %382 = vector.load %arg4[%c0_410, %c0_411, %c0_412] : memref<1x32x288xf32, #tpu.memory_space<vmem>>, vector<1x32x72xf32>
    %383 = vector.shape_cast %382 : vector<1x32x72xf32> to vector<32x72xf32>
    %c34 = arith.constant 34 : index
    %c0_413 = arith.constant 0 : index
    %c0_414 = arith.constant 0 : index
    %384 = vector.load %arg2[%c34, %c0_413, %c0_414] : memref<42x32x32xf32, #tpu.memory_space<vmem>>, vector<1x32x32xf32>
    %385 = vector.shape_cast %384 : vector<1x32x32xf32> to vector<32x32xf32>
    %cst_415 = arith.constant dense<0.000000e+00> : vector<32x72xf32>
    %386 = tpu.matmul %385, %381, %cst_415 {dimension_numbers = #tpu.dot_dimension_numbers<[1], [0], [0], [1], [0, 0, 1, 1], [], []>} : vector<32x32xf32>, vector<32x72xf32>, vector<32x72xf32> -> vector<32x72xf32>
    %387 = arith.addf %383, %386 : vector<32x72xf32>
    %c0_416 = arith.constant 0 : index
    %c0_417 = arith.constant 0 : index
    %c0_418 = arith.constant 0 : index
    %388 = vector.load %arg4[%c0_416, %c0_417, %c0_418] : memref<1x32x288xf32, #tpu.memory_space<vmem>>, vector<1x32x72xf32>
    %389 = vector.shape_cast %388 : vector<1x32x72xf32> to vector<32x72xf32>
    %390 = vector.shape_cast %387 : vector<32x72xf32> to vector<1x32x72xf32>
    tpu.vector_store %arg4[%c0_416, %c0_417, %c0_418], %390 {strides = array<i32>} : memref<1x32x288xf32, #tpu.memory_space<vmem>>, vector<1x32x72xf32>,
    %c0_419 = arith.constant 0 : index
    %c0_420 = arith.constant 0 : index
    %c218 = arith.constant 218 : index
    %391 = vector.load %arg1[%c0_419, %c0_420, %c218] : memref<1x32x290xf32, #tpu.memory_space<vmem>>, vector<1x32x72xf32>
    %392 = vector.shape_cast %391 : vector<1x32x72xf32> to vector<32x72xf32>
    %c0_421 = arith.constant 0 : index
    %c0_422 = arith.constant 0 : index
    %c0_423 = arith.constant 0 : index
    %393 = vector.load %arg4[%c0_421, %c0_422, %c0_423] : memref<1x32x288xf32, #tpu.memory_space<vmem>>, vector<1x32x72xf32>
    %394 = vector.shape_cast %393 : vector<1x32x72xf32> to vector<32x72xf32>
    %c35 = arith.constant 35 : index
    %c0_424 = arith.constant 0 : index
    %c0_425 = arith.constant 0 : index
    %395 = vector.load %arg2[%c35, %c0_424, %c0_425] : memref<42x32x32xf32, #tpu.memory_space<vmem>>, vector<1x32x32xf32>
    %396 = vector.shape_cast %395 : vector<1x32x32xf32> to vector<32x32xf32>
    %cst_426 = arith.constant dense<0.000000e+00> : vector<32x72xf32>
    %397 = tpu.matmul %396, %392, %cst_426 {dimension_numbers = #tpu.dot_dimension_numbers<[1], [0], [0], [1], [0, 0, 1, 1], [], []>} : vector<32x32xf32>, vector<32x72xf32>, vector<32x72xf32> -> vector<32x72xf32>
    %398 = arith.addf %394, %397 : vector<32x72xf32>
    %c0_427 = arith.constant 0 : index
    %c0_428 = arith.constant 0 : index
    %c0_429 = arith.constant 0 : index
    %399 = vector.load %arg4[%c0_427, %c0_428, %c0_429] : memref<1x32x288xf32, #tpu.memory_space<vmem>>, vector<1x32x72xf32>
    %400 = vector.shape_cast %399 : vector<1x32x72xf32> to vector<32x72xf32>
    %401 = vector.shape_cast %398 : vector<32x72xf32> to vector<1x32x72xf32>
    tpu.vector_store %arg4[%c0_427, %c0_428, %c0_429], %401 {strides = array<i32>} : memref<1x32x288xf32, #tpu.memory_space<vmem>>, vector<1x32x72xf32>,
    %c0_430 = arith.constant 0 : index
    %c0_431 = arith.constant 0 : index
    %c0_432 = arith.constant 0 : index
    %402 = vector.load %arg1[%c0_430, %c0_431, %c0_432] : memref<1x32x290xf32, #tpu.memory_space<vmem>>, vector<1x32x288xf32>
    %403 = vector.shape_cast %402 : vector<1x32x288xf32> to vector<32x288xf32>
    %c0_433 = arith.constant 0 : index
    %c0_434 = arith.constant 0 : index
    %c0_435 = arith.constant 0 : index
    %404 = vector.load %arg4[%c0_433, %c0_434, %c0_435] : memref<1x32x288xf32, #tpu.memory_space<vmem>>, vector<1x32x288xf32>
    %405 = vector.shape_cast %404 : vector<1x32x288xf32> to vector<32x288xf32>
    %c36 = arith.constant 36 : index
    %c0_436 = arith.constant 0 : index
    %c0_437 = arith.constant 0 : index
    %406 = vector.load %arg2[%c36, %c0_436, %c0_437] : memref<42x32x32xf32, #tpu.memory_space<vmem>>, vector<1x32x32xf32>
    %407 = vector.shape_cast %406 : vector<1x32x32xf32> to vector<32x32xf32>
    %cst_438 = arith.constant dense<0.000000e+00> : vector<32x288xf32>
    %408 = tpu.matmul %407, %403, %cst_438 {dimension_numbers = #tpu.dot_dimension_numbers<[1], [0], [0], [1], [0, 0, 1, 1], [], []>} : vector<32x32xf32>, vector<32x288xf32>, vector<32x288xf32> -> vector<32x288xf32>
    %409 = arith.addf %405, %408 : vector<32x288xf32>
    %c0_439 = arith.constant 0 : index
    %c0_440 = arith.constant 0 : index
    %c0_441 = arith.constant 0 : index
    %410 = vector.load %arg4[%c0_439, %c0_440, %c0_441] : memref<1x32x288xf32, #tpu.memory_space<vmem>>, vector<1x32x288xf32>
    %411 = vector.shape_cast %410 : vector<1x32x288xf32> to vector<32x288xf32>
    %412 = vector.shape_cast %409 : vector<32x288xf32> to vector<1x32x288xf32>
    tpu.vector_store %arg4[%c0_439, %c0_440, %c0_441], %412 {strides = array<i32>} : memref<1x32x288xf32, #tpu.memory_space<vmem>>, vector<1x32x288xf32>,
    %c0_442 = arith.constant 0 : index
    %c0_443 = arith.constant 0 : index
    %c1_444 = arith.constant 1 : index
    %413 = vector.load %arg1[%c0_442, %c0_443, %c1_444] : memref<1x32x290xf32, #tpu.memory_space<vmem>>, vector<1x32x288xf32>
    %414 = vector.shape_cast %413 : vector<1x32x288xf32> to vector<32x288xf32>
    %c0_445 = arith.constant 0 : index
    %c0_446 = arith.constant 0 : index
    %c0_447 = arith.constant 0 : index
    %415 = vector.load %arg4[%c0_445, %c0_446, %c0_447] : memref<1x32x288xf32, #tpu.memory_space<vmem>>, vector<1x32x288xf32>
    %416 = vector.shape_cast %415 : vector<1x32x288xf32> to vector<32x288xf32>
    %c37 = arith.constant 37 : index
    %c0_448 = arith.constant 0 : index
    %c0_449 = arith.constant 0 : index
    %417 = vector.load %arg2[%c37, %c0_448, %c0_449] : memref<42x32x32xf32, #tpu.memory_space<vmem>>, vector<1x32x32xf32>
    %418 = vector.shape_cast %417 : vector<1x32x32xf32> to vector<32x32xf32>
    %cst_450 = arith.constant dense<0.000000e+00> : vector<32x288xf32>
    %419 = tpu.matmul %418, %414, %cst_450 {dimension_numbers = #tpu.dot_dimension_numbers<[1], [0], [0], [1], [0, 0, 1, 1], [], []>} : vector<32x32xf32>, vector<32x288xf32>, vector<32x288xf32> -> vector<32x288xf32>
    %420 = arith.addf %416, %419 : vector<32x288xf32>
    %c0_451 = arith.constant 0 : index
    %c0_452 = arith.constant 0 : index
    %c0_453 = arith.constant 0 : index
    %421 = vector.load %arg4[%c0_451, %c0_452, %c0_453] : memref<1x32x288xf32, #tpu.memory_space<vmem>>, vector<1x32x288xf32>
    %422 = vector.shape_cast %421 : vector<1x32x288xf32> to vector<32x288xf32>
    %423 = vector.shape_cast %420 : vector<32x288xf32> to vector<1x32x288xf32>
    tpu.vector_store %arg4[%c0_451, %c0_452, %c0_453], %423 {strides = array<i32>} : memref<1x32x288xf32, #tpu.memory_space<vmem>>, vector<1x32x288xf32>,
    %c0_454 = arith.constant 0 : index
    %c0_455 = arith.constant 0 : index
    %c2_456 = arith.constant 2 : index
    %424 = vector.load %arg1[%c0_454, %c0_455, %c2_456] : memref<1x32x290xf32, #tpu.memory_space<vmem>>, vector<1x32x288xf32>
    %425 = vector.shape_cast %424 : vector<1x32x288xf32> to vector<32x288xf32>
    %c0_457 = arith.constant 0 : index
    %c0_458 = arith.constant 0 : index
    %c0_459 = arith.constant 0 : index
    %426 = vector.load %arg4[%c0_457, %c0_458, %c0_459] : memref<1x32x288xf32, #tpu.memory_space<vmem>>, vector<1x32x288xf32>
    %427 = vector.shape_cast %426 : vector<1x32x288xf32> to vector<32x288xf32>
    %c38 = arith.constant 38 : index
    %c0_460 = arith.constant 0 : index
    %c0_461 = arith.constant 0 : index
    %428 = vector.load %arg2[%c38, %c0_460, %c0_461] : memref<42x32x32xf32, #tpu.memory_space<vmem>>, vector<1x32x32xf32>
    %429 = vector.shape_cast %428 : vector<1x32x32xf32> to vector<32x32xf32>
    %cst_462 = arith.constant dense<0.000000e+00> : vector<32x288xf32>
    %430 = tpu.matmul %429, %425, %cst_462 {dimension_numbers = #tpu.dot_dimension_numbers<[1], [0], [0], [1], [0, 0, 1, 1], [], []>} : vector<32x32xf32>, vector<32x288xf32>, vector<32x288xf32> -> vector<32x288xf32>
    %431 = arith.addf %427, %430 : vector<32x288xf32>
    %c0_463 = arith.constant 0 : index
    %c0_464 = arith.constant 0 : index
    %c0_465 = arith.constant 0 : index
    %432 = vector.load %arg4[%c0_463, %c0_464, %c0_465] : memref<1x32x288xf32, #tpu.memory_space<vmem>>, vector<1x32x288xf32>
    %433 = vector.shape_cast %432 : vector<1x32x288xf32> to vector<32x288xf32>
    %434 = vector.shape_cast %431 : vector<32x288xf32> to vector<1x32x288xf32>
    tpu.vector_store %arg4[%c0_463, %c0_464, %c0_465], %434 {strides = array<i32>} : memref<1x32x288xf32, #tpu.memory_space<vmem>>, vector<1x32x288xf32>,
    %c0_466 = arith.constant 0 : index
    %c0_467 = arith.constant 0 : index
    %c0_468 = arith.constant 0 : index
    %435 = vector.load %arg1[%c0_466, %c0_467, %c0_468] : memref<1x32x290xf32, #tpu.memory_space<vmem>>, vector<1x32x288xf32>
    %436 = vector.shape_cast %435 : vector<1x32x288xf32> to vector<32x288xf32>
    %c0_469 = arith.constant 0 : index
    %c0_470 = arith.constant 0 : index
    %c0_471 = arith.constant 0 : index
    %437 = vector.load %arg4[%c0_469, %c0_470, %c0_471] : memref<1x32x288xf32, #tpu.memory_space<vmem>>, vector<1x32x288xf32>
    %438 = vector.shape_cast %437 : vector<1x32x288xf32> to vector<32x288xf32>
    %c39 = arith.constant 39 : index
    %c0_472 = arith.constant 0 : index
    %c0_473 = arith.constant 0 : index
    %439 = vector.load %arg2[%c39, %c0_472, %c0_473] : memref<42x32x32xf32, #tpu.memory_space<vmem>>, vector<1x32x32xf32>
    %440 = vector.shape_cast %439 : vector<1x32x32xf32> to vector<32x32xf32>
    %cst_474 = arith.constant dense<0.000000e+00> : vector<32x288xf32>
    %441 = tpu.matmul %440, %436, %cst_474 {dimension_numbers = #tpu.dot_dimension_numbers<[1], [0], [0], [1], [0, 0, 1, 1], [], []>} : vector<32x32xf32>, vector<32x288xf32>, vector<32x288xf32> -> vector<32x288xf32>
    %442 = arith.addf %438, %441 : vector<32x288xf32>
    %c0_475 = arith.constant 0 : index
    %c0_476 = arith.constant 0 : index
    %c0_477 = arith.constant 0 : index
    %443 = vector.load %arg4[%c0_475, %c0_476, %c0_477] : memref<1x32x288xf32, #tpu.memory_space<vmem>>, vector<1x32x288xf32>
    %444 = vector.shape_cast %443 : vector<1x32x288xf32> to vector<32x288xf32>
    %445 = vector.shape_cast %442 : vector<32x288xf32> to vector<1x32x288xf32>
    tpu.vector_store %arg4[%c0_475, %c0_476, %c0_477], %445 {strides = array<i32>} : memref<1x32x288xf32, #tpu.memory_space<vmem>>, vector<1x32x288xf32>,
    %c0_478 = arith.constant 0 : index
    %c0_479 = arith.constant 0 : index
    %c1_480 = arith.constant 1 : index
    %446 = vector.load %arg1[%c0_478, %c0_479, %c1_480] : memref<1x32x290xf32, #tpu.memory_space<vmem>>, vector<1x32x288xf32>
    %447 = vector.shape_cast %446 : vector<1x32x288xf32> to vector<32x288xf32>
    %c0_481 = arith.constant 0 : index
    %c0_482 = arith.constant 0 : index
    %c0_483 = arith.constant 0 : index
    %448 = vector.load %arg4[%c0_481, %c0_482, %c0_483] : memref<1x32x288xf32, #tpu.memory_space<vmem>>, vector<1x32x288xf32>
    %449 = vector.shape_cast %448 : vector<1x32x288xf32> to vector<32x288xf32>
    %c40 = arith.constant 40 : index
    %c0_484 = arith.constant 0 : index
    %c0_485 = arith.constant 0 : index
    %450 = vector.load %arg2[%c40, %c0_484, %c0_485] : memref<42x32x32xf32, #tpu.memory_space<vmem>>, vector<1x32x32xf32>
    %451 = vector.shape_cast %450 : vector<1x32x32xf32> to vector<32x32xf32>
    %cst_486 = arith.constant dense<0.000000e+00> : vector<32x288xf32>
    %452 = tpu.matmul %451, %447, %cst_486 {dimension_numbers = #tpu.dot_dimension_numbers<[1], [0], [0], [1], [0, 0, 1, 1], [], []>} : vector<32x32xf32>, vector<32x288xf32>, vector<32x288xf32> -> vector<32x288xf32>
    %453 = arith.addf %449, %452 : vector<32x288xf32>
    %c0_487 = arith.constant 0 : index
    %c0_488 = arith.constant 0 : index
    %c0_489 = arith.constant 0 : index
    %454 = vector.load %arg4[%c0_487, %c0_488, %c0_489] : memref<1x32x288xf32, #tpu.memory_space<vmem>>, vector<1x32x288xf32>
    %455 = vector.shape_cast %454 : vector<1x32x288xf32> to vector<32x288xf32>
    %456 = vector.shape_cast %453 : vector<32x288xf32> to vector<1x32x288xf32>
    tpu.vector_store %arg4[%c0_487, %c0_488, %c0_489], %456 {strides = array<i32>} : memref<1x32x288xf32, #tpu.memory_space<vmem>>, vector<1x32x288xf32>,
    %c0_490 = arith.constant 0 : index
    %c0_491 = arith.constant 0 : index
    %c2_492 = arith.constant 2 : index
    %457 = vector.load %arg1[%c0_490, %c0_491, %c2_492] : memref<1x32x290xf32, #tpu.memory_space<vmem>>, vector<1x32x288xf32>
    %458 = vector.shape_cast %457 : vector<1x32x288xf32> to vector<32x288xf32>
    %c0_493 = arith.constant 0 : index
    %c0_494 = arith.constant 0 : index
    %c0_495 = arith.constant 0 : index
    %459 = vector.load %arg4[%c0_493, %c0_494, %c0_495] : memref<1x32x288xf32, #tpu.memory_space<vmem>>, vector<1x32x288xf32>
    %460 = vector.shape_cast %459 : vector<1x32x288xf32> to vector<32x288xf32>
    %c41 = arith.constant 41 : index
    %c0_496 = arith.constant 0 : index
    %c0_497 = arith.constant 0 : index
    %461 = vector.load %arg2[%c41, %c0_496, %c0_497] : memref<42x32x32xf32, #tpu.memory_space<vmem>>, vector<1x32x32xf32>
    %462 = vector.shape_cast %461 : vector<1x32x32xf32> to vector<32x32xf32>
    %cst_498 = arith.constant dense<0.000000e+00> : vector<32x288xf32>
    %463 = tpu.matmul %462, %458, %cst_498 {dimension_numbers = #tpu.dot_dimension_numbers<[1], [0], [0], [1], [0, 0, 1, 1], [], []>} : vector<32x32xf32>, vector<32x288xf32>, vector<32x288xf32> -> vector<32x288xf32>
    %464 = arith.addf %460, %463 : vector<32x288xf32>
    %c0_499 = arith.constant 0 : index
    %c0_500 = arith.constant 0 : index
    %c0_501 = arith.constant 0 : index
    %465 = vector.load %arg4[%c0_499, %c0_500, %c0_501] : memref<1x32x288xf32, #tpu.memory_space<vmem>>, vector<1x32x288xf32>
    %466 = vector.shape_cast %465 : vector<1x32x288xf32> to vector<32x288xf32>
    %467 = vector.shape_cast %464 : vector<32x288xf32> to vector<1x32x288xf32>
    tpu.vector_store %arg4[%c0_499, %c0_500, %c0_501], %467 {strides = array<i32>} : memref<1x32x288xf32, #tpu.memory_space<vmem>>, vector<1x32x288xf32>,
    return
  }
  func.func @transform_0(%arg0: i32) -> (i32, i32, i32) {
    %c0_i32 = arith.constant 0 : i32
    %c0_i32_0 = arith.constant 0 : i32
    %c0_i32_1 = arith.constant 0 : i32
    return %arg0, %c0_i32, %c0_i32_0 : i32, i32, i32
  }
  func.func @transform_1(%arg0: i32) -> (i32, i32, i32) {
    %c0_i32 = arith.constant 0 : i32
    %c0_i32_0 = arith.constant 0 : i32
    %c0_i32_1 = arith.constant 0 : i32
    %c0_i32_2 = arith.constant 0 : i32
    return %c0_i32, %c0_i32_0, %c0_i32_1 : i32, i32, i32
  }
  func.func @transform_2(%arg0: i32) -> (i32, i32) {
    %c0_i32 = arith.constant 0 : i32
    %c0_i32_0 = arith.constant 0 : i32
    %c0_i32_1 = arith.constant 0 : i32
    return %c0_i32, %c0_i32_0 : i32, i32
  }
  func.func @transform_3(%arg0: i32) -> (i32, i32, i32) {
    %c0_i32 = arith.constant 0 : i32
    %c0_i32_0 = arith.constant 0 : i32
    %c0_i32_1 = arith.constant 0 : i32
    return %arg0, %c0_i32, %c0_i32_0 : i32, i32, i32
  }
}

</mosaic_0001>

<bundles_post_ra>
// kernel: tpu_custom_call.1
= control target key start
LH: loop header
LB: loop body
LE: loop exit
PB: predicated region body
PF: predicated region fallthrough
CT: control target
= control target key end

     0   :  { %8 = vsyncpa [#allocation3], 0  ;;  %s16408_s0 = inlined_call_operand.vmem [shape: f32[2,32,290], index: 0, kind: input, shape index: {}]   ;;  %s16409_s1 = inlined_call_operand.vmem [shape: f32[42,32,32], index: 1, kind: input, shape index: {}]   ;;  %s16410_s2 = inlined_call_operand.vmem [shape: f32[32,1], index: 2, kind: input, shape index: {}]   ;;  %s16411_s3 = inlined_call_operand.hbm [shape: f32[2,32,288], index: 3, kind: output, shape index: {}]  }
   0x1   :  { %10 = vsyncpa [#allocation3 + $0x1], 0  ;;  %s12282_s12 = smov 0   ;;  %s12284_s13 = smov 0  }
   0x2   :  { %s12286_s14 = smov 0   ;;  %s12288_s15 = smov 0  }
   0x3 LB: > { %s12303_s16 = sadd.s32 4294967295, %s12245_s15   ;;  %s9872_s17 = sadd.s32 4294967294, %s12245_s15   ;;  %s12245_s15 = sphi %s12288_s15, %s16670_s15   ;;  %s12241_s14 = sphi %s12286_s14, %s16669_s14   ;;  %s12237_s13 = sphi %s12284_s13, %s16668_s13   ;;  %s12233_s12 = sphi %s12282_s12, %s16667_s12  }
   0x4   : > { %s12307_s18 = sadd.s32 1, %s12245_s15   ;;  %s91_s19 = sadd.s32 1, %s12241_s14 }
   0x5   : > { %s88_s20 = ssub.s32 %s12245_s15, %s12307_s18  ;;  %p101_p0 = scmp.ne.s32.totalorder %s12241_s14, %s12237_s13 }
   0x6   : > { %p89_p1 = scmp.eq.s32.totalorder %s88_s20, 0  ;;  %p102_p2 = scmp.eq.s32.totalorder %s12303_s16, 1 }
   0x7   : > { %p107_p3 = scmp.ne.s32.totalorder %s12237_s13, %s12233_s12  ;;  %p108_p4 = scmp.eq.s32.totalorder %s9872_s17, 1 }
   0x8   : > { %s12318_s21 = scalar_select %p89_p1, %s12241_s14, %s91_s19  }
   0x9   : > { %p12320_p5 = por %p102_p2, %p101_p0  ;;  %p12324_p6 = por %p108_p4, %p107_p3 }
   0xa   : > { %p9875_p7 = scmp.ge.s32.totalorder %s12245_s15, 1  ;;  %p140_p8 = scmp.lt.s32.totalorder %s12245_s15, 3 }
   0xc   : > { %p141_p9 = pnand %p9875_p7, %p140_p8 }
   0xe   : > { %144 = sbr.rel (%p141_p9) target bundleno = 922 (0x39a), region = 32 }
  0x15   : > { %v171_v0 = vld [vmem:[%s16410_s2 + $0x10] sm:$0xff]  ;;  %v169_v1 = vld [vmem:[%s16410_s2] sm:$0xff]  ;;  %p164_p10 = scmp.lt.s32.totalorder %s12303_s16, 1  ;;  %v12247_v2 = vmov 0   ;;  %v172_v3 = vld [vmem:[%s16410_s2 + $0x18] sm:$0xff]  ;;  %v16412_v5 = vmov 0.0  }
  0x16   : > { %11349 = vset.pattern.permute.xlu1 %v12247_v2  ;;  %11348 = vset.pattern.permute.xlu0 %v12247_v2  ;;  %v170_v4 = vld [vmem:[%s16410_s2 + $0x8] sm:$0xff]  ;;  %s12249_s10 = smov 127   ;;  %vm195_vm0 = vcmask 261120   ;;  %v226_v26 = vld [vmem:[%s16409_s1] sm:$0xff]  ;;  %s12250_s19 = smov 126   ;;  %v228_v29 = vld [vmem:[%s16409_s1 + $0x10] sm:$0xff] }
  0x17   : > { %185 = vperm.xlu1 %11349, %v171_v0   ;;  %175 = vperm.xlu0 %11348, %v169_v1   ;;  %s165_s28 = scalar_select %p164_p10, %s12303_s16, 1  ;;  %v227_v27 = vld [vmem:[%s16409_s1 + $0x8] sm:$0xff]  ;;  %v229_v31 = vld [vmem:[%s16409_s1 + $0x18] sm:$0xff]  ;;  %vm446_vm1 = vcmask 1039360   ;;  %vm673_vm2 = vcmask 1031168   ;;  %vm1741_vm3 = vcmask 162816  }
  0x18   : > { %306 = vmatprep.mubr.f32.mxu0 %v16412_v5  ;;  %535 = vmatprep.mubr.f32.mxu1 %v16412_v5  ;;  %s12251_s29 = smov 20   ;;  %s12252_s30 = smov 19   ;;  %vm1937_vm4 = vcmask 154624   ;;  %vm2132_vm5 = vcmask 146432   ;;  %vm384_vm6 = vcmask 1048416   ;;  %vm355_vm7 = vcmask 883712  }
  0x19   : > { %s11293_s6 = smul.u32 96, %s165_s28  ;;  %s12253_s4 = smov 18   ;;  %vm1868_vm8 = vcmask 424960   ;;  %vm7713_vm9 = vcmask 326656   ;;  %vm7869_vm10 = vcmask 318464   ;;  %vm8024_vm11 = vcmask 310272  }
  0x1a   : > { %s161_s5 = sand.u32 1, %s12237_s13   ;;  %s12254_s28 = smov 108   ;;  %vm6510_vm12 = vcmask 1048256   ;;  %vm7823_vm13 = vcmask 588800  }
  0x1b   : > { %190 = vperm.xlu1 %11349, %v172_v3   ;;  %180 = vperm.xlu0 %11348, %v170_v4   ;;  %s12349_s9 = scalar_lea.vmem %s16408_s0, %s11293_s6  ;;  %s11292_s6 = smul.u32 96, %s161_s5 }
  0x1c   : > { %v207_v6 = vld [vmem:[%s12349_s9 + $0x8] sm:$0xff]  ;;  %v12353_v7 = vld [vmem:[%s12349_s9 + $0x20] sm:$0xff]  ;;  %v12356_v8 = vld [vmem:[%s12349_s9 + $0x18] sm:$0xff]  ;;  %s11294_s26 = smul.u32 1536, %s12303_s16  ;;  %s12259_s11 = smov [#allocation2]  }
  0x1d   : > { %v12359_v9 = vpack.c.bf16 %v12353_v7, %v207_v6  ;;  %v12363_v10 = vpack.i.bf16 %v12353_v7, %v12356_v8  ;;  %v397_v11 = vld [vmem:[%s12349_s9] sm:$0xff]  ;;  %v12367_v12 = vld [vmem:[%s12349_s9 + $0x38] sm:$0xff]  ;;  %v213_v13 = vld [vmem:[%s12349_s9 + $0x50] sm:$0xff]  ;;  %s12550_s7 = scalar_lea.vmem [#allocation2], %s11292_s6  ;;  %s12256_s6 = smov 39  }
  0x1e   : > { %v12370_v14 = vpack.i.bf16 %v207_v6, %v397_v11  ;;  %v12373_v15 = vpack.c.bf16 %v12356_v8, %v397_v11  ;;  %v12376_v16 = vpack.c.bf16 %v213_v13, %v12367_v12  ;;  %v403_v17 = vld [vmem:[%s12349_s9 + $0x48] sm:$0xff]  ;;  %v401_v18 = vld [vmem:[%s12349_s9 + $0x30] sm:$0xff]  ;;  %v12381_v19 = vpack.i.bf16 %v12356_v8, %v397_v11  ;;  %v1101_v33 = vld [vmem:[%s12349_s9 + $0x58] sm:$0xff] }
  0x1f   : > { %10813 = vmatprep.subr.bf16.mxu0 %v12359_v9  ;;  %11356 = vrot.lane.b32.xlu1 %v12363_v10, %s12249_s10  ;;  %v12386_v20 = vpack.i.bf16 %v213_v13, %v403_v17  ;;  %v12392_v21 = vpack.i.bf16 %v12367_v12, %v401_v18  ;;  %v12394_v22 = vpack.c.bf16 %v403_v17, %v401_v18  ;;  %v1092_v23 = vld [vmem:[%s12349_s9 + $0x10] sm:$0xff]  ;;  %v1095_v30 = vld [vmem:[%s12349_s9 + $0x28] sm:$0xff]  ;;  %v1098_v34 = vld [vmem:[%s12349_s9 + $0x40] sm:$0xff] }
  0x20   : > { %11351 = vrot.lane.b32.xlu0 %v12370_v14, %s12249_s10  ;;  %10815 = vmatpush1.bf16.msra.mxu0 %v12373_v15  ;;  %v12398_v24 = vpack.i.bf16 %v403_v17, %v401_v18  ;;  %v12400_v25 = vpack.i.bf16 %v1092_v23, %v207_v6  ;;  %v11395_v28 = vpack.i.bf16 %v12356_v8, %v1092_v23 }
  0x21   : > { %10817 = vmatprep.subr.bf16.mxu0 %v12376_v16  ;;  %v12439_v32 = vpack.i.bf16 %v1095_v30, %v12353_v7  ;;  %v12443_v35 = vpack.c.bf16 %v1095_v30, %v1092_v23  ;;  %v12448_v36 = vpack.i.bf16 %v1101_v33, %v213_v13  ;;  %v11410_v37 = vpack.i.bf16 %v403_v17, %v1098_v34 }
  0x22   : > { %v12455_v38 = vpack.c.bf16 %v1101_v33, %v1098_v34  ;;  %v11515_v39 = vpack.i.bf16 %v12353_v7, %v1092_v23  ;;  %v12491_v40 = vpack.i.bf16 %v1098_v34, %v12367_v12  ;;  %v11520_v41 = vpack.i.bf16 %v12356_v8, %v1095_v30 }
  0x23   : > { %11366 = vrot.lane.b32.xlu1 %v12386_v20, %s12249_s10 }
  0x24   : > { %11361 = vrot.lane.b32.xlu0 %v12392_v21, %s12249_s10  ;;  %10819 = vmatpush1.bf16.msra.mxu0 %v12394_v22 }
  0x27   : > { %9877 = vmatmul.mubr.msk.f32.vlgmr.msra.gmra.mrb[0].mxu0 %vm195_vm0, %v226_v26  ;;  %11376 = vrot.lane.b32.xlu1 %v12363_v10, %s12250_s19 }
  0x28   : > { %11371 = vrot.lane.b32.xlu0 %v12370_v14, %s12250_s19  ;;  %312 = vmatprep.mubr.f32.mxu0 %v16412_v5 }
  0x2b   : > { %9878 = vmatmul.mubr.msk.f32.gmra.mrb[2].mxu0 %vm195_vm0, %v227_v27  ;;  %11386 = vrot.lane.b32.xlu1 %v12386_v20, %s12250_s19  ;;  %v9882_v27 = vld [vmem:[%s16409_s1 + $0x28] sm:$0xff] }
  0x2c   : > { %11381 = vrot.lane.b32.xlu0 %v12392_v21, %s12250_s19  ;;  %318 = vmatprep.mubr.f32.mxu0 %v16412_v5 }
  0x2f   : > { %9879 = vmatmul.mubr.msk.f32.gmra.mrb[4].mxu0 %vm195_vm0, %v228_v29  ;;  %11396 = vrot.lane.b32.xlu1 %v11395_v28, %s12249_s10 }
  0x30   : > { %11391 = vrot.lane.b32.xlu0 %v12370_v14, %s12249_s10  ;;  %324 = vmatprep.mubr.f32.mxu0 %v16412_v5 }
  0x33   : > { %9880 = vmatmul.mubr.msk.f32.gmra.mrb[6].mxu0 %vm195_vm0, %v229_v31  ;;  %11406 = vrot.lane.b32.xlu1 %v12392_v21, %s12249_s10 }
  0x34   : > { %11401 = vrot.lane.b32.xlu0 %v12439_v32, %s12249_s10  ;;  %762 = vmatprep.mubr.f32.mxu0 %v16412_v5 }
  0x37   : > { %11416 = vrot.lane.b32.xlu1 %v12448_v36, %s12249_s10 }
  0x38   : > { %11411 = vrot.lane.b32.xlu0 %v11410_v37, %s12249_s10 }
  0x3b   : > { %11426 = vrot.lane.b32.xlu1 %v11395_v28, %s12250_s19 }
  0x3c   : > { %11421 = vrot.lane.b32.xlu0 %v12370_v14, %s12250_s19 }
  0x3f   : > { %11436 = vrot.lane.b32.xlu1 %v12392_v21, %s12250_s19 }
  0x40   : > { %11431 = vrot.lane.b32.xlu0 %v12439_v32, %s12250_s19 }
  0x43   : > { %11446 = vrot.lane.b32.xlu1 %v12448_v36, %s12250_s19 }
  0x44   : > { %11441 = vrot.lane.b32.xlu0 %v11410_v37, %s12250_s19 }
  0x47   : > { %11456 = vrot.lane.b32.xlu1 %v11395_v28, %s12251_s29 }
  0x48   : > { %11451 = vrot.lane.b32.xlu0 %v12370_v14, %s12251_s29 }
  0x4b   : > { %11466 = vrot.lane.b32.xlu1 %v12392_v21, %s12251_s29 }
  0x4c   : > { %11461 = vrot.lane.b32.xlu0 %v12439_v32, %s12251_s29 }
  0x4f   : > { %11476 = vrot.lane.b32.xlu1 %v12448_v36, %s12251_s29 }
  0x50   : > { %11471 = vrot.lane.b32.xlu0 %v11410_v37, %s12251_s29 }
  0x53   : > { %11486 = vrot.lane.b32.xlu1 %v11395_v28, %s12252_s30 }
  0x54   : > { %11481 = vrot.lane.b32.xlu0 %v12370_v14, %s12252_s30 }
  0x57   : > { %11496 = vrot.lane.b32.xlu1 %v12392_v21, %s12252_s30 }
  0x58   : > { %11491 = vrot.lane.b32.xlu0 %v12439_v32, %s12252_s30 }
  0x5b   : > { %11506 = vrot.lane.b32.xlu1 %v12448_v36, %s12252_s30 }
  0x5c   : > { %11501 = vrot.lane.b32.xlu0 %v11410_v37, %s12252_s30 }
  0x5f   : > { %11516 = vrot.lane.b32.xlu1 %v11515_v39, %s12253_s4 }
  0x60   : > { %11511 = vrot.lane.b32.xlu0 %v12370_v14, %s12253_s4 }
  0x63   : > { %11526 = vrot.lane.b32.xlu1 %v12491_v40, %s12253_s4 }
  0x64   : > { %11521 = vrot.lane.b32.xlu0 %v11520_v41, %s12253_s4 }
  0x67   : > { %11536 = vrot.lane.b32.xlu1 %v12398_v24, %s12253_s4 }
  0x68   : > { %11531 = vrot.lane.b32.xlu0 %v12448_v36, %s12253_s4 }
  0x6b   : > { %11546 = vrot.lane.b32.xlu1 %v12363_v10, %s12249_s10 }
  0x6c   : > { %11541 = vrot.lane.b32.xlu0 %v12370_v14, %s12249_s10 }
  0x6f   : > { %11556 = vrot.lane.b32.xlu1 %v12386_v20, %s12249_s10 }
  0x70   : > { %11551 = vrot.lane.b32.xlu0 %v12392_v21, %s12249_s10 }
  0x73   : > { %11566 = vrot.lane.b32.xlu1 %v12363_v10, %s12250_s19  ;;  %v9881_v10 = vld [vmem:[%s16409_s1 + $0x20] sm:$0xff] }
  0x74   : > { %11561 = vrot.lane.b32.xlu0 %v12370_v14, %s12250_s19 }
  0x77   : > { %11576 = vrot.lane.b32.xlu1 %v12386_v20, %s12250_s19 }
  0x78   : > { %11571 = vrot.lane.b32.xlu0 %v12392_v21, %s12250_s19 }
  0x7b   : > { %11586 = vrot.lane.b32.xlu1 %v12439_v32, %s12249_s10 }
  0x7c   : > { %11581 = vrot.lane.b32.xlu0 %v12400_v25, %s12249_s10 }
  0x7f   : > { %11596 = vrot.lane.b32.xlu1 %v12491_v40, %s12249_s10 }
  0x80   : > { %11591 = vrot.lane.b32.xlu0 %v12381_v19, %s12249_s10 }
  0x83   : > { %11606 = vrot.lane.b32.xlu1 %v12398_v24, %s12249_s10 }
  0x84   : > { %11601 = vrot.lane.b32.xlu0 %v12448_v36, %s12249_s10 }
  0x87   : > { %11616 = vrot.lane.b32.xlu1 %v12439_v32, %s12250_s19 }
  0x88   : > { %11611 = vrot.lane.b32.xlu0 %v12400_v25, %s12250_s19 }
  0x8b   : > { %11626 = vrot.lane.b32.xlu1 %v12491_v40, %s12250_s19 }
  0x8c   : > { %11621 = vrot.lane.b32.xlu0 %v12381_v19, %s12250_s19 }
  0x8f   : > { %11636 = vrot.lane.b32.xlu1 %v12398_v24, %s12250_s19 }
  0x90   : > { %11631 = vrot.lane.b32.xlu0 %v12448_v36, %s12250_s19 }
  0x93   : > { %11646 = vrot.lane.b32.xlu1 %v12439_v32, %s12251_s29 }
  0x94   : > { %11641 = vrot.lane.b32.xlu0 %v12400_v25, %s12251_s29 }
  0x96   : > { %v186_v42 = vpop.permute.xlu1 %185  ;;  %v176_v43 = vpop.permute.xlu0 %175 }
  0x97   : > { %200 = vst [vmem:[%s12550_s7 + $0x30] sm:$0xff] %v186_v42  ;;  %201 = vst [vmem:[%s12550_s7 + $0x38] sm:$0xff] %v186_v42  ;;  %11656 = vrot.lane.b32.xlu1 %v12491_v40, %s12251_s29 }
  0x98   : > { %202 = vst.msk [vmem:[%s12550_s7 + $0x40] sm:$0xff] %vm195_vm0, %v186_v42  ;;  %193 = vst [vmem:[%s12550_s7] sm:$0xff] %v176_v43  ;;  %11651 = vrot.lane.b32.xlu0 %v12381_v19, %s12251_s29 }
  0x99   : > { %194 = vst [vmem:[%s12550_s7 + $0x8] sm:$0xff] %v176_v43  ;;  %196 = vst.msk [vmem:[%s12550_s7 + $0x10] sm:$0xff] %vm195_vm0, %v176_v43 }
  0x9a   : > { %v191_v44 = vpop.permute.xlu1 %190  ;;  %v181_v45 = vpop.permute.xlu0 %180 }
  0x9b   : > { %203 = vst [vmem:[%s12550_s7 + $0x48] sm:$0xff] %v191_v44  ;;  %204 = vst [vmem:[%s12550_s7 + $0x50] sm:$0xff] %v191_v44  ;;  %11666 = vrot.lane.b32.xlu1 %v12398_v24, %s12251_s29 }
  0x9c   : > { %205 = vst.msk [vmem:[%s12550_s7 + $0x58] sm:$0xff] %vm195_vm0, %v191_v44  ;;  %197 = vst [vmem:[%s12550_s7 + $0x18] sm:$0xff] %v181_v45  ;;  %11661 = vrot.lane.b32.xlu0 %v12448_v36, %s12251_s29 }
  0x9d   : > { %198 = vst [vmem:[%s12550_s7 + $0x20] sm:$0xff] %v181_v45  ;;  %199 = vst.msk [vmem:[%s12550_s7 + $0x28] sm:$0xff] %vm195_vm0, %v181_v45 }
  0x9e   : > { %v11357_v46 = vpop.permute.xlu1 %11356  ;;  %v11352_v47 = vpop.permute.xlu0 %11351 }
  0x9f   : > { %v11358_v48 = vunpack.i.l.bf16 %v11357_v46  ;;  %v11353_v49 = vunpack.i.l.bf16 %v11352_v47  ;;  %v11359_v50 = vunpack.i.h.bf16 %v11357_v46  ;;  %v11354_v51 = vunpack.i.h.bf16 %v11352_v47  ;;  %11676 = vrot.lane.b32.xlu1 %v12439_v32, %s12252_s30 }
  0xa0   : > { %11671 = vrot.lane.b32.xlu0 %v12400_v25, %s12252_s30 }
  0xa1   : > { %v10820_v52 = vpack.c.bf16 %v11359_v50, %v11354_v51  ;;  %v447_v53 = vsel %vm446_vm1, %v11353_v49, %v11354_v51  ;;  %v448_v54 = vsel %vm446_vm1, %v11358_v48, %v11359_v50  ;;  %v12641_v48 = vld [vmem:[%s12349_s9 + $0x18] sm:$0xff]  ;;  %v12644_v49 = vld [vmem:[%s12349_s9 + $0x20] sm:$0xff] }
  0xa2   : > { %v11367_v55 = vpop.permute.xlu1 %11366  ;;  %v11362_v56 = vpop.permute.xlu0 %11361  ;;  %v10822_v57 = vpack.c.bf16 %v448_v54, %v447_v53 }
  0xa3   : > { %v11369_v58 = vunpack.i.h.bf16 %v11367_v55  ;;  %v11368_v59 = vunpack.i.l.bf16 %v11367_v55  ;;  %v11364_v60 = vunpack.i.h.bf16 %v11362_v56  ;;  %v11363_v61 = vunpack.i.l.bf16 %v11362_v56  ;;  %10821 = vmatprep.subr.bf16.mxu1 %v10820_v52  ;;  %11686 = vrot.lane.b32.xlu1 %v12491_v40, %s12252_s30  ;;  %v12654_v55 = vld [vmem:[%s12349_s9] sm:$0xff] }
  0xa4   : > { %10823 = vmatpush1.bf16.msra.mxu1 %v10822_v57  ;;  %11681 = vrot.lane.b32.xlu0 %v12381_v19, %s12252_s30 }
  0xa5   : > { %v10824_v62 = vpack.c.bf16 %v11369_v58, %v11364_v60  ;;  %v449_v63 = vsel %vm446_vm1, %v11363_v61, %v11364_v60  ;;  %v450_v0 = vsel %vm446_vm1, %v11368_v59, %v11369_v58  ;;  %v9897_v60 = vld [vmem:[%s16409_s1 + $0x60] sm:$0xff] }
  0xa6   : > { %v11377_v1 = vpop.permute.xlu1 %11376  ;;  %v11372_v2 = vpop.permute.xlu0 %11371  ;;  %v10826_v3 = vpack.c.bf16 %v450_v0, %v449_v63 }
  0xa7   : > { %v11379_v4 = vunpack.i.h.bf16 %v11377_v1  ;;  %v11378_v6 = vunpack.i.l.bf16 %v11377_v1  ;;  %v11374_v7 = vunpack.i.h.bf16 %v11372_v2  ;;  %v11373_v8 = vunpack.i.l.bf16 %v11372_v2  ;;  %10825 = vmatprep.subr.bf16.mxu1 %v10824_v62  ;;  %11696 = vrot.lane.b32.xlu1 %v12398_v24, %s12252_s30 }
  0xa8   : > { %10827 = vmatpush1.bf16.msra.mxu1 %v10826_v3  ;;  %11691 = vrot.lane.b32.xlu0 %v12448_v36, %s12252_s30  ;;  %v12673_v62 = vpack.i.bf16 %v12644_v49, %v12641_v48 }
  0xa9   : > { %v675_v11 = vsel %vm673_vm2, %v11378_v6, %v11379_v4  ;;  %v674_v12 = vsel %vm673_vm2, %v11373_v8, %v11374_v7  ;;  %v10828_v13 = vpack.c.bf16 %v11379_v4, %v11374_v7  ;;  %10837 = vmatprep.subr.bf16.mxu1 %v12359_v9  ;;  %v12690_v7 = vld [vmem:[%s12349_s9 + $0x48] sm:$0xff]  ;;  %v12695_v8 = vld [vmem:[%s12349_s9 + $0x50] sm:$0xff] }
  0xaa   : > { %v11387_v14 = vpop.permute.xlu1 %11386  ;;  %v11382_v17 = vpop.permute.xlu0 %11381  ;;  %v10830_v18 = vpack.c.bf16 %v675_v11, %v674_v12  ;;  %v12701_v11 = vld [vmem:[%s12349_s9 + $0x38] sm:$0xff]  ;;  %v9898_v12 = vld [vmem:[%s16409_s1 + $0x68] sm:$0xff] }
  0xab   : > { %v11389_v20 = vunpack.i.h.bf16 %v11387_v14  ;;  %v11388_v21 = vunpack.i.l.bf16 %v11387_v14  ;;  %v11384_v23 = vunpack.i.h.bf16 %v11382_v17  ;;  %v11383_v26 = vunpack.i.l.bf16 %v11382_v17  ;;  %9885 = vmatmul.mubr.msk.f32.vlgmr.msra.gmra.mrb[0].mxu1 %vm195_vm0, %v9881_v10  ;;  %10829 = vmatprep.subr.bf16.mxu0 %v10828_v13  ;;  %v12698_v10 = vld [vmem:[%s12349_s9 + $0x30] sm:$0xff] }
  0xac   : > { %10831 = vmatpush1.bf16.msra.mxu0 %v10830_v18  ;;  %541 = vmatprep.mubr.f32.mxu1 %v16412_v5 }
  0xad   : > { %v677_v28 = vsel %vm673_vm2, %v11388_v21, %v11389_v20  ;;  %v676_v9 = vsel %vm673_vm2, %v11383_v26, %v11384_v23  ;;  %v10832_v29 = vpack.c.bf16 %v11389_v20, %v11384_v23  ;;  %10839 = vmatpush1.bf16.msra.mxu1 %v12373_v15  ;;  %11706 = vrot.lane.b32.xlu1 %v12439_v32, %s12253_s4  ;;  %v9883_v15 = vld [vmem:[%s16409_s1 + $0x30] sm:$0xff]  ;;  %v9889_v32 = vld [vmem:[%s16409_s1 + $0x40] sm:$0xff] }
  0xae   : > { %v11397_v30 = vpop.permute.xlu1 %11396  ;;  %v11392_v31 = vpop.permute.xlu0 %11391  ;;  %v10834_v33 = vpack.c.bf16 %v677_v28, %v676_v9  ;;  %10841 = vmatprep.subr.bf16.mxu1 %v12376_v16  ;;  %11701 = vrot.lane.b32.xlu0 %v12400_v25, %s12253_s4  ;;  %v11745_v21 = vpack.i.bf16 %v12695_v8, %v12690_v7  ;;  %v12720_v23 = vpack.i.bf16 %v12701_v11, %v12698_v10  ;;  %v9899_v28 = vld [vmem:[%s16409_s1 + $0x70] sm:$0xff] }
  0xaf   : > { %v11398_v34 = vunpack.i.l.bf16 %v11397_v30  ;;  %v11394_v37 = vunpack.i.h.bf16 %v11392_v31  ;;  %9886 = vmatmul.mubr.msk.f32.gmra.mrb[2].mxu1 %vm195_vm0, %v9882_v27  ;;  %10833 = vmatprep.subr.bf16.mxu0 %v10832_v29  ;;  %v11399_v16 = vunpack.i.h.bf16 %v11397_v30  ;;  %v11393_v39 = vunpack.i.l.bf16 %v11392_v31 }
  0xb0   : > { %10835 = vmatpush1.bf16.msra.mxu0 %v10834_v33  ;;  %547 = vmatprep.mubr.f32.mxu1 %v16412_v5 }
  0xb1   : > { %10843 = vmatpush1.bf16.msra.mxu1 %v12394_v22  ;;  %10845 = vmatprep.subr.bf16.mxu0 %v12443_v35  ;;  %v1156_v22 = vsel %vm446_vm1, %v11394_v37, %v11398_v34  ;;  %v1155_v44 = vsel %vm446_vm1, %v11393_v39, %v11394_v37 }
  0xb2   : > { %v11407_v25 = vpop.permute.xlu1 %11406  ;;  %v11402_v41 = vpop.permute.xlu0 %11401  ;;  %11716 = vrot.lane.b32.xlu1 %v12491_v40, %s12253_s4  ;;  %11711 = vrot.lane.b32.xlu0 %v12381_v19, %s12253_s4  ;;  %v9884_v40 = vld [vmem:[%s16409_s1 + $0x38] sm:$0xff]  ;;  %v9890_v19 = vld [vmem:[%s16409_s1 + $0x48] sm:$0xff] }
  0xb3   : > { %v11404_v42 = vunpack.i.h.bf16 %v11402_v41  ;;  %v11403_v43 = vunpack.i.l.bf16 %v11402_v41  ;;  %9887 = vmatmul.mubr.msk.f32.gmra.mrb[4].mxu1 %vm195_vm0, %v9883_v15  ;;  %9893 = vmatmul.mubr.msk.f32.vlgmr.msra.gmra.mrb[8].mxu0 %vm195_vm0, %v9889_v32  ;;  %v11409_v45 = vunpack.i.h.bf16 %v11407_v25  ;;  %v11408_v50 = vunpack.i.l.bf16 %v11407_v25  ;;  %v9900_v41 = vld [vmem:[%s16409_s1 + $0x78] sm:$0xff] }
  0xb4   : > { %553 = vmatprep.mubr.f32.mxu1 %v16412_v5  ;;  %768 = vmatprep.mubr.f32.mxu0 %v16412_v5 }
  0xb5   : > { %v1157_v46 = vsel %vm446_vm1, %v11399_v16, %v11403_v43  ;;  %10847 = vmatpush3.bf16.msra.mxu0 %v12443_v35  ;;  %v1158_v47 = vsel %vm446_vm1, %v11403_v43, %v11404_v42  ;;  %v12649_v54 = vpack.c.bf16 %v11404_v42, %v11398_v34  ;;  %v12657_v35 = vld [vmem:[%s12349_s9 + $0x8] sm:$0xff]  ;;  %v1159_v2 = vsel %vm446_vm1, %v11408_v50, %v11409_v45 }
  0xb6   : > { %v12646_v51 = vpop.permute.xlu1 %11416  ;;  %v11412_v52 = vpop.permute.xlu0 %11411  ;;  %v10852_v53 = vpack.c.bf16 %v1158_v47, %v1156_v22  ;;  %10849 = vmatprep.subr.bf16.mxu0 %v12455_v38  ;;  %11726 = vrot.lane.b32.xlu1 %v12398_v24, %s12253_s4  ;;  %v9891_v24 = vld [vmem:[%s16409_s1 + $0x50] sm:$0xff]  ;;  %v10854_v61 = vpack.c.bf16 %v1157_v46, %v1155_v44  ;;  %v12680_v1 = vpack.i.bf16 %v12657_v35, %v12654_v55  ;;  %v9909_v44 = vld [vmem:[%s16409_s1 + $0x80] sm:$0xff] }
  0xb7   : > { %v11419_v56 = vunpack.i.h.bf16 %v12646_v51  ;;  %v11418_v57 = vunpack.i.l.bf16 %v12646_v51  ;;  %v11414_v58 = vunpack.i.h.bf16 %v11412_v52  ;;  %v11413_v59 = vunpack.i.l.bf16 %v11412_v52  ;;  %9888 = vmatmul.mubr.msk.f32.gmra.mrb[6].mxu1 %vm195_vm0, %v9884_v40  ;;  %9894 = vmatmul.mubr.msk.f32.gmra.mrb[10].mxu0 %vm195_vm0, %v9890_v19 }
  0xb8   : > { %774 = vmatprep.mubr.f32.mxu0 %v16412_v5  ;;  %956 = vmatprep.mubr.f32.mxu1 %v16412_v5 }
  0xb9   : > { %10853 = vmatprep.subr.bf16.mxu1 %v10852_v53  ;;  %10851 = vmatpush3.bf16.msra.mxu0 %v12455_v38  ;;  %v1160_v63 = vsel %vm446_vm1, %v11409_v45, %v11413_v59  ;;  %v1162_v0 = vsel %vm446_vm1, %v11418_v57, %v11419_v56  ;;  %v1161_v3 = vsel %vm446_vm1, %v11414_v58, %v11418_v57  ;;  %v9910_v53 = vld [vmem:[%s16409_s1 + $0x88] sm:$0xff] }
  0xba   : > { %v12684_v4 = vpop.permute.xlu1 %11426  ;;  %v11422_v6 = vpop.permute.xlu0 %11421  ;;  %10861 = vmatprep.subr.bf16.mxu0 %v12649_v54  ;;  %11721 = vrot.lane.b32.xlu0 %v12448_v36, %s12253_s4  ;;  %v10856_v38 = vpack.c.bf16 %v1162_v0, %v1160_v63  ;;  %v9892_v36 = vld [vmem:[%s16409_s1 + $0x58] sm:$0xff]  ;;  %v10858_v13 = vpack.c.bf16 %v1161_v3, %v1159_v2  ;;  %v10864_v29 = vpack.c.bf16 %v11419_v56, %v11413_v59  ;;  %v9911_v63 = vld [vmem:[%s16409_s1 + $0x90] sm:$0xff]  ;;  %v12790_v3 = vld [vmem:[%s12349_s9 + $0x28] sm:$0xff] }
  0xbb   : > { %9895 = vmatmul.mubr.msk.f32.gmra.mrb[12].mxu0 %vm195_vm0, %v9891_v24  ;;  %9901 = vmatmul.mubr.msk.f32.vlgmr.msra.gmra.mrb[8].mxu1 %vm195_vm0, %v9897_v60  ;;  %v11428_v14 = vunpack.i.l.bf16 %v12684_v4  ;;  %v11424_v17 = vunpack.i.h.bf16 %v11422_v6  ;;  %v11423_v9 = vunpack.i.l.bf16 %v11422_v6  ;;  %v11429_v32 = vunpack.i.h.bf16 %v12684_v4  ;;  %v12787_v2 = vld [vmem:[%s12349_s9 + $0x10] sm:$0xff] }
  0xbc   : > { %10855 = vmatpush1.bf16.msra.mxu1 %v10854_v61  ;;  %780 = vmatprep.mubr.f32.mxu0 %v16412_v5 }
  0xbd   : > { %962 = vmatprep.mubr.f32.mxu1 %v16412_v5  ;;  %10857 = vmatprep.subr.bf16.mxu1 %v10856_v38  ;;  %v1451_v34 = vsel %vm673_vm2, %v11424_v17, %v11428_v14  ;;  %v1450_v43 = vsel %vm673_vm2, %v11423_v9, %v11424_v17  ;;  %v12808_v17 = vld [vmem:[%s12349_s9 + $0x40] sm:$0xff] }
  0xbe   : > { %v11437_v18 = vpop.permute.xlu1 %11436  ;;  %v11432_v20 = vpop.permute.xlu0 %11431  ;;  %11736 = vrot.lane.b32.xlu1 %v12673_v62, %s12249_s10  ;;  %11731 = vrot.lane.b32.xlu0 %v12680_v1, %s12249_s10 }
  0xbf   : > { %v11434_v26 = vunpack.i.h.bf16 %v11432_v20  ;;  %v11433_v27 = vunpack.i.l.bf16 %v11432_v20  ;;  %9896 = vmatmul.mubr.msk.f32.gmra.mrb[14].mxu0 %vm195_vm0, %v9892_v36  ;;  %9902 = vmatmul.mubr.msk.f32.gmra.mrb[10].mxu1 %vm195_vm0, %v9898_v12  ;;  %v11439_v30 = vunpack.i.h.bf16 %v11437_v18  ;;  %v11438_v22 = vunpack.i.l.bf16 %v11437_v18  ;;  %v9912_v36 = vld [vmem:[%s16409_s1 + $0x98] sm:$0xff] }
  0xc0   : > { %968 = vmatprep.mubr.f32.mxu1 %v16412_v5  ;;  %10484 = vmatprep.mubr.msk.f32.mxu0 %vm195_vm0, %v9897_v60  ;;  %v12811_v18 = vld [vmem:[%s12349_s9 + $0x58] sm:$0xff] }
  0xc1   : > { %10859 = vmatpush1.bf16.msra.mxu1 %v10858_v13  ;;  %v1453_v37 = vsel %vm673_vm2, %v11433_v27, %v11434_v26  ;;  %v10876_v15 = vpack.c.bf16 %v11434_v26, %v11428_v14  ;;  %v1452_v47 = vsel %vm673_vm2, %v11429_v32, %v11433_v27  ;;  %v1454_v56 = vsel %vm673_vm2, %v11438_v22, %v11439_v30 }
  0xc2   : > { %v11447_v31 = vpop.permute.xlu1 %11446  ;;  %v11442_v33 = vpop.permute.xlu0 %11441  ;;  %11746 = vrot.lane.b32.xlu1 %v11745_v21, %s12249_s10  ;;  %11741 = vrot.lane.b32.xlu0 %v12720_v23, %s12249_s10  ;;  %v10868_v42 = vpack.c.bf16 %v1453_v37, %v1451_v34  ;;  %v10870_v59 = vpack.c.bf16 %v1452_v47, %v1450_v43  ;;  %v11775_v13 = vpack.i.bf16 %v12644_v49, %v12657_v35 }
  0xc3   : > { %v11449_v16 = vunpack.i.h.bf16 %v11447_v31  ;;  %v11448_v39 = vunpack.i.l.bf16 %v11447_v31  ;;  %v11443_v25 = vunpack.i.l.bf16 %v11442_v33  ;;  %9903 = vmatmul.mubr.msk.f32.gmra.mrb[12].mxu1 %vm195_vm0, %v9899_v28  ;;  %10485 = vmatmul.mubr.msk.f32.vlgmr.msra.gmra.mrb[16].mxu0 %vm195_vm0, %v9898_v12  ;;  %v11444_v50 = vunpack.i.h.bf16 %v11442_v33 }
  0xc4   : > { %10863 = vmatpush3.bf16.msra.mxu0 %v12649_v54  ;;  %974 = vmatprep.mubr.f32.mxu1 %v16412_v5  ;;  %v11770_v14 = vpack.i.bf16 %v12790_v3, %v12787_v2  ;;  %v11785_v37 = vpack.i.bf16 %v12811_v18, %v12808_v17 }
  0xc5   : > { %10865 = vmatprep.subr.bf16.mxu0 %v10864_v29  ;;  %10487 = vmatprep.mubr.msk.f32.mxu0 %vm195_vm0, %v9899_v28  ;;  %v1455_v45 = vsel %vm673_vm2, %v11439_v30, %v11443_v25  ;;  %v1457_v46 = vsel %vm673_vm2, %v11448_v39, %v11449_v16  ;;  %v10880_v24 = vpack.c.bf16 %v11449_v16, %v11443_v25  ;;  %v9921_v30 = vld [vmem:[%s16409_s1 + $0xa0] sm:$0xff] }
  0xc6   : > { %v12744_v40 = vpop.permute.xlu1 %11456  ;;  %v12746_v19 = vpop.permute.xlu0 %11451  ;;  %10877 = vmatprep.subr.bf16.mxu1 %v10876_v15  ;;  %11756 = vrot.lane.b32.xlu1 %v12673_v62, %s12250_s19  ;;  %v10872_v54 = vpack.c.bf16 %v1457_v46, %v1455_v45  ;;  %v1456_v60 = vsel %vm673_vm2, %v11444_v50, %v11448_v39  ;;  %v12842_v25 = vpack.i.bf16 %v12787_v2, %v12657_v35 }
  0xc7   : > { %v11458_v51 = vunpack.i.l.bf16 %v12744_v40  ;;  %v11454_v52 = vunpack.i.h.bf16 %v12746_v19  ;;  %9904 = vmatmul.mubr.msk.f32.gmra.mrb[14].mxu1 %vm195_vm0, %v9900_v41  ;;  %10488 = vmatmul.mubr.msk.f32.gmra.mrb[18].mxu0 %vm195_vm0, %v9900_v41  ;;  %v10874_v38 = vpack.c.bf16 %v1456_v60, %v1454_v56  ;;  %v11459_v20 = vunpack.i.h.bf16 %v12744_v40  ;;  %v9922_v40 = vld [vmem:[%s16409_s1 + $0xa8] sm:$0xff] }
  0xc8   : > { %10867 = vmatpush3.bf16.msra.mxu0 %v10864_v29  ;;  %1251 = vmatprep.mubr.f32.mxu1 %v16412_v5 }
  0xc9   : > { %10869 = vmatprep.subr.bf16.mxu0 %v10868_v42  ;;  %10498 = vmatprep.mubr.msk.f32.mxu0 %vm195_vm0, %v9909_v44  ;;  %v1743_v0 = vsel %vm1741_vm3, %v11454_v52, %v11458_v51 }
  0xca   : > { %v12766_v57 = vpop.permute.xlu1 %11466  ;;  %v12768_v58 = vpop.permute.xlu0 %11461  ;;  %11751 = vrot.lane.b32.xlu0 %v12680_v1, %s12250_s19  ;;  %11766 = vrot.lane.b32.xlu1 %v11745_v21, %s12250_s19  ;;  %v11453_v21 = vunpack.i.l.bf16 %v12746_v19 }
  0xcb   : > { %v11464_v61 = vunpack.i.h.bf16 %v12768_v58  ;;  %v11463_v62 = vunpack.i.l.bf16 %v12768_v58  ;;  %9913 = vmatmul.mubr.msk.f32.vlgmr.msra.gmra.mrb[16].mxu1 %vm195_vm0, %v9909_v44  ;;  %10499 = vmatmul.mubr.msk.f32.vlgmr.msra.gmra.mrb[20].mxu0 %vm195_vm0, %v9910_v53  ;;  %v11468_v16 = vunpack.i.l.bf16 %v12766_v57 }
  0xcc   : > { %10871 = vmatpush1.bf16.msra.mxu0 %v10870_v59  ;;  %10879 = vmatpush3.bf16.msra.mxu1 %v10876_v15  ;;  %v12833_v15 = vpack.i.bf16 %v12641_v48, %v12654_v55  ;;  %v1742_v32 = vsel %vm1741_vm3, %v11453_v21, %v11454_v52 }
  0xcd   : > { %1257 = vmatprep.mubr.f32.mxu1 %v16412_v5  ;;  %10873 = vmatprep.subr.bf16.mxu0 %v10872_v54  ;;  %v1745_v1 = vsel %vm1741_vm3, %v11463_v62, %v11464_v61  ;;  %v1744_v41 = vsel %vm1741_vm3, %v11459_v20, %v11463_v62  ;;  %v9923_v61 = vld [vmem:[%s16409_s1 + $0xb0] sm:$0xff] }
  0xce   : > { %v12792_v4 = vpop.permute.xlu1 %11476  ;;  %v12794_v6 = vpop.permute.xlu0 %11471  ;;  %10881 = vmatprep.subr.bf16.mxu1 %v10880_v24  ;;  %10501 = vmatprep.mubr.msk.f32.mxu0 %vm195_vm0, %v9911_v63  ;;  %v10884_v12 = vpack.c.bf16 %v1745_v1, %v1743_v0 }
  0xcf   : > { %9914 = vmatmul.mubr.msk.f32.gmra.mrb[18].mxu1 %vm195_vm0, %v9910_v53  ;;  %11761 = vrot.lane.b32.xlu0 %v12720_v23, %s12250_s19  ;;  %v11469_v23 = vunpack.i.h.bf16 %v12766_v57  ;;  %v11479_v26 = vunpack.i.h.bf16 %v12792_v4  ;;  %v11478_v27 = vunpack.i.l.bf16 %v12792_v4  ;;  %v11473_v28 = vunpack.i.l.bf16 %v12794_v6 }
  0xd0   : > { %10875 = vmatpush1.bf16.msra.mxu0 %v10874_v38  ;;  %10883 = vmatpush3.bf16.msra.mxu1 %v10880_v24  ;;  %v11474_v42 = vunpack.i.h.bf16 %v12794_v6  ;;  %v11790_v53 = vpack.i.bf16 %v12695_v8, %v12701_v11  ;;  %v10886_v57 = vpack.c.bf16 %v1744_v41, %v1742_v32  ;;  %v12902_v32 = vpack.i.bf16 %v12808_v17, %v12701_v11 }
  0xd1   : > { %10502 = vmatmul.mubr.msk.f32.gmra.mrb[22].mxu0 %vm195_vm0, %v9912_v36  ;;  %1263 = vmatprep.mubr.f32.mxu1 %v16412_v5  ;;  %v1747_v19 = vsel %vm1741_vm3, %v11469_v23, %v11473_v28  ;;  %v1749_v44 = vsel %vm1741_vm3, %v11478_v27, %v11479_v26  ;;  %v1746_v54 = vsel %vm1741_vm3, %v11468_v16, %v11469_v23 }
  0xd2   : > { %v11487_v9 = vpop.permute.xlu1 %11486  ;;  %v11482_v29 = vpop.permute.xlu0 %11481  ;;  %1546 = vmatprep.mubr.f32.mxu0 %v16412_v5  ;;  %10885 = vmatprep.subr.bf16.mxu1 %v10884_v12  ;;  %v1748_v59 = vsel %vm1741_vm3, %v11474_v42, %v11478_v27  ;;  %v10888_v62 = vpack.c.bf16 %v1749_v44, %v1747_v19  ;;  %v12877_v12 = vpack.i.bf16 %v12690_v7, %v12698_v10 }
  0xd3   : > { %v11488_v31 = vunpack.i.l.bf16 %v11487_v9  ;;  %v11484_v33 = vunpack.i.h.bf16 %v11482_v29  ;;  %v11483_v34 = vunpack.i.l.bf16 %v11482_v29  ;;  %9915 = vmatmul.mubr.msk.f32.gmra.mrb[20].mxu1 %vm195_vm0, %v9911_v63  ;;  %11776 = vrot.lane.b32.xlu1 %v11775_v13, %s12249_s10  ;;  %v11489_v39 = vunpack.i.h.bf16 %v11487_v9 }
  0xd4   : > { %11771 = vrot.lane.b32.xlu0 %v11770_v14, %s12249_s10  ;;  %1269 = vmatprep.mubr.f32.mxu1 %v16412_v5  ;;  %v12881_v13 = vpack.i.bf16 %v12790_v3, %v12644_v49  ;;  %v10890_v27 = vpack.c.bf16 %v1748_v59, %v1746_v54  ;;  %v12907_v41 = vpack.c.bf16 %v12644_v49, %v12657_v35  ;;  %v9934_v35 = vld [vmem:[%s16409_s1 + $0xc8] sm:$0xff] }
  0xd5   : > { %9925 = vmatmul.mubr.msk.f32.vlgmr.msra.gmra.mrb[24].mxu0 %vm195_vm0, %v9921_v30  ;;  %v1938_v45 = vsel %vm1937_vm4, %v11483_v34, %v11484_v33  ;;  %v1939_v50 = vsel %vm1937_vm4, %v11484_v33, %v11488_v31  ;;  %v9924_v31 = vld [vmem:[%s16409_s1 + $0xb8] sm:$0xff]  ;;  %v9942_v59 = vld [vmem:[%s16409_s1 + $0xe8] sm:$0xff] }
  0xd6   : > { %v11497_v43 = vpop.permute.xlu1 %11496  ;;  %v11492_v22 = vpop.permute.xlu0 %11491  ;;  %1552 = vmatprep.mubr.f32.mxu0 %v16412_v5 }
  0xd7   : > { %v11494_v46 = vunpack.i.h.bf16 %v11492_v22  ;;  %v11493_v47 = vunpack.i.l.bf16 %v11492_v22  ;;  %9916 = vmatmul.mubr.msk.f32.gmra.mrb[22].mxu1 %vm195_vm0, %v9912_v36  ;;  %11786 = vrot.lane.b32.xlu1 %v11785_v37, %s12249_s10  ;;  %v11499_v51 = vunpack.i.h.bf16 %v11497_v43  ;;  %v11498_v52 = vunpack.i.l.bf16 %v11497_v43  ;;  %v9933_v37 = vld [vmem:[%s16409_s1 + $0xc0] sm:$0xff] }
  0xd8   : > { %11781 = vrot.lane.b32.xlu0 %v12833_v15, %s12249_s10  ;;  %10512 = vmatprep.mubr.msk.f32.mxu1 %vm195_vm0, %v9921_v30 }
  0xd9   : > { %v1940_v56 = vsel %vm1937_vm4, %v11489_v39, %v11493_v47  ;;  %9926 = vmatmul.mubr.msk.f32.gmra.mrb[26].mxu0 %vm195_vm0, %v9922_v40  ;;  %v1941_v58 = vsel %vm1937_vm4, %v11493_v47, %v11494_v46  ;;  %v1942_v36 = vsel %vm1937_vm4, %v11498_v52, %v11499_v51  ;;  %v12927_v46 = vpack.i.bf16 %v12811_v18, %v12695_v8 }
  0xda   : > { %v11507_v24 = vpop.permute.xlu1 %11506  ;;  %v11502_v60 = vpop.permute.xlu0 %11501  ;;  %1558 = vmatprep.mubr.f32.mxu0 %v16412_v5  ;;  %v10892_v63 = vpack.c.bf16 %v1941_v58, %v1939_v50  ;;  %v10894_v0 = vpack.c.bf16 %v1940_v56, %v1938_v45 }
  0xdb   : > { %v11509_v1 = vunpack.i.h.bf16 %v11507_v24  ;;  %v11508_v4 = vunpack.i.l.bf16 %v11507_v24  ;;  %v11504_v6 = vunpack.i.h.bf16 %v11502_v60  ;;  %v11503_v38 = vunpack.i.l.bf16 %v11502_v60  ;;  %10513 = vmatmul.mubr.msk.f32.vlgmr.msra.gmra.mrb[24].mxu1 %vm195_vm0, %v9922_v40  ;;  %11796 = vrot.lane.b32.xlu1 %v12842_v25, %s12250_s19  ;;  %v9941_v40 = vld [vmem:[%s16409_s1 + $0xe0] sm:$0xff] }
  0xdc   : > { %10887 = vmatpush1.bf16.msra.mxu1 %v10886_v57  ;;  %11791 = vrot.lane.b32.xlu0 %v11790_v53, %s12249_s10  ;;  %v12940_v24 = vpack.c.bf16 %v12641_v48, %v12654_v55 }
  0xdd   : > { %v1944_v14 = vsel %vm1937_vm4, %v11504_v6, %v11508_v4  ;;  %9927 = vmatmul.mubr.msk.f32.gmra.mrb[28].mxu0 %vm195_vm0, %v9923_v61  ;;  %10889 = vmatprep.subr.bf16.mxu1 %v10888_v62  ;;  %v1943_v20 = vsel %vm1937_vm4, %v11499_v51, %v11503_v38  ;;  %v1945_v21 = vsel %vm1937_vm4, %v11508_v4, %v11509_v1  ;;  %v9943_v1 = vld [vmem:[%s16409_s1 + $0xf0] sm:$0xff] }
  0xde   : > { %10893 = vmatprep.subr.bf16.mxu0 %v10892_v63  ;;  %v11517_v23 = vpop.permute.xlu1 %11516  ;;  %v11512_v26 = vpop.permute.xlu0 %11511  ;;  %10515 = vmatprep.mubr.msk.f32.mxu1 %vm195_vm0, %v9923_v61  ;;  %v10896_v28 = vpack.c.bf16 %v1945_v21, %v1943_v20  ;;  %v10898_v33 = vpack.c.bf16 %v1944_v14, %v1942_v36  ;;  %v9935_v61 = vld [vmem:[%s16409_s1 + $0xd0] sm:$0xff]  ;;  %v12963_v36 = vpack.c.bf16 %v12695_v8, %v12701_v11  ;;  %v9936_v21 = vld [vmem:[%s16409_s1 + $0xd8] sm:$0xff] }
  0xdf   : > { %10895 = vmatpush1.bf16.msra.mxu0 %v10894_v0  ;;  %v11518_v9 = vunpack.i.l.bf16 %v11517_v23  ;;  %v11514_v29 = vunpack.i.h.bf16 %v11512_v26  ;;  %v11513_v30 = vunpack.i.l.bf16 %v11512_v26  ;;  %1564 = vmatprep.mubr.f32.mxu0 %v16412_v5  ;;  %v11519_v34 = vunpack.i.h.bf16 %v11517_v23  ;;  %v9944_v11 = vld [vmem:[%s16409_s1 + $0xf8] sm:$0xff] }
  0xe0   : > { %10516 = vmatmul.mubr.msk.f32.gmra.mrb[26].mxu1 %vm195_vm0, %v9924_v31  ;;  %11806 = vrot.lane.b32.xlu1 %v12877_v12, %s12249_s10 }
  0xe1   : > { %10891 = vmatpush1.bf16.msra.mxu1 %v10890_v27  ;;  %11801 = vrot.lane.b32.xlu0 %v12881_v13, %s12250_s19  ;;  %v2133_v42 = vsel %vm2132_vm5, %v11513_v30, %v11514_v29  ;;  %v2134_v19 = vsel %vm2132_vm5, %v11514_v29, %v11518_v9  ;;  %v12980_v27 = vpack.c.bf16 %v12690_v7, %v12698_v10 }
  0xe2   : > { %9928 = vmatmul.mubr.msk.f32.gmra.mrb[30].mxu0 %vm195_vm0, %v9924_v31  ;;  %10897 = vmatprep.subr.bf16.mxu0 %v10896_v28  ;;  %v11527_v16 = vpop.permute.xlu1 %11526  ;;  %v11522_v39 = vpop.permute.xlu0 %11521 }
  0xe3   : > { %10899 = vmatpush1.bf16.msra.mxu0 %v10898_v33  ;;  %v11524_v43 = vunpack.i.h.bf16 %v11522_v39  ;;  %v11523_v22 = vunpack.i.l.bf16 %v11522_v39  ;;  %1834 = vmatprep.mubr.f32.mxu1 %v16412_v5  ;;  %v11529_v44 = vunpack.i.h.bf16 %v11527_v16  ;;  %v11528_v45 = vunpack.i.l.bf16 %v11527_v16 }
  0xe4   : > { %9937 = vmatmul.mubr.msk.f32.vlgmr.msra.gmra.mrb[28].mxu1 %vm195_vm0, %v9933_v37  ;;  %2030 = vmatprep.mubr.f32.mxu0 %v16412_v5  ;;  %v9949_v37 = vld [vmem:[%s16409_s1 + $0x100] sm:$0xff] }
  0xe5   : > { %v2135_v49 = vsel %vm2132_vm5, %v11524_v43, %v11519_v34  ;;  %11816 = vrot.lane.b32.xlu1 %v12902_v32, %s12250_s19  ;;  %11811 = vrot.lane.b32.xlu0 %v12833_v15, %s12250_s19  ;;  %v2136_v47 = vsel %vm2132_vm5, %v11519_v34, %v11523_v22  ;;  %v2138_v60 = vsel %vm2132_vm5, %v11528_v45, %v11529_v44  ;;  %v9957_v22 = vld [vmem:[%s16409_s1 + $0x120] sm:$0xff] }
  0xe6   : > { %9945 = vmatmul.mubr.msk.f32.vlgmr.msra.gmra.mrb[32].mxu0 %vm195_vm0, %v9941_v40  ;;  %v11537_v50 = vpop.permute.xlu1 %11536  ;;  %v11532_v51 = vpop.permute.xlu0 %11531  ;;  %1840 = vmatprep.mubr.f32.mxu1 %v16412_v5  ;;  %v10900_v52 = vpack.c.bf16 %v2136_v47, %v2134_v19  ;;  %v10902_v53 = vpack.c.bf16 %v2135_v49, %v2133_v42 }
  0xe7   : > { %v11539_v54 = vunpack.i.h.bf16 %v11537_v50  ;;  %v11538_v56 = vunpack.i.l.bf16 %v11537_v50  ;;  %v11534_v57 = vunpack.i.h.bf16 %v11532_v51  ;;  %v11533_v58 = vunpack.i.l.bf16 %v11532_v51  ;;  %2036 = vmatprep.mubr.f32.mxu0 %v16412_v5  ;;  %10909 = vmatprep.subr.bf16.mxu0 %v12907_v41  ;;  %v9950_v50 = vld [vmem:[%s16409_s1 + $0x108] sm:$0xff] }
  0xe8   : > { %9938 = vmatmul.mubr.msk.f32.gmra.mrb[30].mxu1 %vm195_vm0, %v9934_v35  ;;  %10901 = vmatprep.subr.bf16.mxu1 %v10900_v52  ;;  %v9958_v52 = vld [vmem:[%s16409_s1 + $0x128] sm:$0xff] }
  0xe9   : > { %11826 = vrot.lane.b32.xlu1 %v12877_v12, %s12250_s19  ;;  %11821 = vrot.lane.b32.xlu0 %v12927_v46, %s12250_s19  ;;  %v2140_v62 = vsel %vm2132_vm5, %v11533_v58, %v11534_v57  ;;  %v2137_v48 = vsel %vm2132_vm5, %v11538_v56, %v11528_v45  ;;  %v2139_v55 = vsel %vm2132_vm5, %v11539_v54, %v11533_v58 }
  0xea   : > { %9946 = vmatmul.mubr.msk.f32.gmra.mrb[34].mxu0 %vm195_vm0, %v9942_v59  ;;  %v11547_v63 = vpop.permute.xlu1 %11546  ;;  %v11542_v0 = vpop.permute.xlu0 %11541  ;;  %1846 = vmatprep.mubr.f32.mxu1 %v16412_v5  ;;  %v10904_v4 = vpack.c.bf16 %v2140_v62, %v2138_v60  ;;  %v10906_v8 = vpack.c.bf16 %v2139_v55, %v2137_v48  ;;  %v9951_v62 = vld [vmem:[%s16409_s1 + $0x110] sm:$0xff] }
  0xeb   : > { %2042 = vmatprep.mubr.f32.mxu0 %v16412_v5  ;;  %10903 = vmatpush1.bf16.msra.mxu1 %v10902_v53  ;;  %v11549_v6 = vunpack.i.h.bf16 %v11547_v63  ;;  %v11544_v38 = vunpack.i.h.bf16 %v11542_v0  ;;  %v11548_v14 = vunpack.i.l.bf16 %v11547_v63  ;;  %v11543_v20 = vunpack.i.l.bf16 %v11542_v0 }
  0xec   : > { %9939 = vmatmul.mubr.msk.f32.gmra.mrb[32].mxu1 %vm195_vm0, %v9935_v61  ;;  %10911 = vmatpush1.bf16.msra.mxu0 %v12940_v24 }
  0xed   : > { %11836 = vrot.lane.b32.xlu1 %v12881_v13, %s12252_s30  ;;  %11831 = vrot.lane.b32.xlu0 %v12842_v25, %s12252_s30  ;;  %v10916_v28 = vpack.c.bf16 %v11549_v6, %v11544_v38  ;;  %v2506_v9 = vsel %vm446_vm1, %v11548_v14, %v11549_v6  ;;  %v2505_v29 = vsel %vm446_vm1, %v11543_v20, %v11544_v38  ;;  %v9952_v14 = vld [vmem:[%s16409_s1 + $0x118] sm:$0xff] }
  0xee   : > { %9947 = vmatmul.mubr.msk.f32.gmra.mrb[36].mxu0 %vm195_vm0, %v9943_v1  ;;  %v11557_v23 = vpop.permute.xlu1 %11556  ;;  %v11552_v26 = vpop.permute.xlu0 %11551  ;;  %1852 = vmatprep.mubr.f32.mxu1 %v16412_v5  ;;  %v10918_v40 = vpack.c.bf16 %v2506_v9, %v2505_v29 }
  0xef   : > { %2048 = vmatprep.mubr.f32.mxu0 %v16412_v5  ;;  %10905 = vmatprep.subr.bf16.mxu1 %v10904_v4  ;;  %v11559_v30 = vunpack.i.h.bf16 %v11557_v23  ;;  %v11558_v31 = vunpack.i.l.bf16 %v11557_v23  ;;  %v11554_v33 = vunpack.i.h.bf16 %v11552_v26  ;;  %v11553_v7 = vunpack.i.l.bf16 %v11552_v26 }
  0xf0   : > { %9940 = vmatmul.mubr.msk.f32.gmra.mrb[34].mxu1 %vm195_vm0, %v9936_v21  ;;  %10913 = vmatprep.subr.bf16.mxu0 %v12963_v36 }
  0xf1   : > { %11846 = vrot.lane.b32.xlu1 %v12842_v25, %s12251_s29  ;;  %11841 = vrot.lane.b32.xlu0 %v12833_v15, %s12252_s30  ;;  %v2508_v49 = vsel %vm446_vm1, %v11558_v31, %v11559_v30  ;;  %v2507_v51 = vsel %vm446_vm1, %v11553_v7, %v11554_v33  ;;  %v10920_v54 = vpack.c.bf16 %v11559_v30, %v11554_v33 }
  0xf2   : > { %9948 = vmatmul.mubr.msk.f32.gmra.mrb[38].mxu0 %vm195_vm0, %v9944_v11  ;;  %10907 = vmatpush1.bf16.msra.mxu1 %v10906_v8  ;;  %v11567_v10 = vpop.permute.xlu1 %11566  ;;  %v11562_v34 = vpop.permute.xlu0 %11561  ;;  %v10922_v63 = vpack.c.bf16 %v2508_v49, %v2507_v51  ;;  %v9965_v11 = vld [vmem:[%s16409_s1 + $0x140] sm:$0xff] }
  0xf3   : > { %10915 = vmatpush1.bf16.msra.mxu0 %v12980_v27  ;;  %v11569_v16 = vunpack.i.h.bf16 %v11567_v10  ;;  %v11568_v39 = vunpack.i.l.bf16 %v11567_v10  ;;  %v11564_v42 = vunpack.i.h.bf16 %v11562_v34  ;;  %v11563_v43 = vunpack.i.l.bf16 %v11562_v34  ;;  %2225 = vmatprep.mubr.f32.mxu1 %v16412_v5 }
  0xf4   : > { %2367 = vmatprep.mubr.f32.mxu0 %v16412_v5  ;;  %10917 = vmatprep.subr.bf16.mxu1 %v10916_v28 }
  0xf5   : > { %v2732_v19 = vsel %vm673_vm2, %v11568_v39, %v11569_v16  ;;  %v2731_v44 = vsel %vm673_vm2, %v11563_v43, %v11564_v42  ;;  %9953 = vmatmul.mubr.msk.f32.vlgmr.msra.gmra.mrb[36].mxu1 %vm195_vm0, %v9949_v37  ;;  %11856 = vrot.lane.b32.xlu1 %v12902_v32, %s12252_s30  ;;  %v10924_v45 = vpack.c.bf16 %v11569_v16, %v11564_v42  ;;  %v9975_v37 = vld [vmem:[%s16409_s1 + $0x170] sm:$0xff] }
  0xf6   : > { %11851 = vrot.lane.b32.xlu0 %v12881_v13, %s12251_s29  ;;  %9961 = vmatmul.mubr.msk.f32.vlgmr.msra.gmra.mrb[40].mxu0 %vm195_vm0, %v9957_v22  ;;  %v11577_v35 = vpop.permute.xlu1 %11576  ;;  %v11572_v47 = vpop.permute.xlu0 %11571  ;;  %v10926_v53 = vpack.c.bf16 %v2732_v19, %v2731_v44  ;;  %v10944_v22 = vpack.c.bf16 %v12811_v18, %v12808_v17  ;;  %v9968_v44 = vld [vmem:[%s16409_s1 + $0x158] sm:$0xff] }
  0xf7   : > { %2231 = vmatprep.mubr.f32.mxu1 %v16412_v5  ;;  %2373 = vmatprep.mubr.f32.mxu0 %v16412_v5  ;;  %v11579_v56 = vunpack.i.h.bf16 %v11577_v35  ;;  %v11578_v57 = vunpack.i.l.bf16 %v11577_v35  ;;  %v11574_v58 = vunpack.i.h.bf16 %v11572_v47  ;;  %v11573_v59 = vunpack.i.l.bf16 %v11572_v47 }
  0xf8   : > { %10919 = vmatpush1.bf16.msra.mxu1 %v10918_v40  ;;  %10925 = vmatprep.subr.bf16.mxu0 %v10924_v45 }
  0xf9   : > { %9954 = vmatmul.mubr.msk.f32.gmra.mrb[38].mxu1 %vm195_vm0, %v9950_v50  ;;  %11866 = vrot.lane.b32.xlu1 %v12833_v15, %s12251_s29  ;;  %v9959_v15 = vld [vmem:[%s16409_s1 + $0x130] sm:$0xff]  ;;  %v2734_v48 = vsel %vm673_vm2, %v11578_v57, %v11579_v56  ;;  %v2733_v55 = vsel %vm673_vm2, %v11573_v59, %v11574_v58  ;;  %v10928_v1 = vpack.c.bf16 %v11579_v56, %v11574_v58  ;;  %v9976_v50 = vld [vmem:[%s16409_s1 + $0x178] sm:$0xff]  ;;  %v9981_v56 = vld [vmem:[%s16409_s1 + $0x180] sm:$0xff] }
  0xfa   : > { %11861 = vrot.lane.b32.xlu0 %v12927_v46, %s12252_s30  ;;  %9962 = vmatmul.mubr.msk.f32.gmra.mrb[42].mxu0 %vm195_vm0, %v9958_v52  ;;  %v13024_v60 = vpop.permute.xlu1 %11586  ;;  %v13026_v61 = vpop.permute.xlu0 %11581  ;;  %v10930_v20 = vpack.c.bf16 %v2734_v48, %v2733_v55  ;;  %v9983_v55 = vld [vmem:[%s16409_s1 + $0x190] sm:$0xff] }
  0xfb   : > { %2237 = vmatprep.mubr.f32.mxu1 %v16412_v5  ;;  %2379 = vmatprep.mubr.f32.mxu0 %v16412_v5  ;;  %v308_v0 = vpop.f32.mrb[0].mxu0  ;;  %v11584_v31 = vunpack.i.h.bf16 %v13026_v61 }
  0xfc   : > { %10927 = vmatpush1.bf16.msra.mxu0 %v10926_v53  ;;  %10921 = vmatprep.subr.bf16.mxu1 %v10920_v54  ;;  %v310_v4 = vpop.f32.mrb[1].mxu0 }
  0xfd   : > { %9955 = vmatmul.mubr.msk.f32.gmra.mrb[40].mxu1 %vm195_vm0, %v9951_v62  ;;  %11876 = vrot.lane.b32.xlu1 %v12902_v32, %s12251_s29  ;;  %v9960_v32 = vld [vmem:[%s16409_s1 + $0x138] sm:$0xff] }
  0xfe   : > { %11871 = vrot.lane.b32.xlu0 %v12877_v12, %s12252_s30  ;;  %9963 = vmatmul.mubr.msk.f32.gmra.mrb[44].mxu0 %vm195_vm0, %v9959_v15  ;;  %v13044_v6 = vpop.permute.xlu1 %11596  ;;  %v13046_v38 = vpop.permute.xlu0 %11591  ;;  %s12255_s30 = smov 40  }
  0xff   : > { %2243 = vmatprep.mubr.f32.mxu1 %v16412_v5  ;;  %2385 = vmatprep.mubr.f32.mxu0 %v16412_v5  ;;  %v314_v21 = vpop.f32.mrb[2].mxu0  ;;  %v11594_v42 = vunpack.i.h.bf16 %v13046_v38  ;;  %v11593_v43 = vunpack.i.l.bf16 %v13046_v38  ;;  %v11599_v45 = vunpack.i.h.bf16 %v13044_v6  ;;  %v11598_v49 = vunpack.i.l.bf16 %v13044_v6  ;;  %v13190_v6 = vld [vmem:[%s12349_s9 + $0x18] sm:$0xff] }
 0x100   : > { %10923 = vmatpush1.bf16.msra.mxu1 %v10922_v63  ;;  %10929 = vmatprep.subr.bf16.mxu0 %v10928_v1  ;;  %v316_v23 = vpop.f32.mrb[3].mxu0 }
 0x101   : > { %9956 = vmatmul.mubr.msk.f32.gmra.mrb[42].mxu1 %vm195_vm0, %v9952_v14  ;;  %11886 = vrot.lane.b32.xlu1 %v12877_v12, %s12251_s29  ;;  %v9973_v12 = vld [vmem:[%s16409_s1 + $0x160] sm:$0xff] }
 0x102   : > { %11881 = vrot.lane.b32.xlu0 %v12927_v46, %s12251_s29  ;;  %9964 = vmatmul.mubr.msk.f32.gmra.mrb[46].mxu0 %vm195_vm0, %v9960_v32  ;;  %v13062_v26 = vpop.permute.xlu1 %11606  ;;  %v13064_v8 = vpop.permute.xlu0 %11601  ;;  %v10940_v46 = vpack.c.bf16 %v12790_v3, %v12787_v2  ;;  %v11589_v2 = vunpack.i.h.bf16 %v13024_v60  ;;  %v11588_v3 = vunpack.i.l.bf16 %v13024_v60 }
 0x103   : > { %10931 = vmatpush1.bf16.msra.mxu0 %v10930_v20  ;;  %2593 = vmatprep.mubr.f32.mxu1 %v16412_v5  ;;  %v13073_v28 = vpop.f32.mrb[4].mxu0  ;;  %v11604_v35 = vunpack.i.h.bf16 %v13064_v8  ;;  %v11603_v47 = vunpack.i.l.bf16 %v13064_v8  ;;  %v11609_v53 = vunpack.i.h.bf16 %v13062_v26  ;;  %v11608_v54 = vunpack.i.l.bf16 %v13062_v26  ;;  %v13200_v20 = vld [vmem:[%s16409_s1 + $0x198] sm:$0xff]  ;;  %v13206_v26 = vld [vmem:[%s12349_s9 + $0x50] sm:$0xff] }
 0x104   : > { %2819 = vmatprep.mubr.f32.mxu0 %v16412_v5  ;;  %10933 = vmatprep.subr.bf16.mxu1 %v12907_v41  ;;  %v322_v9 = vpop.f32.mrb[5].mxu0  ;;  %v9966_v41 = vld [vmem:[%s16409_s1 + $0x148] sm:$0xff]  ;;  %v3215_v39 = vsel %vm446_vm1, %v11588_v3, %v11589_v2  ;;  %v3214_v51 = vsel %vm446_vm1, %v11594_v42, %v11588_v3  ;;  %v10956_v57 = vpack.c.bf16 %v11589_v2, %v11584_v31 }
 0x105   : > { %9969 = vmatmul.mubr.msk.f32.vlgmr.msra.gmra.mrb[44].mxu1 %vm195_vm0, %v9965_v11  ;;  %11896 = vrot.lane.b32.xlu1 %v12881_v13, %s12253_s4  ;;  %v11583_v13 = vunpack.i.l.bf16 %v13026_v61  ;;  %v3217_v61 = vsel %vm446_vm1, %v11598_v49, %v11599_v45  ;;  %v3219_v62 = vsel %vm446_vm1, %v11603_v47, %v11604_v35  ;;  %v3216_v15 = vsel %vm446_vm1, %v11608_v54, %v11598_v49 }
 0x106   : > { %11891 = vrot.lane.b32.xlu0 %v12842_v25, %s12253_s4  ;;  %9977 = vmatmul.mubr.msk.f32.vlgmr.msra.gmra.mrb[48].mxu0 %vm195_vm0, %v9973_v12  ;;  %v13085_v29 = vpop.permute.xlu1 %11616  ;;  %v13087_v30 = vpop.permute.xlu0 %11611  ;;  %v9974_v25 = vld [vmem:[%s16409_s1 + $0x168] sm:$0xff]  ;;  %v3218_v63 = vsel %vm446_vm1, %v11609_v53, %v11603_v47  ;;  %v10952_v1 = vpack.c.bf16 %v3219_v62, %v3217_v61  ;;  %v10960_v12 = vpack.c.bf16 %v11604_v35, %v11599_v45 }
 0x107   : > { %2599 = vmatprep.mubr.f32.mxu1 %v16412_v5  ;;  %2825 = vmatprep.mubr.f32.mxu0 %v16412_v5  ;;  %v13101_v33 = vpop.f32.mrb[6].mxu0  ;;  %v3213_v16 = vsel %vm446_vm1, %v11583_v13, %v11584_v31  ;;  %v3212_v52 = vsel %vm446_vm1, %v11593_v43, %v11583_v13  ;;  %v11619_v38 = vunpack.i.h.bf16 %v13085_v29  ;;  %v11614_v14 = vunpack.i.h.bf16 %v13087_v30  ;;  %v9994_v47 = vld [vmem:[%s16409_s1 + $0x1a8] sm:$0xff] }
 0x108   : > { %10935 = vmatpush1.bf16.msra.mxu1 %v12940_v24  ;;  %10941 = vmatprep.subr.bf16.mxu0 %v10940_v46  ;;  %v13104_v7 = vpop.f32.mrb[7].mxu0  ;;  %v9967_v24 = vld [vmem:[%s16409_s1 + $0x150] sm:$0xff]  ;;  %v10950_v60 = vpack.c.bf16 %v3214_v51, %v3212_v52  ;;  %v11613_v32 = vunpack.i.l.bf16 %v13087_v30  ;;  %v11618_v8 = vunpack.i.l.bf16 %v13085_v29  ;;  %v11910_v3 = vpack.i.bf16 %v12811_v18, %v13206_v26 }
 0x109   : > { %9970 = vmatmul.mubr.msk.f32.gmra.mrb[46].mxu1 %vm195_vm0, %v9966_v41  ;;  %341 = vrot.lane.b32.xlu1 %v310_v4, %s12254_s28  ;;  %v13187_v4 = vld [vmem:[%s12349_s9] sm:$0xff] }
 0x10a   : > { %9978 = vmatmul.mubr.msk.f32.gmra.mrb[50].mxu0 %vm195_vm0, %v9974_v25  ;;  %339 = vrot.lane.b32.xlu0 %v308_v0, %s12254_s28  ;;  %v13110_v10 = vpop.permute.xlu1 %11626  ;;  %v13112_v34 = vpop.permute.xlu0 %11621  ;;  %v13218_v30 = vpack.i.bf16 %v13190_v6, %v13187_v4  ;;  %v9993_v25 = vld [vmem:[%s16409_s1 + $0x1a0] sm:$0xff] }
 0x10b   : > { %2605 = vmatprep.mubr.f32.mxu1 %v16412_v5  ;;  %2831 = vmatprep.mubr.f32.mxu0 %v16412_v5  ;;  %v11624_v11 = vunpack.i.h.bf16 %v13112_v34  ;;  %v11629_v31 = vunpack.i.h.bf16 %v13110_v10 }
 0x10c   : > { %10943 = vmatpush3.bf16.msra.mxu0 %v10940_v46  ;;  %10937 = vmatprep.subr.bf16.mxu1 %v12963_v36  ;;  %v10948_v36 = vpack.c.bf16 %v3215_v39, %v3213_v16  ;;  %v11623_v46 = vunpack.i.l.bf16 %v13112_v34  ;;  %v13248_v16 = vld [vmem:[%s12349_s9 + $0x48] sm:$0xff] }
 0x10d   : > { %9971 = vmatmul.mubr.msk.f32.gmra.mrb[48].mxu1 %vm195_vm0, %v9967_v24  ;;  %345 = vrot.lane.b32.xlu1 %v316_v23, %s12254_s28  ;;  %v13203_v23 = vld [vmem:[%s12349_s9 + $0x38] sm:$0xff] }
 0x10e   : > { %9979 = vmatmul.mubr.msk.f32.gmra.mrb[52].mxu0 %vm195_vm0, %v9975_v37  ;;  %343 = vrot.lane.b32.xlu0 %v314_v21, %s12254_s28  ;;  %v13133_v40 = vpop.permute.xlu1 %11636  ;;  %v13135_v19 = vpop.permute.xlu0 %11631  ;;  %v10954_v21 = vpack.c.bf16 %v3218_v63, %v3216_v15  ;;  %v11905_v2 = vpack.i.bf16 %v12808_v17, %v13203_v23  ;;  %v13238_v17 = vsel %vm673_vm2, %v11624_v11, %v11618_v8  ;;  %v13245_v37 = vld [vmem:[%s12349_s9 + $0x30] sm:$0xff] }
 0x10f   : > { %2611 = vmatprep.mubr.f32.mxu1 %v16412_v5  ;;  %2837 = vmatprep.mubr.f32.mxu0 %v16412_v5  ;;  %v11634_v13 = vunpack.i.h.bf16 %v13135_v19  ;;  %v11639_v34 = vunpack.i.h.bf16 %v13133_v40  ;;  %v11638_v24 = vunpack.i.l.bf16 %v13133_v40  ;;  %v3507_v39 = vsel %vm673_vm2, %v11623_v46, %v11613_v32 }
 0x110   : > { %10939 = vmatpush1.bf16.msra.mxu1 %v12980_v27  ;;  %10945 = vmatprep.subr.bf16.mxu0 %v10944_v22  ;;  %v9982_v27 = vld [vmem:[%s16409_s1 + $0x188] sm:$0xff]  ;;  %v13278_v51 = vpack.i.bf16 %v13248_v16, %v13245_v37  ;;  %v10966_v54 = vpack.c.bf16 %v13238_v17, %v3507_v39 }
 0x111   : > { %9972 = vmatmul.mubr.msk.f32.gmra.mrb[50].mxu1 %vm195_vm0, %v9968_v44  ;;  %349 = vrot.lane.b32.xlu1 %v322_v9, %s12254_s28  ;;  %v11633_v9 = vunpack.i.l.bf16 %v13135_v19 }
 0x112   : > { %9980 = vmatmul.mubr.msk.f32.gmra.mrb[54].mxu0 %vm195_vm0, %v9976_v50  ;;  %347 = vrot.lane.b32.xlu0 %v13073_v28, %s12254_s28  ;;  %v13162_v58 = vpop.permute.xlu1 %11646  ;;  %v13164_v59 = vpop.permute.xlu0 %11641  ;;  %v11628_v28 = vunpack.i.l.bf16 %v13110_v10  ;;  %v3510_v10 = vsel %vm673_vm2, %v11618_v8, %v11619_v38 }
 0x113   : > { %10947 = vmatpush3.bf16.msra.mxu0 %v10944_v22  ;;  %3013 = vmatprep.mubr.f32.mxu1 %v16412_v5  ;;  %v13258_v43 = vsel %vm673_vm2, %v11633_v9, %v11634_v13  ;;  %v11649_v22 = vunpack.i.h.bf16 %v13162_v58  ;;  %v11648_v40 = vunpack.i.l.bf16 %v13162_v58  ;;  %v11644_v19 = vunpack.i.h.bf16 %v13164_v59 }
 0x114   : > { %10526 = vmatprep.mubr.msk.f32.mxu0 %vm195_vm0, %v9981_v56  ;;  %10949 = vmatprep.subr.bf16.mxu0 %v10948_v36  ;;  %v13255_v42 = vsel %vm673_vm2, %v11628_v28, %v11629_v31  ;;  %v11643_v44 = vunpack.i.l.bf16 %v13164_v59  ;;  %v13281_v52 = vsel %vm673_vm2, %v11638_v24, %v11628_v28  ;;  %v13284_v53 = vsel %vm673_vm2, %v11639_v34, %v11633_v9  ;;  %v10005_v34 = vld [vmem:[%s16409_s1 + $0x1c0] sm:$0xff] }
 0x115   : > { %9985 = vmatmul.mubr.msk.f32.vlgmr.msra.gmra.mrb[52].mxu1 %vm195_vm0, %v9981_v56  ;;  %10957 = vmatprep.subr.bf16.mxu1 %v10956_v57  ;;  %v10976_v58 = vpack.c.bf16 %v11634_v13, %v11629_v31  ;;  %v10968_v59 = vpack.c.bf16 %v13258_v43, %v13255_v42  ;;  %v3801_v63 = vsel %vm1741_vm3, %v11648_v40, %v11649_v22  ;;  %v9996_v13 = vld [vmem:[%s16409_s1 + $0x1b8] sm:$0xff] }
 0x116   : > { %10527 = vmatmul.mubr.msk.f32.vlgmr.msra.gmra.mrb[56].mxu0 %vm195_vm0, %v9982_v27  ;;  %351 = vrot.lane.b32.xlu0 %v13101_v33, %s12254_s28  ;;  %v13179_v0 = vpop.permute.xlu1 %11656  ;;  %v13181_v48 = vpop.permute.xlu0 %11651  ;;  %v10972_v33 = vpack.c.bf16 %v11619_v38, %v11614_v14  ;;  %v3799_v15 = vsel %vm1741_vm3, %v11643_v44, %v11644_v19  ;;  %v10970_v11 = vpack.c.bf16 %v13284_v53, %v13281_v52 }
 0x117   : > { %353 = vrot.lane.b32.xlu1 %v13104_v7, %s12254_s28  ;;  %10951 = vmatpush1.bf16.msra.mxu0 %v10950_v60  ;;  %v3508_v7 = vsel %vm673_vm2, %v11613_v32, %v11614_v14  ;;  %v11654_v49 = vunpack.i.h.bf16 %v13181_v48  ;;  %v11653_v35 = vunpack.i.l.bf16 %v13181_v48  ;;  %v11659_v48 = vunpack.i.h.bf16 %v13179_v0  ;;  %v9995_v14 = vld [vmem:[%s16409_s1 + $0x1b0] sm:$0xff] }
 0x118   : > { %10959 = vmatpush3.bf16.msra.mxu1 %v10956_v57  ;;  %3019 = vmatprep.mubr.f32.mxu1 %v16412_v5  ;;  %v10964_v50 = vpack.c.bf16 %v3510_v10, %v3508_v7 }
 0x119   : > { %9986 = vmatmul.mubr.msk.f32.gmra.mrb[54].mxu1 %vm195_vm0, %v9982_v27  ;;  %10529 = vmatprep.mubr.msk.f32.mxu0 %vm195_vm0, %v9983_v55  ;;  %v13308_v38 = vsel %vm1741_vm3, %v11653_v35, %v11643_v44 }
 0x11a   : > { %10530 = vmatmul.mubr.msk.f32.gmra.mrb[58].mxu0 %vm195_vm0, %v13200_v20  ;;  %10953 = vmatprep.subr.bf16.mxu0 %v10952_v1  ;;  %v13222_v29 = vpop.permute.xlu1 %11666  ;;  %v13224_v41 = vpop.permute.xlu0 %11661  ;;  %v13305_v1 = vsel %vm1741_vm3, %v11654_v49, %v11648_v40 }
 0x11b   : > { %10955 = vmatpush1.bf16.msra.mxu0 %v10954_v21  ;;  %3025 = vmatprep.mubr.f32.mxu1 %v16412_v5  ;;  %v11669_v32 = vunpack.i.h.bf16 %v13222_v29  ;;  %v11664_v21 = vunpack.i.h.bf16 %v13224_v41 }
 0x11c   : > { %3308 = vmatprep.mubr.f32.mxu0 %v16412_v5  ;;  %10961 = vmatprep.subr.bf16.mxu1 %v10960_v12 }
 0x11d   : > { %9987 = vmatmul.mubr.msk.f32.gmra.mrb[56].mxu1 %vm195_vm0, %v9983_v55  ;;  %11901 = vrot.lane.b32.xlu0 %v13218_v30, %s12253_s4  ;;  %v11658_v55 = vunpack.i.l.bf16 %v13179_v0  ;;  %v11663_v0 = vunpack.i.l.bf16 %v13224_v41 }
 0x11e   : > { %9997 = vmatmul.mubr.msk.f32.vlgmr.msra.gmra.mrb[60].mxu0 %vm195_vm0, %v9993_v25  ;;  %10963 = vmatpush3.bf16.msra.mxu1 %v10960_v12  ;;  %v13265_v36 = vpop.permute.xlu1 %11676  ;;  %v13267_v45 = vpop.permute.xlu0 %11671  ;;  %v10980_v12 = vpack.c.bf16 %v3801_v63, %v3799_v15 }
 0x11f   : > { %3031 = vmatprep.mubr.f32.mxu1 %v16412_v5  ;;  %3314 = vmatprep.mubr.f32.mxu0 %v16412_v5  ;;  %v11674_v56 = vunpack.i.h.bf16 %v13267_v45  ;;  %v11673_v57 = vunpack.i.l.bf16 %v13267_v45  ;;  %v11679_v27 = vunpack.i.h.bf16 %v13265_v36  ;;  %v11678_v60 = vunpack.i.l.bf16 %v13265_v36 }
 0x120   : > { %10973 = vmatprep.subr.bf16.mxu0 %v10972_v33  ;;  %11906 = vrot.lane.b32.xlu1 %v11905_v2, %s12253_s4  ;;  %v13343_v17 = vsel %vm1741_vm3, %v11669_v32, %v11663_v0  ;;  %v3805_v24 = vsel %vm1741_vm3, %v11663_v0, %v11664_v21 }
 0x121   : > { %9988 = vmatmul.mubr.msk.f32.gmra.mrb[58].mxu1 %vm195_vm0, %v13200_v20  ;;  %10975 = vmatpush3.bf16.msra.mxu0 %v10972_v33  ;;  %v11668_v20 = vunpack.i.l.bf16 %v13222_v29  ;;  %v3993_v28 = vsel %vm1937_vm4, %v11673_v57, %v11674_v56  ;;  %v3995_v2 = vsel %vm1937_vm4, %v11678_v60, %v11679_v27  ;;  %v3803_v33 = vsel %vm1741_vm3, %v11658_v55, %v11659_v48 }
 0x122   : > { %9998 = vmatmul.mubr.msk.f32.gmra.mrb[62].mxu0 %vm195_vm0, %v9994_v47  ;;  %v13297_v61 = vpop.permute.xlu1 %11686  ;;  %v11682_v62 = vpop.permute.xlu0 %11681  ;;  %10540 = vmatprep.mubr.msk.f32.mxu1 %vm195_vm0, %v9993_v25  ;;  %v10982_v25 = vpack.c.bf16 %v13305_v1, %v13308_v38  ;;  %v10988_v43 = vpack.c.bf16 %v3995_v2, %v3993_v28  ;;  %v10984_v52 = vpack.c.bf16 %v3805_v24, %v3803_v33  ;;  %v10008_v1 = vld [vmem:[%s16409_s1 + $0x1d8] sm:$0xff]  ;;  %v4320_v38 = vld [vmem:[%s12349_s9 + $0x8] sm:$0xff]  ;;  %v13398_v2 = vld [vmem:[%s12349_s9 + $0x10] sm:$0xff] }
 0x123   : > { %10965 = vmatprep.subr.bf16.mxu1 %v10964_v50  ;;  %3320 = vmatprep.mubr.f32.mxu0 %v16412_v5  ;;  %v11684_v8 = vunpack.i.h.bf16 %v11682_v62  ;;  %v11689_v46 = vunpack.i.h.bf16 %v13297_v61  ;;  %v11688_v9 = vunpack.i.l.bf16 %v13297_v61  ;;  %v11683_v29 = vunpack.i.l.bf16 %v11682_v62  ;;  %v10006_v50 = vld [vmem:[%s16409_s1 + $0x1c8] sm:$0xff] }
 0x124   : > { %11911 = vrot.lane.b32.xlu0 %v11910_v3, %s12253_s4  ;;  %11916 = vrot.lane.b32.xlu1 %v13278_v51, %s12253_s4  ;;  %v13340_v7 = vsel %vm1741_vm3, %v11668_v20, %v11658_v55  ;;  %s16356_s4 = scalar_lea.hbm %s16411_s3, %s11294_s26 }
 0x125   : > { %10541 = vmatmul.mubr.msk.f32.vlgmr.msra.gmra.mrb[60].mxu1 %vm195_vm0, %v9994_v47  ;;  %10977 = vmatprep.subr.bf16.mxu0 %v10976_v58  ;;  %v3994_v10 = vsel %vm1937_vm4, %v11684_v8, %v11678_v60  ;;  %v3992_v22 = vsel %vm1937_vm4, %v11683_v29, %v11673_v57  ;;  %v3997_v44 = vsel %vm1937_vm4, %v11688_v9, %v11689_v46  ;;  %v10007_v57 = vld [vmem:[%s16409_s1 + $0x1d0] sm:$0xff] }
 0x126   : > { %10967 = vmatpush1.bf16.msra.mxu1 %v10966_v54  ;;  %9999 = vmatmul.mubr.msk.f32.gmra.mrb[64].mxu0 %vm195_vm0, %v9995_v14  ;;  %v11697_v18 = vpop.permute.xlu1 %11696  ;;  %v11692_v41 = vpop.permute.xlu0 %11691  ;;  %v10986_v53 = vpack.c.bf16 %v13343_v17, %v13340_v7  ;;  %v13409_v7 = vld [vmem:[%s12349_s9 + $0x28] sm:$0xff] }
 0x127   : > { %v11694_v3 = vunpack.i.h.bf16 %v11692_v41  ;;  %v11693_v31 = vunpack.i.l.bf16 %v11692_v41  ;;  %3326 = vmatprep.mubr.f32.mxu0 %v16412_v5  ;;  %10969 = vmatprep.subr.bf16.mxu1 %v10968_v59  ;;  %v11699_v39 = vunpack.i.h.bf16 %v11697_v18  ;;  %v11698_v42 = vunpack.i.l.bf16 %v11697_v18  ;;  %v10017_v41 = vld [vmem:[%s16409_s1 + $0x1e0] sm:$0xff] }
 0x128   : > { %11921 = vrot.lane.b32.xlu0 %v13218_v30, %s12249_s10  ;;  %10979 = vmatpush3.bf16.msra.mxu0 %v10976_v58  ;;  %v10990_v58 = vpack.c.bf16 %v3994_v10, %v3992_v22 }
 0x129   : > { %10543 = vmatprep.mubr.msk.f32.mxu1 %vm195_vm0, %v9995_v14  ;;  %11926 = vrot.lane.b32.xlu1 %v13278_v51, %s12249_s10  ;;  %v3999_v36 = vsel %vm1937_vm4, %v11693_v31, %v11694_v3  ;;  %v3996_v54 = vsel %vm1937_vm4, %v11698_v42, %v11688_v9  ;;  %v3998_v56 = vsel %vm1937_vm4, %v11699_v39, %v11693_v31  ;;  %v4322_v14 = vld [vmem:[%s12349_s9 + $0x20] sm:$0xff] }
 0x12a   : > { %10000 = vmatmul.mubr.msk.f32.gmra.mrb[66].mxu0 %vm195_vm0, %v9996_v13  ;;  %10971 = vmatpush1.bf16.msra.mxu1 %v10970_v11  ;;  %v11707_v40 = vpop.permute.xlu1 %11706  ;;  %v11702_v19 = vpop.permute.xlu0 %11701  ;;  %v10992_v60 = vpack.c.bf16 %v3999_v36, %v3997_v44  ;;  %v10994_v32 = vpack.c.bf16 %v3998_v56, %v3996_v54  ;;  %v13391_v28 = vpack.c.bf16 %v4322_v14, %v4320_v38 }
 0x12b   : > { %v11709_v45 = vunpack.i.h.bf16 %v11707_v40  ;;  %v11708_v49 = vunpack.i.l.bf16 %v11707_v40  ;;  %v11704_v35 = vunpack.i.h.bf16 %v11702_v19  ;;  %v11703_v47 = vunpack.i.l.bf16 %v11702_v19  ;;  %10544 = vmatmul.mubr.msk.f32.gmra.mrb[62].mxu1 %vm195_vm0, %v9996_v13  ;;  %10554 = vmatprep.mubr.msk.f32.mxu0 %vm195_vm0, %v10005_v34  ;;  %v13423_v19 = vld [vmem:[%s12349_s9 + $0x40] sm:$0xff] }
 0x12c   : > { %10981 = vmatprep.subr.bf16.mxu0 %v10980_v12  ;;  %3603 = vmatprep.mubr.f32.mxu1 %v16412_v5  ;;  %v13403_v31 = vpack.i.bf16 %v13398_v2, %v4320_v38  ;;  %v13414_v10 = vpack.i.bf16 %v13409_v7, %v4322_v14  ;;  %v13450_v54 = vpack.c.bf16 %v13206_v26, %v13203_v23  ;;  %v10027_v38 = vld [vmem:[%s16409_s1 + $0x210] sm:$0xff] }
 0x12d   : > { %11931 = vrot.lane.b32.xlu0 %v13218_v30, %s12250_s19  ;;  %11936 = vrot.lane.b32.xlu1 %v13278_v51, %s12250_s19  ;;  %v4187_v61 = vsel %vm2132_vm5, %v11703_v47, %v11704_v35  ;;  %v4189_v62 = vsel %vm2132_vm5, %v11708_v49, %v11709_v45  ;;  %v11955_v45 = vpack.i.bf16 %v13423_v19, %v13203_v23  ;;  %v10020_v23 = vld [vmem:[%s16409_s1 + $0x1f8] sm:$0xff] }
 0x12e   : > { %10555 = vmatmul.mubr.msk.f32.vlgmr.msra.gmra.mrb[68].mxu0 %vm195_vm0, %v10006_v50  ;;  %v11717_v59 = vpop.permute.xlu1 %11716  ;;  %v11712_v27 = vpop.permute.xlu0 %11711  ;;  %10989 = vmatprep.subr.bf16.mxu1 %v10988_v43  ;;  %v10996_v0 = vpack.c.bf16 %v4189_v62, %v4187_v61  ;;  %v10018_v43 = vld [vmem:[%s16409_s1 + $0x1e8] sm:$0xff] }
 0x12f   : > { %10983 = vmatpush1.bf16.msra.mxu0 %v10982_v25  ;;  %v11719_v15 = vunpack.i.h.bf16 %v11717_v59  ;;  %v11718_v63 = vunpack.i.l.bf16 %v11717_v59  ;;  %v11714_v48 = vunpack.i.h.bf16 %v11712_v27  ;;  %v11713_v55 = vunpack.i.l.bf16 %v11712_v27  ;;  %10009 = vmatmul.mubr.msk.f32.vlgmr.msra.gmra.mrb[64].mxu1 %vm195_vm0, %v10005_v34  ;;  %v10026_v27 = vld [vmem:[%s16409_s1 + $0x208] sm:$0xff] }
 0x130   : > { %10557 = vmatprep.mubr.msk.f32.mxu0 %vm195_vm0, %v10007_v57  ;;  %10985 = vmatprep.subr.bf16.mxu0 %v10984_v52  ;;  %v13443_v52 = vpack.c.bf16 %v13190_v6, %v13187_v4 }
 0x131   : > { %v4188_v20 = vsel %vm2132_vm5, %v11714_v48, %v11708_v49  ;;  %v4186_v21 = vsel %vm2132_vm5, %v11713_v55, %v11703_v47  ;;  %3609 = vmatprep.mubr.f32.mxu1 %v16412_v5  ;;  %10991 = vmatpush1.bf16.msra.mxu1 %v10990_v58  ;;  %v4191_v12 = vsel %vm2132_vm5, %v11718_v63, %v11719_v15  ;;  %v10019_v49 = vld [vmem:[%s16409_s1 + $0x1f0] sm:$0xff] }
 0x132   : > { %10558 = vmatmul.mubr.msk.f32.gmra.mrb[70].mxu0 %vm195_vm0, %v10008_v1  ;;  %v11727_v8 = vpop.permute.xlu1 %11726  ;;  %v11722_v11 = vpop.permute.xlu0 %11721  ;;  %10993 = vmatprep.subr.bf16.mxu1 %v10992_v60  ;;  %v10998_v3 = vpack.c.bf16 %v4188_v20, %v4186_v21  ;;  %v13472_v60 = vpack.c.bf16 %v13248_v16, %v13245_v37  ;;  %v10033_v37 = vld [vmem:[%s16409_s1 + $0x220] sm:$0xff] }
 0x133   : > { %10987 = vmatpush1.bf16.msra.mxu0 %v10986_v53  ;;  %v11729_v46 = vunpack.i.h.bf16 %v11727_v8  ;;  %v11728_v9 = vunpack.i.l.bf16 %v11727_v8  ;;  %v11724_v29 = vunpack.i.h.bf16 %v11722_v11  ;;  %v11723_v18 = vunpack.i.l.bf16 %v11722_v11  ;;  %10010 = vmatmul.mubr.msk.f32.gmra.mrb[66].mxu1 %vm195_vm0, %v10006_v50  ;;  %v10025_v50 = vld [vmem:[%s16409_s1 + $0x200] sm:$0xff]  ;;  %v13446_v53 = vld [vmem:[%s12349_s9 + $0x58] sm:$0xff]  ;;  %v10034_v8 = vld [vmem:[%s16409_s1 + $0x228] sm:$0xff] }
 0x134   : > { %3890 = vmatprep.mubr.f32.mxu0 %v16412_v5  ;;  %3615 = vmatprep.mubr.f32.mxu1 %v16412_v5  ;;  %v11960_v56 = vpack.i.bf16 %v13446_v53, %v13206_v26 }
 0x135   : > { %v4190_v13 = vsel %vm2132_vm5, %v11728_v9, %v11718_v63  ;;  %v4192_v25 = vsel %vm2132_vm5, %v11729_v46, %v11723_v18  ;;  %10995 = vmatpush1.bf16.msra.mxu1 %v10994_v32  ;;  %10997 = vmatprep.subr.bf16.mxu0 %v10996_v0  ;;  %v4193_v33 = vsel %vm2132_vm5, %v11723_v18, %v11724_v29  ;;  %v10028_v46 = vld [vmem:[%s16409_s1 + $0x218] sm:$0xff] }
 0x136   : > { %10021 = vmatmul.mubr.msk.f32.vlgmr.msra.gmra.mrb[72].mxu0 %vm195_vm0, %v10017_v41  ;;  %v11737_v17 = vpop.permute.xlu1 %11736  ;;  %v11732_v34 = vpop.permute.xlu0 %11731  ;;  %v11000_v24 = vpack.c.bf16 %v4193_v33, %v4191_v12  ;;  %11005 = vmatprep.subr.bf16.mxu1 %v13391_v28  ;;  %v11002_v22 = vpack.c.bf16 %v4192_v25, %v4190_v13  ;;  %v10035_v25 = vld [vmem:[%s16409_s1 + $0x230] sm:$0xff]  ;;  %v10041_v33 = vld [vmem:[%s16409_s1 + $0x240] sm:$0xff] }
 0x137   : > { %v11739_v39 = vunpack.i.h.bf16 %v11737_v17  ;;  %v11734_v42 = vunpack.i.h.bf16 %v11732_v34  ;;  %10011 = vmatmul.mubr.msk.f32.gmra.mrb[68].mxu1 %vm195_vm0, %v10007_v57  ;;  %3896 = vmatprep.mubr.f32.mxu0 %v16412_v5  ;;  %v11738_v35 = vunpack.i.l.bf16 %v11737_v17  ;;  %v11733_v47 = vunpack.i.l.bf16 %v11732_v34 }
 0x138   : > { %3621 = vmatprep.mubr.f32.mxu1 %v16412_v5  ;;  %10999 = vmatpush1.bf16.msra.mxu0 %v10998_v3 }
 0x139   : > { %11001 = vmatprep.subr.bf16.mxu0 %v11000_v24  ;;  %v11012_v40 = vpack.c.bf16 %v11739_v39, %v11734_v42  ;;  %11941 = vrot.lane.b32.xlu0 %v13403_v31, %s12249_s10  ;;  %v4558_v26 = vsel %vm446_vm1, %v11733_v47, %v11734_v42 }
 0x13a   : > { %10022 = vmatmul.mubr.msk.f32.gmra.mrb[74].mxu0 %vm195_vm0, %v10018_v43  ;;  %v11747_v44 = vpop.permute.xlu1 %11746  ;;  %v11742_v36 = vpop.permute.xlu0 %11741  ;;  %11946 = vrot.lane.b32.xlu1 %v13414_v10, %s12249_s10  ;;  %v10036_v43 = vld [vmem:[%s16409_s1 + $0x238] sm:$0xff] }
 0x13b   : > { %10012 = vmatmul.mubr.msk.f32.gmra.mrb[70].mxu1 %vm195_vm0, %v10008_v1  ;;  %3902 = vmatprep.mubr.f32.mxu0 %v16412_v5  ;;  %v11749_v59 = vunpack.i.h.bf16 %v11747_v44  ;;  %v11748_v61 = vunpack.i.l.bf16 %v11747_v44  ;;  %v11744_v62 = vunpack.i.h.bf16 %v11742_v36  ;;  %v11743_v15 = vunpack.i.l.bf16 %v11742_v36 }
 0x13c   : > { %4084 = vmatprep.mubr.f32.mxu1 %v16412_v5  ;;  %11003 = vmatpush1.bf16.msra.mxu0 %v11002_v22 }
 0x13d   : > { %11013 = vmatprep.subr.bf16.mxu0 %v11012_v40  ;;  %11951 = vrot.lane.b32.xlu0 %v13218_v30, %s12249_s10  ;;  %v4559_v30 = vsel %vm446_vm1, %v11738_v35, %v11739_v39  ;;  %v4560_v32 = vsel %vm446_vm1, %v11743_v15, %v11744_v62  ;;  %v11016_v20 = vpack.c.bf16 %v11749_v59, %v11744_v62 }
 0x13e   : > { %10023 = vmatmul.mubr.msk.f32.gmra.mrb[76].mxu0 %vm195_vm0, %v10019_v49  ;;  %v11757_v57 = vpop.permute.xlu1 %11756  ;;  %v11752_v58 = vpop.permute.xlu0 %11751  ;;  %11956 = vrot.lane.b32.xlu1 %v11955_v45, %s12249_s10  ;;  %v11014_v14 = vpack.c.bf16 %v4559_v30, %v4558_v26  ;;  %v11036_v40 = vpack.c.bf16 %v13409_v7, %v13398_v2  ;;  %v10049_v45 = vld [vmem:[%s16409_s1 + $0x260] sm:$0xff]  ;;  %v10043_v2 = vld [vmem:[%s16409_s1 + $0x250] sm:$0xff]  ;;  %v11040_v30 = vpack.c.bf16 %v13446_v53, %v13423_v19  ;;  %v10058_v53 = vld [vmem:[%s16409_s1 + $0x288] sm:$0xff] }
 0x13f   : > { %v11759_v4 = vunpack.i.h.bf16 %v11757_v57  ;;  %v11754_v6 = vunpack.i.h.bf16 %v11752_v58  ;;  %3908 = vmatprep.mubr.f32.mxu0 %v16412_v5  ;;  %10029 = vmatmul.mubr.msk.f32.vlgmr.msra.gmra.mrb[72].mxu1 %vm195_vm0, %v10025_v50  ;;  %v11758_v16 = vunpack.i.l.bf16 %v11757_v57  ;;  %v11753_v1 = vunpack.i.l.bf16 %v11752_v58  ;;  %v10050_v50 = vld [vmem:[%s16409_s1 + $0x268] sm:$0xff] }
 0x140   : > { %4090 = vmatprep.mubr.f32.mxu1 %v16412_v5  ;;  %11007 = vmatpush1.bf16.msra.mxu1 %v13443_v52 }
 0x141   : > { %11009 = vmatprep.subr.bf16.mxu1 %v13450_v54  ;;  %v11020_v63 = vpack.c.bf16 %v11759_v4, %v11754_v6  ;;  %11961 = vrot.lane.b32.xlu0 %v11960_v56, %s12249_s10  ;;  %v4785_v11 = vsel %vm673_vm2, %v11758_v16, %v11759_v4  ;;  %v4784_v12 = vsel %vm673_vm2, %v11753_v1, %v11754_v6  ;;  %v10044_v56 = vld [vmem:[%s16409_s1 + $0x258] sm:$0xff] }
 0x142   : > { %10024 = vmatmul.mubr.msk.f32.gmra.mrb[78].mxu0 %vm195_vm0, %v10020_v23  ;;  %v11767_v48 = vpop.permute.xlu1 %11766  ;;  %v11762_v55 = vpop.permute.xlu0 %11761  ;;  %11966 = vrot.lane.b32.xlu1 %v13278_v51, %s12249_s10  ;;  %v4561_v51 = vsel %vm446_vm1, %v11748_v61, %v11749_v59  ;;  %v11022_v17 = vpack.c.bf16 %v4785_v11, %v4784_v12 }
 0x143   : > { %10030 = vmatmul.mubr.msk.f32.gmra.mrb[74].mxu1 %vm195_vm0, %v10026_v27  ;;  %4278 = vmatprep.mubr.f32.mxu0 %v16412_v5  ;;  %v11018_v9 = vpack.c.bf16 %v4561_v51, %v4560_v32  ;;  %v11769_v29 = vunpack.i.h.bf16 %v11767_v48  ;;  %v11768_v18 = vunpack.i.l.bf16 %v11767_v48  ;;  %v11764_v41 = vunpack.i.h.bf16 %v11762_v55 }
 0x144   : > { %4096 = vmatprep.mubr.f32.mxu1 %v16412_v5  ;;  %11011 = vmatpush1.bf16.msra.mxu1 %v13472_v60  ;;  %v11763_v3 = vunpack.i.l.bf16 %v11762_v55 }
 0x145   : > { %11021 = vmatprep.subr.bf16.mxu1 %v11020_v63  ;;  %11971 = vrot.lane.b32.xlu0 %v13403_v31, %s12250_s19  ;;  %v4787_v34 = vsel %vm673_vm2, %v11768_v18, %v11769_v29 }
 0x146   : > { %10037 = vmatmul.mubr.msk.f32.vlgmr.msra.gmra.mrb[80].mxu0 %vm195_vm0, %v10033_v37  ;;  %v13494_v21 = vpop.permute.xlu1 %11776  ;;  %v13496_v0 = vpop.permute.xlu0 %11771  ;;  %11976 = vrot.lane.b32.xlu1 %v13414_v10, %s12250_s19  ;;  %v4786_v24 = vsel %vm673_vm2, %v11763_v3, %v11764_v41  ;;  %v11024_v10 = vpack.c.bf16 %v11769_v29, %v11764_v41 }
 0x147   : > { %10031 = vmatmul.mubr.msk.f32.gmra.mrb[76].mxu1 %vm195_vm0, %v10027_v38  ;;  %4284 = vmatprep.mubr.f32.mxu0 %v16412_v5  ;;  %v11026_v22 = vpack.c.bf16 %v4787_v34, %v4786_v24  ;;  %v11774_v7 = vunpack.i.h.bf16 %v13496_v0  ;;  %v11773_v49 = vunpack.i.l.bf16 %v13496_v0  ;;  %v11779_v58 = vunpack.i.h.bf16 %v13494_v21 }
 0x148   : > { %4102 = vmatprep.mubr.f32.mxu1 %v16412_v5  ;;  %11015 = vmatpush1.bf16.msra.mxu0 %v11014_v14  ;;  %v11778_v4 = vunpack.i.l.bf16 %v13494_v21  ;;  %v10065_v14 = vld [vmem:[%s16409_s1 + $0x2a0] sm:$0xff] }
 0x149   : > { %11017 = vmatprep.subr.bf16.mxu0 %v11016_v20  ;;  %v11052_v57 = vpack.c.bf16 %v11774_v7, %v11773_v49  ;;  %v5268_v59 = vsel %vm446_vm1, %v11779_v58, %v11774_v7  ;;  %v10059_v20 = vld [vmem:[%s16409_s1 + $0x290] sm:$0xff] }
 0x14a   : > { %10038 = vmatmul.mubr.msk.f32.gmra.mrb[82].mxu0 %vm195_vm0, %v10034_v8  ;;  %v13512_v31 = vpop.permute.xlu1 %11786  ;;  %v13514_v13 = vpop.permute.xlu0 %11781  ;;  %v5266_v26 = vsel %vm446_vm1, %v11778_v4, %v11773_v49 }
 0x14b   : > { %10032 = vmatmul.mubr.msk.f32.gmra.mrb[78].mxu1 %vm195_vm0, %v10028_v46  ;;  %4290 = vmatprep.mubr.f32.mxu0 %v16412_v5  ;;  %v11789_v62 = vunpack.i.h.bf16 %v13512_v31  ;;  %v11788_v15 = vunpack.i.l.bf16 %v13512_v31  ;;  %v11044_v63 = vpack.c.bf16 %v5268_v59, %v5266_v26  ;;  %v11784_v51 = vunpack.i.h.bf16 %v13514_v13  ;;  %v10077_v26 = vld [vmem:[%s16409_s1 + $0x2c0] sm:$0xff] }
 0x14c   : > { %4420 = vmatprep.mubr.f32.mxu1 %v16412_v5  ;;  %11019 = vmatpush1.bf16.msra.mxu0 %v11018_v9  ;;  %v11783_v32 = vunpack.i.l.bf16 %v13514_v13  ;;  %v10066_v9 = vld [vmem:[%s16409_s1 + $0x2a8] sm:$0xff]  ;;  %v10060_v13 = vld [vmem:[%s16409_s1 + $0x298] sm:$0xff] }
 0x14d   : > { %11029 = vmatprep.subr.bf16.mxu0 %v13391_v28  ;;  %v10042_v28 = vld [vmem:[%s16409_s1 + $0x248] sm:$0xff]  ;;  %v11056_v8 = vpack.c.bf16 %v11789_v62, %v11788_v15  ;;  %v5267_v29 = vsel %vm446_vm1, %v11784_v51, %v11779_v58 }
 0x14e   : > { %10039 = vmatmul.mubr.msk.f32.gmra.mrb[84].mxu0 %vm195_vm0, %v10035_v25  ;;  %v13529_v39 = vpop.permute.xlu1 %11796  ;;  %v13531_v42 = vpop.permute.xlu0 %11791  ;;  %v5265_v18 = vsel %vm446_vm1, %v11783_v32, %v11778_v4 }
 0x14f   : > { %4296 = vmatprep.mubr.f32.mxu0 %v16412_v5  ;;  %10045 = vmatmul.mubr.msk.f32.vlgmr.msra.gmra.mrb[80].mxu1 %vm195_vm0, %v10041_v33  ;;  %v11799_v48 = vunpack.i.h.bf16 %v13529_v39  ;;  %v11798_v55 = vunpack.i.l.bf16 %v13529_v39  ;;  %v11794_v21 = vunpack.i.h.bf16 %v13531_v42  ;;  %v11793_v0 = vunpack.i.l.bf16 %v13531_v42  ;;  %v10067_v42 = vld [vmem:[%s16409_s1 + $0x2b0] sm:$0xff]  ;;  %v10078_v39 = vld [vmem:[%s16409_s1 + $0x2c8] sm:$0xff] }
 0x150   : > { %4426 = vmatprep.mubr.f32.mxu1 %v16412_v5  ;;  %11023 = vmatpush1.bf16.msra.mxu1 %v11022_v17 }
 0x151   : > { %11025 = vmatprep.subr.bf16.mxu1 %v11024_v10  ;;  %v5561_v11 = vsel %vm673_vm2, %v11798_v55, %v11799_v48  ;;  %v5270_v25 = vsel %vm446_vm1, %v11793_v0, %v11788_v15  ;;  %v5272_v33 = vsel %vm446_vm1, %v11794_v21, %v11789_v62 }
 0x152   : > { %10040 = vmatmul.mubr.msk.f32.gmra.mrb[86].mxu0 %vm195_vm0, %v10036_v43  ;;  %v13545_v44 = vpop.permute.xlu1 %11806  ;;  %v11046_v43 = vpack.c.bf16 %v5267_v29, %v5265_v18 }
 0x153   : > { %v13547_v36 = vpop.permute.xlu0 %11801  ;;  %4646 = vmatprep.mubr.f32.mxu0 %v16412_v5  ;;  %10046 = vmatmul.mubr.msk.f32.gmra.mrb[82].mxu1 %vm195_vm0, %v10042_v28  ;;  %v11809_v41 = vunpack.i.h.bf16 %v13545_v44  ;;  %v11808_v3 = vunpack.i.l.bf16 %v13545_v44  ;;  %v11048_v44 = vpack.c.bf16 %v5272_v33, %v5270_v25 }
 0x154   : > { %4432 = vmatprep.mubr.f32.mxu1 %v16412_v5  ;;  %11027 = vmatpush1.bf16.msra.mxu1 %v11026_v22  ;;  %v11804_v37 = vunpack.i.h.bf16 %v13547_v36  ;;  %v11803_v16 = vunpack.i.l.bf16 %v13547_v36 }
 0x155   : > { %11037 = vmatprep.subr.bf16.mxu1 %v11036_v40  ;;  %v5269_v28 = vsel %vm446_vm1, %v11808_v3, %v11793_v0  ;;  %v5271_v22 = vsel %vm446_vm1, %v11809_v41, %v11794_v21 }
 0x156   : > { %10053 = vmatmul.mubr.msk.f32.vlgmr.msra.gmra.mrb[88].mxu0 %vm195_vm0, %v10049_v45  ;;  %v5563_v12 = vsel %vm673_vm2, %v11803_v16, %v11804_v37  ;;  %v11050_v4 = vpack.c.bf16 %v5271_v22, %v5269_v28  ;;  %v216_v22 = vld [vmem:[%s12550_s7 + $0x10] sm:$0xff] }
 0x157   : > { %v13561_v35 = vpop.permute.xlu1 %11816  ;;  %v13563_v47 = vpop.permute.xlu0 %11811  ;;  %4652 = vmatprep.mubr.f32.mxu0 %v16412_v5  ;;  %10047 = vmatmul.mubr.msk.f32.gmra.mrb[84].mxu1 %vm195_vm0, %v10043_v2  ;;  %v11060_v17 = vpack.c.bf16 %v5563_v12, %v5561_v11 }
 0x158   : > { %4438 = vmatprep.mubr.f32.mxu1 %v16412_v5  ;;  %11031 = vmatpush1.bf16.msra.mxu0 %v13443_v52  ;;  %v10051_v52 = vld [vmem:[%s16409_s1 + $0x270] sm:$0xff]  ;;  %v11814_v34 = vunpack.i.h.bf16 %v13563_v47  ;;  %v11813_v24 = vunpack.i.l.bf16 %v13563_v47  ;;  %v11819_v45 = vunpack.i.h.bf16 %v13561_v35  ;;  %v11818_v2 = vunpack.i.l.bf16 %v13561_v35  ;;  %v10068_v35 = vld [vmem:[%s16409_s1 + $0x2b8] sm:$0xff] }
 0x159   : > { %11033 = vmatprep.subr.bf16.mxu0 %v13450_v54  ;;  %v10057_v54 = vld [vmem:[%s16409_s1 + $0x280] sm:$0xff] }
 0x15a   : > { %10054 = vmatmul.mubr.msk.f32.gmra.mrb[90].mxu0 %vm195_vm0, %v10050_v50  ;;  %v5565_v59 = vsel %vm673_vm2, %v11818_v2, %v11819_v45 }
 0x15b   : > { %v13579_v6 = vpop.permute.xlu1 %11826  ;;  %v13581_v23 = vpop.permute.xlu0 %11821  ;;  %4658 = vmatprep.mubr.f32.mxu0 %v16412_v5  ;;  %10048 = vmatmul.mubr.msk.f32.gmra.mrb[86].mxu1 %vm195_vm0, %v10044_v56  ;;  %v5560_v56 = vsel %vm673_vm2, %v11813_v24, %v11798_v55 }
 0x15c   : > { %4872 = vmatprep.mubr.f32.mxu1 %v16412_v5  ;;  %11035 = vmatpush1.bf16.msra.mxu0 %v13472_v60  ;;  %v10052_v60 = vld [vmem:[%s16409_s1 + $0x278] sm:$0xff]  ;;  %v11824_v7 = vunpack.i.h.bf16 %v13581_v23  ;;  %v11823_v49 = vunpack.i.l.bf16 %v13581_v23  ;;  %v11829_v47 = vunpack.i.h.bf16 %v13579_v6  ;;  %v11828_v50 = vunpack.i.l.bf16 %v13579_v6 }
 0x15d   : > { %11053 = vmatprep.subr.bf16.mxu0 %v11052_v57 }
 0x15e   : > { %10055 = vmatmul.mubr.msk.f32.gmra.mrb[92].mxu0 %vm195_vm0, %v10051_v52 }
 0x15f   : > { %v13598_v27 = vpop.permute.xlu1 %11836  ;;  %v13600_v61 = vpop.permute.xlu0 %11831  ;;  %4664 = vmatprep.mubr.f32.mxu0 %v16412_v5  ;;  %10061 = vmatmul.mubr.msk.f32.vlgmr.msra.gmra.mrb[88].mxu1 %vm195_vm0, %v10057_v54 }
 0x160   : > { %4878 = vmatprep.mubr.f32.mxu1 %v16412_v5  ;;  %11039 = vmatpush3.bf16.msra.mxu1 %v11036_v40  ;;  %v11839_v23 = vunpack.i.h.bf16 %v13598_v27  ;;  %v11838_v6 = vunpack.i.l.bf16 %v13598_v27  ;;  %v11834_v52 = vunpack.i.h.bf16 %v13600_v61  ;;  %v11833_v54 = vunpack.i.l.bf16 %v13600_v61 }
 0x161   : > { %11041 = vmatprep.subr.bf16.mxu1 %v11040_v30  ;;  %v11068_v27 = vpack.c.bf16 %v11804_v37, %v11799_v48  ;;  %v5564_v61 = vsel %vm673_vm2, %v11828_v50, %v11818_v2  ;;  %v13728_v48 = vld [vmem:[%s16409_s1 + $0x2d0] sm:$0xff]  ;;  %v13785_v50 = vld [vmem:[%s12349_s9] sm:$0xff] }
 0x162   : > { %10056 = vmatmul.mubr.msk.f32.gmra.mrb[94].mxu0 %vm195_vm0, %v10052_v60  ;;  %v5567_v60 = vsel %vm673_vm2, %v11823_v49, %v11824_v7  ;;  %v6046_v51 = vsel %vm1937_vm4, %v11833_v54, %v11834_v52  ;;  %v6048_v32 = vsel %vm1937_vm4, %v11838_v6, %v11839_v23 }
 0x163   : > { %v13618_v1 = vpop.permute.xlu1 %11846  ;;  %v13620_v38 = vpop.permute.xlu0 %11841  ;;  %5066 = vmatprep.mubr.f32.mxu0 %v16412_v5  ;;  %10062 = vmatmul.mubr.msk.f32.gmra.mrb[90].mxu1 %vm195_vm0, %v10058_v53  ;;  %v5566_v53 = vsel %vm673_vm2, %v11829_v47, %v11823_v49  ;;  %v11064_v37 = vpack.c.bf16 %v5567_v60, %v5565_v59  ;;  %v13811_v60 = vld [vmem:[%s16409_s1 + $0x2e8] sm:$0xff] }
 0x164   : > { %4884 = vmatprep.mubr.f32.mxu1 %v16412_v5  ;;  %11043 = vmatpush3.bf16.msra.mxu1 %v11040_v30  ;;  %v11849_v15 = vunpack.i.h.bf16 %v13618_v1  ;;  %v11843_v21 = vunpack.i.l.bf16 %v13620_v38 }
 0x165   : > { %11045 = vmatprep.subr.bf16.mxu1 %v11044_v63  ;;  %v11848_v63 = vunpack.i.l.bf16 %v13618_v1 }
 0x166   : > { %10069 = vmatmul.mubr.msk.f32.vlgmr.msra.gmra.mrb[96].mxu0 %vm195_vm0, %v10065_v14  ;;  %v6045_v33 = vsel %vm1937_vm4, %v11843_v21, %v11833_v54 }
 0x167   : > { %v13642_v46 = vpop.permute.xlu1 %11856  ;;  %5072 = vmatprep.mubr.f32.mxu0 %v16412_v5  ;;  %10063 = vmatmul.mubr.msk.f32.gmra.mrb[92].mxu1 %vm195_vm0, %v10059_v20  ;;  %v11844_v20 = vunpack.i.h.bf16 %v13620_v38  ;;  %v13746_v38 = vld [vmem:[%s16409_s1 + $0x2d8] sm:$0xff]  ;;  %v5852_v18 = vsel %vm1741_vm3, %v11848_v63, %v11849_v15 }
 0x168   : > { %v13653_v31 = vpop.permute.xlu0 %11851  ;;  %4890 = vmatprep.mubr.f32.mxu1 %v16412_v5  ;;  %11055 = vmatpush3.bf16.msra.mxu0 %v11052_v57  ;;  %v5562_v57 = vsel %vm673_vm2, %v11814_v34, %v11803_v16  ;;  %v11859_v0 = vunpack.i.h.bf16 %v13642_v46  ;;  %v217_v15 = vld [vmem:[%s12550_s7 + $0x18] sm:$0xff] }
 0x169   : > { %11057 = vmatprep.subr.bf16.mxu0 %v11056_v8  ;;  %v11062_v62 = vpack.c.bf16 %v5562_v57, %v5560_v56  ;;  %v11854_v55 = vunpack.i.h.bf16 %v13653_v31  ;;  %v11853_v16 = vunpack.i.l.bf16 %v13653_v31  ;;  %v6047_v25 = vsel %vm1937_vm4, %v11844_v20, %v11838_v6  ;;  %v13788_v56 = vld [vmem:[%s12349_s9 + $0x18] sm:$0xff] }
 0x16a   : > { %10070 = vmatmul.mubr.msk.f32.gmra.mrb[98].mxu0 %vm195_vm0, %v10066_v9  ;;  %v11086_v47 = vpack.c.bf16 %v6047_v25, %v6045_v33 }
 0x16b   : > { %v13664_v10 = vpop.permute.xlu1 %11866  ;;  %5078 = vmatprep.mubr.f32.mxu0 %v16412_v5  ;;  %10064 = vmatmul.mubr.msk.f32.gmra.mrb[94].mxu1 %vm195_vm0, %v10060_v13  ;;  %v5854_v41 = vsel %vm1741_vm3, %v11853_v16, %v11854_v55  ;;  %v11084_v13 = vpack.c.bf16 %v6048_v32, %v6046_v51 }
 0x16c   : > { %v13673_v40 = vpop.permute.xlu0 %11861  ;;  %10568 = vmatprep.mubr.msk.f32.mxu1 %vm195_vm0, %v10065_v14  ;;  %11059 = vmatpush3.bf16.msra.mxu0 %v11056_v8  ;;  %v11858_v8 = vunpack.i.l.bf16 %v13642_v46  ;;  %v11066_v46 = vpack.c.bf16 %v5566_v53, %v5564_v61 }
 0x16d   : > { %11061 = vmatprep.subr.bf16.mxu0 %v11060_v17  ;;  %v11864_v11 = vunpack.i.h.bf16 %v13673_v40  ;;  %v11863_v12 = vunpack.i.l.bf16 %v13673_v40  ;;  %v13775_v40 = vld [vmem:[%s16409_s1 + $0x2e0] sm:$0xff] }
 0x16e   : > { %10071 = vmatmul.mubr.msk.f32.gmra.mrb[100].mxu0 %vm195_vm0, %v10067_v42  ;;  %v13761_v17 = vsel %vm1937_vm4, %v11858_v8, %v11859_v0 }
 0x16f   : > { %v13685_v58 = vpop.permute.xlu1 %11876  ;;  %5084 = vmatprep.mubr.f32.mxu0 %v16412_v5  ;;  %10569 = vmatmul.mubr.msk.f32.vlgmr.msra.gmra.mrb[96].mxu1 %vm195_vm0, %v10066_v9  ;;  %v11072_v9 = vpack.c.bf16 %v11824_v7, %v11819_v45  ;;  %v11868_v45 = vunpack.i.l.bf16 %v13664_v10  ;;  %v214_v7 = vld [vmem:[%s12550_s7] sm:$0xff] }
 0x170   : > { %v13696_v30 = vpop.permute.xlu0 %11871  ;;  %11047 = vmatpush1.bf16.msra.mxu1 %v11046_v43  ;;  %10571 = vmatprep.mubr.msk.f32.mxu1 %vm195_vm0, %v10067_v42  ;;  %v11076_v42 = vpack.c.bf16 %v5854_v41, %v5852_v18  ;;  %v6052_v43 = vsel %vm1937_vm4, %v11863_v12, %v11864_v11  ;;  %v11879_v57 = vunpack.i.h.bf16 %v13685_v58  ;;  %v222_v11 = vld [vmem:[%s12550_s7 + $0x40] sm:$0xff]  ;;  %v220_v18 = vld [vmem:[%s12550_s7 + $0x30] sm:$0xff] }
 0x171   : > { %11049 = vmatprep.subr.bf16.mxu1 %v11048_v44  ;;  %v11874_v34 = vunpack.i.h.bf16 %v13696_v30  ;;  %v11873_v24 = vunpack.i.l.bf16 %v13696_v30  ;;  %v11869_v44 = vunpack.i.h.bf16 %v13664_v10  ;;  %v11878_v10 = vunpack.i.l.bf16 %v13685_v58 }
 0x172   : > { %10072 = vmatmul.mubr.msk.f32.gmra.mrb[102].mxu0 %vm195_vm0, %v10068_v35  ;;  %v13820_v61 = vsel %vm1741_vm3, %v11868_v45, %v11848_v63  ;;  %v218_v63 = vld [vmem:[%s12550_s7 + $0x20] sm:$0xff] }
 0x173   : > { %v13715_v14 = vpop.permute.xlu1 %11886  ;;  %10582 = vmatprep.mubr.msk.f32.mxu0 %vm195_vm0, %v10077_v26  ;;  %10572 = vmatmul.mubr.msk.f32.gmra.mrb[98].mxu1 %vm195_vm0, %v10068_v35  ;;  %v6049_v23 = vsel %vm1937_vm4, %v11873_v24, %v11858_v8  ;;  %v6051_v6 = vsel %vm1937_vm4, %v11874_v34, %v11863_v12  ;;  %v13825_v53 = vsel %vm1741_vm3, %v11869_v44, %v11853_v16  ;;  %v10091_v12 = vld [vmem:[%s16409_s1 + $0x2f0] sm:$0xff]  ;;  %v10092_v44 = vld [vmem:[%s16409_s1 + $0x2f8] sm:$0xff] }
 0x174   : > { %v13722_v36 = vpop.permute.xlu0 %11881  ;;  %11051 = vmatpush1.bf16.msra.mxu1 %v11050_v4  ;;  %5361 = vmatprep.mubr.f32.mxu1 %v16412_v5  ;;  %v11088_v4 = vpack.c.bf16 %v6052_v43, %v13761_v17  ;;  %v11888_v1 = vunpack.i.l.bf16 %v13715_v14  ;;  %v11090_v31 = vpack.c.bf16 %v6051_v6, %v6049_v23  ;;  %v11889_v16 = vunpack.i.h.bf16 %v13715_v14  ;;  %v221_v17 = vld [vmem:[%s12550_s7 + $0x38] sm:$0xff]  ;;  %v224_v6 = vld [vmem:[%s12550_s7 + $0x50] sm:$0xff] }
 0x175   : > { %11069 = vmatprep.subr.bf16.mxu1 %v11068_v27  ;;  %v11884_v52 = vunpack.i.h.bf16 %v13722_v36  ;;  %v11883_v54 = vunpack.i.l.bf16 %v13722_v36  ;;  %v5856_v51 = vsel %vm1741_vm3, %v11878_v10, %v11879_v57  ;;  %v223_v57 = vld [vmem:[%s12550_s7 + $0x48] sm:$0xff] }
 0x176   : > { %10583 = vmatmul.mubr.msk.f32.vlgmr.msra.gmra.mrb[104].mxu0 %vm195_vm0, %v10078_v39  ;;  %v5855_v25 = vsel %vm1741_vm3, %v11888_v1, %v11878_v10 }
 0x177   : > { %11063 = vmatpush1.bf16.msra.mxu0 %v11062_v62  ;;  %v13739_v29 = vpop.permute.xlu1 %11896  ;;  %10585 = vmatprep.mubr.msk.f32.mxu0 %vm195_vm0, %v13728_v48  ;;  %v5858_v32 = vsel %vm1741_vm3, %v11883_v54, %v11884_v52  ;;  %v5857_v24 = vsel %vm1741_vm3, %v11889_v16, %v11883_v54 }
 0x178   : > { %v13754_v3 = vpop.permute.xlu0 %11891  ;;  %10081 = vmatmul.mubr.msk.f32.vlgmr.msra.gmra.mrb[100].mxu1 %vm195_vm0, %v10077_v26  ;;  %11065 = vmatprep.subr.bf16.mxu0 %v11064_v37  ;;  %v219_v26 = vld [vmem:[%s12550_s7 + $0x28] sm:$0xff]  ;;  %v11899_v20 = vunpack.i.h.bf16 %v13739_v29  ;;  %v11898_v21 = vunpack.i.l.bf16 %v13739_v29  ;;  %v11080_v43 = vpack.c.bf16 %v5858_v32, %v5856_v51  ;;  %v11082_v23 = vpack.c.bf16 %v5857_v24, %v5855_v25  ;;  %v10111_v29 = vld [vmem:[%s16409_s1 + $0x330] sm:$0xff] }
 0x179   : > { %5367 = vmatprep.mubr.f32.mxu1 %v16412_v5  ;;  %11071 = vmatpush3.bf16.msra.mxu1 %v11068_v27  ;;  %v13815_v27 = vpack.c.bf16 %v13788_v56, %v13785_v50  ;;  %v11894_v14 = vunpack.i.h.bf16 %v13754_v3  ;;  %v11893_v0 = vunpack.i.l.bf16 %v13754_v3  ;;  %v10102_v32 = vld [vmem:[%s16409_s1 + $0x308] sm:$0xff] }
 0x17a   : > { %10586 = vmatmul.mubr.msk.f32.gmra.mrb[106].mxu0 %vm195_vm0, %v13746_v38  ;;  %11073 = vmatprep.subr.bf16.mxu1 %v11072_v9 }
 0x17b   : > { %11067 = vmatpush1.bf16.msra.mxu0 %v11066_v46  ;;  %v13768_v28 = vpop.permute.xlu1 %341  ;;  %5656 = vmatprep.mubr.f32.mxu0 %v16412_v5 }
 0x17c   : > { %v13779_v2 = vpop.permute.xlu0 %339  ;;  %v374_v49 = vadd.f32 %v13768_v28, %v216_v22  ;;  %10082 = vmatmul.mubr.msk.f32.gmra.mrb[102].mxu1 %vm195_vm0, %v10078_v39  ;;  %11085 = vmatprep.subr.bf16.mxu0 %v11084_v13  ;;  %v11078_v13 = vpack.c.bf16 %v13825_v53, %v13820_v61  ;;  %v13906_v53 = vld [vmem:[%s12349_s9 + $0x30] sm:$0xff] }
 0x17d   : > { %v372_v35 = vadd.f32 %v13779_v2, %v214_v7  ;;  %5373 = vmatprep.mubr.f32.mxu1 %v16412_v5  ;;  %11075 = vmatpush3.bf16.msra.mxu1 %v11072_v9  ;;  %v6240_v7 = vsel %vm2132_vm5, %v11893_v0, %v11894_v14 }
 0x17e   : > { %387 = vst.msk [vmem:[%s12550_s7 + $0x10] sm:$0xff] %vm195_vm0, %v374_v49  ;;  %10093 = vmatmul.mubr.msk.f32.vlgmr.msra.gmra.mrb[108].mxu0 %vm195_vm0, %v13775_v40  ;;  %v537_v58 = vpop.f32.mrb[0].mxu1  ;;  %11077 = vmatprep.subr.bf16.mxu1 %v11076_v42  ;;  %v6242_v49 = vsel %vm2132_vm5, %v11898_v21, %v11899_v20 }
 0x17f   : > { %385 = vst.msk [vmem:[%s12550_s7] sm:$0xff] %vm384_vm6, %v372_v35  ;;  %v346_v30 = vpop.permute.xlu1 %345  ;;  %v539_v59 = vpop.f32.mrb[1].mxu1  ;;  %5662 = vmatprep.mubr.f32.mxu0 %v16412_v5  ;;  %568 = vrot.lane.b32.xlu0 %v537_v58, %s12254_s28 }
 0x180   : > { %v344_v62 = vpop.permute.xlu0 %343  ;;  %v377_v55 = vadd.f32 %v346_v30, %v219_v26  ;;  %10083 = vmatmul.mubr.msk.f32.gmra.mrb[104].mxu1 %vm195_vm0, %v13728_v48  ;;  %570 = vrot.lane.b32.xlu1 %v539_v59, %s12254_s28 }
 0x181   : > { %v375_v39 = vadd.f32 %v344_v62, %v217_v15  ;;  %v357_v36 = vsel %vm355_vm7, %v344_v62, %v346_v30  ;;  %5379 = vmatprep.mubr.f32.mxu1 %v16412_v5  ;;  %11087 = vmatpush1.bf16.msra.mxu0 %v11086_v47  ;;  %v11092_v30 = vpack.c.bf16 %v6242_v49, %v6240_v7  ;;  %v13909_v62 = vld [vmem:[%s12349_s9 + $0x48] sm:$0xff]  ;;  %v10104_v49 = vld [vmem:[%s16409_s1 + $0x318] sm:$0xff] }
 0x182   : > { %v376_v37 = vadd.f32 %v357_v36, %v218_v63  ;;  %390 = vst.msk [vmem:[%s12550_s7 + $0x28] sm:$0xff] %vm195_vm0, %v377_v55  ;;  %10094 = vmatmul.mubr.msk.f32.gmra.mrb[110].mxu0 %vm195_vm0, %v13811_v60  ;;  %11089 = vmatprep.subr.bf16.mxu0 %v11088_v4  ;;  %v543_v48 = vpop.f32.mrb[2].mxu1  ;;  %v225_v4 = vld [vmem:[%s12550_s7 + $0x58] sm:$0xff]  ;;  %v10101_v55 = vld [vmem:[%s16409_s1 + $0x300] sm:$0xff]  ;;  %v10110_v36 = vld [vmem:[%s16409_s1 + $0x328] sm:$0xff] }
 0x183   : > { %388 = vst.msk [vmem:[%s12550_s7 + $0x18] sm:$0xff] %vm384_vm6, %v375_v39  ;;  %v350_v8 = vpop.permute.xlu1 %349  ;;  %5668 = vmatprep.mubr.f32.mxu0 %v16412_v5  ;;  %v545_v9 = vpop.f32.mrb[3].mxu1  ;;  %v13925_v39 = vpack.c.bf16 %v13909_v62, %v13906_v53 }
 0x184   : > { %389 = vst [vmem:[%s12550_s7 + $0x20] sm:$0xff] %v376_v37  ;;  %v348_v46 = vpop.permute.xlu0 %347  ;;  %v380_v41 = vadd.f32 %v350_v8, %v222_v11  ;;  %10084 = vmatmul.mubr.msk.f32.gmra.mrb[106].mxu1 %vm195_vm0, %v13746_v38 }
 0x185   : > { %v378_v33 = vadd.f32 %v348_v46, %v220_v18  ;;  %v358_v34 = vsel %vm355_vm7, %v348_v46, %v350_v8  ;;  %10596 = vmatprep.mubr.msk.f32.mxu1 %vm195_vm0, %v13775_v40  ;;  %11091 = vmatpush1.bf16.msra.mxu0 %v11090_v31  ;;  %v10103_v18 = vld [vmem:[%s16409_s1 + $0x310] sm:$0xff] }
 0x186   : > { %v379_v42 = vadd.f32 %v358_v34, %v221_v17  ;;  %393 = vst.msk [vmem:[%s12550_s7 + $0x40] sm:$0xff] %vm195_vm0, %v380_v41  ;;  %10095 = vmatmul.mubr.msk.f32.gmra.mrb[112].mxu0 %vm195_vm0, %v10091_v12  ;;  %v764_v38 = vpop.f32.mrb[8].mxu0  ;;  %v13868_v22 = vpop.f32.mrb[4].mxu1  ;;  %11101 = vmatprep.subr.bf16.mxu0 %v13815_v27 }
 0x187   : > { %391 = vst.msk [vmem:[%s12550_s7 + $0x30] sm:$0xff] %vm384_vm6, %v378_v33  ;;  %5674 = vmatprep.mubr.f32.mxu0 %v16412_v5  ;;  %795 = vrot.lane.b32.xlu0 %v764_v38, %s12254_s28  ;;  %v766_v40 = vpop.f32.mrb[9].mxu0  ;;  %v13878_v45 = vpop.f32.mrb[5].mxu1 }
 0x188   : > { %392 = vst [vmem:[%s12550_s7 + $0x38] sm:$0xff] %v379_v42  ;;  %v352_v47 = vpop.permute.xlu0 %351  ;;  %10597 = vmatmul.mubr.msk.f32.vlgmr.msra.gmra.mrb[108].mxu1 %vm195_vm0, %v13811_v60  ;;  %797 = vrot.lane.b32.xlu1 %v766_v40, %s12254_s28  ;;  %v10109_v60 = vld [vmem:[%s16409_s1 + $0x320] sm:$0xff]  ;;  %v10112_v42 = vld [vmem:[%s16409_s1 + $0x338] sm:$0xff] }
 0x189   : > { %v381_v10 = vadd.f32 %v352_v47, %v223_v57  ;;  %v354_v35 = vpop.permute.xlu1 %353  ;;  %11079 = vmatpush1.bf16.msra.mxu1 %v11078_v13  ;;  %10599 = vmatprep.mubr.msk.f32.mxu1 %vm195_vm0, %v10091_v12 }
 0x18a   : > { %v359_v52 = vsel %vm355_vm7, %v352_v47, %v354_v35  ;;  %v383_v54 = vadd.f32 %v354_v35, %v225_v4  ;;  %10096 = vmatmul.mubr.msk.f32.gmra.mrb[114].mxu0 %vm195_vm0, %v10092_v44  ;;  %11081 = vmatprep.subr.bf16.mxu1 %v11080_v43  ;;  %v770_v58 = vpop.f32.mrb[10].mxu0  ;;  %v13896_v26 = vpop.f32.mrb[6].mxu1  ;;  %v14002_v4 = vld [vmem:[%s12349_s9 + $0x38] sm:$0xff] }
 0x18b   : > { %394 = vst.msk [vmem:[%s12550_s7 + $0x48] sm:$0xff] %vm384_vm6, %v381_v10  ;;  %v382_v59 = vadd.f32 %v359_v52, %v224_v6  ;;  %6137 = vmatprep.mubr.f32.mxu0 %v16412_v5  ;;  %572 = vrot.lane.b32.xlu0 %v543_v48, %s12254_s28  ;;  %v772_v61 = vpop.f32.mrb[11].mxu0  ;;  %v13911_v15 = vpop.f32.mrb[7].mxu1 }
 0x18c   : > { %396 = vst.msk [vmem:[%s12550_s7 + $0x58] sm:$0xff] %vm195_vm0, %v383_v54  ;;  %10600 = vmatmul.mubr.msk.f32.gmra.mrb[110].mxu1 %vm195_vm0, %v10092_v44  ;;  %574 = vrot.lane.b32.xlu1 %v545_v9, %s12254_s28  ;;  %v10126_v54 = vld [vmem:[%s16409_s1 + $0x368] sm:$0xff] }
 0x18d   : > { %395 = vst [vmem:[%s12550_s7 + $0x50] sm:$0xff] %v382_v59  ;;  %11083 = vmatpush1.bf16.msra.mxu1 %v11082_v23  ;;  %5943 = vmatprep.mubr.f32.mxu1 %v16412_v5 }
 0x18e   : > { %10113 = vmatmul.mubr.msk.f32.vlgmr.msra.gmra.mrb[116].mxu0 %vm195_vm0, %v10109_v60  ;;  %v776_v1 = vpop.f32.mrb[12].mxu0  ;;  %11093 = vmatprep.subr.bf16.mxu1 %v11092_v30  ;;  %v13927_v63 = vpop.f32.mrb[8].mxu1 }
 0x18f   : > { %6143 = vmatprep.mubr.f32.mxu0 %v16412_v5  ;;  %799 = vrot.lane.b32.xlu0 %v770_v58, %s12254_s28  ;;  %v11902_v31 = vpop.permute.xlu0 %11901  ;;  %v778_v16 = vpop.f32.mrb[13].mxu0 }
 0x190   : > { %10105 = vmatmul.mubr.msk.f32.vlgmr.msra.gmra.mrb[112].mxu1 %vm195_vm0, %v10101_v55  ;;  %801 = vrot.lane.b32.xlu1 %v772_v61, %s12254_s28  ;;  %v11904_v37 = vunpack.i.h.bf16 %v11902_v31  ;;  %v11903_v48 = vunpack.i.l.bf16 %v11902_v31  ;;  %v13936_v51 = vpop.f32.mrb[9].mxu1  ;;  %v10127_v61 = vld [vmem:[%s16409_s1 + $0x370] sm:$0xff]  ;;  %v14020_v55 = vpack.i.bf16 %v13788_v56, %v13785_v50  ;;  %v10117_v50 = vld [vmem:[%s16409_s1 + $0x340] sm:$0xff] }
 0x191   : > { %5949 = vmatprep.mubr.f32.mxu1 %v16412_v5  ;;  %11103 = vmatpush3.bf16.msra.mxu0 %v13815_v27 }
 0x192   : > { %10114 = vmatmul.mubr.msk.f32.gmra.mrb[118].mxu0 %vm195_vm0, %v10110_v36  ;;  %v6241_v20 = vsel %vm2132_vm5, %v11904_v37, %v11898_v21  ;;  %v6239_v14 = vsel %vm2132_vm5, %v11903_v48, %v11893_v0  ;;  %v11907_v8 = vpop.permute.xlu1 %11906  ;;  %11105 = vmatprep.subr.bf16.mxu0 %v13925_v39  ;;  %v13951_v11 = vpop.f32.mrb[14].mxu0  ;;  %v14028_v36 = vpack.i.bf16 %v13423_v19, %v14002_v4  ;;  %v10128_v19 = vld [vmem:[%s16409_s1 + $0x378] sm:$0xff] }
 0x193   : > { %6149 = vmatprep.mubr.f32.mxu0 %v16412_v5  ;;  %v11909_v12 = vunpack.i.h.bf16 %v11907_v8  ;;  %v11908_v9 = vunpack.i.l.bf16 %v11907_v8  ;;  %576 = vrot.lane.b32.xlu0 %v13868_v22, %s12254_s28  ;;  %v11094_v21 = vpack.c.bf16 %v6241_v20, %v6239_v14  ;;  %v13959_v3 = vpop.f32.mrb[15].mxu0  ;;  %v13961_v0 = vpop.f32.mrb[10].mxu1  ;;  %v10125_v22 = vld [vmem:[%s16409_s1 + $0x360] sm:$0xff] }
 0x194   : > { %10106 = vmatmul.mubr.msk.f32.gmra.mrb[114].mxu1 %vm195_vm0, %v10102_v32  ;;  %578 = vrot.lane.b32.xlu1 %v13878_v45, %s12254_s28  ;;  %v13966_v46 = vpop.f32.mrb[11].mxu1  ;;  %v10133_v14 = vld [vmem:[%s16409_s1 + $0x380] sm:$0xff] }
 0x195   : > { %5955 = vmatprep.mubr.f32.mxu1 %v16412_v5  ;;  %11107 = vmatpush3.bf16.msra.mxu0 %v13925_v39  ;;  %v6244_v25 = vsel %vm2132_vm5, %v11908_v9, %v11909_v12 }
 0x196   : > { %10115 = vmatmul.mubr.msk.f32.gmra.mrb[120].mxu0 %vm195_vm0, %v10111_v29  ;;  %v11912_v41 = vpop.permute.xlu0 %11911  ;;  %v11917_v13 = vpop.permute.xlu1 %11916  ;;  %11095 = vmatpush1.bf16.msra.mxu1 %v11094_v21  ;;  %v14062_v29 = vld [vmem:[%s12349_s9 + $0x50] sm:$0xff]  ;;  %v10118_v21 = vld [vmem:[%s16409_s1 + $0x348] sm:$0xff] }
 0x197   : > { %v11914_v33 = vunpack.i.h.bf16 %v11912_v41  ;;  %v11913_v17 = vunpack.i.l.bf16 %v11912_v41  ;;  %6155 = vmatprep.mubr.f32.mxu0 %v16412_v5  ;;  %v11919_v34 = vunpack.i.h.bf16 %v11917_v13  ;;  %v11918_v24 = vunpack.i.l.bf16 %v11917_v13  ;;  %803 = vrot.lane.b32.xlu0 %v776_v1, %s12254_s28  ;;  %v13980_v38 = vpop.f32.mrb[16].mxu0  ;;  %v13982_v43 = vpop.f32.mrb[12].mxu1 }
 0x198   : > { %10107 = vmatmul.mubr.msk.f32.gmra.mrb[116].mxu1 %vm195_vm0, %v10103_v18  ;;  %805 = vrot.lane.b32.xlu1 %v778_v16, %s12254_s28  ;;  %v13989_v40 = vpop.f32.mrb[17].mxu0  ;;  %v13991_v44 = vpop.f32.mrb[13].mxu1 }
 0x199   : > { %v6245_v45 = vsel %vm2132_vm5, %v11919_v34, %v11913_v17  ;;  %v6243_v7 = vsel %vm2132_vm5, %v11918_v24, %v11908_v9  ;;  %5961 = vmatprep.mubr.f32.mxu1 %v16412_v5  ;;  %v6246_v47 = vsel %vm2132_vm5, %v11913_v17, %v11914_v33  ;;  %v14059_v9 = vpack.i.bf16 %v13909_v62, %v13906_v53  ;;  %v10134_v62 = vld [vmem:[%s16409_s1 + $0x388] sm:$0xff]  ;;  %v12180_v33 = vld [vmem:[%s12349_s9 + $0x58] sm:$0xff] }
 0x19a   : > { %10116 = vmatmul.mubr.msk.f32.gmra.mrb[122].mxu0 %vm195_vm0, %v10112_v42  ;;  %v11922_v57 = vpop.permute.xlu0 %11921  ;;  %v11096_v10 = vpack.c.bf16 %v6246_v47, %v6244_v25  ;;  %v11098_v35 = vpack.c.bf16 %v6245_v45, %v6243_v7  ;;  %v14004_v23 = vpop.f32.mrb[18].mxu0  ;;  %v14081_v17 = vpack.i.bf16 %v12180_v33, %v14062_v29  ;;  %v14092_v24 = vld [vmem:[%s12349_s9 + $0x8] sm:$0xff]  ;;  %v14101_v7 = vld [vmem:[%s12349_s9 + $0x20] sm:$0xff] }
 0x19b   : > { %16425 = vst [vmem:[#allocation5_spill] sm:$0xff] %v14004_v23  ;;  %v11924_v6 = vunpack.i.h.bf16 %v11922_v57  ;;  %v11923_v52 = vunpack.i.l.bf16 %v11922_v57  ;;  %10610 = vmatprep.mubr.msk.f32.mxu0 %vm195_vm0, %v10125_v22  ;;  %580 = vrot.lane.b32.xlu0 %v13896_v26, %s12254_s28  ;;  %v11927_v58 = vpop.permute.xlu1 %11926  ;;  %v14012_v30 = vpop.f32.mrb[19].mxu0  ;;  %v10119_v22 = vld [vmem:[%s16409_s1 + $0x350] sm:$0xff]  ;;  %v10136_v57 = vld [vmem:[%s16409_s1 + $0x398] sm:$0xff] }
 0x19c   : > { %10108 = vmatmul.mubr.msk.f32.gmra.mrb[118].mxu1 %vm195_vm0, %v10104_v49  ;;  %11097 = vmatprep.subr.bf16.mxu1 %v11096_v10  ;;  %v11929_v59 = vunpack.i.h.bf16 %v11927_v58  ;;  %v11928_v60 = vunpack.i.l.bf16 %v11927_v58  ;;  %v14022_v26 = vpop.f32.mrb[14].mxu1  ;;  %v12181_v10 = vld [vmem:[%s12349_s9 + $0x10] sm:$0xff]  ;;  %v14126_v58 = vld [vmem:[%s12349_s9 + $0x28] sm:$0xff] }
 0x19d   : > { %16426 = vst [vmem:[#allocation6_spill] sm:$0xff] %v14022_v26  ;;  %582 = vrot.lane.b32.xlu1 %v13911_v15, %s12254_s28  ;;  %11099 = vmatpush1.bf16.msra.mxu1 %v11098_v35  ;;  %v11108_v1 = vpack.c.bf16 %v11924_v6, %v11923_v52  ;;  %v14030_v31 = vpop.f32.mrb[15].mxu1  ;;  %v14116_v35 = vpack.i.bf16 %v12181_v10, %v14092_v24 }
 0x19e   : > { %16427 = vst [vmem:[#allocation7_spill] sm:$0xff] %v14030_v31  ;;  %10611 = vmatmul.mubr.msk.f32.vlgmr.msra.gmra.mrb[124].mxu0 %vm195_vm0, %v10126_v54  ;;  %6331 = vmatprep.mubr.f32.mxu1 %v16412_v5  ;;  %v11112_v56 = vpack.c.bf16 %v11929_v59, %v11928_v60  ;;  %v14037_v16 = vpop.f32.mrb[20].mxu0  ;;  %v14039_v15 = vpop.f32.mrb[16].mxu1  ;;  %v11124_v52 = vpack.c.bf16 %v14101_v7, %v14092_v24  ;;  %v14123_v54 = vld [vmem:[%s12349_s9 + $0x10] sm:$0xff]  ;;  %v12182_v59 = vld [vmem:[%s12349_s9 + $0x28] sm:$0xff] }
 0x19f   : > { %16428 = vst [vmem:[#allocation8_spill] sm:$0xff] %v14037_v16  ;;  %11109 = vmatprep.subr.bf16.mxu0 %v11108_v1  ;;  %10613 = vmatprep.mubr.msk.f32.mxu0 %vm195_vm0, %v10127_v61  ;;  %v11932_v37 = vpop.permute.xlu0 %11931  ;;  %v11937_v48 = vpop.permute.xlu1 %11936  ;;  %v14133_v60 = vpack.i.bf16 %v12182_v59, %v14101_v7 }
 0x1a0   : > { %11111 = vmatpush3.bf16.msra.mxu0 %v11108_v1  ;;  %11981 = vrot.lane.b32.xlu0 %v14020_v55, %s12250_s19  ;;  %v11934_v32 = vunpack.i.h.bf16 %v11932_v37  ;;  %v11933_v20 = vunpack.i.l.bf16 %v11932_v37  ;;  %v14050_v8 = vpop.f32.mrb[21].mxu0  ;;  %v14052_v12 = vpop.f32.mrb[17].mxu1  ;;  %v11939_v18 = vunpack.i.h.bf16 %v11937_v48  ;;  %v11938_v41 = vunpack.i.l.bf16 %v11937_v48  ;;  %v10120_v1 = vld [vmem:[%s16409_s1 + $0x358] sm:$0xff] }
 0x1a1   : > { %10121 = vmatmul.mubr.msk.f32.vlgmr.msra.gmra.mrb[120].mxu1 %vm195_vm0, %v10117_v50  ;;  %11986 = vrot.lane.b32.xlu1 %v14028_v36, %s12250_s19  ;;  %v11132_v37 = vpack.c.bf16 %v14126_v58, %v14123_v54  ;;  %v11128_v48 = vpack.c.bf16 %v14062_v29, %v14002_v4 }
 0x1a2   : > { %10614 = vmatmul.mubr.msk.f32.gmra.mrb[126].mxu0 %vm195_vm0, %v10128_v19  ;;  %11113 = vmatprep.subr.bf16.mxu0 %v11112_v56  ;;  %v11116_v13 = vpack.c.bf16 %v11934_v32, %v11933_v20  ;;  %v14068_v25 = vpop.f32.mrb[18].mxu1  ;;  %v11120_v45 = vpack.c.bf16 %v11939_v18, %v11938_v41  ;;  %v14158_v18 = vld [vmem:[%s12349_s9 + $0x40] sm:$0xff]  ;;  %v14161_v41 = vld [vmem:[%s12349_s9 + $0x58] sm:$0xff] }
 0x1a3   : > { %6337 = vmatprep.mubr.f32.mxu1 %v16412_v5  ;;  %10624 = vmatprep.mubr.msk.f32.mxu0 %vm195_vm0, %v10133_v14  ;;  %v14072_v53 = vpop.f32.mrb[19].mxu1 }
 0x1a4   : > { %11115 = vmatpush3.bf16.msra.mxu0 %v11112_v56  ;;  %807 = vrot.lane.b32.xlu0 %v13951_v11, %s12254_s28  ;;  %v14083_v34 = vpop.f32.mrb[22].mxu0  ;;  %v10135_v11 = vld [vmem:[%s16409_s1 + $0x390] sm:$0xff] }
 0x1a5   : > { %16429 = vst [vmem:[#allocation9_spill] sm:$0xff] %v14083_v34  ;;  %10122 = vmatmul.mubr.msk.f32.gmra.mrb[122].mxu1 %vm195_vm0, %v10118_v21  ;;  %11996 = vrot.lane.b32.xlu1 %v14059_v9, %s12250_s19  ;;  %v14094_v42 = vpop.f32.mrb[23].mxu0 }
 0x1a6   : > { %16430 = vst [vmem:[#allocation10_spill] sm:$0xff] %v14094_v42  ;;  %6343 = vmatprep.mubr.f32.mxu1 %v16412_v5  ;;  %11117 = vmatprep.subr.bf16.mxu1 %v11116_v13  ;;  %v14103_v49 = vpop.f32.mrb[20].mxu1 }
 0x1a7   : > { %16431 = vst [vmem:[#allocation11_spill] sm:$0xff] %v14103_v49  ;;  %10625 = vmatmul.mubr.msk.f32.vlgmr.msra.gmra.mrb[128].mxu0 %vm195_vm0, %v10134_v62  ;;  %11119 = vmatpush3.bf16.msra.mxu1 %v11116_v13  ;;  %v14106_v47 = vpop.f32.mrb[21].mxu1 }
 0x1a8   : > { %11991 = vrot.lane.b32.xlu0 %v14081_v17, %s12250_s19  ;;  %10627 = vmatprep.mubr.msk.f32.mxu0 %vm195_vm0, %v10135_v11  ;;  %v14118_v6 = vpop.f32.mrb[24].mxu0  ;;  %v10142_v11 = vld [vmem:[%s16409_s1 + $0x3a8] sm:$0xff] }
 0x1a9   : > { %10123 = vmatmul.mubr.msk.f32.gmra.mrb[124].mxu1 %vm195_vm0, %v10119_v22  ;;  %809 = vrot.lane.b32.xlu1 %v13959_v3, %s12254_s28  ;;  %v14135_v61 = vpop.f32.mrb[25].mxu0  ;;  %v10141_v3 = vld [vmem:[%s16409_s1 + $0x3a0] sm:$0xff] }
 0x1aa   : > { %6349 = vmatprep.mubr.f32.mxu1 %v16412_v5  ;;  %11121 = vmatprep.subr.bf16.mxu1 %v11120_v45  ;;  %v14141_v50 = vpop.f32.mrb[22].mxu1 }
 0x1ab   : > { %16432 = vst [vmem:[#allocation12_spill] sm:$0xff] %v14141_v50  ;;  %10628 = vmatmul.mubr.msk.f32.gmra.mrb[130].mxu0 %vm195_vm0, %v10136_v57  ;;  %11123 = vmatpush3.bf16.msra.mxu1 %v11120_v45  ;;  %v14147_v56 = vpop.f32.mrb[23].mxu1  ;;  %v11942_v19 = vpop.permute.xlu0 %11941  ;;  %v10143_v45 = vld [vmem:[%s16409_s1 + $0x3b0] sm:$0xff] }
 0x1ac   : > { %16433 = vst [vmem:[#allocation13_spill] sm:$0xff] %v14147_v56  ;;  %12001 = vrot.lane.b32.xlu0 %v14116_v35, %s12255_s30  ;;  %v14155_v32 = vpop.f32.mrb[26].mxu0  ;;  %v11944_v20 = vunpack.i.h.bf16 %v11942_v19  ;;  %v11943_v14 = vunpack.i.l.bf16 %v11942_v19  ;;  %v11947_v21 = vpop.permute.xlu1 %11946  ;;  %11125 = vmatprep.subr.bf16.mxu0 %v11124_v52  ;;  %v11136_v52 = vpack.c.bf16 %v14161_v41, %v14158_v18 }
 0x1ad   : > { %10124 = vmatmul.mubr.msk.f32.gmra.mrb[126].mxu1 %vm195_vm0, %v10120_v1  ;;  %12006 = vrot.lane.b32.xlu1 %v14133_v60, %s12255_s30  ;;  %v14166_v13 = vpop.f32.mrb[27].mxu0  ;;  %v11949_v62 = vunpack.i.h.bf16 %v11947_v21  ;;  %v11948_v33 = vunpack.i.l.bf16 %v11947_v21 }
 0x1ae   : > { %10638 = vmatprep.mubr.msk.f32.mxu1 %vm195_vm0, %v10141_v3  ;;  %v14172_v22 = vpop.f32.mrb[24].mxu1  ;;  %11127 = vmatpush1.bf16.msra.mxu0 %v13815_v27  ;;  %v7148_v59 = vsel %vm446_vm1, %v11943_v14, %v11944_v20 }
 0x1af   : > { %16434 = vst [vmem:[#allocation14_spill] sm:$0xff] %v14172_v22  ;;  %v14178_v57 = vpop.f32.mrb[25].mxu1  ;;  %v11952_v10 = vpop.permute.xlu0 %11951  ;;  %11133 = vmatprep.subr.bf16.mxu1 %v11132_v37  ;;  %11129 = vmatprep.subr.bf16.mxu0 %v11128_v48  ;;  %v11148_v21 = vpack.c.bf16 %v11949_v62, %v11944_v20  ;;  %v7150_v34 = vsel %vm446_vm1, %v11948_v33, %v11949_v62 }
 0x1b0   : > { %12011 = vrot.lane.b32.xlu0 %v14028_v36, %s12255_s30  ;;  %v14185_v1 = vpop.f32.mrb[28].mxu0  ;;  %v11954_v27 = vunpack.i.h.bf16 %v11952_v10  ;;  %v11953_v3 = vunpack.i.l.bf16 %v11952_v10  ;;  %v11957_v19 = vpop.permute.xlu1 %11956  ;;  %6948 = vmatprep.mubr.f32.mxu0 %v16412_v5  ;;  %v10144_v10 = vld [vmem:[%s16409_s1 + $0x3b8] sm:$0xff] }
 0x1b1   : > { %16435 = vst [vmem:[#allocation15_spill] sm:$0xff] %v14185_v1  ;;  %10639 = vmatmul.mubr.msk.f32.vlgmr.msra.gmra.mrb[128].mxu1 %vm195_vm0, %v10142_v11  ;;  %12016 = vrot.lane.b32.xlu1 %v14081_v17, %s12255_s30  ;;  %v14192_v48 = vpop.f32.mrb[29].mxu0  ;;  %v11959_v23 = vunpack.i.h.bf16 %v11957_v19  ;;  %v11958_v22 = vunpack.i.l.bf16 %v11957_v19  ;;  %v10149_v19 = vld [vmem:[%s16409_s1 + $0x3c0] sm:$0xff]  ;;  %s12257_s30 = smov 38  }
 0x1b2   : > { %10641 = vmatprep.mubr.msk.f32.mxu1 %vm195_vm0, %v10143_v45  ;;  %11135 = vmatpush3.bf16.msra.mxu1 %v11132_v37  ;;  %v7147_v20 = vsel %vm446_vm1, %v11953_v3, %v11943_v14  ;;  %v7149_v62 = vsel %vm446_vm1, %v11954_v27, %v11948_v33  ;;  %v11140_v45 = vpack.c.bf16 %v7150_v34, %v7148_v59  ;;  %v10150_v3 = vld [vmem:[%s16409_s1 + $0x3c8] sm:$0xff] }
 0x1b3   : > { %v14198_v5 = vpop.f32.mrb[26].mxu1  ;;  %v11962_v11 = vpop.permute.xlu0 %11961  ;;  %11131 = vmatpush1.bf16.msra.mxu0 %v13925_v39  ;;  %11137 = vmatprep.subr.bf16.mxu1 %v11136_v52  ;;  %v7152_v33 = vsel %vm446_vm1, %v11958_v22, %v11959_v23 }
 0x1b4   : > { %16436 = vst [vmem:[#allocation16_spill] sm:$0xff] %v14198_v5  ;;  %12021 = vrot.lane.b32.xlu0 %v14116_v35, %s12256_s6  ;;  %v14208_v37 = vpop.f32.mrb[27].mxu1  ;;  %v11964_v5 = vunpack.i.h.bf16 %v11962_v11  ;;  %v11963_v42 = vunpack.i.l.bf16 %v11962_v11  ;;  %v11967_v14 = vpop.permute.xlu1 %11966  ;;  %11149 = vmatprep.subr.bf16.mxu0 %v11148_v21  ;;  %v11142_v11 = vpack.c.bf16 %v7149_v62, %v7147_v20 }
 0x1b5   : > { %16437 = vst [vmem:[#allocation17_spill] sm:$0xff] %v14208_v37  ;;  %10642 = vmatmul.mubr.msk.f32.gmra.mrb[130].mxu1 %vm195_vm0, %v10144_v10  ;;  %12026 = vrot.lane.b32.xlu1 %v14133_v60, %s12256_s6  ;;  %v14214_v39 = vpop.f32.mrb[30].mxu0  ;;  %v11969_v34 = vunpack.i.h.bf16 %v11967_v14  ;;  %v11968_v59 = vunpack.i.l.bf16 %v11967_v14 }
 0x1b6   : > { %16438 = vst [vmem:[#allocation18_spill] sm:$0xff] %v14214_v39  ;;  %v14216_v27 = vpop.f32.mrb[31].mxu0  ;;  %11139 = vmatpush3.bf16.msra.mxu1 %v11136_v52  ;;  %10153 = vmatmul.mubr.msk.f32.vlgmr.msra.gmra.mrb[132].mxu0 %vm195_vm0, %v10149_v19  ;;  %v11152_v37 = vpack.c.bf16 %v11964_v5, %v11959_v23  ;;  %v7154_v10 = vsel %vm446_vm1, %v11963_v42, %v11964_v5 }
 0x1b7   : > { %16439 = vst [vmem:[#allocation19_spill] sm:$0xff] %v14216_v27  ;;  %v14223_v50 = vpop.f32.mrb[28].mxu1  ;;  %v7153_v26 = vsel %vm446_vm1, %v11969_v34, %v11963_v42  ;;  %v7151_v39 = vsel %vm446_vm1, %v11968_v59, %v11958_v22  ;;  %v14227_v14 = vpop.permute.xlu0 %11971  ;;  %10652 = vmatprep.mubr.msk.f32.mxu1 %vm195_vm0, %v10149_v19  ;;  %11141 = vmatprep.subr.bf16.mxu1 %v11140_v45  ;;  %v10151_v42 = vld [vmem:[%s16409_s1 + $0x3d0] sm:$0xff]  ;;  %v10152_v34 = vld [vmem:[%s16409_s1 + $0x3d8] sm:$0xff] }
 0x1b8   : > { %v11144_v52 = vpack.c.bf16 %v7154_v10, %v7152_v33  ;;  %12031 = vrot.lane.b32.xlu0 %v14116_v35, %s12257_s30  ;;  %v14232_v20 = vpop.f32.mrb[29].mxu1  ;;  %v11974_v5 = vunpack.i.h.bf16 %v14227_v14  ;;  %v16414_v23 = vunpack.i.l.bf16 %v14227_v14  ;;  %v14236_v62 = vpop.permute.xlu1 %11976  ;;  %11151 = vmatpush3.bf16.msra.mxu0 %v11148_v21  ;;  %v11146_v21 = vpack.c.bf16 %v7153_v26, %v7151_v39 }
 0x1b9   : > { %12036 = vrot.lane.b32.xlu1 %v14133_v60, %s12257_s30  ;;  %v14243_v22 = vpop.f32.mrb[32].mxu0  ;;  %v11979_v19 = vunpack.i.h.bf16 %v14236_v62  ;;  %10653 = vmatmul.mubr.msk.f32.vlgmr.msra.gmra.mrb[132].mxu1 %vm195_vm0, %v10150_v3  ;;  %v16440_v27 = vunpack.i.l.bf16 %v14236_v62 }
 0x1ba   : > { %v14248_v33 = vpop.f32.mrb[33].mxu0  ;;  %11143 = vmatpush1.bf16.msra.mxu1 %v11142_v11  ;;  %11153 = vmatprep.subr.bf16.mxu0 %v11152_v37  ;;  %v7443_v59 = vsel %vm673_vm2, %v16414_v23, %v11974_v5 }
 0x1bb   : > { %v14256_v10 = vpop.f32.mrb[30].mxu1  ;;  %11145 = vmatprep.subr.bf16.mxu1 %v11144_v52  ;;  %10655 = vmatprep.mubr.msk.f32.mxu1 %vm195_vm0, %v10151_v42  ;;  %v11164_v45 = vpack.c.bf16 %v11979_v19, %v11974_v5  ;;  %v7445_v11 = vsel %vm673_vm2, %v16440_v27, %v11979_v19  ;;  %v16441_v5 = vmov 0.0   ;;  %v10161_v27 = vld [vmem:[%s16409_s1 + $0x3e0] sm:$0xff] }
 0x1bc   : > { %12041 = vrot.lane.b32.xlu0 %v14028_v36, %s12256_s6  ;;  %v14264_v26 = vpop.f32.mrb[31].mxu1  ;;  %11155 = vmatpush3.bf16.msra.mxu0 %v11152_v37  ;;  %v11156_v39 = vpack.c.bf16 %v7445_v11, %v7443_v59  ;;  %v10162_v11 = vld [vmem:[%s16409_s1 + $0x3e8] sm:$0xff] }
 0x1bd   : > { %12046 = vrot.lane.b32.xlu1 %v14081_v17, %s12256_s6  ;;  %v14268_v23 = vpop.f32.mrb[34].mxu0  ;;  %10656 = vmatmul.mubr.msk.f32.gmra.mrb[134].mxu1 %vm195_vm0, %v10152_v34  ;;  %s16367_s6 = scalar_lea.sflag [#allocation3], %s161_s5 }
 0x1be   : > { %v14271_v52 = vpop.f32.mrb[35].mxu0  ;;  %11147 = vmatpush1.bf16.msra.mxu1 %v11146_v21  ;;  %7243 = vmatprep.mubr.f32.mxu1 %v16441_v5 }
 0x1bf   : > { %v14277_v19 = vpop.f32.mrb[32].mxu1  ;;  %11165 = vmatprep.subr.bf16.mxu1 %v11164_v45  ;;  %11157 = vmatprep.subr.bf16.mxu0 %v11156_v39 }
 0x1c0   : > { %16442 = vst [vmem:[#allocation20_spill] sm:$0xff] %v14277_v19  ;;  %12051 = vrot.lane.b32.xlu0 %v14028_v36, %s12257_s30  ;;  %v14281_v37 = vpop.f32.mrb[33].mxu1  ;;  %6954 = vmatprep.mubr.f32.mxu0 %v16441_v5 }
 0x1c1   : > { %12056 = vrot.lane.b32.xlu1 %v14081_v17, %s12257_s30  ;;  %v14286_v21 = vpop.f32.mrb[36].mxu0  ;;  %10165 = vmatmul.mubr.msk.f32.vlgmr.msra.gmra.mrb[136].mxu1 %vm195_vm0, %v10161_v27  ;;  %s12187_s30 = sshll.u32 %s12259_s11, 4  ;;  %s12188_s30 = int_to_ptr.vmem [resolvable:$false] %s12187_s30 }
 0x1c2   : > { %16443 = vst [vmem:[#allocation21_spill] sm:$0xff] %v14286_v21  ;;  %v14289_v59 = vpop.f32.mrb[37].mxu0  ;;  %11167 = vmatpush3.bf16.msra.mxu1 %v11164_v45  ;;  %10154 = vmatmul.mubr.msk.f32.gmra.mrb[134].mxu0 %vm195_vm0, %v10150_v3 }
 0x1c3   : > { %16444 = vst [vmem:[#allocation22_spill] sm:$0xff] %v14289_v59  ;;  %v14295_v39 = vpop.f32.mrb[34].mxu1  ;;  %6960 = vmatprep.mubr.f32.mxu0 %v16441_v5  ;;  %7249 = vmatprep.mubr.f32.mxu1 %v16441_v5 }
 0x1c4   : > { %16445 = vst [vmem:[#allocation23_spill] sm:$0xff] %v14295_v39  ;;  %12061 = vrot.lane.b32.xlu0 %v14116_v35, %s12249_s10  ;;  %v14301_v21 = vpop.f32.mrb[35].mxu1  ;;  %v10163_v39 = vld [vmem:[%s16409_s1 + $0x3f0] sm:$0xff] }
 0x1c5   : > { %16446 = vst [vmem:[#allocation24_spill] sm:$0xff] %v14301_v21  ;;  %12066 = vrot.lane.b32.xlu1 %v14133_v60, %s12249_s10  ;;  %v14305_v45 = vpop.f32.mrb[38].mxu0  ;;  %10166 = vmatmul.mubr.msk.f32.gmra.mrb[138].mxu1 %vm195_vm0, %v10162_v11 }
 0x1c6   : > { %16447 = vst [vmem:[#allocation25_spill] sm:$0xff] %v14305_v45  ;;  %v14308_v3 = vpop.f32.mrb[39].mxu0  ;;  %10155 = vmatmul.mubr.msk.f32.gmra.mrb[136].mxu0 %vm195_vm0, %v10151_v42  ;;  %7255 = vmatprep.mubr.f32.mxu1 %v16441_v5  ;;  %v10164_v45 = vld [vmem:[%s16409_s1 + $0x3f8] sm:$0xff] }
 0x1c7   : > { %16448 = vst [vmem:[#allocation26_spill] sm:$0xff] %v14308_v3  ;;  %6966 = vmatprep.mubr.f32.mxu0 %v16441_v5 }
 0x1c8   : > { %12071 = vrot.lane.b32.xlu0 %v14020_v55, %s12249_s10  ;;  %v14318_v35 = vpop.f32.mrb[36].mxu1  ;;  %v14334_v55 = vld [vmem:[%s16409_s1 + $0x400] sm:$0xff] }
 0x1c9   : > { %12076 = vrot.lane.b32.xlu1 %v14028_v36, %s12249_s10  ;;  %v2369_v60 = vpop.f32.mrb[40].mxu0  ;;  %v14322_v3 = vpop.f32.mrb[37].mxu1  ;;  %10167 = vmatmul.mubr.msk.f32.gmra.mrb[140].mxu1 %vm195_vm0, %v10163_v39  ;;  %16449 = vst [vmem:[#allocation27_spill] sm:$0xff] %v14334_v55 }
 0x1ca   : > { %v2371_v42 = vpop.f32.mrb[41].mxu0  ;;  %10156 = vmatmul.mubr.msk.f32.gmra.mrb[138].mxu0 %vm195_vm0, %v10152_v34  ;;  %7261 = vmatprep.mubr.f32.mxu1 %v16441_v5 }
 0x1cb   : > { %10666 = vmatprep.mubr.msk.f32.mxu0 %vm195_vm0, %v10161_v27 }
 0x1cc   : > { %12081 = vrot.lane.b32.xlu0 %v14081_v17, %s12249_s10  ;;  %v14338_v36 = vpop.f32.mrb[38].mxu1 }
 0x1cd   : > { %12086 = vrot.lane.b32.xlu1 %v14059_v9, %s12249_s10  ;;  %v2375_v34 = vpop.f32.mrb[42].mxu0  ;;  %v14342_v21 = vpop.f32.mrb[39].mxu1  ;;  %10168 = vmatmul.mubr.msk.f32.gmra.mrb[142].mxu1 %vm195_vm0, %v10164_v45 }
 0x1ce   : > { %16450 = vst [vmem:[#allocation28_spill] sm:$0xff] %v14342_v21  ;;  %v2377_v56 = vpop.f32.mrb[43].mxu0  ;;  %10667 = vmatmul.mubr.msk.f32.vlgmr.msra.gmra.mrb[140].mxu0 %vm195_vm0, %v10162_v11  ;;  %10680 = vmatprep.mubr.msk.f32.mxu1 %vm195_vm0, %v14334_v55 }
 0x1cf   : > { %10669 = vmatprep.mubr.msk.f32.mxu0 %vm195_vm0, %v10163_v39 }
 0x1d0   : > { %2400 = vrot.lane.b32.xlu0 %v2369_v60, %s12254_s28  ;;  %v14350_v17 = vpop.f32.mrb[40].mxu1 }
 0x1d1   : > { %16451 = vst [vmem:[#allocation29_spill] sm:$0xff] %v14350_v17  ;;  %2402 = vrot.lane.b32.xlu1 %v2371_v42, %s12254_s28  ;;  %v2381_v9 = vpop.f32.mrb[44].mxu0  ;;  %v14353_v27 = vpop.f32.mrb[41].mxu1 }
 0x1d2   : > { %16452 = vst [vmem:[#allocation30_spill] sm:$0xff] %v14353_v27  ;;  %v2383_v19 = vpop.f32.mrb[45].mxu0  ;;  %10670 = vmatmul.mubr.msk.f32.gmra.mrb[142].mxu0 %vm195_vm0, %v10164_v45 }
 0x1d3   : > { %7538 = vmatprep.mubr.f32.mxu0 %v16441_v5 }
 0x1d4   : > { %2404 = vrot.lane.b32.xlu0 %v2375_v34, %s12254_s28  ;;  %v14358_v11 = vpop.f32.mrb[42].mxu1 }
 0x1d5   : > { %16453 = vst [vmem:[#allocation31_spill] sm:$0xff] %v14358_v11  ;;  %2406 = vrot.lane.b32.xlu1 %v2377_v56, %s12254_s28  ;;  %v2387_v39 = vpop.f32.mrb[46].mxu0  ;;  %v14361_v60 = vpop.f32.mrb[43].mxu1 }
 0x1d6   : > { %16454 = vst [vmem:[#allocation32_spill] sm:$0xff] %v14361_v60  ;;  %v2389_v55 = vpop.f32.mrb[47].mxu0 }
 0x1d8   : > { %2408 = vrot.lane.b32.xlu0 %v2381_v9, %s12254_s28  ;;  %v2595_v42 = vpop.f32.mrb[44].mxu1 }
 0x1d9   : > { %2410 = vrot.lane.b32.xlu1 %v2383_v19, %s12254_s28  ;;  %v2821_v27 = vpop.f32.mrb[48].mxu0  ;;  %v2597_v17 = vpop.f32.mrb[45].mxu1 }
 0x1da   : > { %v2823_v45 = vpop.f32.mrb[49].mxu0 }
 0x1dc   : > { %2412 = vrot.lane.b32.xlu0 %v2387_v39, %s12254_s28  ;;  %v2601_v5 = vpop.f32.mrb[46].mxu1 }
 0x1dd   : > { %2414 = vrot.lane.b32.xlu1 %v2389_v55, %s12254_s28  ;;  %v2827_v34 = vpop.f32.mrb[50].mxu0  ;;  %v2603_v11 = vpop.f32.mrb[47].mxu1 }
 0x1de   : > { %v2829_v56 = vpop.f32.mrb[51].mxu0 }
 0x1e0   : > { %2852 = vrot.lane.b32.xlu0 %v2821_v27, %s12254_s28  ;;  %v2607_v60 = vpop.f32.mrb[48].mxu1 }
 0x1e1   : > { %2854 = vrot.lane.b32.xlu1 %v2823_v45, %s12254_s28  ;;  %v2833_v9 = vpop.f32.mrb[52].mxu0  ;;  %v2609_v21 = vpop.f32.mrb[49].mxu1 }
 0x1e2   : > { %v2835_v31 = vpop.f32.mrb[53].mxu0 }
 0x1e4   : > { %2856 = vrot.lane.b32.xlu0 %v2827_v34, %s12254_s28  ;;  %v2613_v19 = vpop.f32.mrb[50].mxu1 }
 0x1e5   : > { %2858 = vrot.lane.b32.xlu1 %v2829_v56, %s12254_s28  ;;  %v2615_v39 = vpop.f32.mrb[51].mxu1  ;;  %v2839_v59 = vpop.f32.mrb[54].mxu0 }
 0x1e6   : > { %v2841_v1 = vpop.f32.mrb[55].mxu0 }
 0x1e8   : > { %2860 = vrot.lane.b32.xlu0 %v2833_v9, %s12254_s28  ;;  %v14372_v55 = vpop.f32.mrb[52].mxu1 }
 0x1e9   : > { %16455 = vst [vmem:[#allocation33_spill] sm:$0xff] %v14372_v55  ;;  %2626 = vrot.lane.b32.xlu1 %v2595_v42, %s12254_s28  ;;  %v14375_v27 = vpop.f32.mrb[56].mxu0  ;;  %v14377_v45 = vpop.f32.mrb[53].mxu1 }
 0x1ea   : > { %16456 = vst [vmem:[#allocation34_spill] sm:$0xff] %v14375_v27  ;;  %16457 = vst [vmem:[#allocation35_spill] sm:$0xff] %v14377_v45  ;;  %v14379_v16 = vpop.f32.mrb[57].mxu0  ;;  %v407_v45 = vld [vmem:[%s12550_s7 + $0x10] sm:$0xff] }
 0x1eb   : > { %16458 = vst [vmem:[#allocation36_spill] sm:$0xff] %v14379_v16 }
 0x1ec   : > { %2628 = vrot.lane.b32.xlu0 %v2597_v17, %s12254_s28  ;;  %v14382_v34 = vpop.f32.mrb[54].mxu1  ;;  %v405_v17 = vld [vmem:[%s12550_s7] sm:$0xff] }
 0x1ed   : > { %16459 = vst [vmem:[#allocation37_spill] sm:$0xff] %v14382_v34  ;;  %2862 = vrot.lane.b32.xlu1 %v2835_v31, %s12254_s28  ;;  %v14385_v56 = vpop.f32.mrb[58].mxu0  ;;  %v14387_v9 = vpop.f32.mrb[55].mxu1 }
 0x1ee   : > { %16460 = vst [vmem:[#allocation38_spill] sm:$0xff] %v14385_v56  ;;  %16461 = vst [vmem:[#allocation39_spill] sm:$0xff] %v14387_v9  ;;  %v14389_v55 = vpop.f32.mrb[59].mxu0 }
 0x1ef   : > { %16462 = vst [vmem:[#allocation40_spill] sm:$0xff] %v14389_v55 }
 0x1f0   : > { %2632 = vrot.lane.b32.xlu0 %v2603_v11, %s12254_s28  ;;  %v14392_v42 = vpop.f32.mrb[56].mxu1 }
 0x1f1   : > { %16463 = vst [vmem:[#allocation41_spill] sm:$0xff] %v14392_v42  ;;  %2630 = vrot.lane.b32.xlu1 %v2601_v5, %s12254_s28  ;;  %v569_v27 = vpop.permute.xlu0 %568  ;;  %v14396_v16 = vpop.f32.mrb[60].mxu0  ;;  %v356_v5 = vsel %vm355_vm7, %v13779_v2, %v13768_v28 }
 0x1f2   : > { %16464 = vst [vmem:[#allocation42_spill] sm:$0xff] %v14396_v16  ;;  %v600_v31 = vadd.f32 %v569_v27, %v405_v17  ;;  %v571_v34 = vpop.permute.xlu1 %570  ;;  %v14399_v56 = vpop.f32.mrb[61].mxu0 }
 0x1f3   : > { %v602_v9 = vadd.f32 %v571_v34, %v407_v45  ;;  %v14401_v49 = vpop.f32.mrb[57].mxu1 }
 0x1f4   : > { %16465 = vst [vmem:[#allocation43_spill] sm:$0xff] %v14401_v49  ;;  %612 = vst.msk [vmem:[%s12550_s7] sm:$0xff] %vm384_vm6, %v600_v31  ;;  %2636 = vrot.lane.b32.xlu0 %v2609_v21, %s12254_s28  ;;  %v14406_v11 = vpop.f32.mrb[58].mxu1  ;;  %v215_v31 = vld [vmem:[%s12550_s7 + $0x8] sm:$0xff]  ;;  %v584_v21 = vsel %vm355_vm7, %v569_v27, %v571_v34 }
 0x1f5   : > { %16466 = vst [vmem:[#allocation44_spill] sm:$0xff] %v14406_v11  ;;  %614 = vst.msk [vmem:[%s12550_s7 + $0x10] sm:$0xff] %vm195_vm0, %v602_v9  ;;  %2634 = vrot.lane.b32.xlu1 %v2607_v60, %s12254_s28  ;;  %v14414_v17 = vpop.f32.mrb[62].mxu0  ;;  %v14416_v45 = vpop.f32.mrb[59].mxu1  ;;  %v373_v11 = vadd.f32 %v356_v5, %v215_v31 }
 0x1f6   : > { %16467 = vst [vmem:[#allocation45_spill] sm:$0xff] %v14414_v17  ;;  %16468 = vst [vmem:[#allocation46_spill] sm:$0xff] %v14416_v45  ;;  %v14418_v42 = vpop.f32.mrb[63].mxu0 }
 0x1f7   : > { %16469 = vst [vmem:[#allocation47_spill] sm:$0xff] %v14418_v42  ;;  %v601_v60 = vadd.f32 %v584_v21, %v373_v11  ;;  %v12090_v11 = vpack.i.bf16 %v14123_v54, %v14092_v24 }
 0x1f8   : > { %2640 = vrot.lane.b32.xlu0 %v2615_v39, %s12254_s28  ;;  %v14423_v55 = vpop.f32.mrb[60].mxu1 }
 0x1f9   : > { %16470 = vst [vmem:[#allocation48_spill] sm:$0xff] %v14423_v55  ;;  %2638 = vrot.lane.b32.xlu1 %v2613_v19, %s12254_s28  ;;  %v796_v28 = vpop.permute.xlu0 %795  ;;  %v14426_v2 = vpop.f32.mrb[64].mxu0  ;;  %v408_v55 = vld [vmem:[%s12550_s7 + $0x18] sm:$0xff] }
 0x1fa   : > { %16471 = vst [vmem:[#allocation49_spill] sm:$0xff] %v14426_v2  ;;  %v798_v9 = vpop.permute.xlu1 %797  ;;  %v14428_v17 = vpop.f32.mrb[65].mxu0  ;;  %v12095_v2 = vpack.i.bf16 %v14126_v58, %v14101_v7 }
 0x1fb   : > { %16472 = vst [vmem:[#allocation50_spill] sm:$0xff] %v14428_v17  ;;  %v632_v45 = vld [vmem:[%s12550_s7] sm:$0xff]  ;;  %v811_v27 = vsel %vm355_vm7, %v796_v28, %v798_v9  ;;  %v14432_v34 = vpop.f32.mrb[61].mxu1 }
 0x1fc   : > { %16473 = vst [vmem:[#allocation51_spill] sm:$0xff] %v14432_v34  ;;  %v827_v39 = vadd.f32 %v796_v28, %v632_v45  ;;  %v634_v5 = vld [vmem:[%s12550_s7 + $0x10] sm:$0xff]  ;;  %v828_v19 = vadd.f32 %v811_v27, %v601_v60  ;;  %2864 = vrot.lane.b32.xlu0 %v2839_v59, %s12254_s28  ;;  %v14443_v34 = vld [vmem:[%s12349_s9] sm:$0xff]  ;;  %v14446_v45 = vld [vmem:[%s12349_s9 + $0x18] sm:$0xff] }
 0x1fd   : > { %v829_v31 = vadd.f32 %v798_v9, %v634_v5  ;;  %2866 = vrot.lane.b32.xlu1 %v2841_v1, %s12254_s28  ;;  %v573_v21 = vpop.permute.xlu0 %572  ;;  %v14448_v28 = vpop.f32.mrb[66].mxu0  ;;  %v410_v60 = vld [vmem:[%s12550_s7 + $0x28] sm:$0xff] }
 0x1fe   : > { %16474 = vst [vmem:[#allocation52_spill] sm:$0xff] %v14448_v28  ;;  %839 = vst.msk [vmem:[%s12550_s7] sm:$0xff] %vm384_vm6, %v827_v39  ;;  %v1067_v24 = vadd.f32 %v13936_v51, %v828_v19  ;;  %v603_v59 = vadd.f32 %v573_v21, %v408_v55  ;;  %v575_v1 = vpop.permute.xlu1 %574  ;;  %v14454_v9 = vpop.f32.mrb[62].mxu1  ;;  %v14469_v51 = vpack.i.bf16 %v14446_v45, %v14443_v34  ;;  %v409_v55 = vld [vmem:[%s12550_s7 + $0x20] sm:$0xff] }
 0x1ff   : > { %16475 = vst [vmem:[#allocation53_spill] sm:$0xff] %v14454_v9  ;;  %841 = vst.msk [vmem:[%s12550_s7 + $0x10] sm:$0xff] %vm195_vm0, %v829_v31  ;;  %v585_v7 = vsel %vm355_vm7, %v573_v21, %v575_v1  ;;  %v605_v27 = vadd.f32 %v575_v1, %v410_v60  ;;  %v14459_v5 = vpop.f32.mrb[63].mxu1  ;;  %v14461_v28 = vpop.f32.mrb[67].mxu0  ;;  %v12105_v31 = vpack.i.bf16 %v14158_v18, %v14002_v4  ;;  %v14484_v1 = vld [vmem:[%s12349_s9 + $0x48] sm:$0xff]  ;;  %v411_v9 = vld [vmem:[%s12550_s7 + $0x30] sm:$0xff] }
 0x200   : > { %16476 = vst [vmem:[#allocation54_spill] sm:$0xff] %v14459_v5  ;;  %16477 = vst [vmem:[#allocation55_spill] sm:$0xff] %v14461_v28  ;;  %v1362_v39 = vadd.f32 %v14052_v12, %v1067_v24  ;;  %12091 = vrot.lane.b32.xlu0 %v12090_v11, %s12250_s19  ;;  %v604_v11 = vadd.f32 %v585_v7, %v409_v55  ;;  %v413_v28 = vld [vmem:[%s12550_s7 + $0x40] sm:$0xff] }
 0x201   : > { %615 = vst.msk [vmem:[%s12550_s7 + $0x18] sm:$0xff] %vm384_vm6, %v603_v59  ;;  %12096 = vrot.lane.b32.xlu1 %v12095_v2, %s12250_s19  ;;  %v800_v19 = vpop.permute.xlu0 %799  ;;  %v14477_v21 = vpop.f32.mrb[68].mxu0  ;;  %v14481_v59 = vld [vmem:[%s12349_s9 + $0x30] sm:$0xff] }
 0x202   : > { %617 = vst.msk [vmem:[%s12550_s7 + $0x28] sm:$0xff] %vm195_vm0, %v605_v27  ;;  %16478 = vst [vmem:[#allocation56_spill] sm:$0xff] %v14477_v21  ;;  %v1657_v12 = vadd.f32 %v14135_v61, %v1362_v39  ;;  %v802_v24 = vpop.permute.xlu1 %801  ;;  %v14486_v60 = vpop.f32.mrb[64].mxu1  ;;  %v12110_v39 = vpack.i.bf16 %v14161_v41, %v14062_v29 }
 0x203   : > { %16479 = vst [vmem:[#allocation57_spill] sm:$0xff] %v14486_v60  ;;  %v812_v2 = vsel %vm355_vm7, %v800_v19, %v802_v24  ;;  %v14489_v4 = vpop.f32.mrb[65].mxu1  ;;  %v14491_v27 = vpop.f32.mrb[69].mxu0  ;;  %v14518_v60 = vld [vmem:[%s12349_s9 + $0x20] sm:$0xff] }
 0x204   : > { %16480 = vst [vmem:[#allocation58_spill] sm:$0xff] %v14491_v27  ;;  %1669 = vst [vmem:[%s12550_s7 + $0x8] sm:$0xff] %v1657_v12  ;;  %v1860_v61 = vadd.f32 %v14232_v20, %v1657_v12  ;;  %v831_v7 = vadd.f32 %v812_v2, %v604_v11  ;;  %12101 = vrot.lane.b32.xlu0 %v14469_v51, %s12250_s19  ;;  %v14504_v27 = vpack.i.bf16 %v14484_v1, %v14481_v59  ;;  %v14507_v20 = vld [vmem:[%s12349_s9 + $0x8] sm:$0xff] }
 0x205   : > { %v863_v55 = vld [vmem:[%s12550_s7] sm:$0xff]  ;;  %12106 = vrot.lane.b32.xlu1 %v12105_v31, %s12250_s19  ;;  %v577_v21 = vpop.permute.xlu0 %576  ;;  %v14509_v12 = vpop.f32.mrb[70].mxu0 }
 0x206   : > { %16481 = vst [vmem:[#allocation59_spill] sm:$0xff] %v14509_v12  ;;  %v1066_v11 = vadd.f32 %v13927_v63, %v863_v55  ;;  %v865_v2 = vld [vmem:[%s12550_s7 + $0x10] sm:$0xff]  ;;  %1869 = vst.msk [vmem:[%s12550_s7 + $0x8] sm:$0xff] %vm1868_vm8, %v1860_v61  ;;  %v1070_v29 = vadd.f32 %v13966_v46, %v831_v7  ;;  %v606_v31 = vadd.f32 %v577_v21, %v411_v9  ;;  %v579_v5 = vpop.permute.xlu1 %578  ;;  %v14520_v16 = vpop.f32.mrb[66].mxu1 }
 0x207   : > { %v1068_v12 = vadd.f32 %v13989_v40, %v865_v2  ;;  %v586_v55 = vsel %vm355_vm7, %v577_v21, %v579_v5  ;;  %v608_v17 = vadd.f32 %v579_v5, %v413_v28  ;;  %v14525_v61 = vpop.f32.mrb[67].mxu1  ;;  %v14527_v46 = vpop.f32.mrb[71].mxu0  ;;  %v12120_v40 = vpack.i.bf16 %v14123_v54, %v14507_v20  ;;  %v412_v5 = vld [vmem:[%s12550_s7 + $0x38] sm:$0xff] }
 0x208   : > { %v635_v63 = vld [vmem:[%s12550_s7 + $0x18] sm:$0xff]  ;;  %16482 = vst [vmem:[#allocation60_spill] sm:$0xff] %v14527_v46  ;;  %v1361_v9 = vadd.f32 %v14039_v15, %v1066_v11  ;;  %v1365_v42 = vadd.f32 %v14072_v53, %v1070_v29  ;;  %618 = vst.msk [vmem:[%s12550_s7 + $0x30] sm:$0xff] %vm384_vm6, %v606_v31  ;;  %12111 = vrot.lane.b32.xlu0 %v12110_v39, %s12250_s19  ;;  %v14546_v53 = vpack.i.bf16 %v14126_v58, %v14518_v60  ;;  %v414_v31 = vld [vmem:[%s12550_s7 + $0x48] sm:$0xff] }
 0x209   : > { %v830_v7 = vadd.f32 %v800_v19, %v635_v63  ;;  %v637_v49 = vld [vmem:[%s12550_s7 + $0x28] sm:$0xff]  ;;  %1080 = vst.msk [vmem:[%s12550_s7 + $0x10] sm:$0xff] %vm195_vm0, %v1068_v12  ;;  %620 = vst.msk [vmem:[%s12550_s7 + $0x40] sm:$0xff] %vm195_vm0, %v608_v17  ;;  %12116 = vrot.lane.b32.xlu1 %v14504_v27, %s12250_s19  ;;  %v804_v15 = vpop.permute.xlu0 %803  ;;  %v14548_v19 = vpop.f32.mrb[72].mxu0  ;;  %v607_v21 = vadd.f32 %v586_v55, %v412_v5 }
 0x20a   : > { %v832_v28 = vadd.f32 %v802_v24, %v637_v49  ;;  %v1656_v54 = vadd.f32 %v14118_v6, %v1361_v9  ;;  %v1660_v49 = vadd.f32 %v14166_v13, %v1365_v42  ;;  %v806_v17 = vpop.permute.xlu1 %805  ;;  %v14555_v24 = vld [vmem:[%s12349_s9 + $0x38] sm:$0xff]  ;;  %v14557_v39 = vpop.f32.mrb[68].mxu1 }
 0x20b   : > { %842 = vst.msk [vmem:[%s12550_s7 + $0x18] sm:$0xff] %vm384_vm6, %v830_v7  ;;  %v813_v58 = vsel %vm355_vm7, %v804_v15, %v806_v17  ;;  %v14562_v12 = vpop.f32.mrb[69].mxu1  ;;  %v14564_v6 = vpop.f32.mrb[73].mxu0  ;;  %v14576_v63 = vpack.i.bf16 %v14158_v18, %v14555_v24 }
 0x20c   : > { %844 = vst.msk [vmem:[%s12550_s7 + $0x28] sm:$0xff] %vm195_vm0, %v832_v28  ;;  %v1859_v11 = vadd.f32 %v14223_v50, %v1656_v54  ;;  %1672 = vst [vmem:[%s12550_s7 + $0x20] sm:$0xff] %v1660_v49  ;;  %v1862_v13 = vadd.f32 %v14264_v26, %v1660_v49  ;;  %v834_v42 = vadd.f32 %v813_v58, %v607_v21  ;;  %12121 = vrot.lane.b32.xlu0 %v12120_v40, %s12249_s10  ;;  %v14581_v26 = vld [vmem:[%s12349_s9 + $0x50] sm:$0xff] }
 0x20d   : > { %v1889_v2 = vld [vmem:[%s12550_s7 + $0x8] sm:$0xff]  ;;  %12126 = vrot.lane.b32.xlu1 %v14546_v53, %s12249_s10  ;;  %v581_v29 = vpop.permute.xlu0 %580  ;;  %v14578_v50 = vpop.f32.mrb[74].mxu0 }
 0x20e   : > { %v2055_v55 = vadd.f32 %v14243_v22, %v1859_v11  ;;  %v2056_v9 = vadd.f32 %v14248_v33, %v1889_v2  ;;  %1871 = vst.msk [vmem:[%s12550_s7 + $0x20] sm:$0xff] %vm1868_vm8, %v1862_v13  ;;  %v1073_v7 = vadd.f32 %v13991_v44, %v834_v42  ;;  %v609_v40 = vadd.f32 %v581_v29, %v414_v31  ;;  %v14588_v28 = vpop.f32.mrb[70].mxu1  ;;  %v14590_v18 = vpop.f32.mrb[75].mxu0  ;;  %v416_v11 = vld [vmem:[%s12550_s7 + $0x58] sm:$0xff]  ;;  %v14615_v31 = vld [vmem:[%s12349_s9 + $0x10] sm:$0xff] }
 0x20f   : > { %v638_v5 = vld [vmem:[%s12550_s7 + $0x30] sm:$0xff]  ;;  %v583_v54 = vpop.permute.xlu1 %582  ;;  %v14593_v49 = vpop.f32.mrb[71].mxu1 }
 0x210   : > { %v2250_v22 = vadd.f32 %v14318_v35, %v2055_v55  ;;  %v1104_v21 = vld [vmem:[%s12550_s7 + $0x10] sm:$0xff]  ;;  %2064 = vst.msk [vmem:[%s12550_s7 + $0x8] sm:$0xff] %vm1868_vm8, %v2056_v9  ;;  %v833_v33 = vadd.f32 %v804_v15, %v638_v5  ;;  %v640_v44 = vld [vmem:[%s12550_s7 + $0x40] sm:$0xff]  ;;  %v1368_v58 = vadd.f32 %v14106_v47, %v1073_v7  ;;  %12131 = vrot.lane.b32.xlu0 %v14469_v51, %s12249_s10 }
 0x211   : > { %621 = vst.msk [vmem:[%s12550_s7 + $0x48] sm:$0xff] %vm384_vm6, %v609_v40  ;;  %v12140_v35 = vpack.i.bf16 %v14161_v41, %v14581_v26  ;;  %v1363_v13 = vadd.f32 %v14050_v8, %v1104_v21  ;;  %v835_v15 = vadd.f32 %v806_v17, %v640_v44  ;;  %v611_v2 = vadd.f32 %v583_v54, %v416_v11  ;;  %v14612_v47 = vpop.f32.mrb[76].mxu0 }
 0x212   : > { %v866_v42 = vld [vmem:[%s12550_s7 + $0x18] sm:$0xff]  ;;  %12136 = vrot.lane.b32.xlu1 %v14576_v63, %s12249_s10  ;;  %2258 = vst [vmem:[%s12550_s7] sm:$0xff] %v2250_v22  ;;  %845 = vst.msk [vmem:[%s12550_s7 + $0x30] sm:$0xff] %vm384_vm6, %v833_v33  ;;  %v1663_v8 = vadd.f32 %v14192_v48, %v1368_v58  ;;  %v11982_v41 = vpop.permute.xlu0 %11981  ;;  %v14623_v17 = vpop.f32.mrb[72].mxu1  ;;  %v587_v58 = vsel %vm355_vm7, %v581_v29, %v583_v54 }
 0x213   : > { %v1069_v55 = vadd.f32 %v13961_v0, %v866_v42  ;;  %v868_v9 = vld [vmem:[%s12550_s7 + $0x28] sm:$0xff]  ;;  %1375 = vst.msk [vmem:[%s12550_s7 + $0x10] sm:$0xff] %vm195_vm0, %v1363_v13  ;;  %847 = vst.msk [vmem:[%s12550_s7 + $0x40] sm:$0xff] %vm195_vm0, %v835_v15  ;;  %v11984_v40 = vunpack.i.h.bf16 %v11982_v41  ;;  %v11983_v0 = vunpack.i.l.bf16 %v11982_v41  ;;  %v14632_v5 = vpop.permute.xlu1 %11986  ;;  %v14634_v22 = vpop.f32.mrb[73].mxu1 }
 0x214   : > { %v1071_v7 = vadd.f32 %v13980_v38, %v868_v9  ;;  %623 = vst.msk [vmem:[%s12550_s7 + $0x58] sm:$0xff] %vm195_vm0, %v611_v2  ;;  %1675 = vst [vmem:[%s12550_s7 + $0x38] sm:$0xff] %v1663_v8  ;;  %v1864_v21 = vadd.f32 %v14281_v37, %v1663_v8  ;;  %12141 = vrot.lane.b32.xlu0 %v12140_v35, %s12249_s10  ;;  %v14640_v33 = vpop.f32.mrb[77].mxu0  ;;  %v12150_v38 = vpack.i.bf16 %v14615_v31, %v14507_v20 }
 0x215   : > { %v1364_v48 = vadd.f32 %v14068_v25, %v1069_v55  ;;  %v1891_v44 = vld [vmem:[%s12550_s7 + $0x20] sm:$0xff]  ;;  %v16483_v25 = vunpack.i.l.bf16 %v14236_v62  ;;  %v16484_v37 = vunpack.i.l.bf16 %v14227_v14  ;;  %v11989_v13 = vunpack.i.h.bf16 %v14632_v5  ;;  %v14657_v42 = vpop.f32.mrb[78].mxu0  ;;  %v14667_v55 = vld [vmem:[%s12349_s9 + $0x58] sm:$0xff] }
 0x216   : > { %1083 = vst.msk [vmem:[%s12550_s7 + $0x28] sm:$0xff] %vm195_vm0, %v1071_v7  ;;  %12146 = vrot.lane.b32.xlu1 %v14504_v27, %s12249_s10  ;;  %v2058_v29 = vadd.f32 %v14271_v52, %v1891_v44  ;;  %v11988_v62 = vunpack.i.l.bf16 %v14632_v5  ;;  %v808_v14 = vpop.permute.xlu0 %807  ;;  %v14664_v2 = vpop.f32.mrb[74].mxu1 }
 0x217   : > { %v7444_v11 = vsel %vm673_vm2, %v11984_v40, %v16483_v25  ;;  %v7442_v35 = vsel %vm673_vm2, %v11983_v0, %v16484_v37  ;;  %v1659_v15 = vadd.f32 %v14155_v32, %v1364_v48  ;;  %1873 = vst.msk [vmem:[%s12550_s7 + $0x38] sm:$0xff] %vm1868_vm8, %v1864_v21  ;;  %v2084_v9 = vld [vmem:[%s12550_s7 + $0x8] sm:$0xff]  ;;  %v11997_v41 = vpop.permute.xlu1 %11996  ;;  %v14671_v7 = vpop.f32.mrb[75].mxu1  ;;  %v415_v40 = vld [vmem:[%s12550_s7 + $0x50] sm:$0xff] }
 0x218   : > { %v11158_v54 = vpack.c.bf16 %v7444_v11, %v7442_v35  ;;  %v641_v8 = vld [vmem:[%s12550_s7 + $0x48] sm:$0xff]  ;;  %v2251_v32 = vadd.f32 %v14322_v3, %v2084_v9  ;;  %2066 = vst.msk [vmem:[%s12550_s7 + $0x20] sm:$0xff] %vm1868_vm8, %v2058_v29  ;;  %v14678_v5 = vpop.f32.mrb[79].mxu0  ;;  %12151 = vrot.lane.b32.xlu0 %v12150_v38, %s12250_s19  ;;  %v610_v21 = vadd.f32 %v587_v58, %v415_v40  ;;  %v11998_v44 = vunpack.i.l.bf16 %v11997_v41 }
 0x219   : > { %v1861_v52 = vadd.f32 %v14256_v10, %v1659_v15  ;;  %v836_v0 = vadd.f32 %v808_v14, %v641_v8  ;;  %v869_v48 = vld [vmem:[%s12550_s7 + $0x30] sm:$0xff]  ;;  %v14684_v3 = vpop.f32.mrb[80].mxu0  ;;  %v12170_v10 = vpack.i.bf16 %v14667_v55, %v14581_v26  ;;  %v11999_v58 = vunpack.i.h.bf16 %v11997_v41 }
 0x21a   : > { %11159 = vmatpush1.bf16.msra.mxu0 %v11158_v54  ;;  %12156 = vrot.lane.b32.xlu1 %v14546_v53, %s12250_s19  ;;  %v1399_v25 = vld [vmem:[%s12550_s7 + $0x10] sm:$0xff]  ;;  %2259 = vst.msk [vmem:[%s12550_s7 + $0x8] sm:$0xff] %vm1868_vm8, %v2251_v32  ;;  %v1072_v38 = vadd.f32 %v13982_v43, %v869_v48  ;;  %v871_v37 = vld [vmem:[%s12550_s7 + $0x40] sm:$0xff]  ;;  %v11992_v53 = vpop.permute.xlu0 %11991  ;;  %v14696_v35 = vpop.f32.mrb[76].mxu1  ;;  %v14699_v15 = vsel %vm673_vm2, %v11988_v62, %v11989_v13 }
 0x21b   : > { %v2057_v11 = vadd.f32 %v14268_v23, %v1861_v52  ;;  %848 = vst.msk [vmem:[%s12550_s7 + $0x48] sm:$0xff] %vm384_vm6, %v836_v0  ;;  %16485 = vst [vmem:[#allocation61_spill] sm:$0xff] %v14696_v35  ;;  %v1658_v29 = vadd.f32 %v14178_v57, %v1399_v25  ;;  %v1074_v54 = vadd.f32 %v14012_v30, %v871_v37  ;;  %v11994_v23 = vunpack.i.h.bf16 %v11992_v53  ;;  %v810_v9 = vpop.permute.xlu1 %809  ;;  %v14706_v8 = vpop.f32.mrb[77].mxu1  ;;  %v16486_v52 = vld [vmem:[#allocation11_spill] sm:$0xff]  ;;  %v643_v48 = vld [vmem:[%s12550_s7 + $0x58] sm:$0xff] }
 0x21c   : > { %v14704_v43 = vsel %vm673_vm2, %v11998_v44, %v11988_v62  ;;  %v1367_v40 = vadd.f32 %v16486_v52, %v1072_v38  ;;  %v11993_v0 = vunpack.i.l.bf16 %v11992_v53  ;;  %v814_v57 = vsel %vm355_vm7, %v808_v14, %v810_v9  ;;  %v14713_v25 = vpop.f32.mrb[81].mxu0  ;;  %12161 = vrot.lane.b32.xlu0 %v14469_v51, %s12250_s19  ;;  %v16487_v30 = vld [vmem:[#allocation8_spill] sm:$0xff]  ;;  %v16489_v51 = vld [vmem:[#allocation15_spill] sm:$0xff]  ;;  %v16490_v53 = vld [vmem:[#allocation22_spill] sm:$0xff] }
 0x21d   : > { %v2252_v41 = vadd.f32 %v14338_v36, %v2057_v11  ;;  %v1107_v32 = vld [vmem:[%s12550_s7 + $0x28] sm:$0xff]  ;;  %1670 = vst.msk [vmem:[%s12550_s7 + $0x10] sm:$0xff] %vm195_vm0, %v1658_v29  ;;  %1086 = vst.msk [vmem:[%s12550_s7 + $0x40] sm:$0xff] %vm195_vm0, %v1074_v54  ;;  %v11168_v44 = vpack.c.bf16 %v11994_v23, %v11989_v13  ;;  %v837_v11 = vadd.f32 %v814_v57, %v610_v21  ;;  %v14725_v14 = vpop.f32.mrb[82].mxu0  ;;  %v16492_v21 = vld [vmem:[#allocation7_spill] sm:$0xff]  ;;  %v16514_v35 = vmov 0.0  }
 0x21e   : > { %v1366_v62 = vadd.f32 %v16487_v30, %v1107_v32  ;;  %v1893_v36 = vld [vmem:[%s12550_s7 + $0x38] sm:$0xff]  ;;  %v838_v38 = vadd.f32 %v810_v9, %v643_v48  ;;  %12166 = vrot.lane.b32.xlu1 %v14576_v63, %s12250_s19  ;;  %16488 = vst [vmem:[#allocation11_spill] sm:$0xff] %v14725_v14  ;;  %v1662_v37 = vadd.f32 %v16489_v51, %v1367_v40  ;;  %v12002_v52 = vpop.permute.xlu0 %12001  ;;  %v14732_v30 = vpop.f32.mrb[78].mxu1 }
 0x21f   : > { %2260 = vst [vmem:[%s12550_s7 + $0x18] sm:$0xff] %v2252_v41  ;;  %v2060_v29 = vadd.f32 %v16490_v53, %v1893_v36  ;;  %v7448_v32 = vsel %vm673_vm2, %v11999_v58, %v11993_v0  ;;  %v7449_v54 = vsel %vm673_vm2, %v11993_v0, %v11994_v23  ;;  %16491 = vst [vmem:[#allocation8_spill] sm:$0xff] %v14732_v30  ;;  %v2086_v13 = vld [vmem:[%s12550_s7 + $0x20] sm:$0xff]  ;;  %v12004_v41 = vunpack.i.h.bf16 %v12002_v52  ;;  %v12007_v58 = vpop.permute.xlu1 %12006  ;;  %v14741_v48 = vpop.f32.mrb[79].mxu1  ;;  %v16493_v57 = vld [vmem:[#allocation28_spill] sm:$0xff] }
 0x220   : > { %1378 = vst.msk [vmem:[%s12550_s7 + $0x28] sm:$0xff] %vm195_vm0, %v1366_v62  ;;  %v11162_v63 = vpack.c.bf16 %v7448_v32, %v14704_v43  ;;  %850 = vst.msk [vmem:[%s12550_s7 + $0x58] sm:$0xff] %vm195_vm0, %v838_v38  ;;  %v1076_v9 = vadd.f32 %v16492_v21, %v837_v11  ;;  %v12003_v40 = vunpack.i.l.bf16 %v12002_v52  ;;  %11169 = vmatprep.subr.bf16.mxu1 %v11168_v44  ;;  %v16494_v0 = vld [vmem:[#allocation20_spill] sm:$0xff]  ;;  %v12009_v62 = vunpack.i.h.bf16 %v12007_v58  ;;  %v14747_v38 = vpop.f32.mrb[83].mxu0  ;;  %v14753_v11 = vld [vmem:[%s16409_s1 + $0x408] sm:$0xff] }
 0x221   : > { %v2253_v23 = vadd.f32 %v16493_v57, %v2086_v13  ;;  %v1863_v36 = vadd.f32 %v16494_v0, %v1662_v37  ;;  %2068 = vst.msk [vmem:[%s12550_s7 + $0x38] sm:$0xff] %vm1868_vm8, %v2060_v29  ;;  %v12008_v43 = vunpack.i.l.bf16 %v12007_v58  ;;  %11171 = vmatpush3.bf16.msra.mxu1 %v11168_v44  ;;  %16495 = vst [vmem:[#allocation15_spill] sm:$0xff] %v14747_v38  ;;  %12171 = vrot.lane.b32.xlu0 %v12170_v10, %s12250_s19  ;;  %v16496_v53 = vld [vmem:[#allocation13_spill] sm:$0xff]  ;;  %v14760_v37 = vpop.f32.mrb[84].mxu0  ;;  %v16499_v13 = vld [vmem:[#allocation6_spill] sm:$0xff] }
 0x222   : > { %v872_v51 = vld [vmem:[%s12550_s7 + $0x48] sm:$0xff]  ;;  %v1371_v32 = vadd.f32 %v16496_v53, %v1076_v9  ;;  %v11160_v52 = vpack.c.bf16 %v7449_v54, %v14699_v15  ;;  %12176 = vrot.lane.b32.xlu1 %v14504_v27, %s12250_s19  ;;  %16497 = vst [vmem:[#allocation22_spill] sm:$0xff] %v14760_v37  ;;  %v7714_v44 = vsel %vm7713_vm9, %v12003_v40, %v12004_v41  ;;  %v16498_v10 = vld [vmem:[#allocation21_spill] sm:$0xff]  ;;  %v12012_v58 = vpop.permute.xlu0 %12011  ;;  %v4422_v57 = vpop.f32.mrb[80].mxu1  ;;  %v16500_v0 = vld [vmem:[#allocation19_spill] sm:$0xff] }
 0x223   : > { %2261 = vst.msk [vmem:[%s12550_s7 + $0x20] sm:$0xff] %vm1868_vm8, %v2253_v23  ;;  %v2059_v29 = vadd.f32 %v16498_v10, %v1863_v36  ;;  %v1075_v21 = vadd.f32 %v16499_v13, %v872_v51  ;;  %v7715_v9 = vsel %vm7713_vm9, %v12008_v43, %v12009_v62  ;;  %v12014_v54 = vunpack.i.h.bf16 %v12012_v58  ;;  %v12017_v53 = vpop.permute.xlu1 %12016  ;;  %v4424_v37 = vpop.f32.mrb[81].mxu1  ;;  %v14774_v40 = vld [vmem:[%s16409_s1 + $0x410] sm:$0xff]  ;;  %v16501_v23 = vld [vmem:[#allocation29_spill] sm:$0xff]  ;;  %v16502_v43 = vld [vmem:[#allocation12_spill] sm:$0xff] }
 0x224   : > { %v1666_v15 = vadd.f32 %v16500_v0, %v1371_v32  ;;  %11161 = vmatprep.subr.bf16.mxu0 %v11160_v52  ;;  %v12013_v27 = vunpack.i.l.bf16 %v12012_v58  ;;  %v11172_v41 = vpack.c.bf16 %v7715_v9, %v7714_v44  ;;  %10681 = vmatmul.mubr.msk.f32.vlgmr.msra.gmra.mrb[144].mxu1 %vm195_vm0, %v14753_v11  ;;  %v1110_v62 = vld [vmem:[%s12550_s7 + $0x40] sm:$0xff]  ;;  %v12019_v32 = vunpack.i.h.bf16 %v12017_v53  ;;  %v14781_v44 = vpop.f32.mrb[85].mxu0  ;;  %v14787_v10 = vld [vmem:[%s16409_s1 + $0x418] sm:$0xff]  ;;  %v16507_v0 = vld [vmem:[#allocation18_spill] sm:$0xff] }
 0x225   : > { %v14777_v36 = vadd.f32 %v16501_v23, %v2059_v29  ;;  %v1370_v51 = vadd.f32 %v16502_v43, %v1075_v21  ;;  %11163 = vmatpush1.bf16.msra.mxu0 %v11162_v63  ;;  %v12018_v52 = vunpack.i.l.bf16 %v12017_v53  ;;  %16503 = vst [vmem:[#allocation7_spill] sm:$0xff] %v14781_v44  ;;  %4453 = vrot.lane.b32.xlu0 %v4422_v57, %s12254_s28  ;;  %v16504_v29 = vld [vmem:[#allocation10_spill] sm:$0xff]  ;;  %v16505_v58 = vld [vmem:[#allocation24_spill] sm:$0xff]  ;;  %v14793_v63 = vpop.f32.mrb[86].mxu0  ;;  %v10185_v21 = vld [vmem:[%s16409_s1 + $0x420] sm:$0xff] }
 0x226   : > { %v1369_v13 = vadd.f32 %v16504_v29, %v1110_v62  ;;  %1678 = vst [vmem:[%s12550_s7 + $0x50] sm:$0xff] %v1666_v15  ;;  %v1866_v9 = vadd.f32 %v16505_v58, %v1666_v15  ;;  %4455 = vrot.lane.b32.xlu1 %v4424_v37, %s12254_s28  ;;  %16506 = vst [vmem:[#allocation28_spill] sm:$0xff] %v14793_v63  ;;  %11173 = vmatprep.subr.bf16.mxu1 %v11172_v41  ;;  %v12022_v62 = vpop.permute.xlu0 %12021  ;;  %v14803_v15 = vpop.f32.mrb[87].mxu0  ;;  %v16509_v29 = vld [vmem:[#allocation14_spill] sm:$0xff]  ;;  %v16510_v44 = vld [vmem:[#allocation5_spill] sm:$0xff] }
 0x227   : > { %v1402_v57 = vld [vmem:[%s12550_s7 + $0x28] sm:$0xff]  ;;  %2262 = vst [vmem:[%s12550_s7 + $0x30] sm:$0xff] %v14777_v36  ;;  %v1665_v53 = vadd.f32 %v16507_v0, %v1370_v51  ;;  %v874_v23 = vld [vmem:[%s12550_s7 + $0x58] sm:$0xff]  ;;  %16508 = vst [vmem:[#allocation20_spill] sm:$0xff] %v14803_v15  ;;  %11175 = vmatpush3.bf16.msra.mxu1 %v11172_v41  ;;  %v7716_v37 = vsel %vm7713_vm9, %v12013_v27, %v12014_v54  ;;  %v7717_v43 = vsel %vm7713_vm9, %v12018_v52, %v12019_v32  ;;  %v12027_v54 = vpop.permute.xlu1 %12026  ;;  %v4428_v32 = vpop.f32.mrb[82].mxu1 }
 0x228   : > { %10683 = vmatprep.mubr.msk.f32.mxu1 %vm195_vm0, %v14774_v40  ;;  %v1661_v58 = vadd.f32 %v16509_v29, %v1402_v57  ;;  %1381 = vst.msk [vmem:[%s12550_s7 + $0x40] sm:$0xff] %vm195_vm0, %v1369_v13  ;;  %v2088_v46 = vld [vmem:[%s12550_s7 + $0x38] sm:$0xff]  ;;  %v1077_v51 = vadd.f32 %v16510_v44, %v874_v23  ;;  %v12024_v41 = vunpack.i.h.bf16 %v12022_v62  ;;  %v12023_v0 = vunpack.i.l.bf16 %v12022_v62  ;;  %v16511_v27 = vld [vmem:[#allocation27_spill] sm:$0xff]  ;;  %v16512_v52 = vld [vmem:[#allocation30_spill] sm:$0xff]  ;;  %v4430_v23 = vpop.f32.mrb[83].mxu1 }
 0x229   : > { %1875 = vst.msk [vmem:[%s12550_s7 + $0x50] sm:$0xff] %vm1868_vm8, %v1866_v9  ;;  %10177 = vmatmul.mubr.msk.f32.vlgmr.msra.gmra.mrb[144].mxu0 %vm195_vm0, %v16511_v27  ;;  %10684 = vmatmul.mubr.msk.f32.gmra.mrb[146].mxu1 %vm195_vm0, %v14787_v10  ;;  %v2255_v13 = vadd.f32 %v16512_v52, %v2088_v46  ;;  %v16513_v57 = vld [vmem:[#allocation23_spill] sm:$0xff]  ;;  %v12029_v15 = vunpack.i.h.bf16 %v12027_v54  ;;  %v12028_v44 = vunpack.i.l.bf16 %v12027_v54  ;;  %v4648_v9 = vpop.f32.mrb[88].mxu0  ;;  %v11176_v62 = vpack.c.bf16 %v7717_v43, %v7716_v37  ;;  %v16515_v46 = vld [vmem:[#allocation25_spill] sm:$0xff] }
 0x22a   : > { %v1865_v29 = vadd.f32 %v16513_v57, %v1665_v53  ;;  %7544 = vmatprep.mubr.f32.mxu0 %v16514_v35  ;;  %10694 = vmatprep.mubr.msk.f32.mxu1 %vm195_vm0, %v10185_v21  ;;  %1673 = vst.msk [vmem:[%s12550_s7 + $0x28] sm:$0xff] %vm195_vm0, %v1661_v58  ;;  %1089 = vst.msk [vmem:[%s12550_s7 + $0x58] sm:$0xff] %vm195_vm0, %v1077_v51  ;;  %v7870_v27 = vsel %vm7869_vm10, %v12023_v0, %v12024_v41  ;;  %v4650_v53 = vpop.f32.mrb[89].mxu0  ;;  %v12032_v57 = vpop.permute.xlu0 %12031  ;;  %v16516_v0 = vld [vmem:[#allocation31_spill] sm:$0xff] }
 0x22b   : > { %2263 = vst.msk [vmem:[%s12550_s7 + $0x38] sm:$0xff] %vm1868_vm8, %v2255_v13  ;;  %v7871_v54 = vsel %vm7869_vm10, %v12028_v44, %v12029_v15  ;;  %4679 = vrot.lane.b32.xlu0 %v4648_v9, %s12254_s28  ;;  %v12034_v21 = vunpack.i.h.bf16 %v12032_v57  ;;  %v12033_v14 = vunpack.i.l.bf16 %v12032_v57  ;;  %4681 = vrot.lane.b32.xlu1 %v4650_v53, %s12254_s28  ;;  %v12037_v58 = vpop.permute.xlu1 %12036  ;;  %v14837_v43 = vpop.f32.mrb[84].mxu1 }
 0x22c   : > { %v2061_v52 = vadd.f32 %v16515_v46, %v1865_v29  ;;  %v11180_v37 = vpack.c.bf16 %v7871_v54, %v7870_v27  ;;  %v12039_v51 = vunpack.i.h.bf16 %v12037_v58  ;;  %v12038_v41 = vunpack.i.l.bf16 %v12037_v58  ;;  %11177 = vmatprep.subr.bf16.mxu1 %v11176_v62  ;;  %v14840_v15 = vpop.f32.mrb[85].mxu1  ;;  %v16518_v54 = vld [vmem:[#allocation26_spill] sm:$0xff] }
 0x22d   : > { %10178 = vmatmul.mubr.msk.f32.gmra.mrb[146].mxu0 %vm195_vm0, %v14753_v11  ;;  %11179 = vmatpush3.bf16.msra.mxu1 %v11176_v62  ;;  %v4654_v29 = vpop.f32.mrb[90].mxu0  ;;  %v8025_v44 = vsel %vm8024_vm11, %v12033_v14, %v12034_v21  ;;  %v10186_v11 = vld [vmem:[%s16409_s1 + $0x428] sm:$0xff]  ;;  %v10187_v62 = vld [vmem:[%s16409_s1 + $0x430] sm:$0xff]  ;;  %v16517_v14 = vld [vmem:[#allocation17_spill] sm:$0xff] }
 0x22e   : > { %7550 = vmatprep.mubr.f32.mxu0 %v16514_v35  ;;  %v14843_v13 = vadd.f32 %v16516_v0, %v2061_v52  ;;  %11181 = vmatprep.subr.bf16.mxu0 %v11180_v37  ;;  %v12042_v46 = vpop.permute.xlu0 %12041  ;;  %v4656_v53 = vpop.f32.mrb[91].mxu0  ;;  %v8026_v57 = vsel %vm8024_vm11, %v12038_v41, %v12039_v51 }
 0x22f   : > { %v1405_v9 = vld [vmem:[%s12550_s7 + $0x40] sm:$0xff]  ;;  %11183 = vmatpush3.bf16.msra.mxu0 %v11180_v37  ;;  %4457 = vrot.lane.b32.xlu0 %v4428_v32, %s12254_s28  ;;  %v12044_v58 = vunpack.i.h.bf16 %v12042_v46  ;;  %v12043_v0 = vunpack.i.l.bf16 %v12042_v46  ;;  %v12047_v37 = vpop.permute.xlu1 %12046  ;;  %v14863_v32 = vpop.f32.mrb[86].mxu1  ;;  %v11188_v38 = vpack.c.bf16 %v8026_v57, %v8025_v44 }
 0x230   : > { %v1895_v27 = vld [vmem:[%s12550_s7 + $0x50] sm:$0xff]  ;;  %2264 = vst [vmem:[%s12550_s7 + $0x48] sm:$0xff] %v14843_v13  ;;  %v1664_v52 = vadd.f32 %v16517_v14, %v1405_v9  ;;  %4459 = vrot.lane.b32.xlu1 %v4430_v23, %s12254_s28  ;;  %v12049_v41 = vunpack.i.h.bf16 %v12047_v37  ;;  %v12048_v63 = vunpack.i.l.bf16 %v12047_v37  ;;  %10695 = vmatmul.mubr.msk.f32.vlgmr.msra.gmra.mrb[148].mxu1 %vm195_vm0, %v10186_v11  ;;  %v14868_v9 = vpop.f32.mrb[87].mxu1  ;;  %v16519_v23 = vld [vmem:[#allocation9_spill] sm:$0xff] }
 0x231   : > { %v2062_v21 = vadd.f32 %v16518_v54, %v1895_v27  ;;  %10179 = vmatmul.mubr.msk.f32.gmra.mrb[148].mxu0 %vm195_vm0, %v14774_v40  ;;  %v1113_v51 = vld [vmem:[%s12550_s7 + $0x58] sm:$0xff]  ;;  %v7872_v40 = vsel %vm7869_vm10, %v12043_v0, %v12044_v58  ;;  %v14876_v46 = vpop.f32.mrb[92].mxu0  ;;  %10697 = vmatprep.mubr.msk.f32.mxu1 %vm195_vm0, %v10187_v62  ;;  %v10193_v44 = vld [vmem:[%s16409_s1 + $0x440] sm:$0xff] }
 0x232   : > { %7556 = vmatprep.mubr.f32.mxu0 %v16514_v35  ;;  %1676 = vst.msk [vmem:[%s12550_s7 + $0x40] sm:$0xff] %vm195_vm0, %v1664_v52  ;;  %v1372_v27 = vadd.f32 %v16519_v23, %v1113_v51  ;;  %v12052_v57 = vpop.permute.xlu0 %12051  ;;  %v7873_v11 = vsel %vm7869_vm10, %v12048_v63, %v12049_v41  ;;  %11189 = vmatprep.subr.bf16.mxu1 %v11188_v38  ;;  %v4662_v14 = vpop.f32.mrb[93].mxu0  ;;  %v10188_v52 = vld [vmem:[%s16409_s1 + $0x438] sm:$0xff] }
 0x233   : > { %2070 = vst.msk [vmem:[%s12550_s7 + $0x50] sm:$0xff] %vm1868_vm8, %v2062_v21  ;;  %4683 = vrot.lane.b32.xlu0 %v4654_v29, %s12254_s28  ;;  %v12054_v54 = vunpack.i.h.bf16 %v12052_v57  ;;  %v12053_v21 = vunpack.i.l.bf16 %v12052_v57  ;;  %v12057_v62 = vpop.permute.xlu1 %12056  ;;  %v11184_v58 = vpack.c.bf16 %v7873_v11, %v7872_v40  ;;  %v11196_v63 = vpack.c.bf16 %v14518_v60, %v14507_v20  ;;  %v10201_v29 = vld [vmem:[%s16409_s1 + $0x460] sm:$0xff]  ;;  %v14897_v0 = vpop.f32.mrb[88].mxu1  ;;  %11191 = vmatpush3.bf16.msra.mxu1 %v11188_v38  ;;  %v8143_v60 = vld [vmem:[%s12349_s9 + $0x28] sm:$0xff] }
 0x234   : > { %1384 = vst.msk [vmem:[%s12550_s7 + $0x58] sm:$0xff] %vm195_vm0, %v1372_v27  ;;  %4685 = vrot.lane.b32.xlu1 %v4656_v53, %s12254_s28  ;;  %v12059_v37 = vunpack.i.h.bf16 %v12057_v62  ;;  %v12058_v51 = vunpack.i.l.bf16 %v12057_v62  ;;  %v14900_v53 = vpop.f32.mrb[89].mxu1  ;;  %10698 = vmatmul.mubr.msk.f32.gmra.mrb[150].mxu1 %vm195_vm0, %v10188_v52  ;;  %v10194_v38 = vld [vmem:[%s16409_s1 + $0x448] sm:$0xff]  ;;  %v11198_v27 = vpack.c.bf16 %v14446_v45, %v14443_v34  ;;  %v10195_v34 = vld [vmem:[%s16409_s1 + $0x450] sm:$0xff]  ;;  %v11200_v45 = vpack.c.bf16 %v14581_v26, %v14555_v24 }
 0x235   : > { %10180 = vmatmul.mubr.msk.f32.gmra.mrb[150].mxu0 %vm195_vm0, %v14787_v10  ;;  %11185 = vmatprep.subr.bf16.mxu0 %v11184_v58  ;;  %v8027_v41 = vsel %vm8024_vm11, %v12053_v21, %v12054_v54  ;;  %v14905_v20 = vpop.f32.mrb[94].mxu0  ;;  %v11204_v54 = vpack.c.bf16 %v8143_v60, %v14615_v31  ;;  %v16520_v21 = vld [vmem:[#allocation32_spill] sm:$0xff] }
 0x236   : > { %10708 = vmatprep.mubr.msk.f32.mxu0 %vm195_vm0, %v10193_v44  ;;  %v14907_v10 = vpop.permute.xlu0 %12061  ;;  %11187 = vmatpush3.bf16.msra.mxu0 %v11184_v58  ;;  %v8028_v23 = vsel %vm8024_vm11, %v12058_v51, %v12059_v37  ;;  %v14916_v40 = vpop.f32.mrb[95].mxu0  ;;  %v11202_v58 = vpack.c.bf16 %v14484_v1, %v14481_v59  ;;  %v10196_v59 = vld [vmem:[%s16409_s1 + $0x458] sm:$0xff]  ;;  %v10202_v1 = vld [vmem:[%s16409_s1 + $0x468] sm:$0xff] }
 0x237   : > { %10722 = vmatprep.mubr.msk.f32.mxu1 %vm195_vm0, %v10201_v29  ;;  %v14920_v44 = vpop.permute.xlu1 %12066  ;;  %v11192_v57 = vpack.c.bf16 %v8028_v23, %v8027_v41  ;;  %11197 = vmatprep.subr.bf16.mxu0 %v11196_v63  ;;  %v14922_v11 = vpop.f32.mrb[90].mxu1  ;;  %v8146_v63 = vld [vmem:[%s12349_s9 + $0x40] sm:$0xff]  ;;  %v12064_v26 = vunpack.i.h.bf16 %v14907_v10  ;;  %v12063_v31 = vunpack.i.l.bf16 %v14907_v10  ;;  %v16522_v60 = vld [vmem:[#allocation16_spill] sm:$0xff] }
 0x238   : > { %4463 = vrot.lane.b32.xlu1 %v14840_v15, %s12254_s28  ;;  %4461 = vrot.lane.b32.xlu0 %v14837_v43, %s12254_s28  ;;  %v14933_v15 = vpop.f32.mrb[91].mxu1  ;;  %v12069_v43 = vunpack.i.h.bf16 %v14920_v44  ;;  %v12068_v37 = vunpack.i.l.bf16 %v14920_v44  ;;  %v11208_v44 = vpack.c.bf16 %v14667_v55, %v8146_v63 }
 0x239   : > { %11193 = vmatprep.subr.bf16.mxu1 %v11192_v57  ;;  %10709 = vmatmul.mubr.msk.f32.vlgmr.msra.gmra.mrb[152].mxu0 %vm195_vm0, %v10194_v38  ;;  %v14940_v29 = vpop.f32.mrb[96].mxu0 }
 0x23a   : > { %v2090_v52 = vld [vmem:[%s12550_s7 + $0x50] sm:$0xff]  ;;  %16521 = vst [vmem:[#allocation13_spill] sm:$0xff] %v14940_v29  ;;  %v12072_v51 = vpop.permute.xlu0 %12071  ;;  %11195 = vmatpush3.bf16.msra.mxu1 %v11192_v57  ;;  %11199 = vmatpush1.bf16.msra.mxu0 %v11198_v27  ;;  %v14953_v41 = vpop.f32.mrb[92].mxu1  ;;  %v11220_v63 = vpack.c.bf16 %v12069_v43, %v12064_v26 }
 0x23b   : > { %v2257_v62 = vadd.f32 %v16520_v21, %v2090_v52  ;;  %v1408_v24 = vld [vmem:[%s12550_s7 + $0x58] sm:$0xff]  ;;  %v14959_v23 = vpop.permute.xlu1 %12076  ;;  %10711 = vmatprep.mubr.msk.f32.mxu0 %vm195_vm0, %v10195_v34  ;;  %v14962_v38 = vpop.f32.mrb[93].mxu1  ;;  %11201 = vmatprep.subr.bf16.mxu0 %v11200_v45  ;;  %v10203_v27 = vld [vmem:[%s16409_s1 + $0x470] sm:$0xff]  ;;  %v12074_v52 = vunpack.i.h.bf16 %v12072_v51  ;;  %v12073_v34 = vunpack.i.l.bf16 %v12072_v51  ;;  %v8443_v21 = vsel %vm446_vm1, %v12063_v31, %v12064_v26 }
 0x23c   : > { %v1667_v10 = vadd.f32 %v16522_v60, %v1408_v24  ;;  %4689 = vrot.lane.b32.xlu1 %v4662_v14, %s12254_s28  ;;  %11205 = vmatprep.subr.bf16.mxu1 %v11204_v54  ;;  %v14968_v57 = vpop.f32.mrb[97].mxu0  ;;  %v12079_v24 = vunpack.i.h.bf16 %v14959_v23 }
 0x23d   : > { %2265 = vst.msk [vmem:[%s12550_s7 + $0x50] sm:$0xff] %vm1868_vm8, %v2257_v62  ;;  %16523 = vst [vmem:[#allocation21_spill] sm:$0xff] %v14968_v57  ;;  %10712 = vmatmul.mubr.msk.f32.gmra.mrb[154].mxu0 %vm195_vm0, %v10196_v59  ;;  %10723 = vmatmul.mubr.msk.f32.vlgmr.msra.gmra.mrb[152].mxu1 %vm195_vm0, %v10202_v1  ;;  %v14974_v14 = vpop.f32.mrb[98].mxu0  ;;  %v8445_v62 = vsel %vm446_vm1, %v12068_v37, %v12069_v43 }
 0x23e   : > { %1679 = vst.msk [vmem:[%s12550_s7 + $0x58] sm:$0xff] %vm195_vm0, %v1667_v10  ;;  %16524 = vst [vmem:[#allocation6_spill] sm:$0xff] %v14974_v14  ;;  %v12082_v45 = vpop.permute.xlu0 %12081  ;;  %11203 = vmatpush1.bf16.msra.mxu0 %v11202_v58  ;;  %11207 = vmatpush3.bf16.msra.mxu1 %v11204_v54  ;;  %v14978_v55 = vpop.f32.mrb[94].mxu1  ;;  %v10204_v54 = vld [vmem:[%s16409_s1 + $0x478] sm:$0xff]  ;;  %v10209_v58 = vld [vmem:[%s16409_s1 + $0x480] sm:$0xff]  ;;  %v11212_v10 = vpack.c.bf16 %v8445_v62, %v8443_v21  ;;  %v8444_v14 = vsel %vm446_vm1, %v12074_v52, %v12068_v37 }
 0x23f   : > { %v12084_v60 = vunpack.i.h.bf16 %v12082_v45  ;;  %v12083_v59 = vunpack.i.l.bf16 %v12082_v45  ;;  %v12087_v1 = vpop.permute.xlu1 %12086  ;;  %10725 = vmatprep.mubr.msk.f32.mxu1 %vm195_vm0, %v10203_v27  ;;  %v14990_v51 = vpop.f32.mrb[95].mxu1  ;;  %8243 = vmatprep.mubr.f32.mxu0 %v16514_v35  ;;  %v8442_v45 = vsel %vm446_vm1, %v12073_v34, %v12063_v31  ;;  %v2276_v31 = vld [vmem:[%s12550_s7 + $0x10] sm:$0xff]  ;;  %v10210_v37 = vld [vmem:[%s16409_s1 + $0x488] sm:$0xff] }
 0x240   : > { %4467 = vrot.lane.b32.xlu1 %v14868_v9, %s12254_s28  ;;  %11209 = vmatprep.subr.bf16.mxu1 %v11208_v44  ;;  %v14993_v26 = vpop.f32.mrb[99].mxu0  ;;  %v12078_v9 = vunpack.i.l.bf16 %v14959_v23  ;;  %v12089_v29 = vunpack.i.h.bf16 %v12087_v1  ;;  %v12088_v57 = vunpack.i.l.bf16 %v12087_v1 }
 0x241   : > { %16525 = vst [vmem:[#allocation19_spill] sm:$0xff] %v14993_v26  ;;  %v11224_v43 = vpack.c.bf16 %v12084_v60, %v12079_v24  ;;  %11221 = vmatprep.subr.bf16.mxu0 %v11220_v63  ;;  %4687 = vrot.lane.b32.xlu0 %v14876_v46, %s12254_s28  ;;  %v14998_v27 = vpop.f32.mrb[100].mxu0  ;;  %v2274_v26 = vld [vmem:[%s12550_s7] sm:$0xff]  ;;  %v8449_v52 = vsel %vm446_vm1, %v12083_v59, %v12084_v60 }
 0x242   : > { %16526 = vst [vmem:[#allocation29_spill] sm:$0xff] %v14998_v27  ;;  %10726 = vmatmul.mubr.msk.f32.gmra.mrb[154].mxu1 %vm195_vm0, %v10204_v54  ;;  %10213 = vmatmul.mubr.msk.f32.vlgmr.msra.gmra.mrb[156].mxu0 %vm195_vm0, %v10209_v58  ;;  %v15004_v23 = vpop.permute.xlu0 %2400  ;;  %v15007_v30 = vpop.f32.mrb[101].mxu0  ;;  %v8447_v1 = vsel %vm446_vm1, %v12078_v9, %v12079_v24  ;;  %v8448_v54 = vsel %vm446_vm1, %v12089_v29, %v12083_v59  ;;  %v10211_v24 = vld [vmem:[%s16409_s1 + $0x490] sm:$0xff] }
 0x243   : > { %11211 = vmatpush3.bf16.msra.mxu1 %v11208_v44  ;;  %11223 = vmatpush3.bf16.msra.mxu0 %v11220_v63  ;;  %v2432_v46 = vadd.f32 %v15004_v23, %v2274_v26  ;;  %v15010_v21 = vpop.permute.xlu1 %2402  ;;  %v15017_v34 = vpop.f32.mrb[96].mxu1  ;;  %v11214_v63 = vpack.c.bf16 %v8444_v14, %v8442_v45  ;;  %v11216_v26 = vpack.c.bf16 %v8449_v52, %v8447_v1  ;;  %v2282_v1 = vld [vmem:[%s12550_s7 + $0x40] sm:$0xff] }
 0x244   : > { %4693 = vrot.lane.b32.xlu1 %v14916_v40, %s12254_s28  ;;  %11213 = vmatprep.subr.bf16.mxu1 %v11212_v10  ;;  %v2434_v44 = vadd.f32 %v15010_v21, %v2276_v31  ;;  %v15022_v62 = vpop.f32.mrb[97].mxu1  ;;  %v8446_v40 = vsel %vm446_vm1, %v12088_v57, %v12078_v9 }
 0x245   : > { %2444 = vst.msk [vmem:[%s12550_s7] sm:$0xff] %vm384_vm6, %v2432_v46  ;;  %10736 = vmatprep.mubr.msk.f32.mxu1 %vm195_vm0, %v10209_v58  ;;  %11225 = vmatprep.subr.bf16.mxu0 %v11224_v43  ;;  %v15028_v60 = vpop.f32.mrb[102].mxu0  ;;  %v2277_v58 = vld [vmem:[%s12550_s7 + $0x18] sm:$0xff]  ;;  %v11218_v46 = vpack.c.bf16 %v8448_v54, %v8446_v40 }
 0x246   : > { %16527 = vst [vmem:[#allocation12_spill] sm:$0xff] %v15028_v60  ;;  %2446 = vst.msk [vmem:[%s12550_s7 + $0x10] sm:$0xff] %vm195_vm0, %v2434_v44  ;;  %4465 = vrot.lane.b32.xlu0 %v14863_v32, %s12254_s28  ;;  %10737 = vmatmul.mubr.msk.f32.vlgmr.msra.gmra.mrb[156].mxu1 %vm195_vm0, %v10210_v37  ;;  %v15037_v14 = vpop.permute.xlu0 %2404  ;;  %v15043_v10 = vpop.f32.mrb[103].mxu0  ;;  %v2279_v32 = vld [vmem:[%s12550_s7 + $0x28] sm:$0xff] }
 0x247   : > { %16528 = vst [vmem:[#allocation10_spill] sm:$0xff] %v15043_v10  ;;  %11215 = vmatpush1.bf16.msra.mxu1 %v11214_v63  ;;  %11227 = vmatpush3.bf16.msra.mxu0 %v11224_v43  ;;  %v2435_v29 = vadd.f32 %v15037_v14, %v2277_v58  ;;  %v15046_v57 = vpop.permute.xlu1 %2406  ;;  %v15049_v59 = vpop.f32.mrb[98].mxu1  ;;  %v10212_v43 = vld [vmem:[%s16409_s1 + $0x498] sm:$0xff] }
 0x248   : > { %16529 = vst [vmem:[#allocation24_spill] sm:$0xff] %v15049_v59  ;;  %4907 = vrot.lane.b32.xlu1 %v14900_v53, %s12254_s28  ;;  %11217 = vmatprep.subr.bf16.mxu1 %v11216_v26  ;;  %v2437_v9 = vadd.f32 %v15046_v57, %v2279_v32  ;;  %v15054_v45 = vpop.f32.mrb[99].mxu1  ;;  %v2285_v32 = vld [vmem:[%s12550_s7 + $0x58] sm:$0xff] }
 0x249   : > { %2447 = vst.msk [vmem:[%s12550_s7 + $0x18] sm:$0xff] %vm384_vm6, %v2435_v29  ;;  %8249 = vmatprep.mubr.f32.mxu0 %v16514_v35  ;;  %10739 = vmatprep.mubr.msk.f32.mxu1 %vm195_vm0, %v10211_v24  ;;  %v15063_v31 = vpop.f32.mrb[104].mxu0 }
 0x24a   : > { %16530 = vst [vmem:[#allocation18_spill] sm:$0xff] %v15063_v31  ;;  %2449 = vst.msk [vmem:[%s12550_s7 + $0x28] sm:$0xff] %vm195_vm0, %v2437_v9  ;;  %4691 = vrot.lane.b32.xlu0 %v14905_v20, %s12254_s28  ;;  %10214 = vmatmul.mubr.msk.f32.gmra.mrb[158].mxu0 %vm195_vm0, %v10210_v37  ;;  %v15070_v53 = vpop.permute.xlu0 %2408  ;;  %v15072_v52 = vpop.f32.mrb[105].mxu0  ;;  %v2275_v31 = vld [vmem:[%s12550_s7 + $0x8] sm:$0xff] }
 0x24b   : > { %11219 = vmatpush1.bf16.msra.mxu1 %v11218_v46  ;;  %v2438_v44 = vadd.f32 %v15070_v53, %v14777_v36  ;;  %v15076_v63 = vpop.permute.xlu1 %2410  ;;  %8255 = vmatprep.mubr.f32.mxu0 %v16514_v35  ;;  %v15080_v54 = vpop.f32.mrb[100].mxu1  ;;  %v10221_v36 = vld [vmem:[%s16409_s1 + $0x4a0] sm:$0xff] }
 0x24c   : > { %4911 = vrot.lane.b32.xlu1 %v14933_v15, %s12254_s28  ;;  %v2440_v20 = vadd.f32 %v15076_v63, %v2282_v1  ;;  %10740 = vmatmul.mubr.msk.f32.gmra.mrb[158].mxu1 %vm195_vm0, %v10212_v43  ;;  %v15086_v37 = vpop.f32.mrb[101].mxu1 }
 0x24d   : > { %2450 = vst.msk [vmem:[%s12550_s7 + $0x30] sm:$0xff] %vm384_vm6, %v2438_v44  ;;  %v15093_v40 = vpop.f32.mrb[106].mxu0  ;;  %8538 = vmatprep.mubr.f32.mxu1 %v16514_v35 }
 0x24e   : > { %16531 = vst [vmem:[#allocation14_spill] sm:$0xff] %v15093_v40  ;;  %2452 = vst.msk [vmem:[%s12550_s7 + $0x40] sm:$0xff] %vm195_vm0, %v2440_v20  ;;  %4905 = vrot.lane.b32.xlu0 %v14897_v0, %s12254_s28  ;;  %10215 = vmatmul.mubr.msk.f32.gmra.mrb[160].mxu0 %vm195_vm0, %v10211_v24  ;;  %v15101_v15 = vpop.permute.xlu0 %2412  ;;  %v15103_v58 = vpop.f32.mrb[107].mxu0 }
 0x24f   : > { %16532 = vst [vmem:[#allocation5_spill] sm:$0xff] %v15103_v58  ;;  %v2441_v26 = vadd.f32 %v15101_v15, %v14843_v13  ;;  %v15107_v29 = vpop.permute.xlu1 %2414  ;;  %8261 = vmatprep.mubr.f32.mxu0 %v16514_v35  ;;  %v15111_v9 = vpop.f32.mrb[102].mxu1  ;;  %v10222_v13 = vld [vmem:[%s16409_s1 + $0x4a8] sm:$0xff] }
 0x250   : > { %16533 = vst [vmem:[#allocation27_spill] sm:$0xff] %v15111_v9  ;;  %4915 = vrot.lane.b32.xlu1 %v14962_v38, %s12254_s28  ;;  %v2443_v0 = vadd.f32 %v15107_v29, %v2285_v32  ;;  %v15116_v24 = vpop.f32.mrb[103].mxu1  ;;  %10225 = vmatmul.mubr.msk.f32.vlgmr.msra.gmra.mrb[160].mxu1 %vm195_vm0, %v10221_v36 }
 0x251   : > { %2453 = vst.msk [vmem:[%s12550_s7 + $0x48] sm:$0xff] %vm384_vm6, %v2441_v26  ;;  %v15124_v46 = vpop.f32.mrb[108].mxu0  ;;  %8544 = vmatprep.mubr.f32.mxu1 %v16514_v35 }
 0x252   : > { %16534 = vst [vmem:[#allocation30_spill] sm:$0xff] %v15124_v46  ;;  %2455 = vst.msk [vmem:[%s12550_s7 + $0x58] sm:$0xff] %vm195_vm0, %v2443_v0  ;;  %10216 = vmatmul.mubr.msk.f32.gmra.mrb[162].mxu0 %vm195_vm0, %v10212_v43  ;;  %v15130_v38 = vpop.permute.xlu0 %2852  ;;  %4909 = vrot.lane.b32.xlu0 %v14922_v11, %s12254_s28  ;;  %v15134_v44 = vpop.f32.mrb[109].mxu0  ;;  %v10223_v43 = vld [vmem:[%s16409_s1 + $0x4b0] sm:$0xff]  ;;  %v10224_v0 = vld [vmem:[%s16409_s1 + $0x4b8] sm:$0xff] }
 0x253   : > { %v15136_v1 = vpop.permute.xlu1 %2854  ;;  %10750 = vmatprep.mubr.msk.f32.mxu0 %vm195_vm0, %v10221_v36  ;;  %v15139_v20 = vpop.f32.mrb[104].mxu1 }
 0x254   : > { %16535 = vst [vmem:[#allocation23_spill] sm:$0xff] %v15139_v20  ;;  %4919 = vrot.lane.b32.xlu1 %v14990_v51, %s12254_s28  ;;  %v15143_v26 = vpop.f32.mrb[105].mxu1  ;;  %10226 = vmatmul.mubr.msk.f32.gmra.mrb[162].mxu1 %vm195_vm0, %v10222_v13  ;;  %v2464_v20 = vld [vmem:[%s12550_s7] sm:$0xff] }
 0x255   : > { %v15149_v11 = vpop.f32.mrb[110].mxu0  ;;  %8550 = vmatprep.mubr.f32.mxu1 %v16514_v35 }
 0x256   : > { %16536 = vst [vmem:[#allocation25_spill] sm:$0xff] %v15149_v11  ;;  %10751 = vmatmul.mubr.msk.f32.vlgmr.msra.gmra.mrb[164].mxu0 %vm195_vm0, %v10222_v13  ;;  %v15153_v36 = vpop.permute.xlu0 %2856  ;;  %4913 = vrot.lane.b32.xlu0 %v14953_v41, %s12254_s28  ;;  %v15157_v51 = vpop.f32.mrb[111].mxu0 }
 0x257   : > { %v15159_v32 = vpop.permute.xlu1 %2858  ;;  %10753 = vmatprep.mubr.msk.f32.mxu0 %vm195_vm0, %v10223_v43  ;;  %v15165_v40 = vpop.f32.mrb[106].mxu1 }
 0x258   : > { %16537 = vst [vmem:[#allocation31_spill] sm:$0xff] %v15165_v40  ;;  %v15167_v60 = vpop.f32.mrb[107].mxu1  ;;  %10227 = vmatmul.mubr.msk.f32.gmra.mrb[164].mxu1 %vm195_vm0, %v10223_v43  ;;  %v15183_v43 = vld [vmem:[%s16409_s1 + $0x4c0] sm:$0xff]  ;;  %v2416_v40 = vsel %vm355_vm7, %v15004_v23, %v15010_v21 }
 0x259   : > { %16538 = vst [vmem:[#allocation17_spill] sm:$0xff] %v15167_v60  ;;  %v15170_v13 = vpop.f32.mrb[112].mxu0  ;;  %8556 = vmatprep.mubr.f32.mxu1 %v16514_v35  ;;  %v2433_v23 = vadd.f32 %v2416_v40, %v2275_v31 }
 0x25a   : > { %16539 = vst [vmem:[#allocation26_spill] sm:$0xff] %v15170_v13  ;;  %10754 = vmatmul.mubr.msk.f32.gmra.mrb[166].mxu0 %vm195_vm0, %v10224_v0  ;;  %v15174_v41 = vpop.permute.xlu0 %2860  ;;  %4917 = vrot.lane.b32.xlu0 %v14978_v55, %s12254_s28  ;;  %v15178_v58 = vpop.f32.mrb[113].mxu0  ;;  %s12258_s28 = smov 88  }
 0x25b   : > { %16540 = vst [vmem:[#allocation9_spill] sm:$0xff] %v15178_v58  ;;  %v2627_v13 = vpop.permute.xlu1 %2626  ;;  %v15189_v27 = vpop.f32.mrb[108].mxu1  ;;  %8833 = vmatprep.mubr.f32.mxu0 %v16514_v35 }
 0x25c   : > { %16541 = vst [vmem:[#allocation32_spill] sm:$0xff] %v15189_v27  ;;  %v2658_v11 = vadd.f32 %v2627_v13, %v2464_v20  ;;  %v15192_v55 = vpop.f32.mrb[109].mxu1  ;;  %10228 = vmatmul.mubr.msk.f32.gmra.mrb[166].mxu1 %vm195_vm0, %v10224_v0  ;;  %v2466_v27 = vld [vmem:[%s12550_s7 + $0x10] sm:$0xff] }
 0x25d   : > { %16542 = vst [vmem:[#allocation16_spill] sm:$0xff] %v15192_v55  ;;  %v15196_v60 = vpop.f32.mrb[114].mxu0  ;;  %10764 = vmatprep.mubr.msk.f32.mxu1 %vm195_vm0, %v15183_v43 }
 0x25e   : > { %16543 = vst [vmem:[#allocation62_spill] sm:$0xff] %v15196_v60  ;;  %2670 = vst.msk [vmem:[%s12550_s7] sm:$0xff] %vm384_vm6, %v2658_v11  ;;  %v2629_v21 = vpop.permute.xlu0 %2628  ;;  %v15203_v9 = vpop.f32.mrb[115].mxu0  ;;  %v2417_v60 = vsel %vm355_vm7, %v15037_v14, %v15046_v57  ;;  %v2868_v11 = vsel %vm355_vm7, %v15130_v38, %v15136_v1 }
 0x25f   : > { %16544 = vst [vmem:[#allocation63_spill] sm:$0xff] %v15203_v9  ;;  %v2642_v20 = vsel %vm355_vm7, %v2627_v13, %v2629_v21  ;;  %v2660_v55 = vadd.f32 %v2629_v21, %v2466_v27  ;;  %v15206_v0 = vpop.permute.xlu1 %2862  ;;  %v15208_v59 = vpop.f32.mrb[110].mxu1  ;;  %v2278_v27 = vld [vmem:[%s12550_s7 + $0x20] sm:$0xff]  ;;  %v2469_v9 = vld [vmem:[%s12550_s7 + $0x28] sm:$0xff] }
 0x260   : > { %16545 = vst [vmem:[#allocation64_spill] sm:$0xff] %v15208_v59  ;;  %v2659_v31 = vadd.f32 %v2642_v20, %v2433_v23  ;;  %v15213_v40 = vpop.f32.mrb[111].mxu1  ;;  %v2436_v14 = vadd.f32 %v2417_v60, %v2278_v27  ;;  %v2467_v20 = vld [vmem:[%s12550_s7 + $0x18] sm:$0xff] }
 0x261   : > { %16546 = vst [vmem:[#allocation65_spill] sm:$0xff] %v15213_v40  ;;  %2672 = vst.msk [vmem:[%s12550_s7 + $0x10] sm:$0xff] %vm195_vm0, %v2660_v55  ;;  %v15220_v13 = vpop.f32.mrb[116].mxu0  ;;  %v2418_v55 = vsel %vm355_vm7, %v15070_v53, %v15076_v63  ;;  %v2281_v27 = vld [vmem:[%s12550_s7 + $0x38] sm:$0xff]  ;;  %v2869_v53 = vsel %vm355_vm7, %v15153_v36, %v15159_v32 }
 0x262   : > { %16547 = vst [vmem:[#allocation66_spill] sm:$0xff] %v15220_v13  ;;  %v2885_v21 = vadd.f32 %v2868_v11, %v2659_v31  ;;  %v2633_v59 = vpop.permute.xlu0 %2632  ;;  %v15224_v10 = vpop.f32.mrb[117].mxu0  ;;  %v16550_v13 = vld [vmem:[#allocation35_spill] sm:$0xff] }
 0x263   : > { %16548 = vst [vmem:[#allocation67_spill] sm:$0xff] %v15224_v10  ;;  %v2663_v57 = vadd.f32 %v2633_v59, %v2469_v9  ;;  %v2631_v23 = vpop.permute.xlu1 %2630  ;;  %v15227_v40 = vpop.f32.mrb[112].mxu1 }
 0x264   : > { %16549 = vst [vmem:[#allocation68_spill] sm:$0xff] %v15227_v40  ;;  %v3124_v58 = vadd.f32 %v16550_v13, %v2885_v21  ;;  %v2643_v31 = vsel %vm355_vm7, %v2631_v23, %v2633_v59  ;;  %v2661_v11 = vadd.f32 %v2631_v23, %v2467_v20  ;;  %v15234_v46 = vpop.f32.mrb[113].mxu1  ;;  %v2472_v21 = vld [vmem:[%s12550_s7 + $0x40] sm:$0xff] }
 0x265   : > { %v2690_v10 = vld [vmem:[%s12550_s7] sm:$0xff]  ;;  %2675 = vst.msk [vmem:[%s12550_s7 + $0x28] sm:$0xff] %vm195_vm0, %v2663_v57  ;;  %v2662_v60 = vadd.f32 %v2643_v31, %v2436_v14  ;;  %v15239_v9 = vpop.f32.mrb[118].mxu0  ;;  %v2439_v14 = vadd.f32 %v2418_v55, %v2281_v27 }
 0x266   : > { %16551 = vst [vmem:[#allocation35_spill] sm:$0xff] %v15239_v9  ;;  %v2884_v63 = vadd.f32 %v15130_v38, %v2690_v10  ;;  %v3419_v59 = vadd.f32 %v14399_v56, %v3124_v58  ;;  %2673 = vst.msk [vmem:[%s12550_s7 + $0x18] sm:$0xff] %vm384_vm6, %v2661_v11  ;;  %v2637_v13 = vpop.permute.xlu0 %2636  ;;  %v15250_v57 = vpop.f32.mrb[119].mxu0  ;;  %v2470_v9 = vld [vmem:[%s12550_s7 + $0x30] sm:$0xff] }
 0x267   : > { %v2888_v23 = vadd.f32 %v2869_v53, %v2662_v60  ;;  %v2666_v20 = vadd.f32 %v2637_v13, %v2472_v21  ;;  %v2635_v31 = vpop.permute.xlu1 %2634  ;;  %v15253_v40 = vpop.f32.mrb[114].mxu1  ;;  %v16552_v60 = vld [vmem:[#allocation39_spill] sm:$0xff] }
 0x268   : > { %2896 = vst.msk [vmem:[%s12550_s7] sm:$0xff] %vm384_vm6, %v2884_v63  ;;  %v2692_v10 = vld [vmem:[%s12550_s7 + $0x10] sm:$0xff]  ;;  %v3714_v56 = vadd.f32 %v14489_v4, %v3419_v59  ;;  %v2644_v58 = vsel %vm355_vm7, %v2635_v31, %v2637_v13  ;;  %v2664_v38 = vadd.f32 %v2635_v31, %v2470_v9  ;;  %v15260_v11 = vpop.f32.mrb[115].mxu1  ;;  %v2419_v4 = vsel %vm355_vm7, %v15101_v15, %v15107_v29  ;;  %v2475_v59 = vld [vmem:[%s12550_s7 + $0x58] sm:$0xff] }
 0x269   : > { %v2886_v55 = vadd.f32 %v15136_v1, %v2692_v10  ;;  %v3127_v27 = vadd.f32 %v16552_v60, %v2888_v23  ;;  %2678 = vst.msk [vmem:[%s12550_s7 + $0x40] sm:$0xff] %vm195_vm0, %v2666_v20  ;;  %v2665_v53 = vadd.f32 %v2644_v58, %v2439_v14  ;;  %v15266_v21 = vpop.f32.mrb[120].mxu0  ;;  %v2870_v1 = vsel %vm355_vm7, %v15174_v41, %v15206_v0  ;;  %v16555_v14 = vld [vmem:[#allocation47_spill] sm:$0xff] }
 0x26a   : > { %16553 = vst [vmem:[#allocation39_spill] sm:$0xff] %v15266_v21  ;;  %3726 = vst [vmem:[%s12550_s7 + $0x8] sm:$0xff] %v3714_v56  ;;  %v3916_v9 = vadd.f32 %v14564_v6, %v3714_v56  ;;  %v2641_v63 = vpop.permute.xlu0 %2640  ;;  %v15279_v13 = vpop.f32.mrb[121].mxu0  ;;  %v2473_v6 = vld [vmem:[%s12550_s7 + $0x48] sm:$0xff]  ;;  %v2284_v10 = vld [vmem:[%s12550_s7 + $0x50] sm:$0xff] }
 0x26b   : > { %2676 = vst.msk [vmem:[%s12550_s7 + $0x30] sm:$0xff] %vm384_vm6, %v2664_v38  ;;  %16554 = vst [vmem:[#allocation69_spill] sm:$0xff] %v15279_v13  ;;  %v3422_v15 = vadd.f32 %v16555_v14, %v3127_v27  ;;  %v2891_v29 = vadd.f32 %v2870_v1, %v2665_v53  ;;  %v2669_v23 = vadd.f32 %v2641_v63, %v2475_v59  ;;  %v2639_v20 = vpop.permute.xlu1 %2638  ;;  %v15285_v31 = vpop.f32.mrb[116].mxu1  ;;  %v16556_v59 = vld [vmem:[#allocation43_spill] sm:$0xff] }
 0x26c   : > { %2898 = vst.msk [vmem:[%s12550_s7 + $0x10] sm:$0xff] %vm195_vm0, %v2886_v55  ;;  %v2695_v56 = vld [vmem:[%s12550_s7 + $0x28] sm:$0xff]  ;;  %v2645_v58 = vsel %vm355_vm7, %v2639_v20, %v2641_v63  ;;  %v2667_v38 = vadd.f32 %v2639_v20, %v2473_v6  ;;  %v15292_v55 = vpop.f32.mrb[117].mxu1  ;;  %v2442_v60 = vadd.f32 %v2419_v4, %v2284_v10 }
 0x26d   : > { %3924 = vst.msk [vmem:[%s12550_s7 + $0x8] sm:$0xff] %vm1868_vm8, %v3916_v9  ;;  %v2889_v27 = vadd.f32 %v15159_v32, %v2695_v56  ;;  %v2693_v53 = vld [vmem:[%s12550_s7 + $0x18] sm:$0xff]  ;;  %v3717_v1 = vadd.f32 %v14525_v61, %v3422_v15  ;;  %v3130_v14 = vadd.f32 %v16556_v59, %v2891_v29  ;;  %v15300_v9 = vpop.f32.mrb[122].mxu0  ;;  %v16559_v15 = vld [vmem:[#allocation50_spill] sm:$0xff]  ;;  %v15319_v56 = vld [vmem:[%s12349_s9 + $0x20] sm:$0xff] }
 0x26e   : > { %2681 = vst.msk [vmem:[%s12550_s7 + $0x58] sm:$0xff] %vm195_vm0, %v2669_v23  ;;  %16557 = vst [vmem:[#allocation47_spill] sm:$0xff] %v15300_v9  ;;  %v2887_v63 = vadd.f32 %v15153_v36, %v2693_v53  ;;  %v2865_v4 = vpop.permute.xlu0 %2864  ;;  %v15305_v20 = vpop.f32.mrb[123].mxu0  ;;  %v2668_v23 = vadd.f32 %v2645_v58, %v2442_v60  ;;  %v15316_v10 = vld [vmem:[%s12349_s9 + $0x8] sm:$0xff] }
 0x26f   : > { %2679 = vst.msk [vmem:[%s12550_s7 + $0x48] sm:$0xff] %vm384_vm6, %v2667_v38  ;;  %16558 = vst [vmem:[#allocation43_spill] sm:$0xff] %v15305_v20  ;;  %v2920_v32 = vld [vmem:[%s12550_s7] sm:$0xff]  ;;  %v3918_v61 = vadd.f32 %v14590_v18, %v3717_v1  ;;  %v3425_v29 = vadd.f32 %v16559_v15, %v3130_v14  ;;  %v2867_v6 = vpop.permute.xlu1 %2866  ;;  %v15313_v36 = vpop.f32.mrb[118].mxu1 }
 0x270   : > { %2901 = vst.msk [vmem:[%s12550_s7 + $0x28] sm:$0xff] %vm195_vm0, %v2889_v27  ;;  %3729 = vst [vmem:[%s12550_s7 + $0x20] sm:$0xff] %v3717_v1  ;;  %v16561_v38 = vld [vmem:[#allocation33_spill] sm:$0xff]  ;;  %v2871_v59 = vsel %vm355_vm7, %v2865_v4, %v2867_v6  ;;  %v15326_v18 = vpop.f32.mrb[119].mxu1 }
 0x271   : > { %16560 = vst [vmem:[#allocation50_spill] sm:$0xff] %v15313_v36  ;;  %v3123_v53 = vadd.f32 %v16561_v38, %v2920_v32  ;;  %2899 = vst.msk [vmem:[%s12550_s7 + $0x18] sm:$0xff] %vm384_vm6, %v2887_v63  ;;  %v2698_v27 = vld [vmem:[%s12550_s7 + $0x40] sm:$0xff]  ;;  %v3720_v1 = vadd.f32 %v14562_v12, %v3425_v29  ;;  %v2894_v14 = vadd.f32 %v2871_v59, %v2668_v23  ;;  %v10612_v32 = vpop.f32.mrb[124].mxu0  ;;  %v16562_v63 = vld [vmem:[#allocation42_spill] sm:$0xff] }
 0x272   : > { %3926 = vst.msk [vmem:[%s12550_s7 + $0x20] sm:$0xff] %vm1868_vm8, %v3918_v61  ;;  %v2892_v58 = vadd.f32 %v15206_v0, %v2698_v27  ;;  %v2696_v60 = vld [vmem:[%s12550_s7 + $0x30] sm:$0xff]  ;;  %v6467_v9 = vpop.f32.mrb[125].mxu0  ;;  %v12092_v36 = vpop.permute.xlu0 %12091  ;;  %6492 = vrot.lane.b32.xlu1 %v10612_v32, %s12258_s28  ;;  %v8972_v12 = vld [vmem:[%s12349_s9 + $0x28] sm:$0xff]  ;;  %v16563_v29 = vld [vmem:[#allocation36_spill] sm:$0xff] }
 0x273   : > { %v3418_v15 = vadd.f32 %v16562_v63, %v3123_v53  ;;  %v2922_v38 = vld [vmem:[%s12550_s7 + $0x10] sm:$0xff]  ;;  %v2890_v20 = vadd.f32 %v15174_v41, %v2696_v60  ;;  %3732 = vst [vmem:[%s12550_s7 + $0x38] sm:$0xff] %v3720_v1  ;;  %v3920_v41 = vadd.f32 %v14640_v33, %v3720_v1  ;;  %v16564_v53 = vld [vmem:[#allocation46_spill] sm:$0xff]  ;;  %v12094_v60 = vunpack.i.h.bf16 %v12092_v36  ;;  %6490 = vrot.lane.b32.xlu0 %v6467_v9, %s12258_s28  ;;  %v12097_v32 = vpop.permute.xlu1 %12096  ;;  %v16565_v63 = vld [vmem:[#allocation57_spill] sm:$0xff] }
 0x274   : > { %v8969_v61 = vld [vmem:[%s12349_s9 + $0x10] sm:$0xff]  ;;  %v3125_v23 = vadd.f32 %v16563_v29, %v2922_v38  ;;  %v3944_v27 = vld [vmem:[%s12550_s7 + $0x8] sm:$0xff]  ;;  %2904 = vst.msk [vmem:[%s12550_s7 + $0x40] sm:$0xff] %vm195_vm0, %v2892_v58  ;;  %v3133_v59 = vadd.f32 %v16564_v53, %v2894_v14  ;;  %v12093_v58 = vunpack.i.l.bf16 %v12092_v36  ;;  %v12099_v29 = vunpack.i.h.bf16 %v12097_v32  ;;  %v15354_v21 = vpop.f32.mrb[120].mxu1 }
 0x275   : > { %v3713_v0 = vadd.f32 %v16565_v63, %v3418_v15  ;;  %v4110_v13 = vadd.f32 %v14634_v22, %v3944_v27  ;;  %2902 = vst.msk [vmem:[%s12550_s7 + $0x30] sm:$0xff] %vm384_vm6, %v2890_v20  ;;  %v2701_v38 = vld [vmem:[%s12550_s7 + $0x58] sm:$0xff]  ;;  %v16566_v1 = vld [vmem:[#allocation55_spill] sm:$0xff]  ;;  %v12098_v22 = vunpack.i.l.bf16 %v12097_v32  ;;  %v10615_v15 = vpop.f32.mrb[126].mxu0  ;;  %v15362_v27 = vpop.f32.mrb[121].mxu1  ;;  %v15364_v20 = vpack.c.bf16 %v8972_v12, %v8969_v61  ;;  %v16567_v32 = vld [vmem:[#allocation34_spill] sm:$0xff] }
 0x276   : > { %3137 = vst.msk [vmem:[%s12550_s7 + $0x10] sm:$0xff] %vm195_vm0, %v3125_v23  ;;  %v2699_v33 = vld [vmem:[%s12550_s7 + $0x48] sm:$0xff]  ;;  %v2895_v9 = vadd.f32 %v2867_v6, %v2701_v38  ;;  %v3428_v14 = vadd.f32 %v16566_v1, %v3133_v59  ;;  %v6477_v6 = vpop.f32.mrb[127].mxu0  ;;  %v12102_v63 = vpop.permute.xlu0 %12101  ;;  %6496 = vrot.lane.b32.xlu1 %v10615_v15, %s12258_s28  ;;  %v8738_v59 = vsel %vm673_vm2, %v12093_v58, %v12094_v60  ;;  %v16568_v12 = vld [vmem:[#allocation37_spill] sm:$0xff] }
 0x277   : > { %3928 = vst.msk [vmem:[%s12550_s7 + $0x38] sm:$0xff] %vm1868_vm8, %v3920_v41  ;;  %v3915_v36 = vadd.f32 %v14548_v19, %v3713_v0  ;;  %4118 = vst.msk [vmem:[%s12550_s7 + $0x8] sm:$0xff] %vm1868_vm8, %v4110_v13  ;;  %v2925_v53 = vld [vmem:[%s12550_s7 + $0x28] sm:$0xff]  ;;  %v2893_v23 = vadd.f32 %v2865_v4, %v2699_v33  ;;  %v11236_v41 = vpack.c.bf16 %v12099_v29, %v12094_v60  ;;  %v12104_v13 = vunpack.i.h.bf16 %v12102_v63  ;;  %v12107_v4 = vpop.permute.xlu1 %12106 }
 0x278   : > { %v3128_v38 = vadd.f32 %v16567_v32, %v2925_v53  ;;  %v2923_v61 = vld [vmem:[%s12550_s7 + $0x18] sm:$0xff]  ;;  %2907 = vst.msk [vmem:[%s12550_s7 + $0x58] sm:$0xff] %vm195_vm0, %v2895_v9  ;;  %v3723_v19 = vadd.f32 %v14593_v49, %v3428_v14  ;;  %v12103_v0 = vunpack.i.l.bf16 %v12102_v63  ;;  %6494 = vrot.lane.b32.xlu0 %v6477_v6, %s12258_s28  ;;  %v12109_v60 = vunpack.i.h.bf16 %v12107_v4  ;;  %v15383_v9 = vpop.f32.mrb[122].mxu1 }
 0x279   : > { %v3126_v33 = vadd.f32 %v16568_v12, %v2923_v61  ;;  %v3946_v1 = vld [vmem:[%s12550_s7 + $0x20] sm:$0xff]  ;;  %2905 = vst.msk [vmem:[%s12550_s7 + $0x48] sm:$0xff] %vm384_vm6, %v2893_v23  ;;  %v12108_v15 = vunpack.i.l.bf16 %v12107_v4  ;;  %11237 = vmatprep.subr.bf16.mxu1 %v11236_v41  ;;  %v8740_v53 = vsel %vm673_vm2, %v12098_v22, %v12099_v29  ;;  %v8739_v23 = vsel %vm673_vm2, %v12104_v13, %v12098_v22  ;;  %v15392_v63 = vpop.f32.mrb[123].mxu1 }
 0x27a   : > { %3140 = vst.msk [vmem:[%s12550_s7 + $0x28] sm:$0xff] %vm195_vm0, %v3128_v38  ;;  %v4112_v49 = vadd.f32 %v14671_v7, %v3946_v1  ;;  %3735 = vst [vmem:[%s12550_s7 + $0x50] sm:$0xff] %v3723_v19  ;;  %v3922_v14 = vadd.f32 %v14678_v5, %v3723_v19  ;;  %v8737_v6 = vsel %vm673_vm2, %v12103_v0, %v12093_v58  ;;  %11239 = vmatpush3.bf16.msra.mxu1 %v11236_v41  ;;  %v16569_v29 = vld [vmem:[#allocation45_spill] sm:$0xff]  ;;  %v12112_v38 = vpop.permute.xlu0 %12111  ;;  %v10626_v12 = vpop.f32.mrb[128].mxu0  ;;  %v16570_v5 = vld [vmem:[#allocation40_spill] sm:$0xff] }
 0x27b   : > { %v3421_v32 = vadd.f32 %v16569_v29, %v3126_v33  ;;  %v2928_v61 = vld [vmem:[%s12550_s7 + $0x40] sm:$0xff]  ;;  %v11230_v4 = vpack.c.bf16 %v8739_v23, %v8737_v6  ;;  %v11228_v7 = vpack.c.bf16 %v8740_v53, %v8738_v59  ;;  %v8742_v1 = vsel %vm673_vm2, %v12108_v15, %v12109_v60  ;;  %v12117_v13 = vpop.permute.xlu1 %12116  ;;  %v6630_v0 = vpop.f32.mrb[129].mxu0  ;;  %6655 = vrot.lane.b32.xlu1 %v10626_v12, %s12258_s28 }
 0x27c   : > { %4120 = vst.msk [vmem:[%s12550_s7 + $0x20] sm:$0xff] %vm1868_vm8, %v4112_v49  ;;  %v3131_v58 = vadd.f32 %v16570_v5, %v2928_v61  ;;  %v2926_v19 = vld [vmem:[%s12550_s7 + $0x30] sm:$0xff]  ;;  %3930 = vst.msk [vmem:[%s12550_s7 + $0x50] sm:$0xff] %vm1868_vm8, %v3922_v14  ;;  %v12114_v22 = vunpack.i.h.bf16 %v12112_v38  ;;  %v12113_v41 = vunpack.i.l.bf16 %v12112_v38  ;;  %v4109_v33 = vadd.f32 %v14623_v17, %v3915_v36  ;;  %v16571_v53 = vld [vmem:[#allocation41_spill] sm:$0xff]  ;;  %6653 = vrot.lane.b32.xlu0 %v6630_v0, %s12258_s28  ;;  %v15410_v61 = vpop.f32.mrb[124].mxu1 }
 0x27d   : > { %v3161_v6 = vld [vmem:[%s12550_s7 + $0x10] sm:$0xff]  ;;  %v3716_v59 = vadd.f32 %v14520_v16, %v3421_v32  ;;  %v3129_v49 = vadd.f32 %v16571_v53, %v2926_v19  ;;  %v12119_v29 = vunpack.i.h.bf16 %v12117_v13  ;;  %v12118_v14 = vunpack.i.l.bf16 %v12117_v13  ;;  %11229 = vmatprep.subr.bf16.mxu0 %v11228_v7  ;;  %v15417_v32 = vpop.f32.mrb[125].mxu1  ;;  %v15420_v7 = vld [vmem:[%s12349_s9] sm:$0xff]  ;;  %v15423_v5 = vld [vmem:[%s12349_s9 + $0x18] sm:$0xff] }
 0x27e   : > { %v3948_v23 = vld [vmem:[%s12550_s7 + $0x38] sm:$0xff]  ;;  %v16572_v38 = vld [vmem:[#allocation51_spill] sm:$0xff]  ;;  %3143 = vst.msk [vmem:[%s12550_s7 + $0x40] sm:$0xff] %vm195_vm0, %v3131_v58  ;;  %v11240_v17 = vpack.c.bf16 %v12114_v22, %v12109_v60  ;;  %11231 = vmatpush1.bf16.msra.mxu0 %v11230_v4  ;;  %v8744_v36 = vsel %vm673_vm2, %v12113_v41, %v12114_v22  ;;  %v16573_v13 = vld [vmem:[#allocation49_spill] sm:$0xff]  ;;  %v10629_v4 = vpop.f32.mrb[130].mxu0 }
 0x27f   : > { %v3420_v12 = vadd.f32 %v16572_v38, %v3161_v6  ;;  %v4114_v16 = vadd.f32 %v14706_v8, %v3948_v23  ;;  %v15426_v19 = vadd.f32 %v14578_v50, %v3716_v59  ;;  %v3424_v58 = vadd.f32 %v16573_v13, %v3129_v49  ;;  %v2931_v0 = vld [vmem:[%s12550_s7 + $0x58] sm:$0xff]  ;;  %v15432_v6 = vpop.permute.xlu0 %12121  ;;  %v4138_v22 = vld [vmem:[%s12550_s7 + $0x8] sm:$0xff]  ;;  %v15441_v49 = vpop.permute.xlu1 %12126  ;;  %6659 = vrot.lane.b32.xlu1 %v10629_v4, %s12258_s28 }
 0x280   : > { %v8743_v8 = vsel %vm673_vm2, %v12119_v29, %v12113_v41  ;;  %v8741_v60 = vsel %vm673_vm2, %v12118_v14, %v12108_v15  ;;  %v2929_v53 = vld [vmem:[%s12550_s7 + $0x48] sm:$0xff]  ;;  %v6640_v41 = vpop.f32.mrb[131].mxu0  ;;  %11241 = vmatprep.subr.bf16.mxu1 %v11240_v17  ;;  %v11232_v15 = vpack.c.bf16 %v8744_v36, %v8742_v1  ;;  %v15453_v13 = vpop.f32.mrb[126].mxu1  ;;  %v11246_v1 = vpack.c.bf16 %v15423_v5, %v15420_v7  ;;  %v8974_v36 = vld [vmem:[%s12349_s9 + $0x38] sm:$0xff]  ;;  %v8973_v7 = vld [vmem:[%s12349_s9 + $0x30] sm:$0xff] }
 0x281   : > { %3432 = vst.msk [vmem:[%s12550_s7 + $0x10] sm:$0xff] %vm195_vm0, %v3420_v12  ;;  %v16574_v23 = vld [vmem:[#allocation38_spill] sm:$0xff]  ;;  %v11234_v59 = vpack.c.bf16 %v8743_v8, %v8741_v60  ;;  %v3719_v38 = vadd.f32 %v14557_v39, %v3424_v58  ;;  %v16575_v12 = vld [vmem:[#allocation44_spill] sm:$0xff]  ;;  %11243 = vmatpush3.bf16.msra.mxu1 %v11240_v17  ;;  %6657 = vrot.lane.b32.xlu0 %v6640_v41, %s12258_s28  ;;  %v15462_v39 = vpop.f32.mrb[127].mxu1  ;;  %v15467_v17 = vld [vmem:[%s16409_s1 + $0x4d0] sm:$0xff] }
 0x282   : > { %4122 = vst.msk [vmem:[%s12550_s7 + $0x38] sm:$0xff] %vm1868_vm8, %v4114_v16  ;;  %v3134_v50 = vadd.f32 %v16574_v23, %v2931_v0  ;;  %v15447_v29 = vld [vmem:[%s16409_s1 + $0x4c8] sm:$0xff]  ;;  %v3132_v16 = vadd.f32 %v16575_v12, %v2929_v53  ;;  %v8977_v0 = vld [vmem:[%s12349_s9 + $0x50] sm:$0xff]  ;;  %v16576_v8 = vld [vmem:[#allocation48_spill] sm:$0xff]  ;;  %11233 = vmatprep.subr.bf16.mxu0 %v11232_v15  ;;  %v16577_v58 = vpack.c.bf16 %v15319_v56, %v15316_v10  ;;  %v12129_v10 = vunpack.i.h.bf16 %v15441_v49 }
 0x283   : > { %v3164_v14 = vld [vmem:[%s12550_s7 + $0x28] sm:$0xff]  ;;  %v15475_v4 = vadd.f32 %v14684_v3, %v4109_v33  ;;  %v4304_v53 = vadd.f32 %v14713_v25, %v4138_v22  ;;  %v15479_v23 = vadd.f32 %v14612_v47, %v3719_v38  ;;  %v3950_v15 = vld [vmem:[%s12550_s7 + $0x50] sm:$0xff]  ;;  %v16419_v56 = vunpack.i.l.bf16 %v15441_v49  ;;  %11235 = vmatpush1.bf16.msra.mxu0 %v11234_v59  ;;  %v8975_v33 = vld [vmem:[%s12349_s9 + $0x40] sm:$0xff] }
 0x284   : > { %v3423_v60 = vadd.f32 %v16576_v8, %v3164_v14  ;;  %3146 = vst.msk [vmem:[%s12550_s7 + $0x58] sm:$0xff] %vm195_vm0, %v3134_v50  ;;  %11245 = vmatprep.subr.bf16.mxu1 %v16577_v58  ;;  %v8976_v5 = vld [vmem:[%s12349_s9 + $0x48] sm:$0xff]  ;;  %v16578_v50 = vld [vmem:[#allocation52_spill] sm:$0xff]  ;;  %v15485_v14 = vpop.permute.xlu0 %12131  ;;  %v4116_v3 = vadd.f32 %v14741_v48, %v3950_v15  ;;  %v15490_v25 = vpop.permute.xlu1 %12136  ;;  %10765 = vmatmul.mubr.msk.f32.vlgmr.msra.gmra.mrb[168].mxu1 %vm195_vm0, %v15447_v29  ;;  %v12124_v12 = vunpack.i.h.bf16 %v15432_v6  ;;  %v4140_v58 = vld [vmem:[%s12550_s7 + $0x20] sm:$0xff] }
 0x285   : > { %v3427_v41 = vadd.f32 %v16578_v50, %v3132_v16  ;;  %v11248_v47 = vpack.c.bf16 %v8977_v0, %v8974_v36  ;;  %11253 = vmatprep.subr.bf16.mxu0 %v15364_v20  ;;  %v8978_v22 = vld [vmem:[%s12349_s9 + $0x58] sm:$0xff]  ;;  %4311 = vst [vmem:[%s12550_s7] sm:$0xff] %v15475_v4  ;;  %4312 = vst.msk [vmem:[%s12550_s7 + $0x8] sm:$0xff] %vm1868_vm8, %v4304_v53  ;;  %v3167_v59 = vld [vmem:[%s12550_s7 + $0x40] sm:$0xff]  ;;  %v10640_v48 = vpop.f32.mrb[128].mxu1  ;;  %10767 = vmatprep.mubr.msk.f32.mxu1 %vm195_vm0, %v15467_v17  ;;  %v16420_v16 = vunpack.i.l.bf16 %v15432_v6  ;;  %s12189_s9 = scalar_lea.vmem %s12188_s30, 3072 }
 0x286   : > { %3435 = vst.msk [vmem:[%s12550_s7 + $0x28] sm:$0xff] %vm195_vm0, %v3423_v60  ;;  %v15510_v36 = vld [vmem:[%s16409_s1 + $0x4d8] sm:$0xff]  ;;  %11247 = vmatpush1.bf16.msra.mxu1 %v11246_v1  ;;  %v11250_v0 = vpack.c.bf16 %v8976_v5, %v8973_v7  ;;  %v16579_v8 = vld [vmem:[#allocation54_spill] sm:$0xff]  ;;  %10237 = vmatmul.mubr.msk.f32.vlgmr.msra.gmra.mrb[168].mxu0 %vm195_vm0, %v15183_v43  ;;  %v15524_v7 = vpack.c.bf16 %v8978_v22, %v8975_v33  ;;  %v16418_v50 = vunpack.i.h.bf16 %v15490_v25 }
 0x287   : > { %v3722_v38 = vadd.f32 %v14588_v28, %v3427_v41  ;;  %v3426_v60 = vadd.f32 %v16579_v8, %v3167_v59  ;;  %4124 = vst.msk [vmem:[%s12550_s7 + $0x50] sm:$0xff] %vm1868_vm8, %v4116_v3  ;;  %v6792_v28 = vpop.f32.mrb[129].mxu1  ;;  %6817 = vrot.lane.b32.xlu1 %v10640_v48, %s12258_s28  ;;  %8839 = vmatprep.mubr.f32.mxu0 %v16514_v35  ;;  %v16580_v15 = vld [vmem:[#allocation58_spill] sm:$0xff]  ;;  %v16581_v22 = vld [vmem:[#allocation8_spill] sm:$0xff]  ;;  %v15549_v8 = vld [vmem:[%s16409_s1 + $0x4e0] sm:$0xff] }
 0x288   : > { %6815 = vrot.lane.b32.xlu0 %v6792_v28, %s12258_s28  ;;  %v15522_v1 = vpop.permute.xlu0 %12141  ;;  %v15529_v5 = vsel %vm446_vm1, %v16419_v56, %v12129_v10  ;;  %v3456_v43 = vld [vmem:[%s12550_s7 + $0x10] sm:$0xff]  ;;  %10768 = vmatmul.mubr.msk.f32.gmra.mrb[170].mxu1 %vm195_vm0, %v15510_v36  ;;  %v4111_v33 = vadd.f32 %v14664_v2, %v15426_v19  ;;  %v10643_v48 = vpop.f32.mrb[130].mxu1  ;;  %v16583_v19 = vld [vmem:[#allocation53_spill] sm:$0xff]  ;;  %v12138_v56 = vunpack.i.l.bf16 %v15490_v25 }
 0x289   : > { %v3921_v53 = vadd.f32 %v14657_v42, %v3722_v38  ;;  %3438 = vst.msk [vmem:[%s12550_s7 + $0x40] sm:$0xff] %vm195_vm0, %v3426_v60  ;;  %v15535_v42 = vpop.permute.xlu1 %12146  ;;  %11249 = vmatprep.subr.bf16.mxu1 %v11248_v47  ;;  %v16417_v41 = vunpack.i.h.bf16 %v15522_v1  ;;  %v3715_v3 = vadd.f32 %v16580_v15, %v3456_v43  ;;  %9072 = vmatprep.mubr.f32.mxu1 %v16514_v35  ;;  %v16582_v60 = vld [vmem:[#allocation15_spill] sm:$0xff]  ;;  %v15561_v43 = vpop.f32.mrb[132].mxu0  ;;  %v16584_v15 = vld [vmem:[#allocation28_spill] sm:$0xff] }
 0x28a   : > { %11251 = vmatpush1.bf16.msra.mxu1 %v11250_v0  ;;  %v9272_v47 = vsel %vm446_vm1, %v16420_v16, %v12124_v12  ;;  %v4306_v2 = vadd.f32 %v16582_v60, %v4140_v58  ;;  %10238 = vmatmul.mubr.msk.f32.gmra.mrb[170].mxu0 %vm195_vm0, %v15447_v29  ;;  %v6802_v0 = vpop.f32.mrb[131].mxu1  ;;  %v12134_v58 = vunpack.i.h.bf16 %v15485_v14 }
 0x28b   : > { %v4115_v59 = vadd.f32 %v16581_v22, %v3921_v53  ;;  %v3170_v38 = vld [vmem:[%s12550_s7 + $0x58] sm:$0xff]  ;;  %v11268_v53 = vpack.c.bf16 %v12129_v10, %v12124_v12  ;;  %6821 = vrot.lane.b32.xlu1 %v10643_v48, %s12258_s28  ;;  %3727 = vst.msk [vmem:[%s12550_s7 + $0x10] sm:$0xff] %vm195_vm0, %v3715_v3  ;;  %v12133_v10 = vunpack.i.l.bf16 %v15485_v14  ;;  %8845 = vmatprep.mubr.f32.mxu0 %v16514_v35 }
 0x28c   : > { %v3429_v28 = vadd.f32 %v16583_v19, %v3170_v38  ;;  %6819 = vrot.lane.b32.xlu0 %v6802_v0, %s12258_s28  ;;  %v15570_v29 = vpop.permute.xlu0 %12151  ;;  %4314 = vst.msk [vmem:[%s12550_s7 + $0x20] sm:$0xff] %vm1868_vm8, %v4306_v2  ;;  %v4142_v3 = vld [vmem:[%s12550_s7 + $0x38] sm:$0xff]  ;;  %v15576_v38 = vpop.f32.mrb[133].mxu0  ;;  %11255 = vmatpush3.bf16.msra.mxu0 %v15364_v20  ;;  %v11272_v14 = vpack.c.bf16 %v16417_v41, %v16418_v50  ;;  %v16587_v41 = vld [vmem:[#allocation11_spill] sm:$0xff]  ;;  %v12143_v19 = vunpack.i.l.bf16 %v15522_v1  ;;  %s9810_s28 = sshll.u32 %s12550_s7, 4  ;;  %s16359_s28 = int_to_ptr.vmem [resolvable:$true] %s9810_s28 }
 0x28d   : > { %v15564_v22 = vadd.f32 %v16584_v15, %v4115_v59  ;;  %v3459_v12 = vld [vmem:[%s12550_s7 + $0x28] sm:$0xff]  ;;  %16585 = vst [vmem:[#allocation33_spill] sm:$0xff] %v15576_v38  ;;  %v15580_v59 = vpop.permute.xlu1 %12156  ;;  %10249 = vmatmul.mubr.msk.f32.vlgmr.msra.gmra.mrb[172].mxu1 %vm195_vm0, %v15549_v8  ;;  %v16421_v48 = vunpack.i.h.bf16 %v15570_v29  ;;  %v16422_v60 = vunpack.i.l.bf16 %v15570_v29  ;;  %v11260_v2 = vpack.c.bf16 %v15529_v5, %v9272_v47  ;;  %11257 = vmatprep.subr.bf16.mxu0 %v15524_v7  ;;  %v16586_v0 = vld [vmem:[#allocation56_spill] sm:$0xff]  ;;  %v15608_v50 = vpop.f32.mrb[132].mxu1  ;;  %s12183_s8 = scalar_lea.vmem %s16359_s28, 1536  ;;  %p12190_p0 = scmp.lt.s32.totalorder %s16359_s28, %s12188_s30 }
 0x28e   : > { %3441 = vst.msk [vmem:[%s12550_s7 + $0x58] sm:$0xff] %vm195_vm0, %v3429_v28  ;;  %9078 = vmatprep.mubr.f32.mxu1 %v16514_v35  ;;  %v15601_v28 = vld [vmem:[%s16409_s1 + $0x4e8] sm:$0xff]  ;;  %v3718_v15 = vadd.f32 %v16586_v0, %v3459_v12  ;;  %v15605_v5 = vadd.f32 %v16587_v41, %v4111_v33  ;;  %v4144_v47 = vld [vmem:[%s12550_s7 + $0x50] sm:$0xff]  ;;  %16588 = vst [vmem:[#allocation42_spill] sm:$0xff] %v15608_v50  ;;  %10239 = vmatmul.mubr.msk.f32.gmra.mrb[172].mxu0 %vm195_vm0, %v15467_v17  ;;  %v15621_v20 = vpop.f32.mrb[133].mxu1  ;;  %v16592_v38 = vunpack.i.h.bf16 %v15580_v59  ;;  %p12184_p11 = scmp.ne.s32.totalorder %s16359_s28, %s12183_s8  ;;  %p12191_p1 = scmp.lt.s32.totalorder %s12189_s9, %s12183_s8 }
 0x28f   : > { %4317 = vst [vmem:[%s12550_s7 + $0x48] sm:$0xff] %v15564_v22  ;;  %11269 = vmatprep.subr.bf16.mxu1 %v11268_v53  ;;  %v9567_v12 = vsel %vm673_vm2, %v16422_v60, %v16421_v48  ;;  %v16589_v41 = vld [vmem:[#allocation61_spill] sm:$0xff]  ;;  %v16590_v0 = vld [vmem:[#allocation7_spill] sm:$0xff]  ;;  %16591 = vst [vmem:[#allocation36_spill] sm:$0xff] %v15621_v20  ;;  %8851 = vmatprep.mubr.f32.mxu0 %v16514_v35  ;;  %v16593_v50 = vunpack.i.l.bf16 %v15580_v59 }
 0x290   : > { %v4113_v33 = vadd.f32 %v16589_v41, %v15479_v23  ;;  %v4308_v16 = vadd.f32 %v16590_v0, %v4142_v3  ;;  %11271 = vmatpush3.bf16.msra.mxu1 %v11268_v53  ;;  %v15625_v17 = vpop.permute.xlu0 %12161  ;;  %3730 = vst.msk [vmem:[%s12550_s7 + $0x28] sm:$0xff] %vm195_vm0, %v3718_v15  ;;  %4313 = vst [vmem:[%s12550_s7 + $0x18] sm:$0xff] %v15605_v5  ;;  %v3462_v23 = vld [vmem:[%s12550_s7 + $0x40] sm:$0xff]  ;;  %v16594_v3 = vld [vmem:[#allocation20_spill] sm:$0xff]  ;;  %11259 = vmatpush3.bf16.msra.mxu0 %v15524_v7  ;;  %p12185_p12 = pnand %p12184_p11, %p12320_p5  ;;  %p12192_p2 = por %p12191_p1, %p12190_p0 }
 0x291   : > { %v9569_v48 = vsel %vm673_vm2, %v16593_v50, %v16592_v38  ;;  %v4310_v41 = vadd.f32 %v16594_v3, %v4144_v47  ;;  %v15638_v0 = vpop.permute.xlu1 %12166  ;;  %10250 = vmatmul.mubr.msk.f32.gmra.mrb[174].mxu1 %vm195_vm0, %v15601_v28  ;;  %v16595_v60 = vld [vmem:[#allocation60_spill] sm:$0xff]  ;;  %v16596_v50 = vunpack.i.l.bf16 %v15432_v6  ;;  %11261 = vmatprep.subr.bf16.mxu0 %v11260_v2  ;;  %v10247_v7 = vld [vmem:[%s16409_s1 + $0x4f0] sm:$0xff]  ;;  %v16597_v15 = vld [vmem:[#allocation22_spill] sm:$0xff]  ;;  %v12148_v6 = vunpack.i.l.bf16 %v15535_v42 }
 0x292   : > { %v11276_v53 = vpack.c.bf16 %v9569_v48, %v9567_v12  ;;  %v3721_v20 = vadd.f32 %v16595_v60, %v3462_v23  ;;  %4316 = vst.msk [vmem:[%s12550_s7 + $0x38] sm:$0xff] %vm1868_vm8, %v4308_v16  ;;  %9084 = vmatprep.mubr.f32.mxu1 %v16514_v35  ;;  %v15654_v47 = vadd.f32 %v16597_v15, %v4113_v33  ;;  %v15658_v48 = vpop.f32.mrb[134].mxu1  ;;  %v12149_v16 = vunpack.i.h.bf16 %v15535_v42  ;;  %p12186_p13 = pneg %p12185_p12 }
 0x293   : > { %v9271_v38 = vsel %vm446_vm1, %v12133_v10, %v16596_v50  ;;  %4318 = vst.msk [vmem:[%s12550_s7 + $0x50] sm:$0xff] %vm1868_vm8, %v4310_v41  ;;  %16598 = vst [vmem:[#allocation46_spill] sm:$0xff] %v15658_v48  ;;  %v16599_v10 = vunpack.i.l.bf16 %v15441_v49  ;;  %10240 = vmatmul.mubr.msk.f32.gmra.mrb[174].mxu0 %vm195_vm0, %v15510_v36  ;;  %v16600_v2 = vunpack.i.h.bf16 %v15490_v25  ;;  %11273 = vmatprep.subr.bf16.mxu1 %v11272_v14  ;;  %v15672_v33 = vpop.f32.mrb[135].mxu1  ;;  %v12169_v3 = vunpack.i.h.bf16 %v15638_v0 }
 0x294   : > { %3733 = vst.msk [vmem:[%s12550_s7 + $0x40] sm:$0xff] %vm195_vm0, %v3721_v20  ;;  %16601 = vst [vmem:[#allocation57_spill] sm:$0xff] %v15672_v33  ;;  %v12168_v42 = vunpack.i.l.bf16 %v15638_v0  ;;  %10778 = vmatprep.mubr.msk.f32.mxu0 %vm195_vm0, %v15549_v8  ;;  %v12163_v49 = vunpack.i.l.bf16 %v15625_v17  ;;  %v16602_v36 = vunpack.i.h.bf16 %v15522_v1  ;;  %11275 = vmatpush3.bf16.msra.mxu1 %v11272_v14  ;;  %v16603_v20 = vld [vmem:[#allocation59_spill] sm:$0xff]  ;;  %v12164_v0 = vunpack.i.h.bf16 %v15625_v17  ;;  %v10248_v1 = vld [vmem:[%s16409_s1 + $0x4f8] sm:$0xff]  ;;  %v15692_v14 = vpop.f32.mrb[136].mxu1  ;;  %p12193_p3 = pnand %p12192_p2, %p12186_p13 }
 0x295   : > { %v9273_v60 = vsel %vm446_vm1, %v12134_v58, %v16599_v10  ;;  %v9276_v12 = vsel %vm446_vm1, %v12138_v56, %v16600_v2  ;;  %v3465_v23 = vld [vmem:[%s12550_s7 + $0x58] sm:$0xff]  ;;  %v12172_v58 = vpop.permute.xlu0 %12171  ;;  %4315 = vst [vmem:[%s12550_s7 + $0x30] sm:$0xff] %v15654_v47  ;;  %v12177_v50 = vpop.permute.xlu1 %12176  ;;  %10251 = vmatmul.mubr.msk.f32.gmra.mrb[176].mxu1 %vm195_vm0, %v10247_v7  ;;  %11277 = vmatprep.subr.bf16.mxu1 %v11276_v53  ;;  %v10257_v53 = vld [vmem:[%s16409_s1 + $0x500] sm:$0xff] }
 0x296   : > { %v9278_v25 = vsel %vm446_vm1, %v12143_v19, %v16602_v36  ;;  %v3724_v41 = vadd.f32 %v16603_v20, %v3465_v23  ;;  %v12174_v15 = vunpack.i.h.bf16 %v12172_v58  ;;  %v12173_v8 = vunpack.i.l.bf16 %v12172_v58  ;;  %9090 = vmatprep.mubr.f32.mxu1 %v16514_v35 }
 0x297   : > { %v11262_v10 = vpack.c.bf16 %v9273_v60, %v9271_v38  ;;  %v9275_v2 = vsel %vm446_vm1, %v12148_v6, %v12138_v56  ;;  %v9277_v23 = vsel %vm446_vm1, %v12149_v16, %v12143_v19  ;;  %10779 = vmatmul.mubr.msk.f32.vlgmr.msra.gmra.mrb[176].mxu0 %vm195_vm0, %v15601_v28  ;;  %v11264_v17 = vpack.c.bf16 %v9278_v25, %v9276_v12  ;;  %v15703_v38 = vpop.f32.mrb[134].mxu0  ;;  %v15705_v60 = vpop.f32.mrb[137].mxu1 }
 0x298   : > { %3736 = vst.msk [vmem:[%s12550_s7 + $0x58] sm:$0xff] %vm195_vm0, %v3724_v41  ;;  %v16604_v36 = vunpack.i.l.bf16 %v15570_v29  ;;  %10781 = vmatprep.mubr.msk.f32.mxu0 %vm195_vm0, %v10247_v7  ;;  %v9571_v28 = vsel %vm673_vm2, %v12168_v42, %v12169_v3  ;;  %v9573_v16 = vsel %vm673_vm2, %v12173_v8, %v12174_v15  ;;  %v15715_v6 = vpop.f32.mrb[135].mxu0  ;;  %v12179_v12 = vunpack.i.h.bf16 %v12177_v50 }
 0x299   : > { %11263 = vmatpush1.bf16.msra.mxu0 %v11262_v10  ;;  %v15711_v19 = vpop.permute.xlu0 %4453  ;;  %16605 = vst [vmem:[#allocation55_spill] sm:$0xff] %v15715_v6  ;;  %v12178_v25 = vunpack.i.l.bf16 %v12177_v50  ;;  %v16606_v58 = vunpack.i.l.bf16 %v15580_v59  ;;  %v15720_v41 = vpop.permute.xlu1 %4455  ;;  %10252 = vmatmul.mubr.msk.f32.gmra.mrb[178].mxu1 %vm195_vm0, %v10248_v1  ;;  %v11266_v10 = vpack.c.bf16 %v9277_v23, %v9275_v2  ;;  %v10258_v50 = vld [vmem:[%s16409_s1 + $0x508] sm:$0xff]  ;;  %v11280_v2 = vpack.c.bf16 %v9573_v16, %v9571_v28 }
 0x29a   : > { %v9566_v56 = vsel %vm673_vm2, %v12163_v49, %v16604_v36  ;;  %v4329_v49 = vld [vmem:[%s12550_s7 + $0x10] sm:$0xff]  ;;  %11265 = vmatprep.subr.bf16.mxu0 %v11264_v17  ;;  %v4485_v7 = vadd.f32 %v15711_v19, %v15475_v4  ;;  %10792 = vmatprep.mubr.msk.f32.mxu1 %vm195_vm0, %v10257_v53  ;;  %v16608_v17 = vunpack.i.h.bf16 %v15580_v59  ;;  %v15743_v23 = vpop.f32.mrb[136].mxu0 }
 0x29b   : > { %v9568_v20 = vsel %vm673_vm2, %v12164_v0, %v16606_v58  ;;  %v4487_v36 = vadd.f32 %v15720_v41, %v4329_v49  ;;  %v15731_v0 = vpop.f32.mrb[138].mxu1  ;;  %v16607_v58 = vunpack.i.h.bf16 %v15570_v29  ;;  %10782 = vmatmul.mubr.msk.f32.gmra.mrb[178].mxu0 %vm195_vm0, %v10248_v1  ;;  %v10259_v4 = vld [vmem:[%s16409_s1 + $0x510] sm:$0xff]  ;;  %v15750_v29 = vpop.f32.mrb[137].mxu0  ;;  %v9570_v59 = vsel %vm673_vm2, %v12178_v25, %v12168_v42 }
 0x29c   : > { %4497 = vst.msk [vmem:[%s12550_s7] sm:$0xff] %vm384_vm6, %v4485_v7  ;;  %v15745_v49 = vpop.f32.mrb[139].mxu1  ;;  %v11278_v6 = vpack.c.bf16 %v9568_v20, %v9566_v56  ;;  %9367 = vmatprep.mubr.f32.mxu0 %v16514_v35  ;;  %16610 = vst [vmem:[#allocation37_spill] sm:$0xff] %v15750_v29  ;;  %v9572_v1 = vsel %vm673_vm2, %v12179_v12, %v12173_v8  ;;  %v11288_v7 = vpack.c.bf16 %v12174_v15, %v12169_v3  ;;  %v10260_v56 = vld [vmem:[%s16409_s1 + $0x518] sm:$0xff]  ;;  %v10269_v12 = vld [vmem:[%s16409_s1 + $0x520] sm:$0xff] }
 0x29d   : > { %v11284_v48 = vpack.c.bf16 %v16608_v17, %v16607_v58  ;;  %16609 = vst [vmem:[#allocation34_spill] sm:$0xff] %v15745_v49  ;;  %4499 = vst.msk [vmem:[%s12550_s7 + $0x10] sm:$0xff] %vm195_vm0, %v4487_v36  ;;  %11267 = vmatpush1.bf16.msra.mxu0 %v11266_v10  ;;  %10793 = vmatmul.mubr.msk.f32.vlgmr.msra.gmra.mrb[180].mxu1 %vm195_vm0, %v10258_v50  ;;  %v15759_v28 = vpop.permute.xlu0 %4679  ;;  %v15761_v16 = vpop.f32.mrb[140].mxu1  ;;  %v11282_v15 = vpack.c.bf16 %v9572_v1, %v9570_v59  ;;  %v4332_v36 = vld [vmem:[%s12550_s7 + $0x28] sm:$0xff] }
 0x29e   : > { %11279 = vmatpush1.bf16.msra.mxu1 %v11278_v6  ;;  %10795 = vmatprep.mubr.msk.f32.mxu1 %vm195_vm0, %v10259_v4  ;;  %v15764_v42 = vpop.permute.xlu1 %4681  ;;  %v15766_v3 = vpop.f32.mrb[138].mxu0 }
 0x29f   : > { %11285 = vmatprep.subr.bf16.mxu0 %v11284_v48  ;;  %11281 = vmatprep.subr.bf16.mxu1 %v11280_v2  ;;  %v15769_v8 = vpop.f32.mrb[139].mxu0  ;;  %v15771_v6 = vpop.f32.mrb[141].mxu1 }
 0x2a0   : > { %10261 = vmatmul.mubr.msk.f32.vlgmr.msra.gmra.mrb[180].mxu0 %vm195_vm0, %v10257_v53  ;;  %16611 = vst [vmem:[#allocation45_spill] sm:$0xff] %v15769_v8  ;;  %16612 = vst [vmem:[#allocation40_spill] sm:$0xff] %v15771_v6  ;;  %v15781_v20 = vpop.f32.mrb[142].mxu1 }
 0x2a1   : > { %9373 = vmatprep.mubr.f32.mxu0 %v16514_v35  ;;  %11287 = vmatpush3.bf16.msra.mxu0 %v11284_v48  ;;  %v15779_v25 = vpop.permute.xlu0 %4457  ;;  %v15791_v2 = vpop.f32.mrb[140].mxu0 }
 0x2a2   : > { %10796 = vmatmul.mubr.msk.f32.gmra.mrb[182].mxu1 %vm195_vm0, %v10260_v56  ;;  %11289 = vmatprep.subr.bf16.mxu0 %v11288_v7  ;;  %v15785_v10 = vpop.permute.xlu1 %4459  ;;  %v4488_v17 = vadd.f32 %v15779_v25, %v15605_v5  ;;  %16613 = vst [vmem:[#allocation41_spill] sm:$0xff] %v15791_v2  ;;  %v10270_v5 = vld [vmem:[%s16409_s1 + $0x528] sm:$0xff] }
 0x2a3   : > { %11283 = vmatpush1.bf16.msra.mxu1 %v11282_v15  ;;  %v4517_v53 = vld [vmem:[%s12550_s7] sm:$0xff]  ;;  %9662 = vmatprep.mubr.f32.mxu1 %v16514_v35  ;;  %v4490_v1 = vadd.f32 %v15785_v10, %v4332_v36  ;;  %v15796_v15 = vpop.f32.mrb[141].mxu0  ;;  %v4328_v2 = vld [vmem:[%s12550_s7 + $0x8] sm:$0xff] }
 0x2a4   : > { %v4519_v48 = vld [vmem:[%s12550_s7 + $0x10] sm:$0xff]  ;;  %10262 = vmatmul.mubr.msk.f32.gmra.mrb[182].mxu0 %vm195_vm0, %v10258_v50  ;;  %v4711_v58 = vadd.f32 %v15759_v28, %v4517_v53  ;;  %16614 = vst [vmem:[#allocation51_spill] sm:$0xff] %v15796_v15  ;;  %v15798_v50 = vpop.f32.mrb[143].mxu1  ;;  %4500 = vst.msk [vmem:[%s12550_s7 + $0x18] sm:$0xff] %vm384_vm6, %v4488_v17  ;;  %v4335_v17 = vld [vmem:[%s12550_s7 + $0x40] sm:$0xff] }
 0x2a5   : > { %v4713_v59 = vadd.f32 %v15764_v42, %v4519_v48  ;;  %9379 = vmatprep.mubr.f32.mxu0 %v16514_v35  ;;  %11291 = vmatpush3.bf16.msra.mxu0 %v11288_v7  ;;  %16615 = vst [vmem:[#allocation49_spill] sm:$0xff] %v15798_v50  ;;  %4502 = vst.msk [vmem:[%s12550_s7 + $0x28] sm:$0xff] %vm195_vm0, %v4490_v1  ;;  %v15813_v7 = vpop.permute.xlu0 %4683  ;;  %v15818_v48 = vpop.f32.mrb[142].mxu0 }
 0x2a6   : > { %4723 = vst.msk [vmem:[%s12550_s7] sm:$0xff] %vm384_vm6, %v4711_v58  ;;  %10273 = vmatmul.mubr.msk.f32.vlgmr.msra.gmra.mrb[184].mxu1 %vm195_vm0, %v10269_v12  ;;  %v15816_v53 = vpop.permute.xlu1 %4685  ;;  %16616 = vst [vmem:[#allocation38_spill] sm:$0xff] %v15818_v48  ;;  %v15821_v36 = vpop.f32.mrb[143].mxu0  ;;  %v10271_v58 = vld [vmem:[%s16409_s1 + $0x530] sm:$0xff] }
 0x2a7   : > { %4725 = vst.msk [vmem:[%s12550_s7 + $0x10] sm:$0xff] %vm195_vm0, %v4713_v59  ;;  %9668 = vmatprep.mubr.f32.mxu1 %v16514_v35  ;;  %16617 = vst [vmem:[#allocation44_spill] sm:$0xff] %v15821_v36 }
 0x2a8   : > { %10263 = vmatmul.mubr.msk.f32.gmra.mrb[184].mxu0 %vm195_vm0, %v10259_v4 }
 0x2a9   : > { %9385 = vmatprep.mubr.f32.mxu0 %v16514_v35 }
 0x2aa   : > { %10274 = vmatmul.mubr.msk.f32.gmra.mrb[186].mxu1 %vm195_vm0, %v10270_v5  ;;  %v15829_v4 = vpop.permute.xlu1 %4463  ;;  %v4462_v48 = vpop.permute.xlu0 %4461 }
 0x2ab   : > { %9674 = vmatprep.mubr.f32.mxu1 %v16514_v35  ;;  %v4493_v59 = vadd.f32 %v15829_v4, %v4335_v17  ;;  %v4520_v1 = vld [vmem:[%s12550_s7 + $0x18] sm:$0xff]  ;;  %v4491_v8 = vadd.f32 %v4462_v48, %v15654_v47 }
 0x2ac   : > { %10264 = vmatmul.mubr.msk.f32.gmra.mrb[186].mxu0 %vm195_vm0, %v10260_v56  ;;  %v4522_v50 = vld [vmem:[%s12550_s7 + $0x28] sm:$0xff]  ;;  %v4714_v36 = vadd.f32 %v15813_v7, %v4520_v1  ;;  %v10272_v17 = vld [vmem:[%s16409_s1 + $0x538] sm:$0xff] }
 0x2ad   : > { %10806 = vmatprep.mubr.msk.f32.mxu0 %vm195_vm0, %v10269_v12  ;;  %v4716_v56 = vadd.f32 %v15816_v53, %v4522_v50  ;;  %4505 = vst.msk [vmem:[%s12550_s7 + $0x40] sm:$0xff] %vm195_vm0, %v4493_v59  ;;  %v4338_v47 = vld [vmem:[%s12550_s7 + $0x58] sm:$0xff]  ;;  %v4743_v49 = vld [vmem:[%s12550_s7] sm:$0xff] }
 0x2ae   : > { %10275 = vmatmul.mubr.msk.f32.gmra.mrb[188].mxu1 %vm195_vm0, %v10271_v58  ;;  %4726 = vst.msk [vmem:[%s12550_s7 + $0x18] sm:$0xff] %vm384_vm6, %v4714_v36  ;;  %v4690_v12 = vpop.permute.xlu1 %4689  ;;  %4503 = vst.msk [vmem:[%s12550_s7 + $0x30] sm:$0xff] %vm384_vm6, %v4491_v8  ;;  %v4745_v6 = vld [vmem:[%s12550_s7 + $0x10] sm:$0xff] }
 0x2af   : > { %9680 = vmatprep.mubr.f32.mxu1 %v16514_v35  ;;  %4728 = vst.msk [vmem:[%s12550_s7 + $0x28] sm:$0xff] %vm195_vm0, %v4716_v56 }
 0x2b0   : > { %10807 = vmatmul.mubr.msk.f32.vlgmr.msra.gmra.mrb[188].mxu0 %vm195_vm0, %v10270_v5 }
 0x2b1   : > { %10809 = vmatprep.mubr.msk.f32.mxu0 %vm195_vm0, %v10271_v58 }
 0x2b2   : > { %10276 = vmatmul.mubr.msk.f32.gmra.mrb[190].mxu1 %vm195_vm0, %v10272_v17  ;;  %v15856_v35 = vpop.permute.xlu1 %4467 }
 0x2b3   : > { %v4496_v50 = vadd.f32 %v15856_v35, %v4338_v47  ;;  %v4688_v36 = vpop.permute.xlu0 %4687 }
 0x2b4   : > { %10810 = vmatmul.mubr.msk.f32.gmra.mrb[190].mxu0 %vm195_vm0, %v10272_v17  ;;  %v4525_v5 = vld [vmem:[%s12550_s7 + $0x40] sm:$0xff] }
 0x2b5   : > { %v4719_v8 = vadd.f32 %v4690_v12, %v4525_v5  ;;  %4508 = vst.msk [vmem:[%s12550_s7 + $0x58] sm:$0xff] %vm195_vm0, %v4496_v50  ;;  %v4523_v59 = vld [vmem:[%s12550_s7 + $0x30] sm:$0xff]  ;;  %v4469_v50 = vsel %vm355_vm7, %v15711_v19, %v15720_v41 }
 0x2b6   : > { %v4717_v58 = vadd.f32 %v4688_v36, %v4523_v59  ;;  %v15866_v1 = vpop.permute.xlu1 %4693  ;;  %v4486_v15 = vadd.f32 %v4469_v50, %v4328_v2  ;;  %v4748_v41 = vld [vmem:[%s12550_s7 + $0x28] sm:$0xff] }
 0x2b7   : > { %4731 = vst.msk [vmem:[%s12550_s7 + $0x40] sm:$0xff] %vm195_vm0, %v4719_v8 }
 0x2b8   : > { %4729 = vst.msk [vmem:[%s12550_s7 + $0x30] sm:$0xff] %vm384_vm6, %v4717_v58  ;;  %v4466_v56 = vpop.permute.xlu0 %4465 }
 0x2b9   : > { %v4494_v17 = vadd.f32 %v4466_v56, %v15564_v22  ;;  %v4695_v22 = vsel %vm355_vm7, %v15759_v28, %v15764_v42  ;;  %v4331_v28 = vld [vmem:[%s12550_s7 + $0x20] sm:$0xff]  ;;  %v4696_v42 = vsel %vm355_vm7, %v15813_v7, %v15816_v53 }
 0x2ba   : > { %v4908_v47 = vpop.permute.xlu1 %4907 }
 0x2bb   : > { %4506 = vst.msk [vmem:[%s12550_s7 + $0x48] sm:$0xff] %vm384_vm6, %v4494_v17  ;;  %v4939_v8 = vadd.f32 %v4908_v47, %v4745_v6  ;;  %v4470_v6 = vsel %vm355_vm7, %v15779_v25, %v15785_v10 }
 0x2bc   : > { %v4528_v5 = vld [vmem:[%s12550_s7 + $0x58] sm:$0xff]  ;;  %v4692_v58 = vpop.permute.xlu0 %4691 }
 0x2bd   : > { %v4722_v59 = vadd.f32 %v15866_v1, %v4528_v5  ;;  %4951 = vst.msk [vmem:[%s12550_s7 + $0x10] sm:$0xff] %vm195_vm0, %v4939_v8  ;;  %v4712_v5 = vadd.f32 %v4695_v22, %v4486_v15  ;;  %v4489_v8 = vadd.f32 %v4470_v6, %v4331_v28  ;;  %v4471_v22 = vsel %vm355_vm7, %v4462_v48, %v15829_v4  ;;  %v4334_v6 = vld [vmem:[%s12550_s7 + $0x38] sm:$0xff] }
 0x2be   : > { %v4912_v19 = vpop.permute.xlu1 %4911 }
 0x2bf   : > { %4734 = vst.msk [vmem:[%s12550_s7 + $0x58] sm:$0xff] %vm195_vm0, %v4722_v59  ;;  %v4942_v17 = vadd.f32 %v4912_v19, %v4748_v41  ;;  %v4751_v59 = vld [vmem:[%s12550_s7 + $0x40] sm:$0xff]  ;;  %v4715_v53 = vadd.f32 %v4696_v42, %v4489_v8 }
 0x2c0   : > { %v4906_v29 = vpop.permute.xlu0 %4905 }
 0x2c1   : > { %4954 = vst.msk [vmem:[%s12550_s7 + $0x28] sm:$0xff] %vm195_vm0, %v4942_v17  ;;  %v4921_v2 = vsel %vm355_vm7, %v4906_v29, %v4908_v47  ;;  %v4937_v50 = vadd.f32 %v4906_v29, %v4743_v49  ;;  %v16618_v47 = vld [vmem:[#allocation21_spill] sm:$0xff]  ;;  %v4746_v29 = vld [vmem:[%s12550_s7 + $0x18] sm:$0xff] }
 0x2c2   : > { %v4526_v25 = vld [vmem:[%s12550_s7 + $0x48] sm:$0xff]  ;;  %v4938_v10 = vadd.f32 %v4921_v2, %v4712_v5  ;;  %v4916_v15 = vpop.permute.xlu1 %4915  ;;  %v4697_v5 = vsel %vm355_vm7, %v4688_v36, %v4690_v12  ;;  %v4492_v2 = vadd.f32 %v4471_v22, %v4334_v6  ;;  %v4472_v12 = vsel %vm355_vm7, %v4466_v56, %v15856_v35  ;;  %v4749_v22 = vld [vmem:[%s12550_s7 + $0x30] sm:$0xff] }
 0x2c3   : > { %v4720_v41 = vadd.f32 %v4692_v58, %v4526_v25  ;;  %4949 = vst.msk [vmem:[%s12550_s7] sm:$0xff] %vm384_vm6, %v4937_v50  ;;  %v4945_v7 = vadd.f32 %v4916_v15, %v4751_v59  ;;  %v16619_v59 = vld [vmem:[#allocation19_spill] sm:$0xff]  ;;  %v4698_v35 = vsel %vm355_vm7, %v4692_v58, %v15866_v1  ;;  %v16620_v1 = vld [vmem:[#allocation13_spill] sm:$0xff] }
 0x2c4   : > { %v4975_v17 = vld [vmem:[%s12550_s7 + $0x10] sm:$0xff]  ;;  %v5177_v33 = vadd.f32 %v16618_v47, %v4938_v10  ;;  %v4910_v49 = vpop.permute.xlu0 %4909  ;;  %v4718_v36 = vadd.f32 %v4697_v5, %v4492_v2 }
 0x2c5   : > { %v5178_v28 = vadd.f32 %v15022_v62, %v4975_v17  ;;  %4732 = vst.msk [vmem:[%s12550_s7 + $0x48] sm:$0xff] %vm384_vm6, %v4720_v41  ;;  %v4922_v4 = vsel %vm355_vm7, %v4910_v49, %v4912_v19  ;;  %v4940_v42 = vadd.f32 %v4910_v49, %v4746_v29  ;;  %v4337_v41 = vld [vmem:[%s12550_s7 + $0x50] sm:$0xff] }
 0x2c6   : > { %4957 = vst.msk [vmem:[%s12550_s7 + $0x40] sm:$0xff] %vm195_vm0, %v4945_v7  ;;  %v4754_v48 = vld [vmem:[%s12550_s7 + $0x58] sm:$0xff]  ;;  %v5472_v50 = vadd.f32 %v15086_v37, %v5177_v33  ;;  %v4920_v8 = vpop.permute.xlu1 %4919  ;;  %v4941_v25 = vadd.f32 %v4922_v4, %v4715_v53 }
 0x2c7   : > { %5190 = vst.msk [vmem:[%s12550_s7 + $0x10] sm:$0xff] %vm195_vm0, %v5178_v28  ;;  %v4948_v62 = vadd.f32 %v4920_v8, %v4754_v48 }
 0x2c8   : > { %4952 = vst.msk [vmem:[%s12550_s7 + $0x18] sm:$0xff] %vm384_vm6, %v4940_v42  ;;  %v4978_v19 = vld [vmem:[%s12550_s7 + $0x28] sm:$0xff]  ;;  %v5767_v10 = vadd.f32 %v15134_v44, %v5472_v50  ;;  %v5180_v37 = vadd.f32 %v16619_v59, %v4941_v25  ;;  %v4914_v33 = vpop.permute.xlu0 %4913  ;;  %v4495_v44 = vadd.f32 %v4472_v12, %v4337_v41 }
 0x2c9   : > { %v5181_v56 = vadd.f32 %v15017_v34, %v4978_v19  ;;  %4960 = vst.msk [vmem:[%s12550_s7 + $0x58] sm:$0xff] %vm195_vm0, %v4948_v62  ;;  %v4923_v7 = vsel %vm355_vm7, %v4914_v33, %v4916_v15  ;;  %v4943_v53 = vadd.f32 %v4914_v33, %v4749_v22  ;;  %v16621_v12 = vld [vmem:[#allocation30_spill] sm:$0xff]  ;;  %v16627_v22 = vld [vmem:[#allocation68_spill] sm:$0xff] }
 0x2ca   : > { %v4973_v17 = vld [vmem:[%s12550_s7] sm:$0xff]  ;;  %5779 = vst [vmem:[%s12550_s7 + $0x8] sm:$0xff] %v5767_v10  ;;  %v5969_v47 = vadd.f32 %v15234_v46, %v5767_v10  ;;  %v5475_v49 = vadd.f32 %v15116_v24, %v5180_v37  ;;  %v4944_v29 = vadd.f32 %v4923_v7, %v4718_v36  ;;  %v4721_v58 = vadd.f32 %v4698_v35, %v4495_v44  ;;  %v16624_v19 = vld [vmem:[#allocation10_spill] sm:$0xff]  ;;  %v16626_v37 = vld [vmem:[#allocation27_spill] sm:$0xff] }
 0x2cb   : > { %5193 = vst.msk [vmem:[%s12550_s7 + $0x28] sm:$0xff] %vm195_vm0, %v5181_v56  ;;  %v5176_v34 = vadd.f32 %v16620_v1, %v4973_v17  ;;  %v16629_v17 = vld [vmem:[#allocation18_spill] sm:$0xff] }
 0x2cc   : > { %4955 = vst.msk [vmem:[%s12550_s7 + $0x30] sm:$0xff] %vm384_vm6, %v4943_v53  ;;  %v5770_v6 = vadd.f32 %v15157_v51, %v5475_v49  ;;  %v5183_v46 = vadd.f32 %v15007_v30, %v4944_v29  ;;  %v4918_v24 = vpop.permute.xlu0 %4917  ;;  %v4752_v5 = vld [vmem:[%s12550_s7 + $0x48] sm:$0xff]  ;;  %v16628_v53 = vld [vmem:[#allocation17_spill] sm:$0xff] }
 0x2cd   : > { %5977 = vst.msk [vmem:[%s12550_s7 + $0x8] sm:$0xff] %vm1868_vm8, %v5969_v47  ;;  %v4981_v15 = vld [vmem:[%s12550_s7 + $0x40] sm:$0xff]  ;;  %v5471_v28 = vadd.f32 %v15080_v54, %v5176_v34  ;;  %v4924_v4 = vsel %vm355_vm7, %v4918_v24, %v4920_v8  ;;  %v4946_v42 = vadd.f32 %v4918_v24, %v4752_v5 }
 0x2ce   : > { %v5184_v48 = vadd.f32 %v15054_v45, %v4981_v15  ;;  %v5214_v2 = vld [vmem:[%s12550_s7 + $0x10] sm:$0xff]  ;;  %5782 = vst [vmem:[%s12550_s7 + $0x20] sm:$0xff] %v5770_v6  ;;  %v5971_v51 = vadd.f32 %v15260_v11, %v5770_v6  ;;  %v5478_v30 = vadd.f32 %v15143_v26, %v5183_v46  ;;  %v4947_v25 = vadd.f32 %v4924_v4, %v4721_v58  ;;  %v16622_v45 = vld [vmem:[#allocation6_spill] sm:$0xff]  ;;  %v16623_v11 = vld [vmem:[#allocation9_spill] sm:$0xff] }
 0x2cf   : > { %v4976_v50 = vld [vmem:[%s12550_s7 + $0x18] sm:$0xff]  ;;  %v5473_v54 = vadd.f32 %v15072_v52, %v5214_v2  ;;  %v5766_v62 = vadd.f32 %v16621_v12, %v5471_v28  ;;  %4958 = vst.msk [vmem:[%s12550_s7 + $0x48] sm:$0xff] %vm384_vm6, %v4946_v42  ;;  %v16630_v29 = vld [vmem:[#allocation25_spill] sm:$0xff]  ;;  %v16632_v15 = vld [vmem:[#allocation66_spill] sm:$0xff] }
 0x2d0   : > { %5196 = vst.msk [vmem:[%s12550_s7 + $0x40] sm:$0xff] %vm195_vm0, %v5184_v48  ;;  %v5179_v8 = vadd.f32 %v16622_v45, %v4976_v50  ;;  %v4984_v36 = vld [vmem:[%s12550_s7 + $0x58] sm:$0xff]  ;;  %v5773_v26 = vadd.f32 %v16623_v11, %v5478_v30  ;;  %v5186_v10 = vadd.f32 %v16624_v19, %v4947_v25  ;;  %v16631_v34 = vld [vmem:[#allocation29_spill] sm:$0xff]  ;;  %v16633_v46 = vld [vmem:[#allocation67_spill] sm:$0xff] }
 0x2d1   : > { %5979 = vst.msk [vmem:[%s12550_s7 + $0x20] sm:$0xff] %vm1868_vm8, %v5971_v51  ;;  %v16625_v52 = vld [vmem:[#allocation24_spill] sm:$0xff]  ;;  %v5968_v41 = vadd.f32 %v16627_v22, %v5766_v62  ;;  %v16635_v28 = vld [vmem:[#allocation23_spill] sm:$0xff]  ;;  %v16636_v30 = vld [vmem:[#allocation5_spill] sm:$0xff] }
 0x2d2   : > { %5485 = vst.msk [vmem:[%s12550_s7 + $0x10] sm:$0xff] %vm195_vm0, %v5473_v54  ;;  %v5187_v59 = vadd.f32 %v16625_v52, %v4984_v36  ;;  %v5474_v33 = vadd.f32 %v16626_v37, %v5179_v8  ;;  %v5217_v35 = vld [vmem:[%s12550_s7 + $0x28] sm:$0xff]  ;;  %5785 = vst [vmem:[%s12550_s7 + $0x38] sm:$0xff] %v5773_v26  ;;  %v5973_v7 = vadd.f32 %v15292_v55, %v5773_v26  ;;  %v16634_v55 = vld [vmem:[#allocation63_spill] sm:$0xff] }
 0x2d3   : > { %v4979_v56 = vld [vmem:[%s12550_s7 + $0x30] sm:$0xff]  ;;  %v5481_v44 = vadd.f32 %v16628_v53, %v5186_v10  ;;  %v5476_v47 = vadd.f32 %v16629_v17, %v5217_v35  ;;  %v6162_v6 = vadd.f32 %v16632_v15, %v5968_v41  ;;  %v16637_v12 = vld [vmem:[#allocation26_spill] sm:$0xff]  ;;  %v16638_v45 = vld [vmem:[#allocation12_spill] sm:$0xff] }
 0x2d4   : > { %v5997_v49 = vld [vmem:[%s12550_s7 + $0x8] sm:$0xff]  ;;  %5199 = vst.msk [vmem:[%s12550_s7 + $0x58] sm:$0xff] %vm195_vm0, %v5187_v59  ;;  %v5769_v1 = vadd.f32 %v16630_v29, %v5474_v33  ;;  %v5182_v58 = vadd.f32 %v16631_v34, %v4979_v56  ;;  %v16639_v11 = vld [vmem:[#allocation35_spill] sm:$0xff]  ;;  %v16641_v10 = vld [vmem:[#allocation16_spill] sm:$0xff] }
 0x2d5   : > { %v6163_v24 = vadd.f32 %v16633_v46, %v5997_v49  ;;  %5981 = vst.msk [vmem:[%s12550_s7 + $0x38] sm:$0xff] %vm1868_vm8, %v5973_v7  ;;  %v5776_v5 = vadd.f32 %v16634_v55, %v5481_v44  ;;  %v6356_v4 = vadd.f32 %v15354_v21, %v6162_v6  ;;  %v16640_v26 = vld [vmem:[#allocation31_spill] sm:$0xff]  ;;  %v16642_v33 = vld [vmem:[#allocation14_spill] sm:$0xff]  ;;  %v16645_v53 = vld [vmem:[#allocation69_spill] sm:$0xff] }
 0x2d6   : > { %5488 = vst.msk [vmem:[%s12550_s7 + $0x28] sm:$0xff] %vm195_vm0, %v5476_v47  ;;  %v5477_v48 = vadd.f32 %v16635_v28, %v5182_v58  ;;  %v5970_v42 = vadd.f32 %v15253_v40, %v5769_v1  ;;  %v4982_v50 = vld [vmem:[%s12550_s7 + $0x48] sm:$0xff]  ;;  %v16644_v7 = vld [vmem:[#allocation39_spill] sm:$0xff]  ;;  %v16650_v28 = vld [vmem:[#allocation65_spill] sm:$0xff] }
 0x2d7   : > { %6171 = vst.msk [vmem:[%s12550_s7 + $0x8] sm:$0xff] %vm1868_vm8, %v6163_v24  ;;  %v5220_v2 = vld [vmem:[%s12550_s7 + $0x40] sm:$0xff]  ;;  %5788 = vst [vmem:[%s12550_s7 + $0x50] sm:$0xff] %v5776_v5  ;;  %v5975_v51 = vadd.f32 %v15326_v18, %v5776_v5  ;;  %v5185_v21 = vadd.f32 %v16638_v45, %v4982_v50  ;;  %v7058_v8 = vadd.f32 %v15561_v43, %v6356_v4  ;;  %v16643_v35 = vld [vmem:[#allocation62_spill] sm:$0xff] }
 0x2d8   : > { %v5479_v25 = vadd.f32 %v16636_v30, %v5220_v2  ;;  %v5999_v54 = vld [vmem:[%s12550_s7 + $0x20] sm:$0xff]  ;;  %v5772_v62 = vadd.f32 %v16637_v12, %v5477_v48  ;;  %v6164_v18 = vadd.f32 %v16639_v11, %v5970_v42  ;;  %v16647_v1 = vld [vmem:[#allocation50_spill] sm:$0xff]  ;;  %v16648_v46 = vld [vmem:[#allocation47_spill] sm:$0xff] }
 0x2d9   : > { %v6165_v40 = vadd.f32 %v15250_v57, %v5999_v54  ;;  %5983 = vst.msk [vmem:[%s12550_s7 + $0x50] sm:$0xff] %vm1868_vm8, %v5975_v51  ;;  %v5509_v36 = vld [vmem:[%s12550_s7 + $0x10] sm:$0xff]  ;;  %v5480_v19 = vadd.f32 %v16640_v26, %v5185_v21  ;;  %v16018_v43 = vadd.f32 %v15692_v14, %v7058_v8  ;;  %v16651_v30 = vld [vmem:[#allocation64_spill] sm:$0xff] }
 0x2da   : > { %5491 = vst.msk [vmem:[%s12550_s7 + $0x40] sm:$0xff] %vm195_vm0, %v5479_v25  ;;  %v5768_v52 = vadd.f32 %v16641_v10, %v5509_v36  ;;  %v5972_v59 = vadd.f32 %v15285_v31, %v5772_v62  ;;  %v6358_v37 = vadd.f32 %v15383_v9, %v6164_v18  ;;  %v16646_v9 = vld [vmem:[#allocation32_spill] sm:$0xff]  ;;  %v16649_v24 = vld [vmem:[#allocation43_spill] sm:$0xff] }
 0x2db   : > { %v5223_v57 = vld [vmem:[%s12550_s7 + $0x58] sm:$0xff]  ;;  %6173 = vst.msk [vmem:[%s12550_s7 + $0x20] sm:$0xff] %vm1868_vm8, %v6165_v40  ;;  %v5775_v56 = vadd.f32 %v16643_v35, %v5480_v19 }
 0x2dc   : > { %v5482_v22 = vadd.f32 %v16642_v33, %v5223_v57  ;;  %v6001_v41 = vld [vmem:[%s12550_s7 + $0x38] sm:$0xff]  ;;  %5780 = vst.msk [vmem:[%s12550_s7 + $0x10] sm:$0xff] %vm195_vm0, %v5768_v52  ;;  %v6166_v31 = vadd.f32 %v16644_v7, %v5972_v59  ;;  %v7061_v17 = vadd.f32 %v15703_v38, %v6358_v37 }
 0x2dd   : > { %v6167_v14 = vadd.f32 %v16645_v53, %v6001_v41  ;;  %v5512_v44 = vld [vmem:[%s12550_s7 + $0x28] sm:$0xff]  ;;  %v5974_v34 = vadd.f32 %v16647_v1, %v5775_v56 }
 0x2de   : > { %5494 = vst.msk [vmem:[%s12550_s7 + $0x58] sm:$0xff] %vm195_vm0, %v5482_v22  ;;  %v5771_v47 = vadd.f32 %v16646_v9, %v5512_v44  ;;  %v6191_v49 = vld [vmem:[%s12550_s7 + $0x8] sm:$0xff]  ;;  %v6360_v29 = vadd.f32 %v15410_v61, %v6166_v31  ;;  %v16043_v15 = vadd.f32 %v15731_v0, %v7061_v17 }
 0x2df   : > { %6175 = vst.msk [vmem:[%s12550_s7 + $0x38] sm:$0xff] %vm1868_vm8, %v6167_v14  ;;  %v6357_v58 = vadd.f32 %v15362_v27, %v6191_v49  ;;  %v6168_v61 = vadd.f32 %v16648_v46, %v5974_v34 }
 0x2e0   : > { %v6003_v38 = vld [vmem:[%s12550_s7 + $0x50] sm:$0xff]  ;;  %5783 = vst.msk [vmem:[%s12550_s7 + $0x28] sm:$0xff] %vm195_vm0, %v5771_v47  ;;  %v7064_v6 = vadd.f32 %v15743_v23, %v6360_v29 }
 0x2e1   : > { %v6169_v55 = vadd.f32 %v16649_v24, %v6003_v38  ;;  %6365 = vst.msk [vmem:[%s12550_s7 + $0x8] sm:$0xff] %vm1868_vm8, %v6357_v58  ;;  %v5515_v5 = vld [vmem:[%s12550_s7 + $0x40] sm:$0xff]  ;;  %v6362_v48 = vadd.f32 %v15453_v13, %v6168_v61 }
 0x2e2   : > { %v6193_v27 = vld [vmem:[%s12550_s7 + $0x20] sm:$0xff]  ;;  %v5774_v0 = vadd.f32 %v16650_v28, %v5515_v5  ;;  %v16058_v4 = vadd.f32 %v15761_v16, %v7064_v6 }
 0x2e3   : > { %6177 = vst.msk [vmem:[%s12550_s7 + $0x50] sm:$0xff] %vm1868_vm8, %v6169_v55  ;;  %v6359_v23 = vadd.f32 %v15392_v63, %v6193_v27  ;;  %v7067_v42 = vadd.f32 %v15766_v3, %v6362_v48  ;;  %v6377_v16 = vld [vmem:[%s12550_s7 + $0x10] sm:$0xff] }
 0x2e4   : > { %5786 = vst.msk [vmem:[%s12550_s7 + $0x40] sm:$0xff] %vm195_vm0, %v5774_v0  ;;  %v6493_v2 = vpop.permute.xlu1 %6492 }
 0x2e5   : > { %6367 = vst.msk [vmem:[%s12550_s7 + $0x20] sm:$0xff] %vm1868_vm8, %v6359_v23  ;;  %v5518_v50 = vld [vmem:[%s12550_s7 + $0x58] sm:$0xff]  ;;  %v6491_v13 = vpop.permute.xlu0 %6490  ;;  %v16073_v63 = vadd.f32 %v15781_v20, %v7067_v42 }
 0x2e6   : > { %v6195_v51 = vld [vmem:[%s12550_s7 + $0x38] sm:$0xff]  ;;  %v5777_v25 = vadd.f32 %v16651_v30, %v5518_v50  ;;  %v6503_v3 = vadd.f32 %v6491_v13, %v6377_v16 }
 0x2e7   : > { %v6379_v54 = vld [vmem:[%s12550_s7 + $0x28] sm:$0xff]  ;;  %v6361_v12 = vadd.f32 %v15417_v32, %v6195_v51 }
 0x2e8   : > { %v6505_v62 = vadd.f32 %v6493_v2, %v6379_v54  ;;  %v6376_v45 = vld [vmem:[%s12550_s7 + $0x8] sm:$0xff]  ;;  %5789 = vst.msk [vmem:[%s12550_s7 + $0x58] sm:$0xff] %vm195_vm0, %v5777_v25  ;;  %6512 = vst.msk [vmem:[%s12550_s7 + $0x10] sm:$0xff] %vm195_vm0, %v6503_v3  ;;  %v6497_v20 = vpop.permute.xlu1 %6496 }
 0x2e9   : > { %v6502_v21 = vadd.f32 %v6491_v13, %v6376_v45  ;;  %6369 = vst.msk [vmem:[%s12550_s7 + $0x38] sm:$0xff] %vm1868_vm8, %v6361_v12 }
 0x2ea   : > { %6514 = vst.msk [vmem:[%s12550_s7 + $0x28] sm:$0xff] %vm195_vm0, %v6505_v62  ;;  %v6495_v8 = vpop.permute.xlu0 %6494  ;;  %v6197_v32 = vld [vmem:[%s12550_s7 + $0x50] sm:$0xff] }
 0x2eb   : > { %6511 = vst.msk [vmem:[%s12550_s7 + $0x8] sm:$0xff] %vm6510_vm12, %v6502_v21  ;;  %v6381_v40 = vld [vmem:[%s12550_s7 + $0x40] sm:$0xff]  ;;  %v6363_v36 = vadd.f32 %v15462_v39, %v6197_v32 }
 0x2ec   : > { %v6378_v11 = vld [vmem:[%s12550_s7 + $0x20] sm:$0xff]  ;;  %v6507_v18 = vadd.f32 %v6495_v8, %v6381_v40 }
 0x2ed   : > { %v6504_v26 = vadd.f32 %v6493_v2, %v6378_v11  ;;  %6371 = vst.msk [vmem:[%s12550_s7 + $0x50] sm:$0xff] %vm1868_vm8, %v6363_v36  ;;  %v6656_v10 = vpop.permute.xlu1 %6655 }
 0x2ee   : > { %6516 = vst.msk [vmem:[%s12550_s7 + $0x40] sm:$0xff] %vm195_vm0, %v6507_v18  ;;  %v6654_v52 = vpop.permute.xlu0 %6653 }
 0x2ef   : > { %6513 = vst.msk [vmem:[%s12550_s7 + $0x20] sm:$0xff] %vm6510_vm12, %v6504_v26  ;;  %v6383_v19 = vld [vmem:[%s12550_s7 + $0x58] sm:$0xff]  ;;  %v6524_v57 = vld [vmem:[%s12550_s7 + $0x10] sm:$0xff] }
 0x2f0   : > { %v6380_v59 = vld [vmem:[%s12550_s7 + $0x38] sm:$0xff]  ;;  %v6509_v39 = vadd.f32 %v6497_v20, %v6383_v19  ;;  %v6666_v22 = vadd.f32 %v6654_v52, %v6524_v57 }
 0x2f1   : > { %v6506_v37 = vadd.f32 %v6495_v8, %v6380_v59  ;;  %v6526_v33 = vld [vmem:[%s12550_s7 + $0x28] sm:$0xff]  ;;  %v6660_v31 = vpop.permute.xlu1 %6659  ;;  %v16652_v26 = vld [vmem:[#allocation36_spill] sm:$0xff] }
 0x2f2   : > { %6518 = vst.msk [vmem:[%s12550_s7 + $0x58] sm:$0xff] %vm195_vm0, %v6509_v39  ;;  %v6668_v41 = vadd.f32 %v6656_v10, %v6526_v33  ;;  %v6523_v35 = vld [vmem:[%s12550_s7 + $0x8] sm:$0xff]  ;;  %6674 = vst.msk [vmem:[%s12550_s7 + $0x10] sm:$0xff] %vm195_vm0, %v6666_v22 }
 0x2f3   : > { %6515 = vst.msk [vmem:[%s12550_s7 + $0x38] sm:$0xff] %vm6510_vm12, %v6506_v37  ;;  %v6665_v56 = vadd.f32 %v6654_v52, %v6523_v35  ;;  %v6658_v7 = vpop.permute.xlu0 %6657  ;;  %v16653_v59 = vld [vmem:[#allocation42_spill] sm:$0xff] }
 0x2f4   : > { %v6382_v53 = vld [vmem:[%s12550_s7 + $0x50] sm:$0xff]  ;;  %6676 = vst.msk [vmem:[%s12550_s7 + $0x28] sm:$0xff] %vm195_vm0, %v6668_v41 }
 0x2f5   : > { %v6508_v14 = vadd.f32 %v6497_v20, %v6382_v53  ;;  %6673 = vst.msk [vmem:[%s12550_s7 + $0x8] sm:$0xff] %vm6510_vm12, %v6665_v56  ;;  %v6528_v44 = vld [vmem:[%s12550_s7 + $0x40] sm:$0xff] }
 0x2f6   : > { %v6525_v17 = vld [vmem:[%s12550_s7 + $0x20] sm:$0xff]  ;;  %v6670_v9 = vadd.f32 %v6658_v7, %v6528_v44 }
 0x2f7   : > { %6517 = vst.msk [vmem:[%s12550_s7 + $0x50] sm:$0xff] %vm6510_vm12, %v6508_v14  ;;  %v6667_v47 = vadd.f32 %v6656_v10, %v6525_v17  ;;  %v16118_v49 = vpop.f32.mrb[144].mxu1  ;;  %v16655_v17 = vld [vmem:[#allocation57_spill] sm:$0xff] }
 0x2f8   : > { %6678 = vst.msk [vmem:[%s12550_s7 + $0x40] sm:$0xff] %vm195_vm0, %v6670_v9  ;;  %v16122_v29 = vpop.f32.mrb[145].mxu1 }
 0x2f9   : > { %6675 = vst.msk [vmem:[%s12550_s7 + $0x20] sm:$0xff] %vm6510_vm12, %v6667_v47  ;;  %v6530_v1 = vld [vmem:[%s12550_s7 + $0x58] sm:$0xff]  ;;  %v6818_v34 = vpop.permute.xlu1 %6817  ;;  %v6686_v46 = vld [vmem:[%s12550_s7 + $0x10] sm:$0xff] }
 0x2fa   : > { %v6816_v58 = vpop.permute.xlu0 %6815  ;;  %v6527_v38 = vld [vmem:[%s12550_s7 + $0x38] sm:$0xff]  ;;  %v6672_v6 = vadd.f32 %v6660_v31, %v6530_v1 }
 0x2fb   : > { %v6669_v61 = vadd.f32 %v6658_v7, %v6527_v38  ;;  %v6688_v24 = vld [vmem:[%s12550_s7 + $0x28] sm:$0xff]  ;;  %v6828_v55 = vadd.f32 %v6816_v58, %v6686_v46 }
 0x2fc   : > { %v7540_v5 = vpop.f32.mrb[144].mxu0  ;;  %v16130_v27 = vpop.f32.mrb[146].mxu1  ;;  %6680 = vst.msk [vmem:[%s12550_s7 + $0x58] sm:$0xff] %vm195_vm0, %v6672_v6  ;;  %v6830_v28 = vadd.f32 %v6818_v34, %v6688_v24  ;;  %v6685_v0 = vld [vmem:[%s12550_s7 + $0x8] sm:$0xff] }
 0x2fd   : > { %v7648_v48 = vadd.f32 %v7540_v5, %v16018_v43  ;;  %v16136_v23 = vpop.f32.mrb[145].mxu0  ;;  %6677 = vst.msk [vmem:[%s12550_s7 + $0x38] sm:$0xff] %vm6510_vm12, %v6669_v61  ;;  %v6827_v42 = vadd.f32 %v6816_v58, %v6685_v0  ;;  %v16142_v50 = vpop.f32.mrb[147].mxu1  ;;  %v16657_v6 = vld [vmem:[#allocation34_spill] sm:$0xff] }
 0x2fe   : > { %6836 = vst.msk [vmem:[%s12550_s7 + $0x10] sm:$0xff] %vm195_vm0, %v6828_v55  ;;  %v6820_v2 = vpop.permute.xlu0 %6819  ;;  %v6529_v13 = vld [vmem:[%s12550_s7 + $0x50] sm:$0xff]  ;;  %6838 = vst.msk [vmem:[%s12550_s7 + $0x28] sm:$0xff] %vm195_vm0, %v6830_v28  ;;  %v6822_v62 = vpop.permute.xlu1 %6821  ;;  %v16658_v24 = vld [vmem:[#allocation46_spill] sm:$0xff] }
 0x2ff   : > { %7660 = vst [vmem:[%s12550_s7] sm:$0xff] %v7648_v48  ;;  %v6671_v43 = vadd.f32 %v6660_v31, %v6529_v13  ;;  %6835 = vst.msk [vmem:[%s12550_s7 + $0x8] sm:$0xff] %vm6510_vm12, %v6827_v42  ;;  %v6690_v16 = vld [vmem:[%s12550_s7 + $0x40] sm:$0xff]  ;;  %v16660_v13 = vld [vmem:[#allocation51_spill] sm:$0xff] }
 0x300   : > { %v7546_v51 = vpop.f32.mrb[146].mxu0  ;;  %v6687_v30 = vld [vmem:[%s12550_s7 + $0x20] sm:$0xff]  ;;  %v6832_v25 = vadd.f32 %v6820_v2, %v6690_v16 }
 0x301   : > { %v7651_v54 = vadd.f32 %v7546_v51, %v16043_v15  ;;  %v16153_v3 = vpop.f32.mrb[147].mxu0  ;;  %6679 = vst.msk [vmem:[%s12550_s7 + $0x50] sm:$0xff] %vm6510_vm12, %v6671_v43  ;;  %v6829_v12 = vadd.f32 %v6818_v34, %v6687_v30 }
 0x302   : > { %6840 = vst.msk [vmem:[%s12550_s7 + $0x40] sm:$0xff] %vm195_vm0, %v6832_v25  ;;  %v16661_v25 = vld [vmem:[#allocation41_spill] sm:$0xff] }
 0x303   : > { %7663 = vst [vmem:[%s12550_s7 + $0x18] sm:$0xff] %v7651_v54  ;;  %6837 = vst.msk [vmem:[%s12550_s7 + $0x20] sm:$0xff] %vm6510_vm12, %v6829_v12  ;;  %v6692_v45 = vld [vmem:[%s12550_s7 + $0x58] sm:$0xff]  ;;  %v10696_v32 = vpop.f32.mrb[148].mxu1 }
 0x304   : > { %v7552_v21 = vpop.f32.mrb[148].mxu0  ;;  %v6689_v20 = vld [vmem:[%s12550_s7 + $0x38] sm:$0xff]  ;;  %v6834_v8 = vadd.f32 %v6822_v62, %v6692_v45  ;;  %v7820_v10 = vadd.f32 %v10696_v32, %v7651_v54  ;;  %v7800_v52 = vpop.f32.mrb[149].mxu1  ;;  %v16663_v32 = vld [vmem:[#allocation45_spill] sm:$0xff] }
 0x305   : > { %v6857_v15 = vld [vmem:[%s12550_s7 + $0x10] sm:$0xff]  ;;  %v7654_v40 = vadd.f32 %v7552_v21, %v16058_v4  ;;  %v16166_v36 = vpop.f32.mrb[149].mxu0  ;;  %v6831_v11 = vadd.f32 %v6820_v2, %v6689_v20  ;;  %v6860_v18 = vld [vmem:[%s12550_s7 + $0x28] sm:$0xff]  ;;  %v7819_v37 = vadd.f32 %v7800_v52, %v7648_v48  ;;  %v16654_v4 = vld [vmem:[#allocation33_spill] sm:$0xff] }
 0x306   : > { %v7060_v19 = vadd.f32 %v16652_v26, %v6857_v15  ;;  %6842 = vst.msk [vmem:[%s12550_s7 + $0x58] sm:$0xff] %vm195_vm0, %v6834_v8  ;;  %v7063_v39 = vadd.f32 %v16653_v59, %v6860_v18  ;;  %v6856_v57 = vld [vmem:[%s12550_s7 + $0x8] sm:$0xff] }
 0x307   : > { %7666 = vst [vmem:[%s12550_s7 + $0x30] sm:$0xff] %v7654_v40  ;;  %6839 = vst.msk [vmem:[%s12550_s7 + $0x38] sm:$0xff] %vm6510_vm12, %v6831_v11  ;;  %v7059_v33 = vadd.f32 %v16654_v4, %v6856_v57  ;;  %v10699_v14 = vpop.f32.mrb[150].mxu1 }
 0x308   : > { %7072 = vst.msk [vmem:[%s12550_s7 + $0x10] sm:$0xff] %vm195_vm0, %v7060_v19  ;;  %v7558_v22 = vpop.f32.mrb[150].mxu0  ;;  %v6691_v41 = vld [vmem:[%s12550_s7 + $0x50] sm:$0xff]  ;;  %7075 = vst.msk [vmem:[%s12550_s7 + $0x28] sm:$0xff] %vm195_vm0, %v7063_v39  ;;  %v7810_v47 = vpop.f32.mrb[151].mxu1  ;;  %v16664_v19 = vld [vmem:[#allocation44_spill] sm:$0xff] }
 0x309   : > { %7825 = vst.msk [vmem:[%s12550_s7 + $0x18] sm:$0xff] %vm7823_vm13, %v7820_v10  ;;  %7824 = vst.msk [vmem:[%s12550_s7] sm:$0xff] %vm7823_vm13, %v7819_v37  ;;  %v7657_v35 = vadd.f32 %v7558_v22, %v16073_v63  ;;  %v7560_v56 = vpop.f32.mrb[151].mxu0  ;;  %v6833_v7 = vadd.f32 %v6822_v62, %v6691_v41  ;;  %v6863_v31 = vld [vmem:[%s12550_s7 + $0x40] sm:$0xff]  ;;  %v7354_v53 = vadd.f32 %v15705_v60, %v7059_v33  ;;  %v16656_v63 = vld [vmem:[#allocation55_spill] sm:$0xff] }
 0x30a   : > { %v6859_v44 = vld [vmem:[%s12550_s7 + $0x20] sm:$0xff]  ;;  %v7066_v9 = vadd.f32 %v16655_v17, %v6863_v31  ;;  %v7821_v38 = vadd.f32 %v7810_v47, %v7654_v40  ;;  %v16662_v62 = vld [vmem:[#allocation40_spill] sm:$0xff] }
 0x30b   : > { %7669 = vst [vmem:[%s12550_s7 + $0x48] sm:$0xff] %v7657_v35  ;;  %v7822_v1 = vadd.f32 %v10699_v14, %v7657_v35  ;;  %6841 = vst.msk [vmem:[%s12550_s7 + $0x50] sm:$0xff] %vm6510_vm12, %v6833_v7  ;;  %v7062_v34 = vadd.f32 %v16656_v63, %v6859_v44  ;;  %v7649_v58 = vadd.f32 %v16136_v23, %v7354_v53  ;;  %v16659_v23 = vld [vmem:[#allocation37_spill] sm:$0xff]  ;;  %v16666_v7 = vld [vmem:[#allocation38_spill] sm:$0xff] }
 0x30c   : > { %7078 = vst.msk [vmem:[%s12550_s7 + $0x40] sm:$0xff] %vm195_vm0, %v7066_v9  ;;  %v10710_v61 = vpop.f32.mrb[152].mxu0  ;;  %v16665_v39 = vld [vmem:[#allocation49_spill] sm:$0xff] }
 0x30d   : > { %7827 = vst.msk [vmem:[%s12550_s7 + $0x48] sm:$0xff] %vm7823_vm13, %v7822_v1  ;;  %v6866_v60 = vld [vmem:[%s12550_s7 + $0x58] sm:$0xff]  ;;  %v7357_v46 = vadd.f32 %v16657_v6, %v7062_v34  ;;  %7826 = vst.msk [vmem:[%s12550_s7 + $0x30] sm:$0xff] %vm7823_vm13, %v7821_v38  ;;  %v7956_v48 = vpop.f32.mrb[153].mxu0 }
 0x30e   : > { %v7069_v55 = vadd.f32 %v16658_v24, %v6866_v60  ;;  %v6862_v5 = vld [vmem:[%s12550_s7 + $0x38] sm:$0xff] }
 0x30f   : > { %v7096_v28 = vld [vmem:[%s12550_s7 + $0x10] sm:$0xff]  ;;  %v7065_v42 = vadd.f32 %v16659_v23, %v6862_v5  ;;  %v7099_v2 = vld [vmem:[%s12550_s7 + $0x28] sm:$0xff]  ;;  %v7652_v16 = vadd.f32 %v16153_v3, %v7357_v46 }
 0x310   : > { %v7837_v0 = vld [vmem:[%s12550_s7 + $0x18] sm:$0xff]  ;;  %v7355_v43 = vadd.f32 %v16660_v13, %v7096_v28  ;;  %v7836_v30 = vld [vmem:[%s12550_s7] sm:$0xff]  ;;  %7081 = vst.msk [vmem:[%s12550_s7 + $0x58] sm:$0xff] %vm195_vm0, %v7069_v55  ;;  %v7358_v54 = vadd.f32 %v16661_v25, %v7099_v2  ;;  %v10724_v21 = vpop.f32.mrb[152].mxu1  ;;  %v10713_v20 = vpop.f32.mrb[154].mxu0 }
 0x311   : > { %v7976_v51 = vadd.f32 %v10710_v61, %v7837_v0  ;;  %v7975_v12 = vadd.f32 %v7956_v48, %v7836_v30  ;;  %v7360_v45 = vadd.f32 %v16662_v62, %v7065_v42  ;;  %v8111_v8 = vpop.f32.mrb[153].mxu1  ;;  %v7966_v15 = vpop.f32.mrb[155].mxu0 }
 0x312   : > { %7367 = vst.msk [vmem:[%s12550_s7 + $0x10] sm:$0xff] %vm195_vm0, %v7355_v43  ;;  %v6865_v3 = vld [vmem:[%s12550_s7 + $0x50] sm:$0xff]  ;;  %7370 = vst.msk [vmem:[%s12550_s7 + $0x28] sm:$0xff] %vm195_vm0, %v7358_v54 }
 0x313   : > { %7980 = vst.msk [vmem:[%s12550_s7 + $0x18] sm:$0xff] %vm7823_vm13, %v7976_v51  ;;  %7979 = vst.msk [vmem:[%s12550_s7] sm:$0xff] %vm7823_vm13, %v7975_v12  ;;  %v7068_v40 = vadd.f32 %v16663_v32, %v6865_v3  ;;  %v7102_v11 = vld [vmem:[%s12550_s7 + $0x40] sm:$0xff]  ;;  %v7655_v18 = vadd.f32 %v16166_v36, %v7360_v45 }
 0x314   : > { %v7839_v26 = vld [vmem:[%s12550_s7 + $0x48] sm:$0xff]  ;;  %v7361_v10 = vadd.f32 %v16664_v19, %v7102_v11  ;;  %v7838_v59 = vld [vmem:[%s12550_s7 + $0x30] sm:$0xff] }
 0x315   : > { %v7978_v52 = vadd.f32 %v10713_v20, %v7839_v26  ;;  %v7363_v57 = vadd.f32 %v16665_v39, %v7068_v40  ;;  %v7977_v37 = vadd.f32 %v7966_v15, %v7838_v59  ;;  %v10727_v4 = vpop.f32.mrb[154].mxu1  ;;  %v8245_v33 = vpop.f32.mrb[156].mxu0 }
 0x316   : > { %7373 = vst.msk [vmem:[%s12550_s7 + $0x40] sm:$0xff] %vm195_vm0, %v7361_v10  ;;  %v8121_v41 = vpop.f32.mrb[155].mxu1  ;;  %v8247_v35 = vpop.f32.mrb[157].mxu0 }
 0x317   : > { %7982 = vst.msk [vmem:[%s12550_s7 + $0x48] sm:$0xff] %vm7823_vm13, %v7978_v52  ;;  %v7105_v36 = vld [vmem:[%s12550_s7 + $0x58] sm:$0xff]  ;;  %v7658_v22 = vadd.f32 %v7560_v56, %v7363_v57  ;;  %7981 = vst.msk [vmem:[%s12550_s7 + $0x30] sm:$0xff] %vm7823_vm13, %v7977_v37  ;;  %v8354_v14 = vadd.f32 %v8247_v35, %v7649_v58 }
 0x318   : > { %v7364_v31 = vadd.f32 %v16666_v7, %v7105_v36 }
 0x319   : > { %v7391_v53 = vld [vmem:[%s12550_s7 + $0x10] sm:$0xff]  ;;  %v7394_v17 = vld [vmem:[%s12550_s7 + $0x28] sm:$0xff]  ;;  %v10738_v63 = vpop.f32.mrb[156].mxu1 }
 0x31a   : > { %v7992_v44 = vld [vmem:[%s12550_s7 + $0x18] sm:$0xff]  ;;  %v7650_v9 = vadd.f32 %v16122_v29, %v7391_v53  ;;  %v7991_v56 = vld [vmem:[%s12550_s7] sm:$0xff]  ;;  %7376 = vst.msk [vmem:[%s12550_s7 + $0x58] sm:$0xff] %vm195_vm0, %v7364_v31  ;;  %v7653_v1 = vadd.f32 %v16118_v49, %v7394_v17  ;;  %v8334_v38 = vpop.f32.mrb[157].mxu1 }
 0x31b   : > { %v8131_v47 = vadd.f32 %v10724_v21, %v7992_v44  ;;  %v8130_v34 = vadd.f32 %v8111_v8, %v7991_v56 }
 0x31c   : > { %7662 = vst.msk [vmem:[%s12550_s7 + $0x10] sm:$0xff] %vm195_vm0, %v7650_v9  ;;  %7665 = vst.msk [vmem:[%s12550_s7 + $0x28] sm:$0xff] %vm195_vm0, %v7653_v1 }
 0x31d   : > { %8135 = vst.msk [vmem:[%s12550_s7 + $0x18] sm:$0xff] %vm7823_vm13, %v8131_v47  ;;  %8134 = vst.msk [vmem:[%s12550_s7] sm:$0xff] %vm7823_vm13, %v8130_v34  ;;  %v7397_v29 = vld [vmem:[%s12550_s7 + $0x40] sm:$0xff]  ;;  %v8251_v60 = vpop.f32.mrb[158].mxu0 }
 0x31e   : > { %v7994_v58 = vld [vmem:[%s12550_s7 + $0x48] sm:$0xff]  ;;  %v7656_v49 = vadd.f32 %v16142_v50, %v7397_v29  ;;  %v7993_v6 = vld [vmem:[%s12550_s7 + $0x30] sm:$0xff]  ;;  %v8253_v61 = vpop.f32.mrb[159].mxu0 }
 0x31f   : > { %v8133_v46 = vadd.f32 %v10727_v4, %v7994_v58  ;;  %v8132_v24 = vadd.f32 %v8121_v41, %v7993_v6  ;;  %v10741_v55 = vpop.f32.mrb[158].mxu1  ;;  %v8357_v5 = vadd.f32 %v8253_v61, %v7652_v16 }
 0x320   : > { %7668 = vst.msk [vmem:[%s12550_s7 + $0x40] sm:$0xff] %vm195_vm0, %v7656_v49  ;;  %v8344_v0 = vpop.f32.mrb[159].mxu1 }
 0x321   : > { %8137 = vst.msk [vmem:[%s12550_s7 + $0x48] sm:$0xff] %vm7823_vm13, %v8133_v46  ;;  %v7400_v28 = vld [vmem:[%s12550_s7 + $0x58] sm:$0xff]  ;;  %8136 = vst.msk [vmem:[%s12550_s7 + $0x30] sm:$0xff] %vm7823_vm13, %v8132_v24  ;;  %v8257_v23 = vpop.f32.mrb[160].mxu0 }
 0x322   : > { %v7659_v50 = vadd.f32 %v16130_v27, %v7400_v28  ;;  %v8259_v43 = vpop.f32.mrb[161].mxu0 }
 0x323   : > { %v8152_v48 = vld [vmem:[%s12550_s7 + $0x10] sm:$0xff]  ;;  %v8155_v42 = vld [vmem:[%s12550_s7 + $0x28] sm:$0xff]  ;;  %v8360_v25 = vadd.f32 %v8259_v43, %v7655_v18  ;;  %v8540_v54 = vpop.f32.mrb[160].mxu1 }
 0x324   : > { %v8355_v2 = vadd.f32 %v8334_v38, %v8152_v48  ;;  %v8150_v13 = vld [vmem:[%s12550_s7] sm:$0xff]  ;;  %7671 = vst.msk [vmem:[%s12550_s7 + $0x58] sm:$0xff] %vm195_vm0, %v7659_v50  ;;  %v8358_v16 = vadd.f32 %v10738_v63, %v8155_v42  ;;  %v8153_v30 = vld [vmem:[%s12550_s7 + $0x18] sm:$0xff]  ;;  %v8542_v12 = vpop.f32.mrb[161].mxu1 }
 0x325   : > { %v8353_v51 = vadd.f32 %v8245_v33, %v8150_v13  ;;  %v8263_v27 = vpop.f32.mrb[162].mxu0  ;;  %v8649_v45 = vadd.f32 %v8542_v12, %v8354_v14  ;;  %v8356_v21 = vadd.f32 %v8251_v60, %v8153_v30 }
 0x326   : > { %8367 = vst.msk [vmem:[%s12550_s7 + $0x10] sm:$0xff] %vm195_vm0, %v8355_v2  ;;  %8370 = vst.msk [vmem:[%s12550_s7 + $0x28] sm:$0xff] %vm195_vm0, %v8358_v16  ;;  %v8265_v3 = vpop.f32.mrb[163].mxu0 }
 0x327   : > { %v8648_v62 = vadd.f32 %v8540_v54, %v8353_v51  ;;  %v8158_v20 = vld [vmem:[%s12550_s7 + $0x40] sm:$0xff]  ;;  %v8363_v32 = vadd.f32 %v8265_v3, %v7658_v22  ;;  %v8546_v40 = vpop.f32.mrb[162].mxu1 }
 0x328   : > { %v8361_v8 = vadd.f32 %v8344_v0, %v8158_v20  ;;  %v8156_v15 = vld [vmem:[%s12550_s7 + $0x30] sm:$0xff]  ;;  %v8651_v18 = vadd.f32 %v8546_v40, %v8356_v21  ;;  %v8548_v26 = vpop.f32.mrb[163].mxu1  ;;  %v8159_v57 = vld [vmem:[%s12550_s7 + $0x48] sm:$0xff] }
 0x329   : > { %v8359_v11 = vadd.f32 %v8257_v23, %v8156_v15  ;;  %v10752_v19 = vpop.f32.mrb[164].mxu0  ;;  %v8652_v10 = vadd.f32 %v8548_v26, %v8357_v5  ;;  %v8362_v53 = vadd.f32 %v8263_v27, %v8159_v57 }
 0x32a   : > { %8373 = vst.msk [vmem:[%s12550_s7 + $0x40] sm:$0xff] %vm195_vm0, %v8361_v8  ;;  %v8629_v59 = vpop.f32.mrb[165].mxu0 }
 0x32b   : > { %v8161_v52 = vld [vmem:[%s12550_s7 + $0x58] sm:$0xff]  ;;  %v8552_v4 = vpop.f32.mrb[164].mxu1 }
 0x32c   : > { %v8364_v39 = vadd.f32 %v10741_v55, %v8161_v52  ;;  %v8654_v22 = vadd.f32 %v8552_v4, %v8359_v11  ;;  %v8554_v41 = vpop.f32.mrb[165].mxu1 }
 0x32d   : > { %v8391_v37 = vld [vmem:[%s12550_s7 + $0x10] sm:$0xff]  ;;  %v8394_v33 = vld [vmem:[%s12550_s7 + $0x28] sm:$0xff]  ;;  %v10755_v7 = vpop.f32.mrb[166].mxu0  ;;  %v8655_v31 = vadd.f32 %v8554_v41, %v8360_v25 }
 0x32e   : > { %v8650_v36 = vadd.f32 %v8629_v59, %v8391_v37  ;;  %8376 = vst.msk [vmem:[%s12550_s7 + $0x58] sm:$0xff] %vm195_vm0, %v8364_v39  ;;  %v8653_v35 = vadd.f32 %v10752_v19, %v8394_v33  ;;  %v8639_v14 = vpop.f32.mrb[167].mxu0 }
 0x32f   : > { %v8558_v44 = vpop.f32.mrb[166].mxu1 }
 0x330   : > { %8662 = vst.msk [vmem:[%s12550_s7 + $0x10] sm:$0xff] %vm195_vm0, %v8650_v36  ;;  %8665 = vst.msk [vmem:[%s12550_s7 + $0x28] sm:$0xff] %vm195_vm0, %v8653_v35  ;;  %v8657_v9 = vadd.f32 %v8558_v44, %v8362_v53  ;;  %v8560_v56 = vpop.f32.mrb[167].mxu1 }
 0x331   : > { %v8397_v17 = vld [vmem:[%s12550_s7 + $0x40] sm:$0xff]  ;;  %v8658_v1 = vadd.f32 %v8560_v56, %v8363_v32 }
 0x332   : > { %v8656_v47 = vadd.f32 %v8639_v14, %v8397_v17 }
 0x334   : > { %8668 = vst.msk [vmem:[%s12550_s7 + $0x40] sm:$0xff] %vm195_vm0, %v8656_v47 }
 0x335   : > { %v8400_v63 = vld [vmem:[%s12550_s7 + $0x58] sm:$0xff] }
 0x336   : > { %v8659_v34 = vadd.f32 %v10755_v7, %v8400_v63 }
 0x337   : > { %v8689_v38 = vld [vmem:[%s12550_s7 + $0x28] sm:$0xff]  ;;  %v8686_v49 = vld [vmem:[%s12550_s7 + $0x10] sm:$0xff] }
 0x338   : > { %8671 = vst.msk [vmem:[%s12550_s7 + $0x58] sm:$0xff] %vm195_vm0, %v8659_v34 }
 0x33b   : > { %v8692_v50 = vld [vmem:[%s12550_s7 + $0x40] sm:$0xff] }
 0x33f   : > { %v8695_v5 = vld [vmem:[%s12550_s7 + $0x58] sm:$0xff] }
 0x357   : > { %v10766_v29 = vpop.f32.mrb[168].mxu1 }
 0x358   : > { %v8948_v58 = vadd.f32 %v10766_v29, %v8689_v38  ;;  %v8924_v60 = vpop.f32.mrb[169].mxu1 }
 0x359   : > { %v8835_v6 = vpop.f32.mrb[168].mxu0  ;;  %v8945_v46 = vadd.f32 %v8924_v60, %v8686_v49 }
 0x35a   : > { %8960 = vst.msk [vmem:[%s12550_s7 + $0x28] sm:$0xff] %vm195_vm0, %v8948_v58  ;;  %v8943_v61 = vadd.f32 %v8835_v6, %v8648_v62  ;;  %v8837_v24 = vpop.f32.mrb[169].mxu0 }
 0x35b   : > { %8957 = vst.msk [vmem:[%s12550_s7 + $0x10] sm:$0xff] %vm195_vm0, %v8945_v46  ;;  %v8944_v55 = vadd.f32 %v8837_v24, %v8649_v45  ;;  %v10769_v28 = vpop.f32.mrb[170].mxu1 }
 0x35c   : > { %v8954_v0 = vadd.f32 %v10769_v28, %v8695_v5  ;;  %v8934_v48 = vpop.f32.mrb[171].mxu1 }
 0x35d   : > { %v8951_v23 = vadd.f32 %v8934_v48, %v8692_v50  ;;  %v8841_v42 = vpop.f32.mrb[170].mxu0 }
 0x35e   : > { %8966 = vst.msk [vmem:[%s12550_s7 + $0x58] sm:$0xff] %vm195_vm0, %v8954_v0  ;;  %v8946_v2 = vadd.f32 %v8841_v42, %v8651_v18  ;;  %v8843_v13 = vpop.f32.mrb[171].mxu0 }
 0x35f   : > { %8963 = vst.msk [vmem:[%s12550_s7 + $0x40] sm:$0xff] %vm195_vm0, %v8951_v23  ;;  %v8947_v43 = vadd.f32 %v8843_v13, %v8652_v10 }
 0x360   : > { %v9074_v16 = vpop.f32.mrb[172].mxu1 }
 0x361   : > { %v9182_v51 = vadd.f32 %v9074_v16, %v8943_v61  ;;  %v9076_v30 = vpop.f32.mrb[173].mxu1  ;;  %v8847_v25 = vpop.f32.mrb[172].mxu0  ;;  %v8984_v19 = vld [vmem:[%s12550_s7 + $0x28] sm:$0xff] }
 0x362   : > { %v9183_v54 = vadd.f32 %v9076_v30, %v8944_v55  ;;  %v8949_v12 = vadd.f32 %v8847_v25, %v8654_v22  ;;  %v8849_v27 = vpop.f32.mrb[173].mxu0  ;;  %v8981_v39 = vld [vmem:[%s12550_s7 + $0x10] sm:$0xff] }
 0x363   : > { %v8950_v62 = vadd.f32 %v8849_v27, %v8655_v31 }
 0x364   : > { %v9080_v45 = vpop.f32.mrb[174].mxu1 }
 0x365   : > { %v9185_v21 = vadd.f32 %v9080_v45, %v8946_v2  ;;  %v9082_v20 = vpop.f32.mrb[175].mxu1  ;;  %v8990_v22 = vld [vmem:[%s12550_s7 + $0x58] sm:$0xff] }
 0x366   : > { %v8853_v3 = vpop.f32.mrb[174].mxu0  ;;  %v9186_v8 = vadd.f32 %v9082_v20, %v8947_v43  ;;  %v8987_v31 = vld [vmem:[%s12550_s7 + $0x40] sm:$0xff] }
 0x367   : > { %v8952_v15 = vadd.f32 %v8853_v3, %v8657_v9  ;;  %v8855_v32 = vpop.f32.mrb[175].mxu0 }
 0x368   : > { %v8953_v40 = vadd.f32 %v8855_v32, %v8658_v1  ;;  %v9086_v11 = vpop.f32.mrb[176].mxu1 }
 0x369   : > { %v9188_v18 = vadd.f32 %v9086_v11, %v8949_v12  ;;  %v9088_v26 = vpop.f32.mrb[177].mxu1 }
 0x36a   : > { %v10780_v10 = vpop.f32.mrb[176].mxu0  ;;  %v9189_v52 = vadd.f32 %v9088_v26, %v8950_v62 }
 0x36b   : > { %v9187_v59 = vadd.f32 %v10780_v10, %v8984_v19  ;;  %v9163_v57 = vpop.f32.mrb[177].mxu0 }
 0x36c   : > { %v9184_v37 = vadd.f32 %v9163_v57, %v8981_v39  ;;  %v9092_v4 = vpop.f32.mrb[178].mxu1 }
 0x36d   : > { %9199 = vst.msk [vmem:[%s12550_s7 + $0x28] sm:$0xff] %vm195_vm0, %v9187_v59  ;;  %v9191_v33 = vadd.f32 %v9092_v4, %v8952_v15  ;;  %v9094_v36 = vpop.f32.mrb[179].mxu1 }
 0x36e   : > { %9196 = vst.msk [vmem:[%s12550_s7 + $0x10] sm:$0xff] %vm195_vm0, %v9184_v37  ;;  %v10783_v41 = vpop.f32.mrb[178].mxu0  ;;  %v9192_v35 = vadd.f32 %v9094_v36, %v8953_v40 }
 0x36f   : > { %v9193_v7 = vadd.f32 %v10783_v41, %v8990_v22  ;;  %v9173_v53 = vpop.f32.mrb[179].mxu0 }
 0x370   : > { %v9190_v14 = vadd.f32 %v9173_v53, %v8987_v31  ;;  %v10794_v44 = vpop.f32.mrb[180].mxu1 }
 0x371   : > { %9205 = vst.msk [vmem:[%s12550_s7 + $0x58] sm:$0xff] %vm195_vm0, %v9193_v7  ;;  %v9458_v17 = vpop.f32.mrb[181].mxu1 }
 0x372   : > { %9202 = vst.msk [vmem:[%s12550_s7 + $0x40] sm:$0xff] %vm195_vm0, %v9190_v14 }
 0x373   : > { %v9369_v9 = vpop.f32.mrb[180].mxu0 }
 0x374   : > { %v9477_v56 = vadd.f32 %v9369_v9, %v9182_v51  ;;  %v9371_v47 = vpop.f32.mrb[181].mxu0  ;;  %v9223_v63 = vld [vmem:[%s12550_s7 + $0x28] sm:$0xff] }
 0x375   : > { %v9478_v1 = vadd.f32 %v9371_v47, %v9183_v54  ;;  %v10797_v34 = vpop.f32.mrb[182].mxu1  ;;  %v9482_v38 = vadd.f32 %v10794_v44, %v9223_v63  ;;  %v9220_v29 = vld [vmem:[%s12550_s7 + $0x10] sm:$0xff] }
 0x376   : > { %v9468_v58 = vpop.f32.mrb[183].mxu1  ;;  %v9479_v49 = vadd.f32 %v9458_v17, %v9220_v29 }
 0x377   : > { %v9375_v60 = vpop.f32.mrb[182].mxu0  ;;  %9494 = vst.msk [vmem:[%s12550_s7 + $0x28] sm:$0xff] %vm195_vm0, %v9482_v38 }
 0x378   : > { %v9480_v6 = vadd.f32 %v9375_v60, %v9185_v21  ;;  %v9377_v46 = vpop.f32.mrb[183].mxu0  ;;  %9491 = vst.msk [vmem:[%s12550_s7 + $0x10] sm:$0xff] %vm195_vm0, %v9479_v49  ;;  %v9229_v24 = vld [vmem:[%s12550_s7 + $0x58] sm:$0xff] }
 0x379   : > { %v9481_v61 = vadd.f32 %v9377_v46, %v9186_v8  ;;  %v9664_v55 = vpop.f32.mrb[184].mxu1  ;;  %v9488_v5 = vadd.f32 %v10797_v34, %v9229_v24  ;;  %v9226_v28 = vld [vmem:[%s12550_s7 + $0x40] sm:$0xff] }
 0x37a   : > { %v9772_v0 = vadd.f32 %v9664_v55, %v9477_v56  ;;  %v9666_v50 = vpop.f32.mrb[185].mxu1  ;;  %v9485_v48 = vadd.f32 %v9468_v58, %v9226_v28 }
 0x37b   : > { %v9381_v23 = vpop.f32.mrb[184].mxu0  ;;  %v9773_v42 = vadd.f32 %v9666_v50, %v9478_v1  ;;  %9500 = vst.msk [vmem:[%s12550_s7 + $0x58] sm:$0xff] %vm195_vm0, %v9488_v5 }
 0x37c   : > { %v9483_v2 = vadd.f32 %v9381_v23, %v9188_v18  ;;  %v9383_v13 = vpop.f32.mrb[185].mxu0  ;;  %9784 = vst [vmem:[%s12550_s7] sm:$0xff] %v9772_v0  ;;  %9497 = vst.msk [vmem:[%s12550_s7 + $0x40] sm:$0xff] %vm195_vm0, %v9485_v48 }
 0x37d   : > { %v9484_v43 = vadd.f32 %v9383_v13, %v9189_v52  ;;  %9785 = vst [vmem:[%s12550_s7 + $0x8] sm:$0xff] %v9773_v42  ;;  %v9670_v16 = vpop.f32.mrb[186].mxu1 }
 0x37e   : > { %v9775_v51 = vadd.f32 %v9670_v16, %v9480_v6  ;;  %v9672_v30 = vpop.f32.mrb[187].mxu1  ;;  %v9518_v3 = vld [vmem:[%s12550_s7 + $0x28] sm:$0xff] }
 0x37f   : > { %v9387_v25 = vpop.f32.mrb[186].mxu0  ;;  %v9776_v54 = vadd.f32 %v9672_v30, %v9481_v61  ;;  %v9515_v40 = vld [vmem:[%s12550_s7 + $0x10] sm:$0xff] }
 0x380   : > { %v9486_v12 = vadd.f32 %v9387_v25, %v9191_v33  ;;  %v9389_v27 = vpop.f32.mrb[187].mxu0  ;;  %9787 = vst [vmem:[%s12550_s7 + $0x18] sm:$0xff] %v9775_v51 }
 0x381   : > { %v9487_v62 = vadd.f32 %v9389_v27, %v9192_v35  ;;  %9788 = vst [vmem:[%s12550_s7 + $0x20] sm:$0xff] %v9776_v54  ;;  %v9676_v45 = vpop.f32.mrb[188].mxu1 }
 0x382   : > { %v9778_v21 = vadd.f32 %v9676_v45, %v9483_v2  ;;  %v9678_v20 = vpop.f32.mrb[189].mxu1  ;;  %v9524_v52 = vld [vmem:[%s12550_s7 + $0x58] sm:$0xff] }
 0x383   : > { %v10808_v8 = vpop.f32.mrb[188].mxu0  ;;  %v9779_v15 = vadd.f32 %v9678_v20, %v9484_v43  ;;  %v9521_v37 = vld [vmem:[%s12550_s7 + $0x40] sm:$0xff] }
 0x384   : > { %v9777_v32 = vadd.f32 %v10808_v8, %v9518_v3  ;;  %v9753_v11 = vpop.f32.mrb[189].mxu0  ;;  %9790 = vst [vmem:[%s12550_s7 + $0x30] sm:$0xff] %v9778_v21 }
 0x385   : > { %v9774_v18 = vadd.f32 %v9753_v11, %v9515_v40  ;;  %9791 = vst [vmem:[%s12550_s7 + $0x38] sm:$0xff] %v9779_v15  ;;  %v9682_v26 = vpop.f32.mrb[190].mxu1 }
 0x386   : > { %9789 = vst.msk [vmem:[%s12550_s7 + $0x28] sm:$0xff] %vm195_vm0, %v9777_v32  ;;  %v9781_v19 = vadd.f32 %v9682_v26, %v9486_v12  ;;  %v9684_v10 = vpop.f32.mrb[191].mxu1 }
 0x387   : > { %9786 = vst.msk [vmem:[%s12550_s7 + $0x10] sm:$0xff] %vm195_vm0, %v9774_v18  ;;  %v10811_v59 = vpop.f32.mrb[190].mxu0  ;;  %v9782_v39 = vadd.f32 %v9684_v10, %v9487_v62 }
 0x388   : > { %v9783_v57 = vadd.f32 %v10811_v59, %v9524_v52  ;;  %v9763_v4 = vpop.f32.mrb[191].mxu0  ;;  %9793 = vst [vmem:[%s12550_s7 + $0x48] sm:$0xff] %v9781_v19 }
 0x389   : > { %v9780_v33 = vadd.f32 %v9763_v4, %v9521_v37  ;;  %9794 = vst [vmem:[%s12550_s7 + $0x50] sm:$0xff] %v9782_v39 }
 0x38a   : > { %9795 = vst.msk [vmem:[%s12550_s7 + $0x58] sm:$0xff] %vm195_vm0, %v9783_v57 }
 0x38b   : > { %9792 = vst.msk [vmem:[%s12550_s7 + $0x40] sm:$0xff] %vm195_vm0, %v9780_v33 }
 0x38c   : > { %12196 = shalt.err (!%p12193_p3)
}
 0x38d   : > { %s12197_s5 = scalar_lea.hbm %s16356_s4, 1536  ;;  %s12201_s20 = scalar_lea.hbm %s16411_s3, 3072 }
 0x38e   : > { %p12198_p4 = scmp.ne.s32.totalorder %s16356_s4, %s12197_s5  ;;  %p12202_p9 = scmp.lt.u32.totalorder %s16356_s4, %s16411_s3 }
 0x38f   : > { %p12203_p10 = scmp.lt.u32.totalorder %s12201_s20, %s12197_s5  ;;  %p12205_p12 = scmp.lt.u32.totalorder %s12197_s5, %s16356_s4 }
 0x390   : > { %p12199_p7 = pnand %p12198_p4, %p12320_p5 }
 0x391   : > { %p12204_p11 = por %p12203_p10, %p12202_p9 }
 0x392   : > { %p12200_p8 = pneg %p12199_p7 }
 0x393   : > { %p12206_p13 = por %p12205_p12, %p12204_p11 }
 0x395   : > { %p12207_p0 = pnand %p12206_p13, %p12200_p8 }
 0x397   : > { %12210 = shalt.err (!%p12207_p0)
}
 0x398   : > { %s12260_s19 = smov 384   ;;  %s12261_s29 = smov 24  }
 0x399   : > { %11295 = dma.vmem_to_hbm [thread:$0]  (%p12320_p5), %s16359_s28, 1536, %s16356_s4, %s16367_s6, %s12260_s19, %s12260_s19, %s12261_s29  }
 0x39a PF: > { %p11301_p1 = scmp.ge.s32.totalorder %s12245_s15, 2  ;;  %s9825_s25 = sand.u32 1, %s12233_s12  }
 0x39b   : > { %s9826_s26 = scalar_lea.sflag [#allocation3], %s9825_s25 }
 0x39c   : > { %p11298_p2 = pnand %p11301_p1, %p12324_p6 }
 0x39e   : > { %12228 = dma.done.wait (!%p11298_p2), %s9826_s26, 1536  }
 0x39f   : > { %12230 = vsyncadd (!%p11298_p2), %s9826_s26, 4294965760  ;;  %p13_p3 = scmp.ge.s32.totalorder %s12307_s18, 4   ;;  %s16667_s12 = smov %s12237_s13 }
 0x3a0   : > { %s16668_s13 = smov %s12241_s14  ;;  %s16669_s14 = smov %s12318_s21 }
 0x3a1   : > { %s16670_s15 = smov %s12307_s18  ;;  %15 = sbr.rel (!%p13_p3) target bundleno = 3 (0x3), region = 108 }
 0x3a8   :  { %9831 = vsyncpa [#allocation3], 1 }
 0x3a9   :  { %9833 = vsyncpa [#allocation3 + $0x1], 1 }

</bundles_post_ra>
